<compile_context>
chip_gen: v7x
topology: tpu7x:2x2x1
jax: 0.10.0
libtpu: 0.0.40
codegen_flags: <defaults>
</compile_context>

<pallas_src>
import functools

import jax
import jax.numpy as jnp
from jax.experimental import pallas as pl
from jax.experimental.pallas import tpu as pltpu

_EPS = 1e-5
_LANE = 128
_VMEM_LIMIT = 48 * 1024 * 1024   # explicit scoped-VMEM cap, fits every generation


def _ru(x, m):
    return ((x + m - 1) // m) * m


def _pick_tn(cpad):
    """Cout tile: 256 feeds the full v6e/v7x MXU width when it divides cpad."""
    return 256 if cpad % 256 == 0 else _LANE


# ---------------------------------------------------------------- Pallas kernels
def _conv3x3_kernel(x_ref, w_ref, b_ref, m_ref, y_ref, ssum_ref, ssq_ref, acc_ref,
                    *, mrows, taps):
    """Direct 3x3 conv (stride 1) on one image + bias + fused per-channel stats.

    x_ref   : (rpad, Cin)  f32   flattened, spatially padded image (+ slack rows)
    w_ref   : (9, Cin, TN) bf16  per-tap weight matrices
    b_ref   : (1, TN)      f32   bias
    m_ref   : (mrows, 1)   f32   1.0 for valid flat rows (col < Wo), else 0.0
    y_ref   : (mrows, TN)  f32   conv output (lane-dense, over-computed cols kept)
    ssum/ssq: (1, TN)      f32   per-channel sum / sum-of-squares, resident
                                 accumulators across the image grid axis
    acc_ref : (mrows, TN)  f32   VMEM accumulator scratch
    """
    img = pl.program_id(1)

    acc_ref[...] = jnp.zeros_like(acc_ref)
    for t, off in enumerate(taps):              # statically unrolled: 9 MXU matmuls
        a = x_ref[off:off + mrows, :].astype(jnp.bfloat16)
        acc_ref[...] += jnp.dot(a, w_ref[t], preferred_element_type=jnp.float32)

    out = acc_ref[...] + b_ref[...]
    y_ref[...] = out

    @pl.when(img == 0)
    def _init_stats():
        ssum_ref[...] = jnp.zeros_like(ssum_ref)
        ssq_ref[...] = jnp.zeros_like(ssq_ref)

    valid = out * m_ref[...]
    ssum_ref[...] += jnp.sum(valid, axis=0, keepdims=True)
    ssq_ref[...] += jnp.sum(valid * out, axis=0, keepdims=True)


def _matmul_bias_stats_kernel(a_ref, w_ref, b_ref, m_ref, y_ref, ssum_ref, ssq_ref,
                              acc_ref):
    """Tiled matmul (bf16 x bf16 -> f32 acc) + bias + fused per-channel stats."""
    i = pl.program_id(1)
    k = pl.program_id(2)

    @pl.when(k == 0)
    def _zero_acc():
        acc_ref[...] = jnp.zeros_like(acc_ref)

    acc_ref[...] += jnp.dot(a_ref[...], w_ref[...],
                            preferred_element_type=jnp.float32)

    @pl.when(jnp.logical_and(i == 0, k == 0))
    def _zero_stats():
        ssum_ref[...] = jnp.zeros_like(ssum_ref)
        ssq_ref[...] = jnp.zeros_like(ssq_ref)

    @pl.when(k == pl.num_programs(2) - 1)
    def _finalize():
        out = acc_ref[...] + b_ref[...]
        y_ref[...] = out
        valid = out * m_ref[...]
        ssum_ref[...] += jnp.sum(valid, axis=0, keepdims=True)
        ssq_ref[...] += jnp.sum(valid * out, axis=0, keepdims=True)


def _colstats_kernel(x_ref, m_ref, ssum_ref, ssq_ref):
    @pl.when(pl.program_id(0) == 0)
    def _init():
        ssum_ref[...] = jnp.zeros_like(ssum_ref)
        ssq_ref[...] = jnp.zeros_like(ssq_ref)

    x = x_ref[...]
    valid = x * m_ref[...]
    ssum_ref[...] += jnp.sum(valid, axis=0, keepdims=True)
    ssq_ref[...] += jnp.sum(valid * x, axis=0, keepdims=True)


def _bn_apply_relu_mask_kernel(x_ref, sc_ref, sh_ref, m_ref, o_ref):
    # masked output (zeros in invalid columns) so the result can be chained
    # straight into the next conv's padded flat layout.
    o_ref[...] = jnp.maximum(x_ref[...] * sc_ref[...] + sh_ref[...], 0.0) * m_ref[...]


def _bn2_bn3_add_relu_kernel(y_ref, r_ref, s2_ref, t2_ref, s3_ref, t3_ref, o_ref):
    out = (y_ref[...] * s2_ref[...] + t2_ref[...]
           + r_ref[...] * s3_ref[...] + t3_ref[...])
    o_ref[...] = jnp.maximum(out, 0.0)


# ---------------------------------------------------------------- pallas_call wrappers
def _compiler_params(dims):
    return pltpu.CompilerParams(dimension_semantics=dims,
                                vmem_limit_bytes=_VMEM_LIMIT)


def _conv3x3_pallas(xf, w9, bias, mask, *, mrows, taps):
    n, rpad, cin = xf.shape
    cpad = w9.shape[-1]
    tn = _pick_tn(cpad)
    kernel = functools.partial(_conv3x3_kernel, mrows=mrows, taps=taps)
    return pl.pallas_call(
        kernel,
        grid=(cpad // tn, n),                       # (cout tiles, images)
        in_specs=[
            pl.BlockSpec((None, rpad, cin), lambda j, i: (i, 0, 0)),
            pl.BlockSpec((9, cin, tn), lambda j, i: (0, 0, j)),
            pl.BlockSpec((1, tn), lambda j, i: (0, j)),
            pl.BlockSpec((mrows, 1), lambda j, i: (0, 0)),
        ],
        out_specs=[
            pl.BlockSpec((None, mrows, tn), lambda j, i: (i, 0, j)),
            pl.BlockSpec((1, tn), lambda j, i: (0, j)),
            pl.BlockSpec((1, tn), lambda j, i: (0, j)),
        ],
        out_shape=[
            jax.ShapeDtypeStruct((n, mrows, cpad), jnp.float32),
            jax.ShapeDtypeStruct((1, cpad), jnp.float32),
            jax.ShapeDtypeStruct((1, cpad), jnp.float32),
        ],
        scratch_shapes=[pltpu.VMEM((mrows, tn), jnp.float32)],
        compiler_params=_compiler_params(("parallel", "arbitrary")),
    )(xf, w9, bias, mask)


def matmul_bias_stats(a, w, bias, mask, *, tm=256, tk_max=512):
    """a:[M,K] bf16, w:[K,Cp] bf16, bias:[1,Cp] f32, mask:[M,1] f32 (0 rows are
    excluded from the stats).  Returns y:[Mpad,Cp] f32 and (1,Cp) sum / sumsq."""
    m, k = a.shape
    cpad = w.shape[1]
    tm = min(tm, _ru(m, 8))
    tk = k if k <= tk_max else tk_max
    mpad, kpad = _ru(m, tm), _ru(k, tk)
    if (mpad, kpad) != (m, k):
        a = jnp.pad(a, ((0, mpad - m), (0, kpad - k)))
        mask = jnp.pad(mask, ((0, mpad - m), (0, 0)))
        w = jnp.pad(w, ((0, kpad - k), (0, 0)))
    tn = _pick_tn(cpad)
    return pl.pallas_call(
        _matmul_bias_stats_kernel,
        grid=(cpad // tn, mpad // tm, kpad // tk),
        in_specs=[
            pl.BlockSpec((tm, tk), lambda j, i, k_: (i, k_)),
            pl.BlockSpec((tk, tn), lambda j, i, k_: (k_, j)),
            pl.BlockSpec((1, tn), lambda j, i, k_: (0, j)),
            pl.BlockSpec((tm, 1), lambda j, i, k_: (i, 0)),
        ],
        out_specs=[
            pl.BlockSpec((tm, tn), lambda j, i, k_: (i, j)),
            pl.BlockSpec((1, tn), lambda j, i, k_: (0, j)),
            pl.BlockSpec((1, tn), lambda j, i, k_: (0, j)),
        ],
        out_shape=[
            jax.ShapeDtypeStruct((mpad, cpad), jnp.float32),
            jax.ShapeDtypeStruct((1, cpad), jnp.float32),
            jax.ShapeDtypeStruct((1, cpad), jnp.float32),
        ],
        scratch_shapes=[pltpu.VMEM((tm, tn), jnp.float32)],
        compiler_params=_compiler_params(("parallel", "arbitrary", "arbitrary")),
    )(a, w, bias, mask)


def column_stats(x, mask, *, tm=256):
    m, cpad = x.shape
    tm = min(tm, _ru(m, 8))
    mpad = _ru(m, tm)
    if mpad != m:
        x = jnp.pad(x, ((0, mpad - m), (0, 0)))
        mask = jnp.pad(mask, ((0, mpad - m), (0, 0)))
    return pl.pallas_call(
        _colstats_kernel,
        grid=(mpad // tm,),
        in_specs=[pl.BlockSpec((tm, cpad), lambda i: (i, 0)),
                  pl.BlockSpec((tm, 1), lambda i: (i, 0))],
        out_specs=[pl.BlockSpec((1, cpad), lambda i: (0, 0)),
                   pl.BlockSpec((1, cpad), lambda i: (0, 0))],
        out_shape=[jax.ShapeDtypeStruct((1, cpad), jnp.float32),
                   jax.ShapeDtypeStruct((1, cpad), jnp.float32)],
        compiler_params=_compiler_params(("arbitrary",)),
    )(x, mask)


def bn_apply_relu(x, scale, shift, mask, *, tm=256):
    """y = relu(x * scale + shift) * mask, tiled elementwise (lane-dense)."""
    m, cpad = x.shape
    tm = min(tm, _ru(m, 8))
    mpad = _ru(m, tm)
    if mpad != m:
        x = jnp.pad(x, ((0, mpad - m), (0, 0)))
        mask = jnp.pad(mask, ((0, mpad - m), (0, 0)))
    y = pl.pallas_call(
        _bn_apply_relu_mask_kernel,
        grid=(mpad // tm,),
        in_specs=[pl.BlockSpec((tm, cpad), lambda i: (i, 0)),
                  pl.BlockSpec((1, cpad), lambda i: (0, 0)),
                  pl.BlockSpec((1, cpad), lambda i: (0, 0)),
                  pl.BlockSpec((tm, 1), lambda i: (i, 0))],
        out_specs=pl.BlockSpec((tm, cpad), lambda i: (i, 0)),
        out_shape=jax.ShapeDtypeStruct((mpad, cpad), jnp.float32),
        compiler_params=_compiler_params(("parallel",)),
    )(x, scale, shift, mask)
    return y[:m]


def bn2_bn3_add_relu(y, r, sc2, sh2, sc3, sh3, *, tm=256):
    m, cpad = y.shape
    tm = min(tm, _ru(m, 8))
    mpad = _ru(m, tm)
    if mpad != m:
        y = jnp.pad(y, ((0, mpad - m), (0, 0)))
        r = jnp.pad(r, ((0, mpad - m), (0, 0)))
    out = pl.pallas_call(
        _bn2_bn3_add_relu_kernel,
        grid=(mpad // tm,),
        in_specs=[pl.BlockSpec((tm, cpad), lambda i: (i, 0)),
                  pl.BlockSpec((tm, cpad), lambda i: (i, 0)),
                  pl.BlockSpec((1, cpad), lambda i: (0, 0)),
                  pl.BlockSpec((1, cpad), lambda i: (0, 0)),
                  pl.BlockSpec((1, cpad), lambda i: (0, 0)),
                  pl.BlockSpec((1, cpad), lambda i: (0, 0))],
        out_specs=pl.BlockSpec((tm, cpad), lambda i: (i, 0)),
        out_shape=jax.ShapeDtypeStruct((mpad, cpad), jnp.float32),
        compiler_params=_compiler_params(("parallel",)),
    )(y, r, sc2, sh2, sc3, sh3)
    return out[:m]


# ---------------------------------------------------------------- host-side glue
def _prep_w3x3(w_oihw, cin_target, cpad):
    cout, cin, kh, kw = w_oihw.shape
    wm = jnp.transpose(w_oihw, (2, 3, 1, 0)).reshape(kh * kw, cin, cout)
    wm = jnp.pad(wm, ((0, 0), (0, cin_target - cin), (0, cpad - cout)))
    return wm.astype(jnp.bfloat16)


def _prep_w_matrix(w_oihw, cpad):
    cout, cin, kh, kw = w_oihw.shape
    wm = jnp.transpose(w_oihw, (2, 3, 1, 0)).reshape(kh * kw * cin, cout)
    return jnp.pad(wm, ((0, 0), (0, cpad - cout))).astype(jnp.bfloat16)


def _pad_lane(v, cpad):
    return jnp.pad(v, (0, cpad - v.shape[0])).astype(jnp.float32).reshape(1, cpad)


def _valid_col_mask(n_rows, wp, wo):
    col = jax.lax.broadcasted_iota(jnp.int32, (n_rows, 1), 0) % wp
    return (col < wo).astype(jnp.float32)


def _bn_scale_shift(ssum, ssq, gamma, beta, count, cpad):
    g = _pad_lane(gamma, cpad)
    b = _pad_lane(beta, cpad)
    mean = ssum / count
    var = ssq / count - mean * mean            # biased variance (train-mode BN)
    scale = g * jax.lax.rsqrt(var + _EPS)
    shift = b - mean * scale
    return scale, shift


def _conv_dims(ho, wo):
    hp, wp = ho + 2, wo + 2
    mrows = ho * wp
    rpad = _ru(hp * wp + 2, 16)       # + slack so every shifted window is in-bounds
    return hp, wp, mrows, rpad


def _flat_input_from_nhwc(x_nhwc):
    """NHWC -> per-image flattened, spatially padded f32 buffer (n, rpad, cin)."""
    n, h, w, cin = x_nhwc.shape
    hp, wp, _, rpad = _conv_dims(h, w)
    xp = jnp.pad(x_nhwc.astype(jnp.float32), ((0, 0), (1, 1), (1, 1), (0, 0)))
    xf = xp.reshape(n, hp * wp, cin)
    xf = jnp.pad(xf, ((0, 0), (0, rpad - hp * wp), (0, 0)))
    return xf, (h, w)


def _flat_input_from_masked_flat(yflat_masked, n, ho, wo, cpad):
    """Chain a masked flat conv output (zeros in the 2 over-computed columns of
    each row group) directly into the next conv's padded flat layout.

    With Wp == Wo + 2, the spatially padded flat image equals the masked flat
    buffer placed at row offset (Wp + 1) inside an all-zero (rpad,) buffer, so
    the whole spatial re-pad is one jnp.pad (verified index-by-index)."""
    hp, wp, mrows, rpad = _conv_dims(ho, wo)
    y = yflat_masked.reshape(n, mrows, cpad)
    xf = jnp.pad(y, ((0, 0), (wp + 1, rpad - (wp + 1) - mrows), (0, 0)))
    return xf, (ho, wo)


def conv3x3_bn_stats(xf, hw, w_oihw, bias, cpad):
    """3x3 conv, stride 1, padding 1, on a prepared flat input buffer.
    Returns (y_flat [N*Ho*Wp, Cp] f32, sum, sumsq, (ho, wo, wp)).  Wp = Wo + 2:
    flat columns >= Wo are over-computed don't-care values; the per-channel
    stats already exclude them."""
    n, rpad, cin = xf.shape
    ho, wo = hw
    _, wp, mrows, rpad_chk = _conv_dims(ho, wo)
    assert rpad == rpad_chk, (rpad, rpad_chk)

    w9 = _prep_w3x3(w_oihw, cin, cpad)
    b = _pad_lane(bias, cpad)
    mask = _valid_col_mask(mrows, wp, wo)
    taps = tuple(dy * wp + dx for dy in range(3) for dx in range(3))

    y, ssum, ssq = _conv3x3_pallas(xf, w9, b, mask, mrows=mrows, taps=taps)
    return y.reshape(n * mrows, cpad), ssum, ssq, (ho, wo, wp)


def _im2col(x_nhwc, k, stride, pad):            # only used for the stride != 1 path
    n, h, w, c = x_nhwc.shape
    xp = jnp.pad(x_nhwc, ((0, 0), (pad, pad), (pad, pad), (0, 0)))
    ho = (h + 2 * pad - k) // stride + 1
    wo = (w + 2 * pad - k) // stride + 1
    patches = []
    for i in range(k):
        for j in range(k):
            patches.append(
                xp[:, i:i + stride * ho:stride, j:j + stride * wo:stride, :])
    p = jnp.stack(patches, axis=3)               # [N, Ho, Wo, k*k, C]
    return p.reshape(n * ho * wo, k * k * c), ho, wo


def init_resblock_params(key, in_channels, out_channels):
    ks = jax.random.split(key, 6)
    s3 = 1.0 / jnp.sqrt(in_channels * 9.0)
    s3b = 1.0 / jnp.sqrt(out_channels * 9.0)
    s1 = 1.0 / jnp.sqrt(float(in_channels))
    return {
        "w1": jax.random.normal(ks[0], (out_channels, in_channels, 3, 3), jnp.float32) * s3,
        "b1": jax.random.normal(ks[1], (out_channels,), jnp.float32) * s3,
        "w2": jax.random.normal(ks[2], (out_channels, out_channels, 3, 3), jnp.float32) * s3b,
        "b2": jax.random.normal(ks[3], (out_channels,), jnp.float32) * s3b,
        "w1x1": jax.random.normal(ks[4], (out_channels, in_channels, 1, 1), jnp.float32) * s1,
        "b1x1": jax.random.normal(ks[5], (out_channels,), jnp.float32) * s1,
        "g1": jnp.ones((out_channels,), jnp.float32),
        "be1": jnp.zeros((out_channels,), jnp.float32),
        "g2": jnp.ones((out_channels,), jnp.float32),
        "be2": jnp.zeros((out_channels,), jnp.float32),
        "g3": jnp.ones((out_channels,), jnp.float32),
        "be3": jnp.zeros((out_channels,), jnp.float32),
    }


def res_block_forward(x_nchw, params, *, in_channels, out_channels, stride=1):
    residual_conv = not (in_channels == out_channels and stride == 1)
    n, cin, h, w = x_nchw.shape
    assert cin == in_channels
    cout = out_channels
    cpad = _ru(cout, _LANE)                     # lane-dense channel padding

    x = jnp.transpose(x_nchw, (0, 2, 3, 1)).astype(jnp.float32)      # NHWC

    # ---- conv1 (3x3, stride, pad 1): bias + fused BN1 batch statistics --------
    if stride == 1:
        xf1, hw1 = _flat_input_from_nhwc(x)
        y1f, s1, q1, (ho, wo, wp1) = conv3x3_bn_stats(
            xf1, hw1, params["w1"], params["b1"], cpad)
    else:
        # TODO(synk): strided shifted windows inside the direct conv kernel; for
        # stride != 1 fall back to host im2col feeding the tiled matmul kernel.
        a1, ho, wo = _im2col(x, 3, stride, 1)
        m1_rows = n * ho * wo
        y1p, s1, q1 = matmul_bias_stats(
            a1.astype(jnp.bfloat16), _prep_w_matrix(params["w1"], cpad),
            _pad_lane(params["b1"], cpad), jnp.ones((m1_rows, 1), jnp.float32))
        y1f, wp1 = y1p[:m1_rows], wo

    count = float(n * ho * wo)
    sc1, sh1 = _bn_scale_shift(s1, q1, params["g1"], params["be1"], count, cpad)

    # ---- BN1 normalize + ReLU (two-pass BN, tiled elementwise, masked) ---------
    m1 = y1f.shape[0]
    mask1 = _valid_col_mask(m1, wp1, wo)        # all-ones when wp1 == wo
    y1n = bn_apply_relu(y1f, sc1, sh1, mask1)   # zeros in over-computed columns

    # ---- conv2 (3x3, stride 1, pad 1): bias + fused BN2 statistics -------------
    if stride == 1:
        # zero-copy-ish hand-off: masked flat output -> padded flat conv2 input
        xf2, hw2 = _flat_input_from_masked_flat(y1n, n, ho, wo, cpad)
    else:
        xf2, hw2 = _flat_input_from_nhwc(y1n.reshape(n, ho, wo, cpad))
    y2f, s2, q2, (_, _, wp2) = conv3x3_bn_stats(xf2, hw2, params["w2"],
                                                params["b2"], cpad)
    m_out = n * ho * wp2
    mask2 = _valid_col_mask(m_out, wp2, wo)

    # ---- residual branch + BN3 statistics --------------------------------------
    if residual_conv:
        xs = x[:, ::stride, ::stride, :]                    # 1x1 conv with stride
        xs = jnp.pad(xs, ((0, 0), (0, 0), (0, wp2 - wo), (0, 0)))
        w1x1 = jnp.pad(params["w1x1"].reshape(cout, cin).T,
                       ((0, 0), (0, cpad - cout))).astype(jnp.bfloat16)
        rp, s3, q3 = matmul_bias_stats(
            xs.reshape(m_out, cin).astype(jnp.bfloat16), w1x1,
            _pad_lane(params["b1x1"], cpad), mask2)
        r = rp[:m_out]
    else:
        # identity residual (cin == cout, stride == 1) laid out like conv2 output
        xs = jnp.pad(x, ((0, 0), (0, 0), (0, wp2 - wo), (0, cpad - cin)))
        r = xs.reshape(m_out, cpad)
        s3, q3 = column_stats(r, mask2)

    sc2, sh2 = _bn_scale_shift(s2, q2, params["g2"], params["be2"], count, cpad)
    sc3, sh3 = _bn_scale_shift(s3, q3, params["g3"], params["be3"], count, cpad)

    # ---- fused BN2 + BN3 + add + ReLU epilogue (tiled, elementwise) -------------
    out = bn2_bn3_add_relu(y2f, r, sc2, sh2, sc3, sh3)      # [m_out, cpad]
    out = out.reshape(n, ho, wp2, cpad)[:, :, :wo, :cout]
    return jnp.transpose(out, (0, 3, 1, 2))                 # back to NCHW


# ---------------------------------------------------------------- pure-JAX reference
def _bn2d_ref(x_nchw, g, b):
    mean = jnp.mean(x_nchw, axis=(0, 2, 3), keepdims=True)
    var = jnp.mean(jnp.square(x_nchw), axis=(0, 2, 3), keepdims=True) - jnp.square(mean)
    return ((x_nchw - mean) * jax.lax.rsqrt(var + _EPS)
            * g.reshape(1, -1, 1, 1) + b.reshape(1, -1, 1, 1))


def res_block_reference(x, params, *, in_channels, out_channels, stride=1):
    residual_conv = not (in_channels == out_channels and stride == 1)
    dn = ("NCHW", "OIHW", "NCHW")
    hi = jax.lax.Precision.HIGHEST
    y = jax.lax.conv_general_dilated(x, params["w1"], (stride, stride),
                                     ((1, 1), (1, 1)), dimension_numbers=dn,
                                     precision=hi) + params["b1"].reshape(1, -1, 1, 1)
    y = jnp.maximum(_bn2d_ref(y, params["g1"], params["be1"]), 0.0)
    y = jax.lax.conv_general_dilated(y, params["w2"], (1, 1),
                                     ((1, 1), (1, 1)), dimension_numbers=dn,
                                     precision=hi) + params["b2"].reshape(1, -1, 1, 1)
    y = _bn2d_ref(y, params["g2"], params["be2"])
    r = x
    if residual_conv:
        r = jax.lax.conv_general_dilated(x, params["w1x1"], (stride, stride),
                                         ((0, 0), (0, 0)), dimension_numbers=dn,
                                         precision=hi) + params["b1x1"].reshape(1, -1, 1, 1)
    r = _bn2d_ref(r, params["g3"], params["be3"])
    return jnp.maximum(y + r, 0.0)


# ---------------------------------------------------------------- main
if __name__ == "__main__":
    key = jax.random.PRNGKey(0)
    k_x, k_p = jax.random.split(key)

    N, C_IN, C_OUT, H, W, STRIDE = 2, 4, 8, 16, 16, 1       # residual_conv=True path
    x = jax.random.normal(k_x, (N, C_IN, H, W), jnp.float32)
    params = init_resblock_params(k_p, C_IN, C_OUT)

    fwd = jax.jit(functools.partial(
        res_block_forward, in_channels=C_IN, out_channels=C_OUT, stride=STRIDE))
    out = jax.block_until_ready(fwd(x, params))

    assert out.shape == (N, C_OUT, H, W), out.shape
    assert bool(jnp.all(jnp.isfinite(out)))
    assert bool(jnp.all(out >= 0.0))                        # post-ReLU

    ref = jax.block_until_ready(res_block_reference(
        x, params, in_channels=C_IN, out_channels=C_OUT, stride=STRIDE))
    max_err = float(jnp.max(jnp.abs(out - ref)))
    assert max_err < 3e-1, max_err                          # bf16-MXU tolerance

    print("KERNEL_OK")
</pallas_src>

<mosaic_0001>
module attributes {stable_mosaic.version = 11 : i64} {
  func.func @_conv3x3_kernel(%arg0: i32, %arg1: i32, %arg2: memref<1x336x4xf32, #tpu.memory_space<vmem>>, %arg3: memref<9x4x128xbf16, #tpu.memory_space<vmem>>, %arg4: memref<1x128xf32, #tpu.memory_space<vmem>>, %arg5: memref<288x1xf32, #tpu.memory_space<vmem>>, %arg6: memref<1x288x128xf32, #tpu.memory_space<vmem>>, %arg7: memref<1x128xf32, #tpu.memory_space<vmem>>, %arg8: memref<1x128xf32, #tpu.memory_space<vmem>>, %arg9: memref<288x128xf32, #tpu.memory_space<vmem>>) attributes {dimension_semantics = [#tpu.dimension_semantics<parallel>, #tpu.dimension_semantics<arbitrary>], iteration_bounds = array<i64: 1, 2>, scalar_prefetch = 0 : i64, scratch_operands = 1 : i64, tpu.core_type = #tpu.core_type<tc>, window_params = [{transform_indices = @transform_0, window_bounds = array<i64: 1, 336, 4>}, {transform_indices = @transform_1, window_bounds = array<i64: 9, 4, 128>}, {transform_indices = @transform_2, window_bounds = array<i64: 1, 128>}, {pipeline_mode = #tpu.pipeline_mode<synchronous>, transform_indices = @transform_3, window_bounds = array<i64: 288, 1>}, {transform_indices = @transform_4, window_bounds = array<i64: 1, 288, 128>}, {transform_indices = @transform_5, window_bounds = array<i64: 1, 128>}, {transform_indices = @transform_6, window_bounds = array<i64: 1, 128>}]} {
    %cst = arith.constant 0.000000e+00 : f32
    %0 = vector.broadcast %cst : f32 to vector<288x128xf32>
    %c0 = arith.constant 0 : index
    %c0_0 = arith.constant 0 : index
    %1 = vector.load %arg9[%c0, %c0_0] : memref<288x128xf32, #tpu.memory_space<vmem>>, vector<288x128xf32>
    tpu.vector_store %arg9[%c0, %c0_0], %0 {strides = array<i32>} : memref<288x128xf32, #tpu.memory_space<vmem>>, vector<288x128xf32>,
    %c0_1 = arith.constant 0 : index
    %c0_2 = arith.constant 0 : index
    %c0_3 = arith.constant 0 : index
    %2 = vector.load %arg2[%c0_1, %c0_2, %c0_3] : memref<1x336x4xf32, #tpu.memory_space<vmem>>, vector<1x288x4xf32>
    %3 = vector.shape_cast %2 : vector<1x288x4xf32> to vector<288x4xf32>
    %4 = arith.truncf %3 : vector<288x4xf32> to vector<288x4xbf16>
    %c0_4 = arith.constant 0 : index
    %c0_5 = arith.constant 0 : index
    %5 = vector.load %arg9[%c0_4, %c0_5] : memref<288x128xf32, #tpu.memory_space<vmem>>, vector<288x128xf32>
    %c0_6 = arith.constant 0 : index
    %c0_7 = arith.constant 0 : index
    %c0_8 = arith.constant 0 : index
    %6 = vector.load %arg3[%c0_6, %c0_7, %c0_8] : memref<9x4x128xbf16, #tpu.memory_space<vmem>>, vector<1x4x128xbf16>
    %7 = vector.shape_cast %6 : vector<1x4x128xbf16> to vector<4x128xbf16>
    %cst_9 = arith.constant dense<0.000000e+00> : vector<288x128xf32>
    %8 = tpu.matmul %4, %7, %cst_9 {dimension_numbers = #tpu.dot_dimension_numbers<[1], [0], [0], [1], [0, 0, 1, 1], [], []>} : vector<288x4xbf16>, vector<4x128xbf16>, vector<288x128xf32> -> vector<288x128xf32>
    %9 = arith.addf %5, %8 : vector<288x128xf32>
    %c0_10 = arith.constant 0 : index
    %c0_11 = arith.constant 0 : index
    %10 = vector.load %arg9[%c0_10, %c0_11] : memref<288x128xf32, #tpu.memory_space<vmem>>, vector<288x128xf32>
    tpu.vector_store %arg9[%c0_10, %c0_11], %9 {strides = array<i32>} : memref<288x128xf32, #tpu.memory_space<vmem>>, vector<288x128xf32>,
    %c0_12 = arith.constant 0 : index
    %c1 = arith.constant 1 : index
    %c0_13 = arith.constant 0 : index
    %11 = vector.load %arg2[%c0_12, %c1, %c0_13] : memref<1x336x4xf32, #tpu.memory_space<vmem>>, vector<1x288x4xf32>
    %12 = vector.shape_cast %11 : vector<1x288x4xf32> to vector<288x4xf32>
    %13 = arith.truncf %12 : vector<288x4xf32> to vector<288x4xbf16>
    %c0_14 = arith.constant 0 : index
    %c0_15 = arith.constant 0 : index
    %14 = vector.load %arg9[%c0_14, %c0_15] : memref<288x128xf32, #tpu.memory_space<vmem>>, vector<288x128xf32>
    %c1_16 = arith.constant 1 : index
    %c0_17 = arith.constant 0 : index
    %c0_18 = arith.constant 0 : index
    %15 = vector.load %arg3[%c1_16, %c0_17, %c0_18] : memref<9x4x128xbf16, #tpu.memory_space<vmem>>, vector<1x4x128xbf16>
    %16 = vector.shape_cast %15 : vector<1x4x128xbf16> to vector<4x128xbf16>
    %cst_19 = arith.constant dense<0.000000e+00> : vector<288x128xf32>
    %17 = tpu.matmul %13, %16, %cst_19 {dimension_numbers = #tpu.dot_dimension_numbers<[1], [0], [0], [1], [0, 0, 1, 1], [], []>} : vector<288x4xbf16>, vector<4x128xbf16>, vector<288x128xf32> -> vector<288x128xf32>
    %18 = arith.addf %14, %17 : vector<288x128xf32>
    %c0_20 = arith.constant 0 : index
    %c0_21 = arith.constant 0 : index
    %19 = vector.load %arg9[%c0_20, %c0_21] : memref<288x128xf32, #tpu.memory_space<vmem>>, vector<288x128xf32>
    tpu.vector_store %arg9[%c0_20, %c0_21], %18 {strides = array<i32>} : memref<288x128xf32, #tpu.memory_space<vmem>>, vector<288x128xf32>,
    %c0_22 = arith.constant 0 : index
    %c2 = arith.constant 2 : index
    %c0_23 = arith.constant 0 : index
    %20 = vector.load %arg2[%c0_22, %c2, %c0_23] : memref<1x336x4xf32, #tpu.memory_space<vmem>>, vector<1x288x4xf32>
    %21 = vector.shape_cast %20 : vector<1x288x4xf32> to vector<288x4xf32>
    %22 = arith.truncf %21 : vector<288x4xf32> to vector<288x4xbf16>
    %c0_24 = arith.constant 0 : index
    %c0_25 = arith.constant 0 : index
    %23 = vector.load %arg9[%c0_24, %c0_25] : memref<288x128xf32, #tpu.memory_space<vmem>>, vector<288x128xf32>
    %c2_26 = arith.constant 2 : index
    %c0_27 = arith.constant 0 : index
    %c0_28 = arith.constant 0 : index
    %24 = vector.load %arg3[%c2_26, %c0_27, %c0_28] : memref<9x4x128xbf16, #tpu.memory_space<vmem>>, vector<1x4x128xbf16>
    %25 = vector.shape_cast %24 : vector<1x4x128xbf16> to vector<4x128xbf16>
    %cst_29 = arith.constant dense<0.000000e+00> : vector<288x128xf32>
    %26 = tpu.matmul %22, %25, %cst_29 {dimension_numbers = #tpu.dot_dimension_numbers<[1], [0], [0], [1], [0, 0, 1, 1], [], []>} : vector<288x4xbf16>, vector<4x128xbf16>, vector<288x128xf32> -> vector<288x128xf32>
    %27 = arith.addf %23, %26 : vector<288x128xf32>
    %c0_30 = arith.constant 0 : index
    %c0_31 = arith.constant 0 : index
    %28 = vector.load %arg9[%c0_30, %c0_31] : memref<288x128xf32, #tpu.memory_space<vmem>>, vector<288x128xf32>
    tpu.vector_store %arg9[%c0_30, %c0_31], %27 {strides = array<i32>} : memref<288x128xf32, #tpu.memory_space<vmem>>, vector<288x128xf32>,
    %c0_32 = arith.constant 0 : index
    %c18 = arith.constant 18 : index
    %c0_33 = arith.constant 0 : index
    %29 = vector.load %arg2[%c0_32, %c18, %c0_33] : memref<1x336x4xf32, #tpu.memory_space<vmem>>, vector<1x288x4xf32>
    %30 = vector.shape_cast %29 : vector<1x288x4xf32> to vector<288x4xf32>
    %31 = arith.truncf %30 : vector<288x4xf32> to vector<288x4xbf16>
    %c0_34 = arith.constant 0 : index
    %c0_35 = arith.constant 0 : index
    %32 = vector.load %arg9[%c0_34, %c0_35] : memref<288x128xf32, #tpu.memory_space<vmem>>, vector<288x128xf32>
    %c3 = arith.constant 3 : index
    %c0_36 = arith.constant 0 : index
    %c0_37 = arith.constant 0 : index
    %33 = vector.load %arg3[%c3, %c0_36, %c0_37] : memref<9x4x128xbf16, #tpu.memory_space<vmem>>, vector<1x4x128xbf16>
    %34 = vector.shape_cast %33 : vector<1x4x128xbf16> to vector<4x128xbf16>
    %cst_38 = arith.constant dense<0.000000e+00> : vector<288x128xf32>
    %35 = tpu.matmul %31, %34, %cst_38 {dimension_numbers = #tpu.dot_dimension_numbers<[1], [0], [0], [1], [0, 0, 1, 1], [], []>} : vector<288x4xbf16>, vector<4x128xbf16>, vector<288x128xf32> -> vector<288x128xf32>
    %36 = arith.addf %32, %35 : vector<288x128xf32>
    %c0_39 = arith.constant 0 : index
    %c0_40 = arith.constant 0 : index
    %37 = vector.load %arg9[%c0_39, %c0_40] : memref<288x128xf32, #tpu.memory_space<vmem>>, vector<288x128xf32>
    tpu.vector_store %arg9[%c0_39, %c0_40], %36 {strides = array<i32>} : memref<288x128xf32, #tpu.memory_space<vmem>>, vector<288x128xf32>,
    %c0_41 = arith.constant 0 : index
    %c19 = arith.constant 19 : index
    %c0_42 = arith.constant 0 : index
    %38 = vector.load %arg2[%c0_41, %c19, %c0_42] : memref<1x336x4xf32, #tpu.memory_space<vmem>>, vector<1x288x4xf32>
    %39 = vector.shape_cast %38 : vector<1x288x4xf32> to vector<288x4xf32>
    %40 = arith.truncf %39 : vector<288x4xf32> to vector<288x4xbf16>
    %c0_43 = arith.constant 0 : index
    %c0_44 = arith.constant 0 : index
    %41 = vector.load %arg9[%c0_43, %c0_44] : memref<288x128xf32, #tpu.memory_space<vmem>>, vector<288x128xf32>
    %c4 = arith.constant 4 : index
    %c0_45 = arith.constant 0 : index
    %c0_46 = arith.constant 0 : index
    %42 = vector.load %arg3[%c4, %c0_45, %c0_46] : memref<9x4x128xbf16, #tpu.memory_space<vmem>>, vector<1x4x128xbf16>
    %43 = vector.shape_cast %42 : vector<1x4x128xbf16> to vector<4x128xbf16>
    %cst_47 = arith.constant dense<0.000000e+00> : vector<288x128xf32>
    %44 = tpu.matmul %40, %43, %cst_47 {dimension_numbers = #tpu.dot_dimension_numbers<[1], [0], [0], [1], [0, 0, 1, 1], [], []>} : vector<288x4xbf16>, vector<4x128xbf16>, vector<288x128xf32> -> vector<288x128xf32>
    %45 = arith.addf %41, %44 : vector<288x128xf32>
    %c0_48 = arith.constant 0 : index
    %c0_49 = arith.constant 0 : index
    %46 = vector.load %arg9[%c0_48, %c0_49] : memref<288x128xf32, #tpu.memory_space<vmem>>, vector<288x128xf32>
    tpu.vector_store %arg9[%c0_48, %c0_49], %45 {strides = array<i32>} : memref<288x128xf32, #tpu.memory_space<vmem>>, vector<288x128xf32>,
    %c0_50 = arith.constant 0 : index
    %c20 = arith.constant 20 : index
    %c0_51 = arith.constant 0 : index
    %47 = vector.load %arg2[%c0_50, %c20, %c0_51] : memref<1x336x4xf32, #tpu.memory_space<vmem>>, vector<1x288x4xf32>
    %48 = vector.shape_cast %47 : vector<1x288x4xf32> to vector<288x4xf32>
    %49 = arith.truncf %48 : vector<288x4xf32> to vector<288x4xbf16>
    %c0_52 = arith.constant 0 : index
    %c0_53 = arith.constant 0 : index
    %50 = vector.load %arg9[%c0_52, %c0_53] : memref<288x128xf32, #tpu.memory_space<vmem>>, vector<288x128xf32>
    %c5 = arith.constant 5 : index
    %c0_54 = arith.constant 0 : index
    %c0_55 = arith.constant 0 : index
    %51 = vector.load %arg3[%c5, %c0_54, %c0_55] : memref<9x4x128xbf16, #tpu.memory_space<vmem>>, vector<1x4x128xbf16>
    %52 = vector.shape_cast %51 : vector<1x4x128xbf16> to vector<4x128xbf16>
    %cst_56 = arith.constant dense<0.000000e+00> : vector<288x128xf32>
    %53 = tpu.matmul %49, %52, %cst_56 {dimension_numbers = #tpu.dot_dimension_numbers<[1], [0], [0], [1], [0, 0, 1, 1], [], []>} : vector<288x4xbf16>, vector<4x128xbf16>, vector<288x128xf32> -> vector<288x128xf32>
    %54 = arith.addf %50, %53 : vector<288x128xf32>
    %c0_57 = arith.constant 0 : index
    %c0_58 = arith.constant 0 : index
    %55 = vector.load %arg9[%c0_57, %c0_58] : memref<288x128xf32, #tpu.memory_space<vmem>>, vector<288x128xf32>
    tpu.vector_store %arg9[%c0_57, %c0_58], %54 {strides = array<i32>} : memref<288x128xf32, #tpu.memory_space<vmem>>, vector<288x128xf32>,
    %c0_59 = arith.constant 0 : index
    %c36 = arith.constant 36 : index
    %c0_60 = arith.constant 0 : index
    %56 = vector.load %arg2[%c0_59, %c36, %c0_60] : memref<1x336x4xf32, #tpu.memory_space<vmem>>, vector<1x288x4xf32>
    %57 = vector.shape_cast %56 : vector<1x288x4xf32> to vector<288x4xf32>
    %58 = arith.truncf %57 : vector<288x4xf32> to vector<288x4xbf16>
    %c0_61 = arith.constant 0 : index
    %c0_62 = arith.constant 0 : index
    %59 = vector.load %arg9[%c0_61, %c0_62] : memref<288x128xf32, #tpu.memory_space<vmem>>, vector<288x128xf32>
    %c6 = arith.constant 6 : index
    %c0_63 = arith.constant 0 : index
    %c0_64 = arith.constant 0 : index
    %60 = vector.load %arg3[%c6, %c0_63, %c0_64] : memref<9x4x128xbf16, #tpu.memory_space<vmem>>, vector<1x4x128xbf16>
    %61 = vector.shape_cast %60 : vector<1x4x128xbf16> to vector<4x128xbf16>
    %cst_65 = arith.constant dense<0.000000e+00> : vector<288x128xf32>
    %62 = tpu.matmul %58, %61, %cst_65 {dimension_numbers = #tpu.dot_dimension_numbers<[1], [0], [0], [1], [0, 0, 1, 1], [], []>} : vector<288x4xbf16>, vector<4x128xbf16>, vector<288x128xf32> -> vector<288x128xf32>
    %63 = arith.addf %59, %62 : vector<288x128xf32>
    %c0_66 = arith.constant 0 : index
    %c0_67 = arith.constant 0 : index
    %64 = vector.load %arg9[%c0_66, %c0_67] : memref<288x128xf32, #tpu.memory_space<vmem>>, vector<288x128xf32>
    tpu.vector_store %arg9[%c0_66, %c0_67], %63 {strides = array<i32>} : memref<288x128xf32, #tpu.memory_space<vmem>>, vector<288x128xf32>,
    %c0_68 = arith.constant 0 : index
    %c37 = arith.constant 37 : index
    %c0_69 = arith.constant 0 : index
    %65 = vector.load %arg2[%c0_68, %c37, %c0_69] : memref<1x336x4xf32, #tpu.memory_space<vmem>>, vector<1x288x4xf32>
    %66 = vector.shape_cast %65 : vector<1x288x4xf32> to vector<288x4xf32>
    %67 = arith.truncf %66 : vector<288x4xf32> to vector<288x4xbf16>
    %c0_70 = arith.constant 0 : index
    %c0_71 = arith.constant 0 : index
    %68 = vector.load %arg9[%c0_70, %c0_71] : memref<288x128xf32, #tpu.memory_space<vmem>>, vector<288x128xf32>
    %c7 = arith.constant 7 : index
    %c0_72 = arith.constant 0 : index
    %c0_73 = arith.constant 0 : index
    %69 = vector.load %arg3[%c7, %c0_72, %c0_73] : memref<9x4x128xbf16, #tpu.memory_space<vmem>>, vector<1x4x128xbf16>
    %70 = vector.shape_cast %69 : vector<1x4x128xbf16> to vector<4x128xbf16>
    %cst_74 = arith.constant dense<0.000000e+00> : vector<288x128xf32>
    %71 = tpu.matmul %67, %70, %cst_74 {dimension_numbers = #tpu.dot_dimension_numbers<[1], [0], [0], [1], [0, 0, 1, 1], [], []>} : vector<288x4xbf16>, vector<4x128xbf16>, vector<288x128xf32> -> vector<288x128xf32>
    %72 = arith.addf %68, %71 : vector<288x128xf32>
    %c0_75 = arith.constant 0 : index
    %c0_76 = arith.constant 0 : index
    %73 = vector.load %arg9[%c0_75, %c0_76] : memref<288x128xf32, #tpu.memory_space<vmem>>, vector<288x128xf32>
    tpu.vector_store %arg9[%c0_75, %c0_76], %72 {strides = array<i32>} : memref<288x128xf32, #tpu.memory_space<vmem>>, vector<288x128xf32>,
    %c0_77 = arith.constant 0 : index
    %c38 = arith.constant 38 : index
    %c0_78 = arith.constant 0 : index
    %74 = vector.load %arg2[%c0_77, %c38, %c0_78] : memref<1x336x4xf32, #tpu.memory_space<vmem>>, vector<1x288x4xf32>
    %75 = vector.shape_cast %74 : vector<1x288x4xf32> to vector<288x4xf32>
    %76 = arith.truncf %75 : vector<288x4xf32> to vector<288x4xbf16>
    %c0_79 = arith.constant 0 : index
    %c0_80 = arith.constant 0 : index
    %77 = vector.load %arg9[%c0_79, %c0_80] : memref<288x128xf32, #tpu.memory_space<vmem>>, vector<288x128xf32>
    %c8 = arith.constant 8 : index
    %c0_81 = arith.constant 0 : index
    %c0_82 = arith.constant 0 : index
    %78 = vector.load %arg3[%c8, %c0_81, %c0_82] : memref<9x4x128xbf16, #tpu.memory_space<vmem>>, vector<1x4x128xbf16>
    %79 = vector.shape_cast %78 : vector<1x4x128xbf16> to vector<4x128xbf16>
    %cst_83 = arith.constant dense<0.000000e+00> : vector<288x128xf32>
    %80 = tpu.matmul %76, %79, %cst_83 {dimension_numbers = #tpu.dot_dimension_numbers<[1], [0], [0], [1], [0, 0, 1, 1], [], []>} : vector<288x4xbf16>, vector<4x128xbf16>, vector<288x128xf32> -> vector<288x128xf32>
    %81 = arith.addf %77, %80 : vector<288x128xf32>
    %c0_84 = arith.constant 0 : index
    %c0_85 = arith.constant 0 : index
    %82 = vector.load %arg9[%c0_84, %c0_85] : memref<288x128xf32, #tpu.memory_space<vmem>>, vector<288x128xf32>
    tpu.vector_store %arg9[%c0_84, %c0_85], %81 {strides = array<i32>} : memref<288x128xf32, #tpu.memory_space<vmem>>, vector<288x128xf32>,
    %c0_86 = arith.constant 0 : index
    %c0_87 = arith.constant 0 : index
    %83 = vector.load %arg9[%c0_86, %c0_87] : memref<288x128xf32, #tpu.memory_space<vmem>>, vector<288x128xf32>
    %c0_88 = arith.constant 0 : index
    %c0_89 = arith.constant 0 : index
    %84 = vector.load %arg4[%c0_88, %c0_89] : memref<1x128xf32, #tpu.memory_space<vmem>>, vector<1x128xf32>
    %85 = vector.broadcast %84 : vector<1x128xf32> to vector<288x128xf32>
    %86 = arith.addf %83, %85 : vector<288x128xf32>
    %c0_90 = arith.constant 0 : index
    %c0_91 = arith.constant 0 : index
    %c0_92 = arith.constant 0 : index
    %87 = vector.load %arg6[%c0_90, %c0_91, %c0_92] : memref<1x288x128xf32, #tpu.memory_space<vmem>>, vector<1x288x128xf32>
    %88 = vector.shape_cast %87 : vector<1x288x128xf32> to vector<288x128xf32>
    %89 = vector.shape_cast %86 : vector<288x128xf32> to vector<1x288x128xf32>
    tpu.vector_store %arg6[%c0_90, %c0_91, %c0_92], %89 {strides = array<i32>} : memref<1x288x128xf32, #tpu.memory_space<vmem>>, vector<1x288x128xf32>,
    %c0_i32 = arith.constant 0 : i32
    %90 = arith.cmpi eq, %arg1, %c0_i32 : i32
    %91 = arith.extui %90 : i1 to i32
    %c0_i32_93 = arith.constant 0 : i32
    %92 = arith.cmpi ne, %91, %c0_i32_93 : i32
    scf.if %92 {
      %cst_106 = arith.constant 0.000000e+00 : f32
      %107 = vector.broadcast %cst_106 : f32 to vector<1x128xf32>
      %c0_107 = arith.constant 0 : index
      %c0_108 = arith.constant 0 : index
      %108 = vector.load %arg7[%c0_107, %c0_108] : memref<1x128xf32, #tpu.memory_space<vmem>>, vector<1x128xf32>
      tpu.vector_store %arg7[%c0_107, %c0_108], %107 {strides = array<i32>} : memref<1x128xf32, #tpu.memory_space<vmem>>, vector<1x128xf32>,
      %cst_109 = arith.constant 0.000000e+00 : f32
      %109 = vector.broadcast %cst_109 : f32 to vector<1x128xf32>
      %c0_110 = arith.constant 0 : index
      %c0_111 = arith.constant 0 : index
      %110 = vector.load %arg8[%c0_110, %c0_111] : memref<1x128xf32, #tpu.memory_space<vmem>>, vector<1x128xf32>
      tpu.vector_store %arg8[%c0_110, %c0_111], %109 {strides = array<i32>} : memref<1x128xf32, #tpu.memory_space<vmem>>, vector<1x128xf32>,
    } else {
    }
    %c0_94 = arith.constant 0 : index
    %c0_95 = arith.constant 0 : index
    %93 = vector.load %arg5[%c0_94, %c0_95] : memref<288x1xf32, #tpu.memory_space<vmem>>, vector<288x1xf32>
    %94 = vector.broadcast %93 : vector<288x1xf32> to vector<288x128xf32>
    %95 = arith.mulf %86, %94 : vector<288x128xf32>
    %c0_96 = arith.constant 0 : index
    %c0_97 = arith.constant 0 : index
    %96 = vector.load %arg7[%c0_96, %c0_97] : memref<1x128xf32, #tpu.memory_space<vmem>>, vector<1x128xf32>
    %cst_98 = arith.constant dense<0.000000e+00> : vector<128xf32>
    %97 = vector.multi_reduction <add>, %95, %cst_98 [0] : vector<288x128xf32> to vector<128xf32>
    %98 = vector.shape_cast %97 : vector<128xf32> to vector<1x128xf32>
    %99 = arith.addf %96, %98 : vector<1x128xf32>
    %c0_99 = arith.constant 0 : index
    %c0_100 = arith.constant 0 : index
    %100 = vector.load %arg7[%c0_99, %c0_100] : memref<1x128xf32, #tpu.memory_space<vmem>>, vector<1x128xf32>
    tpu.vector_store %arg7[%c0_99, %c0_100], %99 {strides = array<i32>} : memref<1x128xf32, #tpu.memory_space<vmem>>, vector<1x128xf32>,
    %c0_101 = arith.constant 0 : index
    %c0_102 = arith.constant 0 : index
    %101 = vector.load %arg8[%c0_101, %c0_102] : memref<1x128xf32, #tpu.memory_space<vmem>>, vector<1x128xf32>
    %102 = arith.mulf %95, %86 : vector<288x128xf32>
    %cst_103 = arith.constant dense<0.000000e+00> : vector<128xf32>
    %103 = vector.multi_reduction <add>, %102, %cst_103 [0] : vector<288x128xf32> to vector<128xf32>
    %104 = vector.shape_cast %103 : vector<128xf32> to vector<1x128xf32>
    %105 = arith.addf %101, %104 : vector<1x128xf32>
    %c0_104 = arith.constant 0 : index
    %c0_105 = arith.constant 0 : index
    %106 = vector.load %arg8[%c0_104, %c0_105] : memref<1x128xf32, #tpu.memory_space<vmem>>, vector<1x128xf32>
    tpu.vector_store %arg8[%c0_104, %c0_105], %105 {strides = array<i32>} : memref<1x128xf32, #tpu.memory_space<vmem>>, vector<1x128xf32>,
    return
  }
  func.func @transform_0(%arg0: i32, %arg1: i32) -> (i32, i32, i32) {
    %c0_i32 = arith.constant 0 : i32
    %c0_i32_0 = arith.constant 0 : i32
    %c0_i32_1 = arith.constant 0 : i32
    return %arg1, %c0_i32, %c0_i32_0 : i32, i32, i32
  }
  func.func @transform_1(%arg0: i32, %arg1: i32) -> (i32, i32, i32) {
    %c0_i32 = arith.constant 0 : i32
    %c0_i32_0 = arith.constant 0 : i32
    %c0_i32_1 = arith.constant 0 : i32
    return %c0_i32, %c0_i32_0, %arg0 : i32, i32, i32
  }
  func.func @transform_2(%arg0: i32, %arg1: i32) -> (i32, i32) {
    %c0_i32 = arith.constant 0 : i32
    %c0_i32_0 = arith.constant 0 : i32
    return %c0_i32, %arg0 : i32, i32
  }
  func.func @transform_3(%arg0: i32, %arg1: i32) -> (i32, i32) {
    %c0_i32 = arith.constant 0 : i32
    %c0_i32_0 = arith.constant 0 : i32
    %c0_i32_1 = arith.constant 0 : i32
    return %c0_i32, %c0_i32_0 : i32, i32
  }
  func.func @transform_4(%arg0: i32, %arg1: i32) -> (i32, i32, i32) {
    %c0_i32 = arith.constant 0 : i32
    %c0_i32_0 = arith.constant 0 : i32
    return %arg1, %c0_i32, %arg0 : i32, i32, i32
  }
  func.func @transform_5(%arg0: i32, %arg1: i32) -> (i32, i32) {
    %c0_i32 = arith.constant 0 : i32
    %c0_i32_0 = arith.constant 0 : i32
    return %c0_i32, %arg0 : i32, i32
  }
  func.func @transform_6(%arg0: i32, %arg1: i32) -> (i32, i32) {
    %c0_i32 = arith.constant 0 : i32
    %c0_i32_0 = arith.constant 0 : i32
    return %c0_i32, %arg0 : i32, i32
  }
}

module attributes {stable_mosaic.version = 11 : i64} {
  func.func @_bn_apply_relu_mask_kernel(%arg0: i32, %arg1: memref<256x128xf32, #tpu.memory_space<vmem>>, %arg2: memref<1x128xf32, #tpu.memory_space<vmem>>, %arg3: memref<1x128xf32, #tpu.memory_space<vmem>>, %arg4: memref<256x1xf32, #tpu.memory_space<vmem>>, %arg5: memref<256x128xf32, #tpu.memory_space<vmem>>) attributes {dimension_semantics = [#tpu.dimension_semantics<parallel>], iteration_bounds = array<i64: 3>, scalar_prefetch = 0 : i64, scratch_operands = 0 : i64, tpu.core_type = #tpu.core_type<tc>, window_params = [{transform_indices = @transform_0, window_bounds = array<i64: 256, 128>}, {pipeline_mode = #tpu.pipeline_mode<synchronous>, transform_indices = @transform_1, window_bounds = array<i64: 1, 128>}, {pipeline_mode = #tpu.pipeline_mode<synchronous>, transform_indices = @transform_2, window_bounds = array<i64: 1, 128>}, {transform_indices = @transform_3, window_bounds = array<i64: 256, 1>}, {transform_indices = @transform_4, window_bounds = array<i64: 256, 128>}]} {
    %c0 = arith.constant 0 : index
    %c0_0 = arith.constant 0 : index
    %0 = vector.load %arg1[%c0, %c0_0] : memref<256x128xf32, #tpu.memory_space<vmem>>, vector<256x128xf32>
    %c0_1 = arith.constant 0 : index
    %c0_2 = arith.constant 0 : index
    %1 = vector.load %arg2[%c0_1, %c0_2] : memref<1x128xf32, #tpu.memory_space<vmem>>, vector<1x128xf32>
    %2 = vector.broadcast %1 : vector<1x128xf32> to vector<256x128xf32>
    %3 = arith.mulf %0, %2 : vector<256x128xf32>
    %c0_3 = arith.constant 0 : index
    %c0_4 = arith.constant 0 : index
    %4 = vector.load %arg3[%c0_3, %c0_4] : memref<1x128xf32, #tpu.memory_space<vmem>>, vector<1x128xf32>
    %5 = vector.broadcast %4 : vector<1x128xf32> to vector<256x128xf32>
    %6 = arith.addf %3, %5 : vector<256x128xf32>
    %cst = arith.constant 0.000000e+00 : f32
    %7 = vector.broadcast %cst : f32 to vector<256x128xf32>
    %8 = arith.maximumf %6, %7 : vector<256x128xf32>
    %c0_5 = arith.constant 0 : index
    %c0_6 = arith.constant 0 : index
    %9 = vector.load %arg4[%c0_5, %c0_6] : memref<256x1xf32, #tpu.memory_space<vmem>>, vector<256x1xf32>
    %10 = vector.broadcast %9 : vector<256x1xf32> to vector<256x128xf32>
    %11 = arith.mulf %8, %10 : vector<256x128xf32>
    %c0_7 = arith.constant 0 : index
    %c0_8 = arith.constant 0 : index
    %12 = vector.load %arg5[%c0_7, %c0_8] : memref<256x128xf32, #tpu.memory_space<vmem>>, vector<256x128xf32>
    tpu.vector_store %arg5[%c0_7, %c0_8], %11 {strides = array<i32>} : memref<256x128xf32, #tpu.memory_space<vmem>>, vector<256x128xf32>,
    return
  }
  func.func @transform_0(%arg0: i32) -> (i32, i32) {
    %c0_i32 = arith.constant 0 : i32
    %c0_i32_0 = arith.constant 0 : i32
    return %arg0, %c0_i32 : i32, i32
  }
  func.func @transform_1(%arg0: i32) -> (i32, i32) {
    %c0_i32 = arith.constant 0 : i32
    %c0_i32_0 = arith.constant 0 : i32
    %c0_i32_1 = arith.constant 0 : i32
    return %c0_i32, %c0_i32_0 : i32, i32
  }
  func.func @transform_2(%arg0: i32) -> (i32, i32) {
    %c0_i32 = arith.constant 0 : i32
    %c0_i32_0 = arith.constant 0 : i32
    %c0_i32_1 = arith.constant 0 : i32
    return %c0_i32, %c0_i32_0 : i32, i32
  }
  func.func @transform_3(%arg0: i32) -> (i32, i32) {
    %c0_i32 = arith.constant 0 : i32
    %c0_i32_0 = arith.constant 0 : i32
    return %arg0, %c0_i32 : i32, i32
  }
  func.func @transform_4(%arg0: i32) -> (i32, i32) {
    %c0_i32 = arith.constant 0 : i32
    %c0_i32_0 = arith.constant 0 : i32
    return %arg0, %c0_i32 : i32, i32
  }
}

module attributes {stable_mosaic.version = 11 : i64} {
  func.func @_conv3x3_kernel(%arg0: i32, %arg1: i32, %arg2: memref<1x336x128xf32, #tpu.memory_space<vmem>>, %arg3: memref<9x128x128xbf16, #tpu.memory_space<vmem>>, %arg4: memref<1x128xf32, #tpu.memory_space<vmem>>, %arg5: memref<288x1xf32, #tpu.memory_space<vmem>>, %arg6: memref<1x288x128xf32, #tpu.memory_space<vmem>>, %arg7: memref<1x128xf32, #tpu.memory_space<vmem>>, %arg8: memref<1x128xf32, #tpu.memory_space<vmem>>, %arg9: memref<288x128xf32, #tpu.memory_space<vmem>>) attributes {dimension_semantics = [#tpu.dimension_semantics<parallel>, #tpu.dimension_semantics<arbitrary>], iteration_bounds = array<i64: 1, 2>, scalar_prefetch = 0 : i64, scratch_operands = 1 : i64, tpu.core_type = #tpu.core_type<tc>, window_params = [{transform_indices = @transform_0, window_bounds = array<i64: 1, 336, 128>}, {transform_indices = @transform_1, window_bounds = array<i64: 9, 128, 128>}, {transform_indices = @transform_2, window_bounds = array<i64: 1, 128>}, {pipeline_mode = #tpu.pipeline_mode<synchronous>, transform_indices = @transform_3, window_bounds = array<i64: 288, 1>}, {transform_indices = @transform_4, window_bounds = array<i64: 1, 288, 128>}, {transform_indices = @transform_5, window_bounds = array<i64: 1, 128>}, {transform_indices = @transform_6, window_bounds = array<i64: 1, 128>}]} {
    %cst = arith.constant 0.000000e+00 : f32
    %0 = vector.broadcast %cst : f32 to vector<288x128xf32>
    %c0 = arith.constant 0 : index
    %c0_0 = arith.constant 0 : index
    %1 = vector.load %arg9[%c0, %c0_0] : memref<288x128xf32, #tpu.memory_space<vmem>>, vector<288x128xf32>
    tpu.vector_store %arg9[%c0, %c0_0], %0 {strides = array<i32>} : memref<288x128xf32, #tpu.memory_space<vmem>>, vector<288x128xf32>,
    %c0_1 = arith.constant 0 : index
    %c0_2 = arith.constant 0 : index
    %c0_3 = arith.constant 0 : index
    %2 = vector.load %arg2[%c0_1, %c0_2, %c0_3] : memref<1x336x128xf32, #tpu.memory_space<vmem>>, vector<1x288x128xf32>
    %3 = vector.shape_cast %2 : vector<1x288x128xf32> to vector<288x128xf32>
    %4 = arith.truncf %3 : vector<288x128xf32> to vector<288x128xbf16>
    %c0_4 = arith.constant 0 : index
    %c0_5 = arith.constant 0 : index
    %5 = vector.load %arg9[%c0_4, %c0_5] : memref<288x128xf32, #tpu.memory_space<vmem>>, vector<288x128xf32>
    %c0_6 = arith.constant 0 : index
    %c0_7 = arith.constant 0 : index
    %c0_8 = arith.constant 0 : index
    %6 = vector.load %arg3[%c0_6, %c0_7, %c0_8] : memref<9x128x128xbf16, #tpu.memory_space<vmem>>, vector<1x128x128xbf16>
    %7 = vector.shape_cast %6 : vector<1x128x128xbf16> to vector<128x128xbf16>
    %cst_9 = arith.constant dense<0.000000e+00> : vector<288x128xf32>
    %8 = tpu.matmul %4, %7, %cst_9 {dimension_numbers = #tpu.dot_dimension_numbers<[1], [0], [0], [1], [0, 0, 1, 1], [], []>} : vector<288x128xbf16>, vector<128x128xbf16>, vector<288x128xf32> -> vector<288x128xf32>
    %9 = arith.addf %5, %8 : vector<288x128xf32>
    %c0_10 = arith.constant 0 : index
    %c0_11 = arith.constant 0 : index
    %10 = vector.load %arg9[%c0_10, %c0_11] : memref<288x128xf32, #tpu.memory_space<vmem>>, vector<288x128xf32>
    tpu.vector_store %arg9[%c0_10, %c0_11], %9 {strides = array<i32>} : memref<288x128xf32, #tpu.memory_space<vmem>>, vector<288x128xf32>,
    %c0_12 = arith.constant 0 : index
    %c1 = arith.constant 1 : index
    %c0_13 = arith.constant 0 : index
    %11 = vector.load %arg2[%c0_12, %c1, %c0_13] : memref<1x336x128xf32, #tpu.memory_space<vmem>>, vector<1x288x128xf32>
    %12 = vector.shape_cast %11 : vector<1x288x128xf32> to vector<288x128xf32>
    %13 = arith.truncf %12 : vector<288x128xf32> to vector<288x128xbf16>
    %c0_14 = arith.constant 0 : index
    %c0_15 = arith.constant 0 : index
    %14 = vector.load %arg9[%c0_14, %c0_15] : memref<288x128xf32, #tpu.memory_space<vmem>>, vector<288x128xf32>
    %c1_16 = arith.constant 1 : index
    %c0_17 = arith.constant 0 : index
    %c0_18 = arith.constant 0 : index
    %15 = vector.load %arg3[%c1_16, %c0_17, %c0_18] : memref<9x128x128xbf16, #tpu.memory_space<vmem>>, vector<1x128x128xbf16>
    %16 = vector.shape_cast %15 : vector<1x128x128xbf16> to vector<128x128xbf16>
    %cst_19 = arith.constant dense<0.000000e+00> : vector<288x128xf32>
    %17 = tpu.matmul %13, %16, %cst_19 {dimension_numbers = #tpu.dot_dimension_numbers<[1], [0], [0], [1], [0, 0, 1, 1], [], []>} : vector<288x128xbf16>, vector<128x128xbf16>, vector<288x128xf32> -> vector<288x128xf32>
    %18 = arith.addf %14, %17 : vector<288x128xf32>
    %c0_20 = arith.constant 0 : index
    %c0_21 = arith.constant 0 : index
    %19 = vector.load %arg9[%c0_20, %c0_21] : memref<288x128xf32, #tpu.memory_space<vmem>>, vector<288x128xf32>
    tpu.vector_store %arg9[%c0_20, %c0_21], %18 {strides = array<i32>} : memref<288x128xf32, #tpu.memory_space<vmem>>, vector<288x128xf32>,
    %c0_22 = arith.constant 0 : index
    %c2 = arith.constant 2 : index
    %c0_23 = arith.constant 0 : index
    %20 = vector.load %arg2[%c0_22, %c2, %c0_23] : memref<1x336x128xf32, #tpu.memory_space<vmem>>, vector<1x288x128xf32>
    %21 = vector.shape_cast %20 : vector<1x288x128xf32> to vector<288x128xf32>
    %22 = arith.truncf %21 : vector<288x128xf32> to vector<288x128xbf16>
    %c0_24 = arith.constant 0 : index
    %c0_25 = arith.constant 0 : index
    %23 = vector.load %arg9[%c0_24, %c0_25] : memref<288x128xf32, #tpu.memory_space<vmem>>, vector<288x128xf32>
    %c2_26 = arith.constant 2 : index
    %c0_27 = arith.constant 0 : index
    %c0_28 = arith.constant 0 : index
    %24 = vector.load %arg3[%c2_26, %c0_27, %c0_28] : memref<9x128x128xbf16, #tpu.memory_space<vmem>>, vector<1x128x128xbf16>
    %25 = vector.shape_cast %24 : vector<1x128x128xbf16> to vector<128x128xbf16>
    %cst_29 = arith.constant dense<0.000000e+00> : vector<288x128xf32>
    %26 = tpu.matmul %22, %25, %cst_29 {dimension_numbers = #tpu.dot_dimension_numbers<[1], [0], [0], [1], [0, 0, 1, 1], [], []>} : vector<288x128xbf16>, vector<128x128xbf16>, vector<288x128xf32> -> vector<288x128xf32>
    %27 = arith.addf %23, %26 : vector<288x128xf32>
    %c0_30 = arith.constant 0 : index
    %c0_31 = arith.constant 0 : index
    %28 = vector.load %arg9[%c0_30, %c0_31] : memref<288x128xf32, #tpu.memory_space<vmem>>, vector<288x128xf32>
    tpu.vector_store %arg9[%c0_30, %c0_31], %27 {strides = array<i32>} : memref<288x128xf32, #tpu.memory_space<vmem>>, vector<288x128xf32>,
    %c0_32 = arith.constant 0 : index
    %c18 = arith.constant 18 : index
    %c0_33 = arith.constant 0 : index
    %29 = vector.load %arg2[%c0_32, %c18, %c0_33] : memref<1x336x128xf32, #tpu.memory_space<vmem>>, vector<1x288x128xf32>
    %30 = vector.shape_cast %29 : vector<1x288x128xf32> to vector<288x128xf32>
    %31 = arith.truncf %30 : vector<288x128xf32> to vector<288x128xbf16>
    %c0_34 = arith.constant 0 : index
    %c0_35 = arith.constant 0 : index
    %32 = vector.load %arg9[%c0_34, %c0_35] : memref<288x128xf32, #tpu.memory_space<vmem>>, vector<288x128xf32>
    %c3 = arith.constant 3 : index
    %c0_36 = arith.constant 0 : index
    %c0_37 = arith.constant 0 : index
    %33 = vector.load %arg3[%c3, %c0_36, %c0_37] : memref<9x128x128xbf16, #tpu.memory_space<vmem>>, vector<1x128x128xbf16>
    %34 = vector.shape_cast %33 : vector<1x128x128xbf16> to vector<128x128xbf16>
    %cst_38 = arith.constant dense<0.000000e+00> : vector<288x128xf32>
    %35 = tpu.matmul %31, %34, %cst_38 {dimension_numbers = #tpu.dot_dimension_numbers<[1], [0], [0], [1], [0, 0, 1, 1], [], []>} : vector<288x128xbf16>, vector<128x128xbf16>, vector<288x128xf32> -> vector<288x128xf32>
    %36 = arith.addf %32, %35 : vector<288x128xf32>
    %c0_39 = arith.constant 0 : index
    %c0_40 = arith.constant 0 : index
    %37 = vector.load %arg9[%c0_39, %c0_40] : memref<288x128xf32, #tpu.memory_space<vmem>>, vector<288x128xf32>
    tpu.vector_store %arg9[%c0_39, %c0_40], %36 {strides = array<i32>} : memref<288x128xf32, #tpu.memory_space<vmem>>, vector<288x128xf32>,
    %c0_41 = arith.constant 0 : index
    %c19 = arith.constant 19 : index
    %c0_42 = arith.constant 0 : index
    %38 = vector.load %arg2[%c0_41, %c19, %c0_42] : memref<1x336x128xf32, #tpu.memory_space<vmem>>, vector<1x288x128xf32>
    %39 = vector.shape_cast %38 : vector<1x288x128xf32> to vector<288x128xf32>
    %40 = arith.truncf %39 : vector<288x128xf32> to vector<288x128xbf16>
    %c0_43 = arith.constant 0 : index
    %c0_44 = arith.constant 0 : index
    %41 = vector.load %arg9[%c0_43, %c0_44] : memref<288x128xf32, #tpu.memory_space<vmem>>, vector<288x128xf32>
    %c4 = arith.constant 4 : index
    %c0_45 = arith.constant 0 : index
    %c0_46 = arith.constant 0 : index
    %42 = vector.load %arg3[%c4, %c0_45, %c0_46] : memref<9x128x128xbf16, #tpu.memory_space<vmem>>, vector<1x128x128xbf16>
    %43 = vector.shape_cast %42 : vector<1x128x128xbf16> to vector<128x128xbf16>
    %cst_47 = arith.constant dense<0.000000e+00> : vector<288x128xf32>
    %44 = tpu.matmul %40, %43, %cst_47 {dimension_numbers = #tpu.dot_dimension_numbers<[1], [0], [0], [1], [0, 0, 1, 1], [], []>} : vector<288x128xbf16>, vector<128x128xbf16>, vector<288x128xf32> -> vector<288x128xf32>
    %45 = arith.addf %41, %44 : vector<288x128xf32>
    %c0_48 = arith.constant 0 : index
    %c0_49 = arith.constant 0 : index
    %46 = vector.load %arg9[%c0_48, %c0_49] : memref<288x128xf32, #tpu.memory_space<vmem>>, vector<288x128xf32>
    tpu.vector_store %arg9[%c0_48, %c0_49], %45 {strides = array<i32>} : memref<288x128xf32, #tpu.memory_space<vmem>>, vector<288x128xf32>,
    %c0_50 = arith.constant 0 : index
    %c20 = arith.constant 20 : index
    %c0_51 = arith.constant 0 : index
    %47 = vector.load %arg2[%c0_50, %c20, %c0_51] : memref<1x336x128xf32, #tpu.memory_space<vmem>>, vector<1x288x128xf32>
    %48 = vector.shape_cast %47 : vector<1x288x128xf32> to vector<288x128xf32>
    %49 = arith.truncf %48 : vector<288x128xf32> to vector<288x128xbf16>
    %c0_52 = arith.constant 0 : index
    %c0_53 = arith.constant 0 : index
    %50 = vector.load %arg9[%c0_52, %c0_53] : memref<288x128xf32, #tpu.memory_space<vmem>>, vector<288x128xf32>
    %c5 = arith.constant 5 : index
    %c0_54 = arith.constant 0 : index
    %c0_55 = arith.constant 0 : index
    %51 = vector.load %arg3[%c5, %c0_54, %c0_55] : memref<9x128x128xbf16, #tpu.memory_space<vmem>>, vector<1x128x128xbf16>
    %52 = vector.shape_cast %51 : vector<1x128x128xbf16> to vector<128x128xbf16>
    %cst_56 = arith.constant dense<0.000000e+00> : vector<288x128xf32>
    %53 = tpu.matmul %49, %52, %cst_56 {dimension_numbers = #tpu.dot_dimension_numbers<[1], [0], [0], [1], [0, 0, 1, 1], [], []>} : vector<288x128xbf16>, vector<128x128xbf16>, vector<288x128xf32> -> vector<288x128xf32>
    %54 = arith.addf %50, %53 : vector<288x128xf32>
    %c0_57 = arith.constant 0 : index
    %c0_58 = arith.constant 0 : index
    %55 = vector.load %arg9[%c0_57, %c0_58] : memref<288x128xf32, #tpu.memory_space<vmem>>, vector<288x128xf32>
    tpu.vector_store %arg9[%c0_57, %c0_58], %54 {strides = array<i32>} : memref<288x128xf32, #tpu.memory_space<vmem>>, vector<288x128xf32>,
    %c0_59 = arith.constant 0 : index
    %c36 = arith.constant 36 : index
    %c0_60 = arith.constant 0 : index
    %56 = vector.load %arg2[%c0_59, %c36, %c0_60] : memref<1x336x128xf32, #tpu.memory_space<vmem>>, vector<1x288x128xf32>
    %57 = vector.shape_cast %56 : vector<1x288x128xf32> to vector<288x128xf32>
    %58 = arith.truncf %57 : vector<288x128xf32> to vector<288x128xbf16>
    %c0_61 = arith.constant 0 : index
    %c0_62 = arith.constant 0 : index
    %59 = vector.load %arg9[%c0_61, %c0_62] : memref<288x128xf32, #tpu.memory_space<vmem>>, vector<288x128xf32>
    %c6 = arith.constant 6 : index
    %c0_63 = arith.constant 0 : index
    %c0_64 = arith.constant 0 : index
    %60 = vector.load %arg3[%c6, %c0_63, %c0_64] : memref<9x128x128xbf16, #tpu.memory_space<vmem>>, vector<1x128x128xbf16>
    %61 = vector.shape_cast %60 : vector<1x128x128xbf16> to vector<128x128xbf16>
    %cst_65 = arith.constant dense<0.000000e+00> : vector<288x128xf32>
    %62 = tpu.matmul %58, %61, %cst_65 {dimension_numbers = #tpu.dot_dimension_numbers<[1], [0], [0], [1], [0, 0, 1, 1], [], []>} : vector<288x128xbf16>, vector<128x128xbf16>, vector<288x128xf32> -> vector<288x128xf32>
    %63 = arith.addf %59, %62 : vector<288x128xf32>
    %c0_66 = arith.constant 0 : index
    %c0_67 = arith.constant 0 : index
    %64 = vector.load %arg9[%c0_66, %c0_67] : memref<288x128xf32, #tpu.memory_space<vmem>>, vector<288x128xf32>
    tpu.vector_store %arg9[%c0_66, %c0_67], %63 {strides = array<i32>} : memref<288x128xf32, #tpu.memory_space<vmem>>, vector<288x128xf32>,
    %c0_68 = arith.constant 0 : index
    %c37 = arith.constant 37 : index
    %c0_69 = arith.constant 0 : index
    %65 = vector.load %arg2[%c0_68, %c37, %c0_69] : memref<1x336x128xf32, #tpu.memory_space<vmem>>, vector<1x288x128xf32>
    %66 = vector.shape_cast %65 : vector<1x288x128xf32> to vector<288x128xf32>
    %67 = arith.truncf %66 : vector<288x128xf32> to vector<288x128xbf16>
    %c0_70 = arith.constant 0 : index
    %c0_71 = arith.constant 0 : index
    %68 = vector.load %arg9[%c0_70, %c0_71] : memref<288x128xf32, #tpu.memory_space<vmem>>, vector<288x128xf32>
    %c7 = arith.constant 7 : index
    %c0_72 = arith.constant 0 : index
    %c0_73 = arith.constant 0 : index
    %69 = vector.load %arg3[%c7, %c0_72, %c0_73] : memref<9x128x128xbf16, #tpu.memory_space<vmem>>, vector<1x128x128xbf16>
    %70 = vector.shape_cast %69 : vector<1x128x128xbf16> to vector<128x128xbf16>
    %cst_74 = arith.constant dense<0.000000e+00> : vector<288x128xf32>
    %71 = tpu.matmul %67, %70, %cst_74 {dimension_numbers = #tpu.dot_dimension_numbers<[1], [0], [0], [1], [0, 0, 1, 1], [], []>} : vector<288x128xbf16>, vector<128x128xbf16>, vector<288x128xf32> -> vector<288x128xf32>
    %72 = arith.addf %68, %71 : vector<288x128xf32>
    %c0_75 = arith.constant 0 : index
    %c0_76 = arith.constant 0 : index
    %73 = vector.load %arg9[%c0_75, %c0_76] : memref<288x128xf32, #tpu.memory_space<vmem>>, vector<288x128xf32>
    tpu.vector_store %arg9[%c0_75, %c0_76], %72 {strides = array<i32>} : memref<288x128xf32, #tpu.memory_space<vmem>>, vector<288x128xf32>,
    %c0_77 = arith.constant 0 : index
    %c38 = arith.constant 38 : index
    %c0_78 = arith.constant 0 : index
    %74 = vector.load %arg2[%c0_77, %c38, %c0_78] : memref<1x336x128xf32, #tpu.memory_space<vmem>>, vector<1x288x128xf32>
    %75 = vector.shape_cast %74 : vector<1x288x128xf32> to vector<288x128xf32>
    %76 = arith.truncf %75 : vector<288x128xf32> to vector<288x128xbf16>
    %c0_79 = arith.constant 0 : index
    %c0_80 = arith.constant 0 : index
    %77 = vector.load %arg9[%c0_79, %c0_80] : memref<288x128xf32, #tpu.memory_space<vmem>>, vector<288x128xf32>
    %c8 = arith.constant 8 : index
    %c0_81 = arith.constant 0 : index
    %c0_82 = arith.constant 0 : index
    %78 = vector.load %arg3[%c8, %c0_81, %c0_82] : memref<9x128x128xbf16, #tpu.memory_space<vmem>>, vector<1x128x128xbf16>
    %79 = vector.shape_cast %78 : vector<1x128x128xbf16> to vector<128x128xbf16>
    %cst_83 = arith.constant dense<0.000000e+00> : vector<288x128xf32>
    %80 = tpu.matmul %76, %79, %cst_83 {dimension_numbers = #tpu.dot_dimension_numbers<[1], [0], [0], [1], [0, 0, 1, 1], [], []>} : vector<288x128xbf16>, vector<128x128xbf16>, vector<288x128xf32> -> vector<288x128xf32>
    %81 = arith.addf %77, %80 : vector<288x128xf32>
    %c0_84 = arith.constant 0 : index
    %c0_85 = arith.constant 0 : index
    %82 = vector.load %arg9[%c0_84, %c0_85] : memref<288x128xf32, #tpu.memory_space<vmem>>, vector<288x128xf32>
    tpu.vector_store %arg9[%c0_84, %c0_85], %81 {strides = array<i32>} : memref<288x128xf32, #tpu.memory_space<vmem>>, vector<288x128xf32>,
    %c0_86 = arith.constant 0 : index
    %c0_87 = arith.constant 0 : index
    %83 = vector.load %arg9[%c0_86, %c0_87] : memref<288x128xf32, #tpu.memory_space<vmem>>, vector<288x128xf32>
    %c0_88 = arith.constant 0 : index
    %c0_89 = arith.constant 0 : index
    %84 = vector.load %arg4[%c0_88, %c0_89] : memref<1x128xf32, #tpu.memory_space<vmem>>, vector<1x128xf32>
    %85 = vector.broadcast %84 : vector<1x128xf32> to vector<288x128xf32>
    %86 = arith.addf %83, %85 : vector<288x128xf32>
    %c0_90 = arith.constant 0 : index
    %c0_91 = arith.constant 0 : index
    %c0_92 = arith.constant 0 : index
    %87 = vector.load %arg6[%c0_90, %c0_91, %c0_92] : memref<1x288x128xf32, #tpu.memory_space<vmem>>, vector<1x288x128xf32>
    %88 = vector.shape_cast %87 : vector<1x288x128xf32> to vector<288x128xf32>
    %89 = vector.shape_cast %86 : vector<288x128xf32> to vector<1x288x128xf32>
    tpu.vector_store %arg6[%c0_90, %c0_91, %c0_92], %89 {strides = array<i32>} : memref<1x288x128xf32, #tpu.memory_space<vmem>>, vector<1x288x128xf32>,
    %c0_i32 = arith.constant 0 : i32
    %90 = arith.cmpi eq, %arg1, %c0_i32 : i32
    %91 = arith.extui %90 : i1 to i32
    %c0_i32_93 = arith.constant 0 : i32
    %92 = arith.cmpi ne, %91, %c0_i32_93 : i32
    scf.if %92 {
      %cst_106 = arith.constant 0.000000e+00 : f32
      %107 = vector.broadcast %cst_106 : f32 to vector<1x128xf32>
      %c0_107 = arith.constant 0 : index
      %c0_108 = arith.constant 0 : index
      %108 = vector.load %arg7[%c0_107, %c0_108] : memref<1x128xf32, #tpu.memory_space<vmem>>, vector<1x128xf32>
      tpu.vector_store %arg7[%c0_107, %c0_108], %107 {strides = array<i32>} : memref<1x128xf32, #tpu.memory_space<vmem>>, vector<1x128xf32>,
      %cst_109 = arith.constant 0.000000e+00 : f32
      %109 = vector.broadcast %cst_109 : f32 to vector<1x128xf32>
      %c0_110 = arith.constant 0 : index
      %c0_111 = arith.constant 0 : index
      %110 = vector.load %arg8[%c0_110, %c0_111] : memref<1x128xf32, #tpu.memory_space<vmem>>, vector<1x128xf32>
      tpu.vector_store %arg8[%c0_110, %c0_111], %109 {strides = array<i32>} : memref<1x128xf32, #tpu.memory_space<vmem>>, vector<1x128xf32>,
    } else {
    }
    %c0_94 = arith.constant 0 : index
    %c0_95 = arith.constant 0 : index
    %93 = vector.load %arg5[%c0_94, %c0_95] : memref<288x1xf32, #tpu.memory_space<vmem>>, vector<288x1xf32>
    %94 = vector.broadcast %93 : vector<288x1xf32> to vector<288x128xf32>
    %95 = arith.mulf %86, %94 : vector<288x128xf32>
    %c0_96 = arith.constant 0 : index
    %c0_97 = arith.constant 0 : index
    %96 = vector.load %arg7[%c0_96, %c0_97] : memref<1x128xf32, #tpu.memory_space<vmem>>, vector<1x128xf32>
    %cst_98 = arith.constant dense<0.000000e+00> : vector<128xf32>
    %97 = vector.multi_reduction <add>, %95, %cst_98 [0] : vector<288x128xf32> to vector<128xf32>
    %98 = vector.shape_cast %97 : vector<128xf32> to vector<1x128xf32>
    %99 = arith.addf %96, %98 : vector<1x128xf32>
    %c0_99 = arith.constant 0 : index
    %c0_100 = arith.constant 0 : index
    %100 = vector.load %arg7[%c0_99, %c0_100] : memref<1x128xf32, #tpu.memory_space<vmem>>, vector<1x128xf32>
    tpu.vector_store %arg7[%c0_99, %c0_100], %99 {strides = array<i32>} : memref<1x128xf32, #tpu.memory_space<vmem>>, vector<1x128xf32>,
    %c0_101 = arith.constant 0 : index
    %c0_102 = arith.constant 0 : index
    %101 = vector.load %arg8[%c0_101, %c0_102] : memref<1x128xf32, #tpu.memory_space<vmem>>, vector<1x128xf32>
    %102 = arith.mulf %95, %86 : vector<288x128xf32>
    %cst_103 = arith.constant dense<0.000000e+00> : vector<128xf32>
    %103 = vector.multi_reduction <add>, %102, %cst_103 [0] : vector<288x128xf32> to vector<128xf32>
    %104 = vector.shape_cast %103 : vector<128xf32> to vector<1x128xf32>
    %105 = arith.addf %101, %104 : vector<1x128xf32>
    %c0_104 = arith.constant 0 : index
    %c0_105 = arith.constant 0 : index
    %106 = vector.load %arg8[%c0_104, %c0_105] : memref<1x128xf32, #tpu.memory_space<vmem>>, vector<1x128xf32>
    tpu.vector_store %arg8[%c0_104, %c0_105], %105 {strides = array<i32>} : memref<1x128xf32, #tpu.memory_space<vmem>>, vector<1x128xf32>,
    return
  }
  func.func @transform_0(%arg0: i32, %arg1: i32) -> (i32, i32, i32) {
    %c0_i32 = arith.constant 0 : i32
    %c0_i32_0 = arith.constant 0 : i32
    %c0_i32_1 = arith.constant 0 : i32
    return %arg1, %c0_i32, %c0_i32_0 : i32, i32, i32
  }
  func.func @transform_1(%arg0: i32, %arg1: i32) -> (i32, i32, i32) {
    %c0_i32 = arith.constant 0 : i32
    %c0_i32_0 = arith.constant 0 : i32
    %c0_i32_1 = arith.constant 0 : i32
    return %c0_i32, %c0_i32_0, %arg0 : i32, i32, i32
  }
  func.func @transform_2(%arg0: i32, %arg1: i32) -> (i32, i32) {
    %c0_i32 = arith.constant 0 : i32
    %c0_i32_0 = arith.constant 0 : i32
    return %c0_i32, %arg0 : i32, i32
  }
  func.func @transform_3(%arg0: i32, %arg1: i32) -> (i32, i32) {
    %c0_i32 = arith.constant 0 : i32
    %c0_i32_0 = arith.constant 0 : i32
    %c0_i32_1 = arith.constant 0 : i32
    return %c0_i32, %c0_i32_0 : i32, i32
  }
  func.func @transform_4(%arg0: i32, %arg1: i32) -> (i32, i32, i32) {
    %c0_i32 = arith.constant 0 : i32
    %c0_i32_0 = arith.constant 0 : i32
    return %arg1, %c0_i32, %arg0 : i32, i32, i32
  }
  func.func @transform_5(%arg0: i32, %arg1: i32) -> (i32, i32) {
    %c0_i32 = arith.constant 0 : i32
    %c0_i32_0 = arith.constant 0 : i32
    return %c0_i32, %arg0 : i32, i32
  }
  func.func @transform_6(%arg0: i32, %arg1: i32) -> (i32, i32) {
    %c0_i32 = arith.constant 0 : i32
    %c0_i32_0 = arith.constant 0 : i32
    return %c0_i32, %arg0 : i32, i32
  }
}

module attributes {stable_mosaic.version = 11 : i64} {
  func.func @_matmul_bias_stats_kernel(%arg0: i32, %arg1: i32, %arg2: i32, %arg3: memref<256x4xbf16, #tpu.memory_space<vmem>>, %arg4: memref<4x128xbf16, #tpu.memory_space<vmem>>, %arg5: memref<1x128xf32, #tpu.memory_space<vmem>>, %arg6: memref<256x1xf32, #tpu.memory_space<vmem>>, %arg7: memref<256x128xf32, #tpu.memory_space<vmem>>, %arg8: memref<1x128xf32, #tpu.memory_space<vmem>>, %arg9: memref<1x128xf32, #tpu.memory_space<vmem>>, %arg10: memref<256x128xf32, #tpu.memory_space<vmem>>) attributes {dimension_semantics = [#tpu.dimension_semantics<parallel>, #tpu.dimension_semantics<arbitrary>, #tpu.dimension_semantics<arbitrary>], iteration_bounds = array<i64: 1, 3, 1>, scalar_prefetch = 0 : i64, scratch_operands = 1 : i64, tpu.core_type = #tpu.core_type<tc>, window_params = [{transform_indices = @transform_0, window_bounds = array<i64: 256, 4>}, {transform_indices = @transform_1, window_bounds = array<i64: 4, 128>}, {transform_indices = @transform_2, window_bounds = array<i64: 1, 128>}, {transform_indices = @transform_3, window_bounds = array<i64: 256, 1>}, {transform_indices = @transform_4, window_bounds = array<i64: 256, 128>}, {transform_indices = @transform_5, window_bounds = array<i64: 1, 128>}, {transform_indices = @transform_6, window_bounds = array<i64: 1, 128>}]} {
    %c0_i32 = arith.constant 0 : i32
    %0 = arith.cmpi eq, %arg2, %c0_i32 : i32
    %1 = arith.extui %0 : i1 to i32
    %c0_i32_0 = arith.constant 0 : i32
    %2 = arith.cmpi ne, %1, %c0_i32_0 : i32
    scf.if %2 {
      %cst_13 = arith.constant 0.000000e+00 : f32
      %17 = vector.broadcast %cst_13 : f32 to vector<256x128xf32>
      %c0_14 = arith.constant 0 : index
      %c0_15 = arith.constant 0 : index
      %18 = vector.load %arg10[%c0_14, %c0_15] : memref<256x128xf32, #tpu.memory_space<vmem>>, vector<256x128xf32>
      tpu.vector_store %arg10[%c0_14, %c0_15], %17 {strides = array<i32>} : memref<256x128xf32, #tpu.memory_space<vmem>>, vector<256x128xf32>,
    } else {
    }
    %c0 = arith.constant 0 : index
    %c0_1 = arith.constant 0 : index
    %3 = vector.load %arg10[%c0, %c0_1] : memref<256x128xf32, #tpu.memory_space<vmem>>, vector<256x128xf32>
    %c0_2 = arith.constant 0 : index
    %c0_3 = arith.constant 0 : index
    %4 = vector.load %arg3[%c0_2, %c0_3] : memref<256x4xbf16, #tpu.memory_space<vmem>>, vector<256x4xbf16>
    %c0_4 = arith.constant 0 : index
    %c0_5 = arith.constant 0 : index
    %5 = vector.load %arg4[%c0_4, %c0_5] : memref<4x128xbf16, #tpu.memory_space<vmem>>, vector<4x128xbf16>
    %cst = arith.constant dense<0.000000e+00> : vector<256x128xf32>
    %6 = tpu.matmul %4, %5, %cst {dimension_numbers = #tpu.dot_dimension_numbers<[1], [0], [0], [1], [0, 0, 1, 1], [], []>} : vector<256x4xbf16>, vector<4x128xbf16>, vector<256x128xf32> -> vector<256x128xf32>
    %7 = arith.addf %3, %6 : vector<256x128xf32>
    %c0_6 = arith.constant 0 : index
    %c0_7 = arith.constant 0 : index
    %8 = vector.load %arg10[%c0_6, %c0_7] : memref<256x128xf32, #tpu.memory_space<vmem>>, vector<256x128xf32>
    tpu.vector_store %arg10[%c0_6, %c0_7], %7 {strides = array<i32>} : memref<256x128xf32, #tpu.memory_space<vmem>>, vector<256x128xf32>,
    %c0_i32_8 = arith.constant 0 : i32
    %9 = arith.cmpi eq, %arg1, %c0_i32_8 : i32
    %c0_i32_9 = arith.constant 0 : i32
    %10 = arith.cmpi eq, %arg2, %c0_i32_9 : i32
    %11 = arith.andi %9, %10 : i1
    %12 = arith.extui %11 : i1 to i32
    %c0_i32_10 = arith.constant 0 : i32
    %13 = arith.cmpi ne, %12, %c0_i32_10 : i32
    scf.if %13 {
      %cst_13 = arith.constant 0.000000e+00 : f32
      %17 = vector.broadcast %cst_13 : f32 to vector<1x128xf32>
      %c0_14 = arith.constant 0 : index
      %c0_15 = arith.constant 0 : index
      %18 = vector.load %arg8[%c0_14, %c0_15] : memref<1x128xf32, #tpu.memory_space<vmem>>, vector<1x128xf32>
      tpu.vector_store %arg8[%c0_14, %c0_15], %17 {strides = array<i32>} : memref<1x128xf32, #tpu.memory_space<vmem>>, vector<1x128xf32>,
      %cst_16 = arith.constant 0.000000e+00 : f32
      %19 = vector.broadcast %cst_16 : f32 to vector<1x128xf32>
      %c0_17 = arith.constant 0 : index
      %c0_18 = arith.constant 0 : index
      %20 = vector.load %arg9[%c0_17, %c0_18] : memref<1x128xf32, #tpu.memory_space<vmem>>, vector<1x128xf32>
      tpu.vector_store %arg9[%c0_17, %c0_18], %19 {strides = array<i32>} : memref<1x128xf32, #tpu.memory_space<vmem>>, vector<1x128xf32>,
    } else {
    }
    %c0_i32_11 = arith.constant 0 : i32
    %14 = arith.cmpi eq, %arg2, %c0_i32_11 : i32
    %15 = arith.extui %14 : i1 to i32
    %c0_i32_12 = arith.constant 0 : i32
    %16 = arith.cmpi ne, %15, %c0_i32_12 : i32
    scf.if %16 {
      %c0_13 = arith.constant 0 : index
      %c0_14 = arith.constant 0 : index
      %17 = vector.load %arg10[%c0_13, %c0_14] : memref<256x128xf32, #tpu.memory_space<vmem>>, vector<256x128xf32>
      %c0_15 = arith.constant 0 : index
      %c0_16 = arith.constant 0 : index
      %18 = vector.load %arg5[%c0_15, %c0_16] : memref<1x128xf32, #tpu.memory_space<vmem>>, vector<1x128xf32>
      %19 = vector.broadcast %18 : vector<1x128xf32> to vector<256x128xf32>
      %20 = arith.addf %17, %19 : vector<256x128xf32>
      %c0_17 = arith.constant 0 : index
      %c0_18 = arith.constant 0 : index
      %21 = vector.load %arg7[%c0_17, %c0_18] : memref<256x128xf32, #tpu.memory_space<vmem>>, vector<256x128xf32>
      tpu.vector_store %arg7[%c0_17, %c0_18], %20 {strides = array<i32>} : memref<256x128xf32, #tpu.memory_space<vmem>>, vector<256x128xf32>,
      %c0_19 = arith.constant 0 : index
      %c0_20 = arith.constant 0 : index
      %22 = vector.load %arg6[%c0_19, %c0_20] : memref<256x1xf32, #tpu.memory_space<vmem>>, vector<256x1xf32>
      %23 = vector.broadcast %22 : vector<256x1xf32> to vector<256x128xf32>
      %24 = arith.mulf %20, %23 : vector<256x128xf32>
      %c0_21 = arith.constant 0 : index
      %c0_22 = arith.constant 0 : index
      %25 = vector.load %arg8[%c0_21, %c0_22] : memref<1x128xf32, #tpu.memory_space<vmem>>, vector<1x128xf32>
      %cst_23 = arith.constant dense<0.000000e+00> : vector<128xf32>
      %26 = vector.multi_reduction <add>, %24, %cst_23 [0] : vector<256x128xf32> to vector<128xf32>
      %27 = vector.shape_cast %26 : vector<128xf32> to vector<1x128xf32>
      %28 = arith.addf %25, %27 : vector<1x128xf32>
      %c0_24 = arith.constant 0 : index
      %c0_25 = arith.constant 0 : index
      %29 = vector.load %arg8[%c0_24, %c0_25] : memref<1x128xf32, #tpu.memory_space<vmem>>, vector<1x128xf32>
      tpu.vector_store %arg8[%c0_24, %c0_25], %28 {strides = array<i32>} : memref<1x128xf32, #tpu.memory_space<vmem>>, vector<1x128xf32>,
      %c0_26 = arith.constant 0 : index
      %c0_27 = arith.constant 0 : index
      %30 = vector.load %arg9[%c0_26, %c0_27] : memref<1x128xf32, #tpu.memory_space<vmem>>, vector<1x128xf32>
      %31 = arith.mulf %24, %20 : vector<256x128xf32>
      %cst_28 = arith.constant dense<0.000000e+00> : vector<128xf32>
      %32 = vector.multi_reduction <add>, %31, %cst_28 [0] : vector<256x128xf32> to vector<128xf32>
      %33 = vector.shape_cast %32 : vector<128xf32> to vector<1x128xf32>
      %34 = arith.addf %30, %33 : vector<1x128xf32>
      %c0_29 = arith.constant 0 : index
      %c0_30 = arith.constant 0 : index
      %35 = vector.load %arg9[%c0_29, %c0_30] : memref<1x128xf32, #tpu.memory_space<vmem>>, vector<1x128xf32>
      tpu.vector_store %arg9[%c0_29, %c0_30], %34 {strides = array<i32>} : memref<1x128xf32, #tpu.memory_space<vmem>>, vector<1x128xf32>,
    } else {
    }
    return
  }
  func.func @transform_0(%arg0: i32, %arg1: i32, %arg2: i32) -> (i32, i32) {
    %c0_i32 = arith.constant 0 : i32
    return %arg1, %arg2 : i32, i32
  }
  func.func @transform_1(%arg0: i32, %arg1: i32, %arg2: i32) -> (i32, i32) {
    %c0_i32 = arith.constant 0 : i32
    return %arg2, %arg0 : i32, i32
  }
  func.func @transform_2(%arg0: i32, %arg1: i32, %arg2: i32) -> (i32, i32) {
    %c0_i32 = arith.constant 0 : i32
    %c0_i32_0 = arith.constant 0 : i32
    return %c0_i32, %arg0 : i32, i32
  }
  func.func @transform_3(%arg0: i32, %arg1: i32, %arg2: i32) -> (i32, i32) {
    %c0_i32 = arith.constant 0 : i32
    %c0_i32_0 = arith.constant 0 : i32
    return %arg1, %c0_i32 : i32, i32
  }
  func.func @transform_4(%arg0: i32, %arg1: i32, %arg2: i32) -> (i32, i32) {
    %c0_i32 = arith.constant 0 : i32
    return %arg1, %arg0 : i32, i32
  }
  func.func @transform_5(%arg0: i32, %arg1: i32, %arg2: i32) -> (i32, i32) {
    %c0_i32 = arith.constant 0 : i32
    %c0_i32_0 = arith.constant 0 : i32
    return %c0_i32, %arg0 : i32, i32
  }
  func.func @transform_6(%arg0: i32, %arg1: i32, %arg2: i32) -> (i32, i32) {
    %c0_i32 = arith.constant 0 : i32
    %c0_i32_0 = arith.constant 0 : i32
    return %c0_i32, %arg0 : i32, i32
  }
}

module attributes {stable_mosaic.version = 11 : i64} {
  func.func @_bn2_bn3_add_relu_kernel(%arg0: i32, %arg1: memref<256x128xf32, #tpu.memory_space<vmem>>, %arg2: memref<256x128xf32, #tpu.memory_space<vmem>>, %arg3: memref<1x128xf32, #tpu.memory_space<vmem>>, %arg4: memref<1x128xf32, #tpu.memory_space<vmem>>, %arg5: memref<1x128xf32, #tpu.memory_space<vmem>>, %arg6: memref<1x128xf32, #tpu.memory_space<vmem>>, %arg7: memref<256x128xf32, #tpu.memory_space<vmem>>) attributes {dimension_semantics = [#tpu.dimension_semantics<parallel>], iteration_bounds = array<i64: 3>, scalar_prefetch = 0 : i64, scratch_operands = 0 : i64, tpu.core_type = #tpu.core_type<tc>, window_params = [{transform_indices = @transform_0, window_bounds = array<i64: 256, 128>}, {transform_indices = @transform_1, window_bounds = array<i64: 256, 128>}, {pipeline_mode = #tpu.pipeline_mode<synchronous>, transform_indices = @transform_2, window_bounds = array<i64: 1, 128>}, {pipeline_mode = #tpu.pipeline_mode<synchronous>, transform_indices = @transform_3, window_bounds = array<i64: 1, 128>}, {pipeline_mode = #tpu.pipeline_mode<synchronous>, transform_indices = @transform_4, window_bounds = array<i64: 1, 128>}, {pipeline_mode = #tpu.pipeline_mode<synchronous>, transform_indices = @transform_5, window_bounds = array<i64: 1, 128>}, {transform_indices = @transform_6, window_bounds = array<i64: 256, 128>}]} {
    %c0 = arith.constant 0 : index
    %c0_0 = arith.constant 0 : index
    %0 = vector.load %arg1[%c0, %c0_0] : memref<256x128xf32, #tpu.memory_space<vmem>>, vector<256x128xf32>
    %c0_1 = arith.constant 0 : index
    %c0_2 = arith.constant 0 : index
    %1 = vector.load %arg3[%c0_1, %c0_2] : memref<1x128xf32, #tpu.memory_space<vmem>>, vector<1x128xf32>
    %2 = vector.broadcast %1 : vector<1x128xf32> to vector<256x128xf32>
    %3 = arith.mulf %0, %2 : vector<256x128xf32>
    %c0_3 = arith.constant 0 : index
    %c0_4 = arith.constant 0 : index
    %4 = vector.load %arg4[%c0_3, %c0_4] : memref<1x128xf32, #tpu.memory_space<vmem>>, vector<1x128xf32>
    %5 = vector.broadcast %4 : vector<1x128xf32> to vector<256x128xf32>
    %6 = arith.addf %3, %5 : vector<256x128xf32>
    %c0_5 = arith.constant 0 : index
    %c0_6 = arith.constant 0 : index
    %7 = vector.load %arg2[%c0_5, %c0_6] : memref<256x128xf32, #tpu.memory_space<vmem>>, vector<256x128xf32>
    %c0_7 = arith.constant 0 : index
    %c0_8 = arith.constant 0 : index
    %8 = vector.load %arg5[%c0_7, %c0_8] : memref<1x128xf32, #tpu.memory_space<vmem>>, vector<1x128xf32>
    %9 = vector.broadcast %8 : vector<1x128xf32> to vector<256x128xf32>
    %10 = arith.mulf %7, %9 : vector<256x128xf32>
    %11 = arith.addf %6, %10 : vector<256x128xf32>
    %c0_9 = arith.constant 0 : index
    %c0_10 = arith.constant 0 : index
    %12 = vector.load %arg6[%c0_9, %c0_10] : memref<1x128xf32, #tpu.memory_space<vmem>>, vector<1x128xf32>
    %13 = vector.broadcast %12 : vector<1x128xf32> to vector<256x128xf32>
    %14 = arith.addf %11, %13 : vector<256x128xf32>
    %cst = arith.constant 0.000000e+00 : f32
    %15 = vector.broadcast %cst : f32 to vector<256x128xf32>
    %16 = arith.maximumf %14, %15 : vector<256x128xf32>
    %c0_11 = arith.constant 0 : index
    %c0_12 = arith.constant 0 : index
    %17 = vector.load %arg7[%c0_11, %c0_12] : memref<256x128xf32, #tpu.memory_space<vmem>>, vector<256x128xf32>
    tpu.vector_store %arg7[%c0_11, %c0_12], %16 {strides = array<i32>} : memref<256x128xf32, #tpu.memory_space<vmem>>, vector<256x128xf32>,
    return
  }
  func.func @transform_0(%arg0: i32) -> (i32, i32) {
    %c0_i32 = arith.constant 0 : i32
    %c0_i32_0 = arith.constant 0 : i32
    return %arg0, %c0_i32 : i32, i32
  }
  func.func @transform_1(%arg0: i32) -> (i32, i32) {
    %c0_i32 = arith.constant 0 : i32
    %c0_i32_0 = arith.constant 0 : i32
    return %arg0, %c0_i32 : i32, i32
  }
  func.func @transform_2(%arg0: i32) -> (i32, i32) {
    %c0_i32 = arith.constant 0 : i32
    %c0_i32_0 = arith.constant 0 : i32
    %c0_i32_1 = arith.constant 0 : i32
    return %c0_i32, %c0_i32_0 : i32, i32
  }
  func.func @transform_3(%arg0: i32) -> (i32, i32) {
    %c0_i32 = arith.constant 0 : i32
    %c0_i32_0 = arith.constant 0 : i32
    %c0_i32_1 = arith.constant 0 : i32
    return %c0_i32, %c0_i32_0 : i32, i32
  }
  func.func @transform_4(%arg0: i32) -> (i32, i32) {
    %c0_i32 = arith.constant 0 : i32
    %c0_i32_0 = arith.constant 0 : i32
    %c0_i32_1 = arith.constant 0 : i32
    return %c0_i32, %c0_i32_0 : i32, i32
  }
  func.func @transform_5(%arg0: i32) -> (i32, i32) {
    %c0_i32 = arith.constant 0 : i32
    %c0_i32_0 = arith.constant 0 : i32
    %c0_i32_1 = arith.constant 0 : i32
    return %c0_i32, %c0_i32_0 : i32, i32
  }
  func.func @transform_6(%arg0: i32) -> (i32, i32) {
    %c0_i32 = arith.constant 0 : i32
    %c0_i32_0 = arith.constant 0 : i32
    return %arg0, %c0_i32 : i32, i32
  }
}

</mosaic_0001>

<bundles_post_ra>
// kernel: res_block_forward.6
= control target key start
LH: loop header
LB: loop body
LE: loop exit
PB: predicated region body
PF: predicated region fallthrough
CT: control target
= control target key end

     0   :  { %s749_s15 = smov 0   ;;  %s950_s0 = inlined_call_operand.vmem [shape: f32[768,128], index: 0, kind: input, shape index: {}]   ;;  %s951_s1 = inlined_call_operand.vmem [shape: f32[1,128], index: 1, kind: input, shape index: {}]   ;;  %s952_s2 = inlined_call_operand.vmem [shape: f32[1,128], index: 2, kind: input, shape index: {}]   ;;  %s953_s3 = inlined_call_operand.vmem [shape: f32[768,1], index: 3, kind: input, shape index: {}]   ;;  %s954_s4 = inlined_call_operand.vmem [shape: f32[768,128], index: 4, kind: output, shape index: {}]  }
   0x1 LB: > { %s689_s16 = sadd.s32 4294967295, %s721_s15   ;;  %p693_p0 = scmp.ge.s32.totalorder %s721_s15, 1  ;;  %s721_s15 = sphi %s749_s15, %s14_s15  }
   0x2   : > { %p174_p1 = scmp.lt.s32.totalorder %s721_s15, 4 }
   0x4   : > { %p175_p2 = pnand %p693_p0, %p174_p1 }
   0x5   : > { %s694_s17 = sshll.u32 (!%p175_p2), %s689_s16, 5  ;;  %v723_v0 = vmov (!%p175_p2), 0   ;;  %v806_v33 = vld [vmem:[%s951_s1] ss:$0 sm:$0xff] (!%p175_p2) }
   0x6   : > { %178 = sbr.rel (%p175_p2) target bundleno = 208 (0xd0), region = 36  ;;  %714 = vset.pattern.permute.xlu1 (!%p175_p2), %v723_v0  ;;  %713 = vset.pattern.permute.xlu0 (!%p175_p2), %v723_v0  ;;  %p206_p3 = scmp.lt.s32.totalorder (!%p175_p2), %s694_s17, 95  ;;  %v815_v38 = vld [vmem:[%s952_s2] ss:$0 sm:$0xff] (!%p175_p2) }
   0xd   : > { %s956_s17 = smov (!%p206_p3, %s694_s17), 95 }
   0xe   : > { %s757_s18 = sshll.u32 %s956_s17, 3 }
   0xf   : > { %s763_s21 = scalar_lea.vmem %s953_s3, %s757_s18  ;;  %s801_s24 = scalar_lea.vmem %s950_s0, %s757_s18 }
  0x10   : > { %v367_v1 = vld [vmem:[%s763_s21 + $0x10] sm:$0xff]  ;;  %v365_v2 = vld [vmem:[%s763_s21] sm:$0xff]  ;;  %v368_v3 = vld [vmem:[%s763_s21 + $0x18] sm:$0xff]  ;;  %s835_s5 = scalar_lea.vmem %s954_s4, %s757_s18 }
  0x11   : > { %409 = vperm.xlu1 %714, %v367_v1   ;;  %399 = vperm.xlu0 %713, %v365_v2   ;;  %v366_v4 = vld [vmem:[%s763_s21 + $0x8] sm:$0xff]  ;;  %v369_v6 = vld [vmem:[%s763_s21 + $0x20] sm:$0xff]  ;;  %v372_v7 = vld [vmem:[%s763_s21 + $0x38] sm:$0xff] }
  0x12   : > { %v370_v5 = vld [vmem:[%s763_s21 + $0x28] sm:$0xff]  ;;  %v371_v8 = vld [vmem:[%s763_s21 + $0x30] sm:$0xff]  ;;  %v373_v10 = vld [vmem:[%s763_s21 + $0x40] sm:$0xff] }
  0x13   : > { %v374_v9 = vld [vmem:[%s763_s21 + $0x48] sm:$0xff]  ;;  %v376_v11 = vld [vmem:[%s763_s21 + $0x58] sm:$0xff]  ;;  %v375_v12 = vld [vmem:[%s763_s21 + $0x50] sm:$0xff] }
  0x14   : > { %v378_v13 = vld [vmem:[%s763_s21 + $0x68] sm:$0xff]  ;;  %v377_v14 = vld [vmem:[%s763_s21 + $0x60] sm:$0xff]  ;;  %v380_v15 = vld [vmem:[%s763_s21 + $0x78] sm:$0xff] }
  0x15   : > { %414 = vperm.xlu1 %714, %v368_v3   ;;  %404 = vperm.xlu0 %713, %v366_v4   ;;  %v379_v16 = vld [vmem:[%s763_s21 + $0x70] sm:$0xff]  ;;  %v382_v17 = vld [vmem:[%s763_s21 + $0x88] sm:$0xff]  ;;  %v381_v18 = vld [vmem:[%s763_s21 + $0x80] sm:$0xff] }
  0x16   : > { %v384_v19 = vld [vmem:[%s763_s21 + $0x98] sm:$0xff]  ;;  %v383_v20 = vld [vmem:[%s763_s21 + $0x90] sm:$0xff]  ;;  %v386_v21 = vld [vmem:[%s763_s21 + $0xa8] sm:$0xff] }
  0x17   : > { %v385_v22 = vld [vmem:[%s763_s21 + $0xa0] sm:$0xff]  ;;  %v388_v23 = vld [vmem:[%s763_s21 + $0xb8] sm:$0xff]  ;;  %v387_v24 = vld [vmem:[%s763_s21 + $0xb0] sm:$0xff] }
  0x18   : > { %v390_v25 = vld [vmem:[%s763_s21 + $0xc8] sm:$0xff]  ;;  %v389_v26 = vld [vmem:[%s763_s21 + $0xc0] sm:$0xff]  ;;  %v392_v27 = vld [vmem:[%s763_s21 + $0xd8] sm:$0xff] }
  0x19   : > { %424 = vperm.xlu1 %714, %v370_v5   ;;  %419 = vperm.xlu0 %713, %v369_v6   ;;  %v391_v28 = vld [vmem:[%s763_s21 + $0xd0] sm:$0xff]  ;;  %v394_v29 = vld [vmem:[%s763_s21 + $0xe8] sm:$0xff]  ;;  %v393_v30 = vld [vmem:[%s763_s21 + $0xe0] sm:$0xff] }
  0x1a   : > { %v396_v31 = vld [vmem:[%s763_s21 + $0xf8] sm:$0xff]  ;;  %v395_v32 = vld [vmem:[%s763_s21 + $0xf0] sm:$0xff]  ;;  %v223_v35 = vld [vmem:[%s801_s24] sm:$0xff] }
  0x1b   : > { %v225_v34 = vld [vmem:[%s801_s24 + $0x10] sm:$0xff]  ;;  %v262_v37 = vmul.f32 %v806_v33, %v223_v35  ;;  %v226_v39 = vld [vmem:[%s801_s24 + $0x18] sm:$0xff]  ;;  %v224_v40 = vld [vmem:[%s801_s24 + $0x8] sm:$0xff] }
  0x1c   : > { %v264_v36 = vmul.f32 %v806_v33, %v225_v34  ;;  %v265_v43 = vmul.f32 %v806_v33, %v226_v39  ;;  %v263_v44 = vmul.f32 %v806_v33, %v224_v40  ;;  %v228_v45 = vld [vmem:[%s801_s24 + $0x28] sm:$0xff]  ;;  %v227_v46 = vld [vmem:[%s801_s24 + $0x20] sm:$0xff]  ;;  %v230_v53 = vld [vmem:[%s801_s24 + $0x38] sm:$0xff] }
  0x1d   : > { %434 = vperm.xlu1 %714, %v372_v7   ;;  %429 = vperm.xlu0 %713, %v371_v8   ;;  %v301_v42 = vadd.f32 %v815_v38, %v262_v37  ;;  %v267_v47 = vmul.f32 %v806_v33, %v228_v45  ;;  %v266_v48 = vmul.f32 %v806_v33, %v227_v46  ;;  %v229_v54 = vld [vmem:[%s801_s24 + $0x30] sm:$0xff]  ;;  %v232_v1 = vld [vmem:[%s801_s24 + $0x48] sm:$0xff]  ;;  %v231_v2 = vld [vmem:[%s801_s24 + $0x40] sm:$0xff] }
  0x1e   : > { %v303_v41 = vadd.f32 %v815_v38, %v264_v36  ;;  %v304_v51 = vadd.f32 %v815_v38, %v265_v43  ;;  %v302_v52 = vadd.f32 %v815_v38, %v263_v44  ;;  %v269_v59 = vmul.f32 %v806_v33, %v230_v53  ;;  %v238_v39 = vld [vmem:[%s801_s24 + $0x78] sm:$0xff]  ;;  %v237_v40 = vld [vmem:[%s801_s24 + $0x70] sm:$0xff] }
  0x1f   : > { %v333_v50 = vmax.f32 %v301_v42, 0.0  ;;  %v306_v57 = vadd.f32 %v815_v38, %v267_v47  ;;  %v305_v58 = vadd.f32 %v815_v38, %v266_v48  ;;  %v268_v60 = vmul.f32 %v806_v33, %v229_v54 }
  0x20   : > { %v335_v49 = vmax.f32 %v303_v41, 0.0  ;;  %v336_v63 = vmax.f32 %v304_v51, 0.0  ;;  %v334_v0 = vmax.f32 %v302_v52, 0.0  ;;  %v308_v7 = vadd.f32 %v815_v38, %v269_v59  ;;  %v240_v51 = vld [vmem:[%s801_s24 + $0x88] sm:$0xff]  ;;  %v239_v52 = vld [vmem:[%s801_s24 + $0x80] sm:$0xff] }
  0x21   : > { %444 = vperm.xlu1 %714, %v374_v9   ;;  %439 = vperm.xlu0 %713, %v373_v10   ;;  %v338_v5 = vmax.f32 %v306_v57, 0.0  ;;  %v337_v6 = vmax.f32 %v305_v58, 0.0  ;;  %v307_v8 = vadd.f32 %v815_v38, %v268_v60  ;;  %v277_v45 = vmul.f32 %v806_v33, %v238_v39 }
  0x22   : > { %v276_v46 = vmul.f32 %v806_v33, %v237_v40  ;;  %v279_v57 = vmul.f32 %v806_v33, %v240_v51  ;;  %v278_v58 = vmul.f32 %v806_v33, %v239_v52 }
  0x25   : > { %454 = vperm.xlu1 %714, %v376_v11   ;;  %449 = vperm.xlu0 %713, %v375_v12   ;;  %v271_v11 = vmul.f32 %v806_v33, %v232_v1  ;;  %v270_v12 = vmul.f32 %v806_v33, %v231_v2 }
  0x29   : > { %464 = vperm.xlu1 %714, %v378_v13   ;;  %459 = vperm.xlu0 %713, %v377_v14   ;;  %v234_v13 = vld [vmem:[%s801_s24 + $0x58] sm:$0xff]  ;;  %v233_v14 = vld [vmem:[%s801_s24 + $0x50] sm:$0xff] }
  0x2d   : > { %474 = vperm.xlu1 %714, %v380_v15   ;;  %469 = vperm.xlu0 %713, %v379_v16  }
  0x31   : > { %484 = vperm.xlu1 %714, %v382_v17   ;;  %479 = vperm.xlu0 %713, %v381_v18   ;;  %v340_v17 = vmax.f32 %v308_v7, 0.0  ;;  %v339_v18 = vmax.f32 %v307_v8, 0.0 }
  0x35   : > { %494 = vperm.xlu1 %714, %v384_v19   ;;  %489 = vperm.xlu0 %713, %v383_v20   ;;  %v273_v19 = vmul.f32 %v806_v33, %v234_v13  ;;  %v272_v20 = vmul.f32 %v806_v33, %v233_v14 }
  0x39   : > { %504 = vperm.xlu1 %714, %v386_v21   ;;  %499 = vperm.xlu0 %713, %v385_v22  }
  0x3d   : > { %514 = vperm.xlu1 %714, %v388_v23   ;;  %509 = vperm.xlu0 %713, %v387_v24   ;;  %v310_v23 = vadd.f32 %v815_v38, %v271_v11  ;;  %v309_v24 = vadd.f32 %v815_v38, %v270_v12  ;;  %v244_v11 = vld [vmem:[%s801_s24 + $0xa8] sm:$0xff]  ;;  %v243_v12 = vld [vmem:[%s801_s24 + $0xa0] sm:$0xff] }
  0x3f   : > { %v342_v36 = vmax.f32 %v310_v23, 0.0  ;;  %v341_v37 = vmax.f32 %v309_v24, 0.0  ;;  %v246_v23 = vld [vmem:[%s801_s24 + $0xb8] sm:$0xff]  ;;  %v245_v24 = vld [vmem:[%s801_s24 + $0xb0] sm:$0xff] }
  0x41   : > { %524 = vperm.xlu1 %714, %v390_v25   ;;  %519 = vperm.xlu0 %713, %v389_v26   ;;  %v236_v25 = vld [vmem:[%s801_s24 + $0x68] sm:$0xff]  ;;  %v235_v26 = vld [vmem:[%s801_s24 + $0x60] sm:$0xff] }
  0x45   : > { %534 = vperm.xlu1 %714, %v392_v27   ;;  %529 = vperm.xlu0 %713, %v391_v28  }
  0x49   : > { %544 = vperm.xlu1 %714, %v394_v29   ;;  %539 = vperm.xlu0 %713, %v393_v30   ;;  %v312_v29 = vadd.f32 %v815_v38, %v273_v19  ;;  %v311_v30 = vadd.f32 %v815_v38, %v272_v20 }
  0x4d   : > { %554 = vperm.xlu1 %714, %v396_v31   ;;  %549 = vperm.xlu0 %713, %v395_v32   ;;  %v275_v31 = vmul.f32 %v806_v33, %v236_v25  ;;  %v274_v32 = vmul.f32 %v806_v33, %v235_v26 }
  0x4f   : > { %v314_v43 = vadd.f32 %v815_v38, %v275_v31  ;;  %v313_v44 = vadd.f32 %v815_v38, %v274_v32 }
  0x90   : > { %v410_v55 = vpop.permute.xlu1 %409  ;;  %v400_v56 = vpop.permute.xlu0 %399 }
  0x91   : > { %v559_v61 = vmul.f32 %v410_v55, %v335_v49  ;;  %v557_v62 = vmul.f32 %v400_v56, %v333_v50  ;;  %v344_v49 = vmax.f32 %v312_v29, 0.0  ;;  %v343_v50 = vmax.f32 %v311_v30, 0.0 }
  0x92   : > { %v316_v55 = vadd.f32 %v815_v38, %v277_v45  ;;  %v315_v56 = vadd.f32 %v815_v38, %v276_v46  ;;  %v285_v29 = vmul.f32 %v806_v33, %v246_v23  ;;  %v284_v30 = vmul.f32 %v806_v33, %v245_v24 }
  0x93   : > { %591 = vst [vmem:[%s835_s5 + $0x10] sm:$0xff] %v559_v61  ;;  %589 = vst [vmem:[%s835_s5] sm:$0xff] %v557_v62  ;;  %v346_v61 = vmax.f32 %v314_v43, 0.0  ;;  %v345_v62 = vmax.f32 %v313_v44, 0.0 }
  0x94   : > { %v415_v3 = vpop.permute.xlu1 %414  ;;  %v405_v4 = vpop.permute.xlu0 %404  ;;  %v324_v43 = vadd.f32 %v815_v38, %v285_v29  ;;  %v323_v44 = vadd.f32 %v815_v38, %v284_v30 }
  0x95   : > { %v560_v9 = vmul.f32 %v415_v3, %v336_v63  ;;  %v558_v10 = vmul.f32 %v405_v4, %v334_v0  ;;  %v242_v63 = vld [vmem:[%s801_s24 + $0x98] sm:$0xff]  ;;  %v241_v0 = vld [vmem:[%s801_s24 + $0x90] sm:$0xff]  ;;  %v348_v3 = vmax.f32 %v316_v55, 0.0  ;;  %v347_v4 = vmax.f32 %v315_v56, 0.0 }
  0x97   : > { %592 = vst [vmem:[%s835_s5 + $0x18] sm:$0xff] %v560_v9  ;;  %590 = vst [vmem:[%s835_s5 + $0x8] sm:$0xff] %v558_v10  ;;  %v281_v9 = vmul.f32 %v806_v33, %v242_v63  ;;  %v280_v10 = vmul.f32 %v806_v33, %v241_v0 }
  0x98   : > { %v425_v15 = vpop.permute.xlu1 %424  ;;  %v420_v16 = vpop.permute.xlu0 %419 }
  0x99   : > { %v562_v21 = vmul.f32 %v425_v15, %v338_v5  ;;  %v561_v22 = vmul.f32 %v420_v16, %v337_v6  ;;  %v318_v5 = vadd.f32 %v815_v38, %v279_v57  ;;  %v317_v6 = vadd.f32 %v815_v38, %v278_v58 }
  0x9b   : > { %594 = vst [vmem:[%s835_s5 + $0x28] sm:$0xff] %v562_v21  ;;  %593 = vst [vmem:[%s835_s5 + $0x20] sm:$0xff] %v561_v22  ;;  %v350_v15 = vmax.f32 %v318_v5, 0.0  ;;  %v349_v16 = vmax.f32 %v317_v6, 0.0  ;;  %v320_v21 = vadd.f32 %v815_v38, %v281_v9  ;;  %v319_v22 = vadd.f32 %v815_v38, %v280_v10  ;;  %v254_v9 = vld [vmem:[%s801_s24 + $0xf8] sm:$0xff]  ;;  %v253_v10 = vld [vmem:[%s801_s24 + $0xf0] sm:$0xff] }
  0x9c   : > { %v435_v27 = vpop.permute.xlu1 %434  ;;  %v430_v28 = vpop.permute.xlu0 %429 }
  0x9d   : > { %v564_v34 = vmul.f32 %v435_v27, %v340_v17  ;;  %v563_v35 = vmul.f32 %v430_v28, %v339_v18  ;;  %v283_v17 = vmul.f32 %v806_v33, %v244_v11  ;;  %v282_v18 = vmul.f32 %v806_v33, %v243_v12 }
  0x9f   : > { %596 = vst [vmem:[%s835_s5 + $0x38] sm:$0xff] %v564_v34  ;;  %595 = vst [vmem:[%s835_s5 + $0x30] sm:$0xff] %v563_v35  ;;  %v322_v27 = vadd.f32 %v815_v38, %v283_v17  ;;  %v321_v28 = vadd.f32 %v815_v38, %v282_v18  ;;  %v352_v34 = vmax.f32 %v320_v21, 0.0  ;;  %v351_v35 = vmax.f32 %v319_v22, 0.0 }
  0xa0   : > { %v445_v41 = vpop.permute.xlu1 %444  ;;  %v440_v42 = vpop.permute.xlu0 %439 }
  0xa1   : > { %v566_v47 = vmul.f32 %v445_v41, %v342_v36  ;;  %v565_v48 = vmul.f32 %v440_v42, %v341_v37  ;;  %v248_v36 = vld [vmem:[%s801_s24 + $0xc8] sm:$0xff]  ;;  %v247_v37 = vld [vmem:[%s801_s24 + $0xc0] sm:$0xff]  ;;  %v354_v41 = vmax.f32 %v322_v27, 0.0  ;;  %v353_v42 = vmax.f32 %v321_v28, 0.0 }
  0xa3   : > { %598 = vst [vmem:[%s835_s5 + $0x48] sm:$0xff] %v566_v47  ;;  %597 = vst [vmem:[%s835_s5 + $0x40] sm:$0xff] %v565_v48  ;;  %v287_v47 = vmul.f32 %v806_v33, %v248_v36  ;;  %v286_v48 = vmul.f32 %v806_v33, %v247_v37 }
  0xa4   : > { %v455_v53 = vpop.permute.xlu1 %454  ;;  %v450_v54 = vpop.permute.xlu0 %449 }
  0xa5   : > { %v568_v59 = vmul.f32 %v455_v53, %v344_v49  ;;  %v567_v60 = vmul.f32 %v450_v54, %v343_v50  ;;  %v250_v49 = vld [vmem:[%s801_s24 + $0xd8] sm:$0xff]  ;;  %v249_v50 = vld [vmem:[%s801_s24 + $0xd0] sm:$0xff]  ;;  %v356_v53 = vmax.f32 %v324_v43, 0.0  ;;  %v355_v54 = vmax.f32 %v323_v44, 0.0 }
  0xa6   : > { %v289_v55 = vmul.f32 %v806_v33, %v250_v49  ;;  %v288_v56 = vmul.f32 %v806_v33, %v249_v50 }
  0xa7   : > { %600 = vst [vmem:[%s835_s5 + $0x58] sm:$0xff] %v568_v59  ;;  %599 = vst [vmem:[%s835_s5 + $0x50] sm:$0xff] %v567_v60  ;;  %v326_v59 = vadd.f32 %v815_v38, %v287_v47  ;;  %v325_v60 = vadd.f32 %v815_v38, %v286_v48 }
  0xa8   : > { %v465_v1 = vpop.permute.xlu1 %464  ;;  %v460_v2 = vpop.permute.xlu0 %459 }
  0xa9   : > { %v570_v7 = vmul.f32 %v465_v1, %v346_v61  ;;  %v569_v8 = vmul.f32 %v460_v2, %v345_v62  ;;  %v252_v61 = vld [vmem:[%s801_s24 + $0xe8] sm:$0xff]  ;;  %v251_v62 = vld [vmem:[%s801_s24 + $0xe0] sm:$0xff]  ;;  %v328_v1 = vadd.f32 %v815_v38, %v289_v55  ;;  %v327_v2 = vadd.f32 %v815_v38, %v288_v56 }
  0xab   : > { %602 = vst [vmem:[%s835_s5 + $0x68] sm:$0xff] %v570_v7  ;;  %601 = vst [vmem:[%s835_s5 + $0x60] sm:$0xff] %v569_v8  ;;  %v358_v7 = vmax.f32 %v326_v59, 0.0  ;;  %v357_v8 = vmax.f32 %v325_v60, 0.0 }
  0xac   : > { %v475_v13 = vpop.permute.xlu1 %474  ;;  %v470_v14 = vpop.permute.xlu0 %469 }
  0xad   : > { %v572_v19 = vmul.f32 %v475_v13, %v348_v3  ;;  %v571_v20 = vmul.f32 %v470_v14, %v347_v4  ;;  %v291_v3 = vmul.f32 %v806_v33, %v252_v61  ;;  %v290_v4 = vmul.f32 %v806_v33, %v251_v62 }
  0xae   : > { %v360_v13 = vmax.f32 %v328_v1, 0.0  ;;  %v359_v14 = vmax.f32 %v327_v2, 0.0 }
  0xaf   : > { %604 = vst [vmem:[%s835_s5 + $0x78] sm:$0xff] %v572_v19  ;;  %603 = vst [vmem:[%s835_s5 + $0x70] sm:$0xff] %v571_v20  ;;  %v293_v19 = vmul.f32 %v806_v33, %v254_v9  ;;  %v292_v20 = vmul.f32 %v806_v33, %v253_v10 }
  0xb0   : > { %v485_v25 = vpop.permute.xlu1 %484  ;;  %v480_v26 = vpop.permute.xlu0 %479 }
  0xb1   : > { %v574_v31 = vmul.f32 %v485_v25, %v350_v15  ;;  %v573_v32 = vmul.f32 %v480_v26, %v349_v16  ;;  %v330_v15 = vadd.f32 %v815_v38, %v291_v3  ;;  %v329_v16 = vadd.f32 %v815_v38, %v290_v4 }
  0xb2   : > { %v332_v27 = vadd.f32 %v815_v38, %v293_v19  ;;  %v331_v28 = vadd.f32 %v815_v38, %v292_v20 }
  0xb3   : > { %606 = vst [vmem:[%s835_s5 + $0x88] sm:$0xff] %v574_v31  ;;  %605 = vst [vmem:[%s835_s5 + $0x80] sm:$0xff] %v573_v32  ;;  %v362_v23 = vmax.f32 %v330_v15, 0.0  ;;  %v361_v24 = vmax.f32 %v329_v16, 0.0 }
  0xb4   : > { %v495_v39 = vpop.permute.xlu1 %494  ;;  %v490_v40 = vpop.permute.xlu0 %489  ;;  %v364_v32 = vmax.f32 %v332_v27, 0.0 }
  0xb5   : > { %v576_v45 = vmul.f32 %v495_v39, %v352_v34  ;;  %v575_v46 = vmul.f32 %v490_v40, %v351_v35  ;;  %v363_v34 = vmax.f32 %v331_v28, 0.0 }
  0xb7   : > { %608 = vst [vmem:[%s835_s5 + $0x98] sm:$0xff] %v576_v45  ;;  %607 = vst [vmem:[%s835_s5 + $0x90] sm:$0xff] %v575_v46 }
  0xb8   : > { %v505_v51 = vpop.permute.xlu1 %504  ;;  %v500_v52 = vpop.permute.xlu0 %499 }
  0xb9   : > { %v578_v57 = vmul.f32 %v505_v51, %v354_v41  ;;  %v577_v58 = vmul.f32 %v500_v52, %v353_v42 }
  0xbb   : > { %610 = vst [vmem:[%s835_s5 + $0xa8] sm:$0xff] %v578_v57  ;;  %609 = vst [vmem:[%s835_s5 + $0xa0] sm:$0xff] %v577_v58 }
  0xbc   : > { %v515_v63 = vpop.permute.xlu1 %514  ;;  %v510_v0 = vpop.permute.xlu0 %509 }
  0xbd   : > { %v580_v5 = vmul.f32 %v515_v63, %v356_v53  ;;  %v579_v6 = vmul.f32 %v510_v0, %v355_v54 }
  0xbf   : > { %612 = vst [vmem:[%s835_s5 + $0xb8] sm:$0xff] %v580_v5  ;;  %611 = vst [vmem:[%s835_s5 + $0xb0] sm:$0xff] %v579_v6 }
  0xc0   : > { %v525_v11 = vpop.permute.xlu1 %524  ;;  %v520_v12 = vpop.permute.xlu0 %519 }
  0xc1   : > { %v582_v17 = vmul.f32 %v525_v11, %v358_v7  ;;  %v581_v18 = vmul.f32 %v520_v12, %v357_v8 }
  0xc3   : > { %614 = vst [vmem:[%s835_s5 + $0xc8] sm:$0xff] %v582_v17  ;;  %613 = vst [vmem:[%s835_s5 + $0xc0] sm:$0xff] %v581_v18 }
  0xc4   : > { %v535_v21 = vpop.permute.xlu1 %534  ;;  %v530_v22 = vpop.permute.xlu0 %529 }
  0xc5   : > { %v584_v25 = vmul.f32 %v535_v21, %v360_v13  ;;  %v583_v26 = vmul.f32 %v530_v22, %v359_v14 }
  0xc7   : > { %616 = vst [vmem:[%s835_s5 + $0xd8] sm:$0xff] %v584_v25  ;;  %615 = vst [vmem:[%s835_s5 + $0xd0] sm:$0xff] %v583_v26 }
  0xc8   : > { %v545_v29 = vpop.permute.xlu1 %544  ;;  %v540_v33 = vpop.permute.xlu0 %539 }
  0xc9   : > { %v586_v30 = vmul.f32 %v545_v29, %v362_v23  ;;  %v585_v31 = vmul.f32 %v540_v33, %v361_v24 }
  0xcb   : > { %618 = vst [vmem:[%s835_s5 + $0xe8] sm:$0xff] %v586_v30  ;;  %617 = vst [vmem:[%s835_s5 + $0xe0] sm:$0xff] %v585_v31 }
  0xcc   : > { %v555_v35 = vpop.permute.xlu1 %554  ;;  %v550_v36 = vpop.permute.xlu0 %549 }
  0xcd   : > { %v588_v37 = vmul.f32 %v555_v35, %v364_v32  ;;  %v587_v39 = vmul.f32 %v550_v36, %v363_v34 }
  0xcf   : > { %620 = vst [vmem:[%s835_s5 + $0xf8] sm:$0xff] %v588_v37  ;;  %619 = vst [vmem:[%s835_s5 + $0xf0] sm:$0xff] %v587_v39 }
  0xd0 PF: > { %s14_s15 = sadd.s32 1, %s721_s15  }
  0xd1   : > { %p11_p4 = scmp.ge.s32.totalorder %s14_s15, 5  }
  0xd3   :  { %13 = sbr.rel (!%p11_p4) target bundleno = 1 (0x1), region = 69 }

// kernel: res_block_forward.5
= control target key start
LH: loop header
LB: loop body
LE: loop exit
PB: predicated region body
PF: predicated region fallthrough
CT: control target
= control target key end

     0   :  { %s5675_s21 = smov 0   ;;  %s5677_s22 = smov 0   ;;  %s6751_s0 = inlined_call_operand.vmem [shape: f32[2,336,4], index: 0, kind: input, shape index: {}]   ;;  %s6752_s1 = inlined_call_operand.vmem [shape: bf16[9,4,128], index: 1, kind: input, shape index: {}]   ;;  %s6753_s2 = inlined_call_operand.vmem [shape: f32[1,128], index: 2, kind: input, shape index: {}]   ;;  %s6754_s3 = inlined_call_operand.vmem [shape: f32[288,1], index: 3, kind: input, shape index: {}]   ;;  %s6755_s4 = inlined_call_operand.vmem [shape: f32[2,288,128], index: 4, kind: output, shape index: {0}]   ;;  %s6756_s5 = inlined_call_operand.vmem [shape: f32[1,128], index: 5, kind: output, shape index: {1}]   ;;  %s6757_s6 = inlined_call_operand.vmem [shape: f32[1,128], index: 6, kind: output, shape index: {2}]  }
   0x1   :  { %s5679_s23 = smov 0  }
   0x2 LB: > { %s26_s24 = sadd.s32 1, %s5632_s22  ;;  %p4592_p0 = scmp.ge.s32.totalorder %s5636_s23, 1  ;;  %s5636_s23 = sphi %s5679_s23, %s17_s23   ;;  %s5632_s22 = sphi %s5677_s22, %s6759_s22   ;;  %s5628_s21 = sphi %s5675_s21, %s6758_s21  }
   0x3   : > { %p27_p1 = scmp.ge.s32.totalorder %s26_s24, 2  ;;  %p248_p2 = scmp.lt.s32.totalorder %s5636_s23, 3 }
   0x5   : > { %s6761_s24 = smov (%p27_p1, %s26_s24), 0  ;;  %p249_p3 = pnand %p4592_p0, %p248_p2 }
   0x6   : > { %vm503_vm0 = vcmask (!%p249_p3), 1041408   ;;  %v5698_v0 = vld [vmem:[%s6752_s1 + $0x8] sm:$0x3] (!%p249_p3)  ;;  %v447_v1 = vld [vmem:[%s6752_s1] sm:$0x3] (!%p249_p3)  ;;  %p294_p4 = scmp.lt.s32.totalorder (!%p249_p3), %s5628_s21, 1 }
   0x7   : > { %252 = sbr.rel (%p249_p3) target bundleno = 787 (0x313), region = 36  ;;  %5578 = vmatprep.subr.msk.bf16.mxu0 (!%p249_p3), %vm503_vm0, %v5698_v0  ;;  %5574 = vmatprep.subr.msk.bf16.mxu1 (!%p249_p3), %vm503_vm0, %v447_v1  ;;  %v5709_v2 = vsel (!%p249_p3), %vm503_vm0, %v5698_v0, 0  ;;  %v505_v3 = vsel (!%p249_p3), %vm503_vm0, %v447_v1, 0  ;;  %v4689_v4 = vld [vmem:[%s6752_s1 + $0xa] sm:$0x3] (!%p249_p3)  ;;  %vm448_vm1 = vcmask (!%p249_p3), 31744  }
   0x8   : > { %5095 = vmatpush3.bf16.msra.mxu0 (!%p249_p3), %v5709_v2  ;;  %4943 = vmatpush3.bf16.msra.mxu1 (!%p249_p3), %v505_v3  ;;  %v4613_v5 = vld [vmem:[%s6752_s1 + $0x2] sm:$0x3] (!%p249_p3)  ;;  %v2495_v20 = vsel (!%p249_p3), %vm503_vm0, %v4689_v4, 0  ;;  %v5750_v26 = vld [vmem:[%s6752_s1 + $0xc] sm:$0x3] (!%p249_p3)  ;;  %p4766_p5 = scmp.ne.s32.totalorder (!%p249_p3), %s5628_s21, 0 }
   0x9   : > { %5580 = vmatprep.subr.msk.bf16.mxu0 (!%p249_p3), %vm503_vm0, %v4689_v4  ;;  %5575 = vmatprep.subr.msk.bf16.mxu1 (!%p249_p3), %vm503_vm0, %v4613_v5  ;;  %v903_v18 = vsel (!%p249_p3), %vm503_vm0, %v4613_v5, 0  ;;  %v5755_v27 = vld [vmem:[%s6752_s1 + $0x4] sm:$0x3] (!%p249_p3) }
   0xe   : > { %s5717_s7 = scalar_select %p294_p4, %s5628_s21, 1 }
  0x10   : > { %s5584_s10 = smul.u32 336, %s5717_s7 }
  0x11   : > { %s5585_s28 = smul.u32 288, %s5717_s7 }
  0x12   : > { %s5728_s13 = scalar_lea.vmem %s6751_s0, %s5584_s10 }
  0x13   : > { %v357_v6 = vld [vmem:[%s5728_s13] sm:$0xff]  ;;  %v358_v7 = vld [vmem:[%s5728_s13 + $0x8] sm:$0xff]  ;;  %v1950_v8 = vld [vmem:[%s5728_s13 + $0x13] sm:$0xff]  ;;  %s6355_s10 = scalar_lea.vmem %s6755_s4, %s5585_s28 }
  0x14   : > { %v393_v9 = vpack.c.bf16 %v358_v7, %v357_v6  ;;  %v1951_v10 = vld [vmem:[%s5728_s13 + $0x1b] sm:$0xff]  ;;  %v359_v11 = vld [vmem:[%s5728_s13 + $0x10] sm:$0xff]  ;;  %v1952_v15 = vld [vmem:[%s5728_s13 + $0x23] sm:$0xff] }
  0x15   : > { %v360_v12 = vld [vmem:[%s5728_s13 + $0x18] sm:$0xff]  ;;  %v1986_v13 = vpack.c.bf16 %v1951_v10, %v1950_v8  ;;  %v1953_v16 = vld [vmem:[%s5728_s13 + $0x2b] sm:$0xff]  ;;  %v361_v17 = vld [vmem:[%s5728_s13 + $0x20] sm:$0xff] }
  0x16   : > { %v394_v14 = vpack.c.bf16 %v360_v12, %v359_v11  ;;  %4944 = vmatprep.mubr.msk.bf16.mxu1 %vm448_vm1, %v393_v9  ;;  %v1987_v19 = vpack.c.bf16 %v1953_v16, %v1952_v15  ;;  %v362_v21 = vld [vmem:[%s5728_s13 + $0x28] sm:$0xff]  ;;  %v1954_v22 = vld [vmem:[%s5728_s13 + $0x33] sm:$0xff]  ;;  %v1955_v23 = vld [vmem:[%s5728_s13 + $0x3b] sm:$0xff] }
  0x17   : > { %5096 = vmatprep.mubr.msk.bf16.mxu0 %vm448_vm1, %v1986_v13  ;;  %v395_v24 = vpack.c.bf16 %v362_v21, %v361_v17  ;;  %v1988_v25 = vpack.c.bf16 %v1955_v23, %v1954_v22  ;;  %v363_v28 = vld [vmem:[%s5728_s13 + $0x30] sm:$0xff]  ;;  %v364_v29 = vld [vmem:[%s5728_s13 + $0x38] sm:$0xff]  ;;  %v1956_v30 = vld [vmem:[%s5728_s13 + $0x43] sm:$0xff] }
  0x18   : > { %4945 = vmatmul.mubr.msk.bf16.vlgmr.msra.gmra.mrb[0].mxu1 %vm448_vm1, %v394_v14  ;;  %5097 = vmatmul.mubr.msk.bf16.vlgmr.msra.gmra.mrb[0].mxu0 %vm448_vm1, %v1987_v19  ;;  %v1957_v31 = vld [vmem:[%s5728_s13 + $0x4b] sm:$0xff]  ;;  %v365_v32 = vld [vmem:[%s5728_s13 + $0x40] sm:$0xff]  ;;  %v1958_v34 = vld [vmem:[%s5728_s13 + $0x53] sm:$0xff]  ;;  %v396_v36 = vpack.c.bf16 %v364_v29, %v363_v28  ;;  %v2893_v28 = vsel %vm503_vm0, %v5750_v26, 0 }
  0x19   : > { %4981 = vmatpush3.bf16.msra.mxu1 %v903_v18  ;;  %5133 = vmatpush3.bf16.msra.mxu0 %v2495_v20  ;;  %v366_v33 = vld [vmem:[%s5728_s13 + $0x48] sm:$0xff]  ;;  %v1959_v35 = vld [vmem:[%s5728_s13 + $0x5b] sm:$0xff]  ;;  %v1989_v37 = vpack.c.bf16 %v1957_v31, %v1956_v30  ;;  %v367_v40 = vld [vmem:[%s5728_s13 + $0x50] sm:$0xff] }
  0x1a   : > { %4948 = vmatprep.mubr.msk.bf16.mxu1 %vm448_vm1, %v395_v24  ;;  %5100 = vmatprep.mubr.msk.bf16.mxu0 %vm448_vm1, %v1988_v25  ;;  %v397_v38 = vpack.c.bf16 %v366_v33, %v365_v32  ;;  %v1990_v39 = vpack.c.bf16 %v1959_v35, %v1958_v34  ;;  %v368_v41 = vld [vmem:[%s5728_s13 + $0x58] sm:$0xff]  ;;  %v1960_v42 = vld [vmem:[%s5728_s13 + $0x63] sm:$0xff]  ;;  %v1961_v43 = vld [vmem:[%s5728_s13 + $0x6b] sm:$0xff] }
  0x1b   : > { %5581 = vmatprep.subr.msk.bf16.mxu0 %vm503_vm0, %v5750_v26  ;;  %5576 = vmatprep.subr.msk.bf16.mxu1 %vm503_vm0, %v5755_v27  ;;  %v369_v44 = vld [vmem:[%s5728_s13 + $0x60] sm:$0xff]  ;;  %v370_v45 = vld [vmem:[%s5728_s13 + $0x68] sm:$0xff]  ;;  %v1962_v46 = vld [vmem:[%s5728_s13 + $0x73] sm:$0xff]  ;;  %v398_v48 = vpack.c.bf16 %v368_v41, %v367_v40  ;;  %v1991_v49 = vpack.c.bf16 %v1961_v43, %v1960_v42 }
  0x1c   : > { %v1963_v47 = vld [vmem:[%s5728_s13 + $0x7b] sm:$0xff]  ;;  %v399_v50 = vpack.c.bf16 %v370_v45, %v369_v44  ;;  %v371_v52 = vld [vmem:[%s5728_s13 + $0x70] sm:$0xff]  ;;  %v1964_v54 = vld [vmem:[%s5728_s13 + $0x83] sm:$0xff] }
  0x1d   : > { %v1992_v51 = vpack.c.bf16 %v1963_v47, %v1962_v46  ;;  %v372_v53 = vld [vmem:[%s5728_s13 + $0x78] sm:$0xff]  ;;  %v1965_v55 = vld [vmem:[%s5728_s13 + $0x8b] sm:$0xff]  ;;  %v373_v56 = vld [vmem:[%s5728_s13 + $0x80] sm:$0xff] }
  0x1e   : > { %v374_v57 = vld [vmem:[%s5728_s13 + $0x88] sm:$0xff]  ;;  %v1966_v58 = vld [vmem:[%s5728_s13 + $0x93] sm:$0xff]  ;;  %v1967_v59 = vld [vmem:[%s5728_s13 + $0x9b] sm:$0xff]  ;;  %v400_v60 = vpack.c.bf16 %v372_v53, %v371_v52  ;;  %v1993_v61 = vpack.c.bf16 %v1965_v55, %v1964_v54 }
  0x1f   : > { %v401_v62 = vpack.c.bf16 %v374_v57, %v373_v56  ;;  %v1994_v63 = vpack.c.bf16 %v1967_v59, %v1966_v58  ;;  %v375_v1 = vld [vmem:[%s5728_s13 + $0x90] sm:$0xff]  ;;  %v376_v3 = vld [vmem:[%s5728_s13 + $0x98] sm:$0xff]  ;;  %v1968_v4 = vld [vmem:[%s5728_s13 + $0xa3] sm:$0xff] }
  0x20   : > { %4949 = vmatmul.mubr.msk.bf16.gmra.mrb[4].mxu1 %vm448_vm1, %v396_v36  ;;  %5101 = vmatmul.mubr.msk.bf16.gmra.mrb[4].mxu0 %vm448_vm1, %v1989_v37  ;;  %v1969_v5 = vld [vmem:[%s5728_s13 + $0xab] sm:$0xff]  ;;  %v377_v6 = vld [vmem:[%s5728_s13 + $0xa0] sm:$0xff]  ;;  %v2348_v8 = vld [vmem:[%s5728_s13 + $0x14] sm:$0xff]  ;;  %v402_v10 = vpack.c.bf16 %v376_v3, %v375_v1 }
  0x21   : > { %4952 = vmatprep.mubr.msk.bf16.mxu1 %vm448_vm1, %v397_v38  ;;  %5104 = vmatprep.mubr.msk.bf16.mxu0 %vm448_vm1, %v1990_v39  ;;  %v378_v7 = vld [vmem:[%s5728_s13 + $0xa8] sm:$0xff]  ;;  %v2349_v9 = vld [vmem:[%s5728_s13 + $0x1c] sm:$0xff]  ;;  %v1995_v11 = vpack.c.bf16 %v1969_v5, %v1968_v4  ;;  %v379_v14 = vld [vmem:[%s5728_s13 + $0xb0] sm:$0xff] }
  0x22   : > { %v403_v12 = vpack.c.bf16 %v378_v7, %v377_v6  ;;  %v2384_v13 = vpack.c.bf16 %v2349_v9, %v2348_v8  ;;  %v380_v15 = vld [vmem:[%s5728_s13 + $0xb8] sm:$0xff]  ;;  %v2350_v16 = vld [vmem:[%s5728_s13 + $0x24] sm:$0xff]  ;;  %v2351_v17 = vld [vmem:[%s5728_s13 + $0x2c] sm:$0xff] }
  0x23   : > { %v381_v18 = vld [vmem:[%s5728_s13 + $0xc0] sm:$0xff]  ;;  %v382_v19 = vld [vmem:[%s5728_s13 + $0xc8] sm:$0xff]  ;;  %v2352_v20 = vld [vmem:[%s5728_s13 + $0x34] sm:$0xff]  ;;  %v404_v22 = vpack.c.bf16 %v380_v15, %v379_v14  ;;  %v5820_v23 = vpack.c.bf16 %v2351_v17, %v2350_v16  ;;  %v1301_v15 = vsel %vm503_vm0, %v5755_v27, 0 }
  0x24   : > { %v2353_v21 = vld [vmem:[%s5728_s13 + $0x3c] sm:$0xff]  ;;  %v405_v24 = vpack.c.bf16 %v382_v19, %v381_v18  ;;  %v5830_v29 = vld [vmem:[%s6752_s1 + $0xe] sm:$0x3]  ;;  %v383_v30 = vld [vmem:[%s5728_s13 + $0xd0] sm:$0xff] }
  0x25   : > { %v5822_v25 = vpack.c.bf16 %v2353_v21, %v2352_v20  ;;  %v384_v31 = vld [vmem:[%s5728_s13 + $0xd8] sm:$0xff]  ;;  %v2354_v32 = vld [vmem:[%s5728_s13 + $0x44] sm:$0xff]  ;;  %v2355_v26 = vld [vmem:[%s5728_s13 + $0x4c] sm:$0xff] }
  0x26   : > { %v385_v33 = vld [vmem:[%s5728_s13 + $0xe0] sm:$0xff]  ;;  %v386_v34 = vld [vmem:[%s5728_s13 + $0xe8] sm:$0xff]  ;;  %v2356_v35 = vld [vmem:[%s5728_s13 + $0x54] sm:$0xff]  ;;  %v406_v37 = vpack.c.bf16 %v384_v31, %v383_v30  ;;  %v5847_v38 = vpack.c.bf16 %v2355_v26, %v2354_v32 }
  0x27   : > { %v2357_v36 = vld [vmem:[%s5728_s13 + $0x5c] sm:$0xff]  ;;  %v407_v39 = vpack.c.bf16 %v386_v34, %v385_v33  ;;  %v387_v41 = vld [vmem:[%s5728_s13 + $0xf0] sm:$0xff]  ;;  %v2358_v43 = vld [vmem:[%s5728_s13 + $0x64] sm:$0xff] }
  0x28   : > { %4953 = vmatmul.mubr.msk.bf16.gmra.mrb[8].mxu1 %vm448_vm1, %v398_v48  ;;  %5105 = vmatmul.mubr.msk.bf16.gmra.mrb[8].mxu0 %vm448_vm1, %v1991_v49  ;;  %v5849_v40 = vpack.c.bf16 %v2357_v36, %v2356_v35  ;;  %v388_v42 = vld [vmem:[%s5728_s13 + $0xf8] sm:$0xff]  ;;  %v2359_v44 = vld [vmem:[%s5728_s13 + $0x6c] sm:$0xff]  ;;  %v389_v45 = vld [vmem:[%s5728_s13 + $0x100] sm:$0xff] }
  0x29   : > { %4956 = vmatprep.mubr.msk.bf16.mxu1 %vm448_vm1, %v399_v50  ;;  %5108 = vmatprep.mubr.msk.bf16.mxu0 %vm448_vm1, %v1992_v51  ;;  %v390_v46 = vld [vmem:[%s5728_s13 + $0x108] sm:$0xff]  ;;  %v2360_v47 = vld [vmem:[%s5728_s13 + $0x74] sm:$0xff]  ;;  %v2361_v48 = vld [vmem:[%s5728_s13 + $0x7c] sm:$0xff]  ;;  %v408_v49 = vpack.c.bf16 %v388_v42, %v387_v41  ;;  %v5865_v50 = vpack.c.bf16 %v2359_v44, %v2358_v43 }
  0x2a   : > { %v409_v51 = vpack.c.bf16 %v390_v46, %v389_v45  ;;  %v5867_v52 = vpack.c.bf16 %v2361_v48, %v2360_v47  ;;  %v391_v53 = vld [vmem:[%s5728_s13 + $0x110] sm:$0xff]  ;;  %v392_v54 = vld [vmem:[%s5728_s13 + $0x118] sm:$0xff]  ;;  %v2362_v55 = vld [vmem:[%s5728_s13 + $0x84] sm:$0xff] }
  0x2b   : > { %v2363_v56 = vld [vmem:[%s5728_s13 + $0x8c] sm:$0xff]  ;;  %v756_v57 = vld [vmem:[%s5728_s13 + $0x1] sm:$0xff]  ;;  %v2364_v59 = vld [vmem:[%s5728_s13 + $0x94] sm:$0xff] }
  0x2c   : > { %v757_v58 = vld [vmem:[%s5728_s13 + $0x9] sm:$0xff]  ;;  %v758_v3 = vld [vmem:[%s5728_s13 + $0x11] sm:$0xff]  ;;  %v759_v4 = vld [vmem:[%s5728_s13 + $0x19] sm:$0xff] }
  0x2d   : > { %v2366_v5 = vld [vmem:[%s5728_s13 + $0xa4] sm:$0xff]  ;;  %v2367_v6 = vld [vmem:[%s5728_s13 + $0xac] sm:$0xff]  ;;  %v2368_v9 = vld [vmem:[%s5728_s13 + $0xb4] sm:$0xff] }
  0x2e   : > { %v760_v7 = vld [vmem:[%s5728_s13 + $0x21] sm:$0xff]  ;;  %v761_v8 = vld [vmem:[%s5728_s13 + $0x29] sm:$0xff]  ;;  %v762_v17 = vld [vmem:[%s5728_s13 + $0x31] sm:$0xff] }
  0x2f   : > { %v5911_v16 = vld [vmem:[%s6752_s1 + $0x6] sm:$0x3]  ;;  %v763_v18 = vld [vmem:[%s5728_s13 + $0x39] sm:$0xff]  ;;  %v2371_v27 = vld [vmem:[%s5728_s13 + $0xcc] sm:$0xff] }
  0x30   : > { %4957 = vmatmul.mubr.msk.bf16.gmra.mrb[12].mxu1 %vm448_vm1, %v400_v60  ;;  %5109 = vmatmul.mubr.msk.bf16.gmra.mrb[12].mxu0 %vm448_vm1, %v1993_v61  ;;  %v2365_v60 = vld [vmem:[%s5728_s13 + $0x9c] sm:$0xff]  ;;  %v410_v61 = vpack.c.bf16 %v392_v54, %v391_v53  ;;  %v2370_v19 = vld [vmem:[%s5728_s13 + $0xc4] sm:$0xff]  ;;  %v766_v26 = vld [vmem:[%s5728_s13 + $0x51] sm:$0xff] }
  0x31   : > { %4960 = vmatprep.mubr.msk.bf16.mxu1 %vm448_vm1, %v401_v62  ;;  %5112 = vmatprep.mubr.msk.bf16.mxu0 %vm448_vm1, %v1994_v63  ;;  %v5883_v62 = vpack.c.bf16 %v2363_v56, %v2362_v55  ;;  %v792_v63 = vpack.c.bf16 %v757_v58, %v756_v57  ;;  %v5885_v1 = vpack.c.bf16 %v2365_v60, %v2364_v59  ;;  %v764_v20 = vld [vmem:[%s5728_s13 + $0x41] sm:$0xff]  ;;  %v765_v21 = vld [vmem:[%s5728_s13 + $0x49] sm:$0xff]  ;;  %v767_v33 = vld [vmem:[%s5728_s13 + $0x59] sm:$0xff] }
  0x32   : > { %v5928_v30 = vpack.c.bf16 %v2371_v27, %v2370_v19  ;;  %v796_v31 = vpack.c.bf16 %v765_v21, %v764_v20  ;;  %v2374_v34 = vld [vmem:[%s5728_s13 + $0xe4] sm:$0xff]  ;;  %v2375_v35 = vld [vmem:[%s5728_s13 + $0xec] sm:$0xff]  ;;  %v2377_v41 = vld [vmem:[%s5728_s13 + $0xfc] sm:$0xff]  ;;  %v797_v42 = vpack.c.bf16 %v767_v33, %v766_v26 }
  0x33   : > { %v768_v36 = vld [vmem:[%s5728_s13 + $0x61] sm:$0xff]  ;;  %v5946_v43 = vpack.c.bf16 %v2375_v35, %v2374_v34  ;;  %v770_v46 = vld [vmem:[%s5728_s13 + $0x71] sm:$0xff]  ;;  %v771_v47 = vld [vmem:[%s5728_s13 + $0x79] sm:$0xff] }
  0x34   : > { %v2378_v48 = vld [vmem:[%s5728_s13 + $0x104] sm:$0xff]  ;;  %v2380_v54 = vld [vmem:[%s5728_s13 + $0x114] sm:$0xff]  ;;  %v2381_v55 = vld [vmem:[%s5728_s13 + $0x11c] sm:$0xff]  ;;  %v799_v56 = vpack.c.bf16 %v771_v47, %v770_v46 }
  0x35   : > { %v773_v53 = vld [vmem:[%s5728_s13 + $0x89] sm:$0xff]  ;;  %v5966_v59 = vpack.c.bf16 %v2381_v55, %v2380_v54  ;;  %v774_v60 = vld [vmem:[%s5728_s13 + $0x91] sm:$0xff]  ;;  %v783_v27 = vld [vmem:[%s5728_s13 + $0xd9] sm:$0xff] }
  0x36   : > { %v5998_v19 = vld [vmem:[%s6752_s1 + $0x10] sm:$0x3]  ;;  %v791_v33 = vld [vmem:[%s5728_s13 + $0x119] sm:$0xff]  ;;  %v1170_v54 = vld [vmem:[%s5728_s13 + $0x82] sm:$0xff] }
  0x37   : > { %v785_v20 = vld [vmem:[%s5728_s13 + $0xe9] sm:$0xff] }
  0x38   : > { %4961 = vmatmul.mubr.msk.bf16.gmra.mrb[16].mxu1 %vm448_vm1, %v402_v10  ;;  %5113 = vmatmul.mubr.msk.bf16.gmra.mrb[16].mxu0 %vm448_vm1, %v1995_v11  ;;  %v2369_v10 = vld [vmem:[%s5728_s13 + $0xbc] sm:$0xff]  ;;  %v793_v11 = vpack.c.bf16 %v759_v4, %v758_v3  ;;  %v2383_v3 = vld [vmem:[%s5728_s13 + $0x12c] sm:$0xff] }
  0x39   : > { %4964 = vmatprep.mubr.msk.bf16.mxu1 %vm448_vm1, %v403_v12  ;;  %5134 = vmatprep.mubr.msk.bf16.mxu0 %vm448_vm1, %v2384_v13  ;;  %v5901_v12 = vpack.c.bf16 %v2367_v6, %v2366_v5  ;;  %v794_v13 = vpack.c.bf16 %v761_v8, %v760_v7  ;;  %v5903_v14 = vpack.c.bf16 %v2369_v10, %v2368_v9  ;;  %v776_v4 = vld [vmem:[%s5728_s13 + $0xa1] sm:$0xff]  ;;  %v777_v5 = vld [vmem:[%s5728_s13 + $0xa9] sm:$0xff]  ;;  %v778_v9 = vld [vmem:[%s5728_s13 + $0xb1] sm:$0xff] }
  0x3a   : > { %v802_v8 = vpack.c.bf16 %v777_v5, %v776_v4  ;;  %v779_v10 = vld [vmem:[%s5728_s13 + $0xb9] sm:$0xff]  ;;  %v1155_v34 = vld [vmem:[%s5728_s13 + $0xa] sm:$0xff] }
  0x3b   : > { %v1163_v46 = vld [vmem:[%s5728_s13 + $0x4a] sm:$0xff] }
  0x3c   : > { %v1171_v55 = vld [vmem:[%s5728_s13 + $0x8a] sm:$0xff] }
  0x3d   : > { %v3144_v4 = vld [vmem:[%s5728_s13 + $0x25] sm:$0xff] }
  0x40   : > { %4965 = vmatmul.mubr.msk.bf16.gmra.mrb[20].mxu1 %vm448_vm1, %v404_v22  ;;  %5135 = vmatmul.mubr.msk.bf16.vlgmr.msra.gmra.mrb[0].mxu0 %vm448_vm1, %v5820_v23  ;;  %v2372_v22 = vld [vmem:[%s5728_s13 + $0xd4] sm:$0xff] }
  0x41   : > { %4968 = vmatprep.mubr.msk.bf16.mxu1 %vm448_vm1, %v405_v24  ;;  %5171 = vmatpush3.bf16.msra.mxu0 %v2893_v28  ;;  %v2373_v24 = vld [vmem:[%s5728_s13 + $0xdc] sm:$0xff]  ;;  %v795_v28 = vpack.c.bf16 %v763_v18, %v762_v17  ;;  %v3291_v18 = vsel %vm503_vm0, %v5830_v29, 0 }
  0x42   : > { %5138 = vmatprep.mubr.msk.bf16.mxu0 %vm448_vm1, %v5822_v25  ;;  %5582 = vmatprep.subr.msk.bf16.mxu0 %vm503_vm0, %v5830_v29  ;;  %v5930_v32 = vpack.c.bf16 %v2373_v24, %v2372_v22  ;;  %v784_v29 = vld [vmem:[%s5728_s13 + $0xe1] sm:$0xff] }
  0x43   : > { %v806_v22 = vpack.c.bf16 %v785_v20, %v784_v29  ;;  %v788_v24 = vld [vmem:[%s5728_s13 + $0x101] sm:$0xff] }
  0x48   : > { %4969 = vmatmul.mubr.msk.bf16.gmra.mrb[24].mxu1 %vm448_vm1, %v406_v37  ;;  %5139 = vmatmul.mubr.msk.bf16.gmra.mrb[4].mxu0 %vm448_vm1, %v5847_v38  ;;  %v769_v37 = vld [vmem:[%s5728_s13 + $0x69] sm:$0xff] }
  0x49   : > { %4972 = vmatprep.mubr.msk.bf16.mxu1 %vm448_vm1, %v407_v39  ;;  %5142 = vmatprep.mubr.msk.bf16.mxu0 %vm448_vm1, %v5849_v40  ;;  %v2376_v39 = vld [vmem:[%s5728_s13 + $0xf4] sm:$0xff]  ;;  %v798_v44 = vpack.c.bf16 %v769_v37, %v768_v36 }
  0x4a   : > { %v5948_v45 = vpack.c.bf16 %v2377_v41, %v2376_v39  ;;  %v1157_v37 = vld [vmem:[%s5728_s13 + $0x1a] sm:$0xff]  ;;  %v1159_v39 = vld [vmem:[%s5728_s13 + $0x2a] sm:$0xff] }
  0x50   : > { %4973 = vmatmul.mubr.msk.bf16.gmra.mrb[28].mxu1 %vm448_vm1, %v408_v49  ;;  %5143 = vmatmul.mubr.msk.bf16.gmra.mrb[8].mxu0 %vm448_vm1, %v5865_v50  ;;  %v2379_v49 = vld [vmem:[%s5728_s13 + $0x10c] sm:$0xff] }
  0x51   : > { %4976 = vmatprep.mubr.msk.bf16.mxu1 %vm448_vm1, %v409_v51  ;;  %5146 = vmatprep.mubr.msk.bf16.mxu0 %vm448_vm1, %v5867_v52  ;;  %v772_v51 = vld [vmem:[%s5728_s13 + $0x81] sm:$0xff]  ;;  %v5964_v57 = vpack.c.bf16 %v2379_v49, %v2378_v48  ;;  %v1167_v49 = vld [vmem:[%s5728_s13 + $0x6a] sm:$0xff] }
  0x52   : > { %v800_v58 = vpack.c.bf16 %v773_v53, %v772_v51  ;;  %v1165_v48 = vld [vmem:[%s5728_s13 + $0x5a] sm:$0xff] }
  0x58   : > { %4977 = vmatmul.mubr.msk.bf16.gmra.mrb[32].mxu1 %vm448_vm1, %v410_v61  ;;  %5147 = vmatmul.mubr.msk.bf16.gmra.mrb[12].mxu0 %vm448_vm1, %v5883_v62  ;;  %v775_v61 = vld [vmem:[%s5728_s13 + $0x99] sm:$0xff] }
  0x59   : > { %4982 = vmatprep.mubr.msk.bf16.mxu1 %vm448_vm1, %v792_v63  ;;  %5150 = vmatprep.mubr.msk.bf16.mxu0 %vm448_vm1, %v5885_v1  ;;  %v2382_v63 = vld [vmem:[%s5728_s13 + $0x124] sm:$0xff]  ;;  %v801_v6 = vpack.c.bf16 %v775_v61, %v774_v60  ;;  %v1173_v60 = vld [vmem:[%s5728_s13 + $0x9a] sm:$0xff] }
  0x5a   : > { %v5980_v7 = vpack.c.bf16 %v2383_v3, %v2382_v63  ;;  %v2781_v61 = vld [vmem:[%s5728_s13 + $0x13c] sm:$0xff]  ;;  %v1175_v3 = vld [vmem:[%s5728_s13 + $0xaa] sm:$0xff] }
  0x5b   : > { %v1174_v63 = vld [vmem:[%s5728_s13 + $0xa2] sm:$0xff] }
  0x60   : > { %4983 = vmatmul.mubr.msk.bf16.vlgmr.msra.gmra.mrb[0].mxu1 %vm448_vm1, %v793_v11  ;;  %5151 = vmatmul.mubr.msk.bf16.gmra.mrb[16].mxu0 %vm448_vm1, %v5901_v12  ;;  %v780_v11 = vld [vmem:[%s5728_s13 + $0xc1] sm:$0xff] }
  0x61   : > { %4986 = vmatprep.mubr.msk.bf16.mxu1 %vm448_vm1, %v794_v13  ;;  %5154 = vmatprep.mubr.msk.bf16.mxu0 %vm448_vm1, %v5903_v14  ;;  %v781_v13 = vld [vmem:[%s5728_s13 + $0xc9] sm:$0xff] }
  0x62   : > { %5019 = vmatpush3.bf16.msra.mxu1 %v1301_v15  ;;  %v803_v15 = vpack.c.bf16 %v779_v10, %v778_v9  ;;  %v804_v17 = vpack.c.bf16 %v781_v13, %v780_v11  ;;  %v1177_v10 = vld [vmem:[%s5728_s13 + $0xba] sm:$0xff] }
  0x63   : > { %5577 = vmatprep.subr.msk.bf16.mxu1 %vm503_vm0, %v5911_v16  ;;  %v3146_v11 = vld [vmem:[%s5728_s13 + $0x35] sm:$0xff]  ;;  %v3147_v13 = vld [vmem:[%s5728_s13 + $0x3d] sm:$0xff] }
  0x64   : > { %v3181_v29 = vpack.c.bf16 %v3147_v13, %v3146_v11 }
  0x68   : > { %4987 = vmatmul.mubr.msk.bf16.gmra.mrb[4].mxu1 %vm448_vm1, %v795_v28  ;;  %5155 = vmatmul.mubr.msk.bf16.gmra.mrb[20].mxu0 %vm448_vm1, %v5928_v30  ;;  %v789_v28 = vld [vmem:[%s5728_s13 + $0x109] sm:$0xff] }
  0x69   : > { %4990 = vmatprep.mubr.msk.bf16.mxu1 %vm448_vm1, %v796_v31  ;;  %5158 = vmatprep.mubr.msk.bf16.mxu0 %vm448_vm1, %v5930_v32  ;;  %v808_v26 = vpack.c.bf16 %v789_v28, %v788_v24  ;;  %v3150_v24 = vld [vmem:[%s5728_s13 + $0x55] sm:$0xff]  ;;  %v3151_v28 = vld [vmem:[%s5728_s13 + $0x5d] sm:$0xff] }
  0x70   : > { %4991 = vmatmul.mubr.msk.bf16.gmra.mrb[8].mxu1 %vm448_vm1, %v797_v42  ;;  %5159 = vmatmul.mubr.msk.bf16.gmra.mrb[24].mxu0 %vm448_vm1, %v5946_v43 }
  0x71   : > { %4994 = vmatprep.mubr.msk.bf16.mxu1 %vm448_vm1, %v798_v44  ;;  %5162 = vmatprep.mubr.msk.bf16.mxu0 %vm448_vm1, %v5948_v45  ;;  %v1699_v44 = vsel %vm503_vm0, %v5911_v16, 0  ;;  %v1162_v16 = vld [vmem:[%s5728_s13 + $0x42] sm:$0xff] }
  0x78   : > { %4995 = vmatmul.mubr.msk.bf16.gmra.mrb[12].mxu1 %vm448_vm1, %v799_v56  ;;  %5163 = vmatmul.mubr.msk.bf16.gmra.mrb[28].mxu0 %vm448_vm1, %v5964_v57 }
  0x79   : > { %4998 = vmatprep.mubr.msk.bf16.mxu1 %vm448_vm1, %v800_v58  ;;  %5166 = vmatprep.mubr.msk.bf16.mxu0 %vm448_vm1, %v5966_v59  ;;  %v6095_v58 = vpack.c.bf16 %v1171_v55, %v1170_v54  ;;  %v3160_v54 = vld [vmem:[%s5728_s13 + $0xa5] sm:$0xff]  ;;  %v3161_v55 = vld [vmem:[%s5728_s13 + $0xad] sm:$0xff] }
  0x80   : > { %4999 = vmatmul.mubr.msk.bf16.gmra.mrb[16].mxu1 %vm448_vm1, %v801_v6  ;;  %5167 = vmatmul.mubr.msk.bf16.gmra.mrb[32].mxu0 %vm448_vm1, %v5980_v7 }
  0x81   : > { %5002 = vmatprep.mubr.msk.bf16.mxu1 %vm448_vm1, %v802_v8  ;;  %5172 = vmatprep.mubr.msk.bf16.mxu0 %vm448_vm1, %v5820_v23  ;;  %v782_v23 = vld [vmem:[%s5728_s13 + $0xd1] sm:$0xff]  ;;  %v6115_v8 = vpack.c.bf16 %v1175_v3, %v1174_v63  ;;  %v3163_v63 = vld [vmem:[%s5728_s13 + $0xbd] sm:$0xff]  ;;  %v3164_v3 = vld [vmem:[%s5728_s13 + $0xc5] sm:$0xff] }
  0x82   : > { %v805_v21 = vpack.c.bf16 %v783_v27, %v782_v23  ;;  %v3149_v23 = vld [vmem:[%s5728_s13 + $0x4d] sm:$0xff] }
  0x88   : > { %5003 = vmatmul.mubr.msk.bf16.gmra.mrb[20].mxu1 %vm448_vm1, %v803_v15  ;;  %5173 = vmatmul.mubr.msk.bf16.vlgmr.msra.gmra.mrb[0].mxu0 %vm448_vm1, %v5822_v25  ;;  %v786_v25 = vld [vmem:[%s5728_s13 + $0xf1] sm:$0xff]  ;;  %v1178_v15 = vld [vmem:[%s5728_s13 + $0xc2] sm:$0xff] }
  0x89   : > { %5006 = vmatprep.mubr.msk.bf16.mxu1 %vm448_vm1, %v804_v17  ;;  %5209 = vmatpush3.bf16.msra.mxu0 %v3291_v18  ;;  %v1179_v17 = vld [vmem:[%s5728_s13 + $0xca] sm:$0xff] }
  0x8a   : > { %5176 = vmatprep.mubr.msk.bf16.mxu0 %vm448_vm1, %v5847_v38  ;;  %5583 = vmatprep.subr.msk.bf16.mxu0 %vm503_vm0, %v5998_v19  ;;  %v787_v38 = vld [vmem:[%s5728_s13 + $0xf9] sm:$0xff]  ;;  %v3148_v18 = vld [vmem:[%s5728_s13 + $0x45] sm:$0xff]  ;;  %v6133_v20 = vpack.c.bf16 %v1179_v17, %v1178_v15  ;;  %v3173_v15 = vld [vmem:[%s5728_s13 + $0x10d] sm:$0xff] }
  0x8b   : > { %v807_v31 = vpack.c.bf16 %v787_v38, %v786_v25  ;;  %v1180_v25 = vld [vmem:[%s5728_s13 + $0xd2] sm:$0xff]  ;;  %v1181_v38 = vld [vmem:[%s5728_s13 + $0xda] sm:$0xff] }
  0x90   : > { %5007 = vmatmul.mubr.msk.bf16.gmra.mrb[24].mxu1 %vm448_vm1, %v805_v21  ;;  %5177 = vmatmul.mubr.msk.bf16.gmra.mrb[4].mxu0 %vm448_vm1, %v5849_v40  ;;  %v790_v40 = vld [vmem:[%s5728_s13 + $0x111] sm:$0xff]  ;;  %v3182_v21 = vpack.c.bf16 %v3149_v23, %v3148_v18  ;;  %v3176_v23 = vld [vmem:[%s5728_s13 + $0x125] sm:$0xff] }
  0x91   : > { %5010 = vmatprep.mubr.msk.bf16.mxu1 %vm448_vm1, %v806_v22  ;;  %5180 = vmatprep.mubr.msk.bf16.mxu0 %vm448_vm1, %v5865_v50  ;;  %v1154_v50 = vld [vmem:[%s5728_s13 + $0x2] sm:$0xff]  ;;  %v809_v35 = vpack.c.bf16 %v791_v33, %v790_v40  ;;  %v3689_v22 = vsel %vm503_vm0, %v5998_v19, 0  ;;  %v3153_v40 = vld [vmem:[%s5728_s13 + $0x6d] sm:$0xff]  ;;  %v6151_v33 = vpack.c.bf16 %v1181_v38, %v1180_v25 }
  0x92   : > { %v1190_v36 = vpack.c.bf16 %v1155_v34, %v1154_v50  ;;  %v1182_v19 = vld [vmem:[%s5728_s13 + $0xe2] sm:$0xff]  ;;  %v3183_v50 = vpack.c.bf16 %v3151_v28, %v3150_v24  ;;  %v3543_v38 = vld [vmem:[%s5728_s13 + $0x2e] sm:$0xff] }
  0x93   : > { %v3542_v25 = vld [vmem:[%s5728_s13 + $0x26] sm:$0xff] }
  0x94   : > { %v3578_v28 = vpack.c.bf16 %v3543_v38, %v3542_v25  ;;  %v3570_v25 = vld [vmem:[%s5728_s13 + $0x106] sm:$0xff]  ;;  %v3571_v38 = vld [vmem:[%s5728_s13 + $0x10e] sm:$0xff] }
  0x98   : > { %5011 = vmatmul.mubr.msk.bf16.gmra.mrb[28].mxu1 %vm448_vm1, %v807_v31  ;;  %5181 = vmatmul.mubr.msk.bf16.gmra.mrb[8].mxu0 %vm448_vm1, %v5867_v52  ;;  %v1156_v52 = vld [vmem:[%s5728_s13 + $0x12] sm:$0xff]  ;;  %v1183_v31 = vld [vmem:[%s5728_s13 + $0xea] sm:$0xff] }
  0x99   : > { %5014 = vmatprep.mubr.msk.bf16.mxu1 %vm448_vm1, %v808_v26  ;;  %5184 = vmatprep.mubr.msk.bf16.mxu0 %vm448_vm1, %v5883_v62  ;;  %v1158_v62 = vld [vmem:[%s5728_s13 + $0x22] sm:$0xff]  ;;  %v6041_v41 = vpack.c.bf16 %v1157_v37, %v1156_v52  ;;  %v6153_v34 = vpack.c.bf16 %v1183_v31, %v1182_v19  ;;  %v1185_v52 = vld [vmem:[%s5728_s13 + $0xfa] sm:$0xff]  ;;  %v3547_v31 = vld [vmem:[%s5728_s13 + $0x4e] sm:$0xff] }
  0x9a   : > { %v6043_v42 = vpack.c.bf16 %v1159_v39, %v1158_v62  ;;  %v3152_v26 = vld [vmem:[%s5728_s13 + $0x65] sm:$0xff]  ;;  %v3154_v37 = vld [vmem:[%s5728_s13 + $0x75] sm:$0xff]  ;;  %v3155_v62 = vld [vmem:[%s5728_s13 + $0x7d] sm:$0xff] }
  0x9b   : > { %v1186_v39 = vld [vmem:[%s5728_s13 + $0x102] sm:$0xff] }
  0x9c   : > { %v3546_v19 = vld [vmem:[%s5728_s13 + $0x46] sm:$0xff] }
  0xa0   : > { %5015 = vmatmul.mubr.msk.bf16.gmra.mrb[32].mxu1 %vm448_vm1, %v809_v35  ;;  %5185 = vmatmul.mubr.msk.bf16.gmra.mrb[12].mxu0 %vm448_vm1, %v5885_v1  ;;  %v1160_v1 = vld [vmem:[%s5728_s13 + $0x32] sm:$0xff]  ;;  %v3184_v35 = vpack.c.bf16 %v3153_v40, %v3152_v26  ;;  %v3580_v40 = vpack.c.bf16 %v3547_v31, %v3546_v19  ;;  %v1984_v19 = vld [vmem:[%s5728_s13 + $0x123] sm:$0xff] }
  0xa1   : > { %5020 = vmatprep.mubr.msk.bf16.mxu1 %vm448_vm1, %v1190_v36  ;;  %5188 = vmatprep.mubr.msk.bf16.mxu0 %vm448_vm1, %v5901_v12  ;;  %v1161_v12 = vld [vmem:[%s5728_s13 + $0x3a] sm:$0xff]  ;;  %v1184_v36 = vld [vmem:[%s5728_s13 + $0xf2] sm:$0xff] }
  0xa2   : > { %v6061_v47 = vpack.c.bf16 %v1161_v12, %v1160_v1  ;;  %v3156_v1 = vld [vmem:[%s5728_s13 + $0x85] sm:$0xff]  ;;  %v3157_v12 = vld [vmem:[%s5728_s13 + $0x8d] sm:$0xff] }
  0xa3   : > { %v1985_v31 = vld [vmem:[%s5728_s13 + $0x12b] sm:$0xff] }
  0xa8   : > { %5021 = vmatmul.mubr.msk.bf16.vlgmr.msra.gmra.mrb[0].mxu1 %vm448_vm1, %v6041_v41  ;;  %5189 = vmatmul.mubr.msk.bf16.gmra.mrb[16].mxu0 %vm448_vm1, %v5903_v14  ;;  %v6063_v14 = vpack.c.bf16 %v1163_v46, %v1162_v16  ;;  %v6169_v16 = vpack.c.bf16 %v1185_v52, %v1184_v36  ;;  %v3185_v46 = vpack.c.bf16 %v3155_v62, %v3154_v37  ;;  %v3554_v37 = vld [vmem:[%s5728_s13 + $0x86] sm:$0xff]  ;;  %v3555_v62 = vld [vmem:[%s5728_s13 + $0x8e] sm:$0xff] }
  0xa9   : > { %5024 = vmatprep.mubr.msk.bf16.mxu1 %vm448_vm1, %v6043_v42  ;;  %5192 = vmatprep.mubr.msk.bf16.mxu0 %vm448_vm1, %v5928_v30  ;;  %v1164_v30 = vld [vmem:[%s5728_s13 + $0x52] sm:$0xff] }
  0xaa   : > { %5057 = vmatpush3.bf16.msra.mxu1 %v1699_v44  ;;  %v6077_v51 = vpack.c.bf16 %v1165_v48, %v1164_v30  ;;  %v1187_v44 = vld [vmem:[%s5728_s13 + $0x10a] sm:$0xff]  ;;  %v3186_v48 = vpack.c.bf16 %v3157_v12, %v3156_v1  ;;  %v3556_v12 = vld [vmem:[%s5728_s13 + $0x96] sm:$0xff] }
  0xab   : > { %5579 = vmatprep.subr.msk.bf16.mxu1 %vm503_vm0, %v5698_v0  ;;  %v1166_v0 = vld [vmem:[%s5728_s13 + $0x62] sm:$0xff]  ;;  %v6171_v30 = vpack.c.bf16 %v1187_v44, %v1186_v39  ;;  %v3584_v44 = vpack.c.bf16 %v3555_v62, %v3554_v37  ;;  %v1587_v1 = vld [vmem:[%s5728_s13 + $0x12a] sm:$0xff] }
  0xac   : > { %v6079_v53 = vpack.c.bf16 %v1167_v49, %v1166_v0  ;;  %v1188_v0 = vld [vmem:[%s5728_s13 + $0x112] sm:$0xff]  ;;  %v1189_v49 = vld [vmem:[%s5728_s13 + $0x11a] sm:$0xff] }
  0xb0   : > { %5025 = vmatmul.mubr.msk.bf16.gmra.mrb[4].mxu1 %vm448_vm1, %v6061_v47  ;;  %5193 = vmatmul.mubr.msk.bf16.gmra.mrb[20].mxu0 %vm448_vm1, %v5930_v32  ;;  %v1168_v32 = vld [vmem:[%s5728_s13 + $0x72] sm:$0xff] }
  0xb1   : > { %5028 = vmatprep.mubr.msk.bf16.mxu1 %vm448_vm1, %v6063_v14  ;;  %5196 = vmatprep.mubr.msk.bf16.mxu0 %vm448_vm1, %v5946_v43  ;;  %v1169_v43 = vld [vmem:[%s5728_s13 + $0x7a] sm:$0xff] }
  0xb2   : > { %v6093_v56 = vpack.c.bf16 %v1169_v43, %v1168_v32  ;;  %v3158_v32 = vld [vmem:[%s5728_s13 + $0x95] sm:$0xff]  ;;  %v3159_v43 = vld [vmem:[%s5728_s13 + $0x9d] sm:$0xff] }
  0xb8   : > { %5029 = vmatmul.mubr.msk.bf16.gmra.mrb[8].mxu1 %vm448_vm1, %v6077_v51  ;;  %5197 = vmatmul.mubr.msk.bf16.gmra.mrb[24].mxu0 %vm448_vm1, %v5948_v45  ;;  %v1172_v45 = vld [vmem:[%s5728_s13 + $0x92] sm:$0xff] }
  0xb9   : > { %5032 = vmatprep.mubr.msk.bf16.mxu1 %vm448_vm1, %v6079_v53  ;;  %5200 = vmatprep.mubr.msk.bf16.mxu0 %vm448_vm1, %v5964_v57  ;;  %v2780_v57 = vld [vmem:[%s5728_s13 + $0x134] sm:$0xff]  ;;  %v6113_v5 = vpack.c.bf16 %v1173_v60, %v1172_v45  ;;  %v6185_v45 = vpack.c.bf16 %v1189_v49, %v1188_v0  ;;  %v3187_v60 = vpack.c.bf16 %v3159_v43, %v3158_v32 }
  0xba   : > { %v2799_v6 = vpack.c.bf16 %v2781_v61, %v2780_v57  ;;  %v3188_v57 = vpack.c.bf16 %v3161_v55, %v3160_v54  ;;  %v3162_v61 = vld [vmem:[%s5728_s13 + $0xb5] sm:$0xff]  ;;  %v1972_v55 = vld [vmem:[%s5728_s13 + $0xc3] sm:$0xff] }
  0xbb   : > { %v3559_v0 = vld [vmem:[%s5728_s13 + $0xae] sm:$0xff] }
  0xc0   : > { %5033 = vmatmul.mubr.msk.bf16.gmra.mrb[12].mxu1 %vm448_vm1, %v6093_v56  ;;  %5201 = vmatmul.mubr.msk.bf16.gmra.mrb[28].mxu0 %vm448_vm1, %v5966_v59  ;;  %v3145_v59 = vld [vmem:[%s5728_s13 + $0x2d] sm:$0xff] }
  0xc1   : > { %5036 = vmatprep.mubr.msk.bf16.mxu1 %vm448_vm1, %v6095_v58  ;;  %5204 = vmatprep.mubr.msk.bf16.mxu0 %vm448_vm1, %v5980_v7  ;;  %v3180_v9 = vpack.c.bf16 %v3145_v59, %v3144_v4  ;;  %v1176_v7 = vld [vmem:[%s5728_s13 + $0xb2] sm:$0xff]  ;;  %v3189_v59 = vpack.c.bf16 %v3163_v63, %v3162_v61  ;;  %v1975_v63 = vld [vmem:[%s5728_s13 + $0xdb] sm:$0xff] }
  0xc2   : > { %v6131_v27 = vpack.c.bf16 %v1177_v10, %v1176_v7  ;;  %v3165_v4 = vld [vmem:[%s5728_s13 + $0xcd] sm:$0xff]  ;;  %v3168_v7 = vld [vmem:[%s5728_s13 + $0xe5] sm:$0xff] }
  0xc3   : > { %v3169_v10 = vld [vmem:[%s5728_s13 + $0xed] sm:$0xff] }
  0xc4   : > { %v3192_v13 = vpack.c.bf16 %v3169_v10, %v3168_v7  ;;  %v1974_v61 = vld [vmem:[%s5728_s13 + $0xd3] sm:$0xff]  ;;  %v1976_v7 = vld [vmem:[%s5728_s13 + $0xe3] sm:$0xff]  ;;  %v1977_v10 = vld [vmem:[%s5728_s13 + $0xeb] sm:$0xff] }
  0xc8   : > { %5037 = vmatmul.mubr.msk.bf16.gmra.mrb[16].mxu1 %vm448_vm1, %v6113_v5  ;;  %5205 = vmatmul.mubr.msk.bf16.gmra.mrb[32].mxu0 %vm448_vm1, %v2799_v6  ;;  %v3190_v6 = vpack.c.bf16 %v3165_v4, %v3164_v3  ;;  %v3562_v3 = vld [vmem:[%s5728_s13 + $0xc6] sm:$0xff]  ;;  %v3563_v4 = vld [vmem:[%s5728_s13 + $0xce] sm:$0xff] }
  0xc9   : > { %5040 = vmatprep.mubr.msk.bf16.mxu1 %vm448_vm1, %v6115_v8  ;;  %5210 = vmatprep.mubr.msk.bf16.mxu0 %vm448_vm1, %v3180_v9  ;;  %v3167_v9 = vld [vmem:[%s5728_s13 + $0xdd] sm:$0xff] }
  0xd0   : > { %5041 = vmatmul.mubr.msk.bf16.gmra.mrb[20].mxu1 %vm448_vm1, %v6131_v27  ;;  %5211 = vmatmul.mubr.msk.bf16.vlgmr.msra.gmra.mrb[0].mxu0 %vm448_vm1, %v3181_v29  ;;  %v3177_v29 = vld [vmem:[%s5728_s13 + $0x12d] sm:$0xff] }
  0xd1   : > { %5044 = vmatprep.mubr.msk.bf16.mxu1 %vm448_vm1, %v6133_v20  ;;  %5247 = vmatpush3.bf16.msra.mxu0 %v3689_v22  ;;  %v3196_v22 = vpack.c.bf16 %v3177_v29, %v3176_v23  ;;  %v1980_v23 = vld [vmem:[%s5728_s13 + $0x103] sm:$0xff]  ;;  %v1981_v29 = vld [vmem:[%s5728_s13 + $0x10b] sm:$0xff] }
  0xd2   : > { %5214 = vmatprep.mubr.msk.bf16.mxu0 %vm448_vm1, %v3182_v21 }
  0xd8   : > { %5045 = vmatmul.mubr.msk.bf16.gmra.mrb[24].mxu1 %vm448_vm1, %v6151_v33  ;;  %5215 = vmatmul.mubr.msk.bf16.gmra.mrb[4].mxu0 %vm448_vm1, %v3183_v50  ;;  %v3550_v50 = vld [vmem:[%s5728_s13 + $0x66] sm:$0xff] }
  0xd9   : > { %5048 = vmatprep.mubr.msk.bf16.mxu1 %vm448_vm1, %v6153_v34  ;;  %5218 = vmatprep.mubr.msk.bf16.mxu0 %vm448_vm1, %v3184_v35  ;;  %v3551_v35 = vld [vmem:[%s5728_s13 + $0x6e] sm:$0xff] }
  0xda   : > { %v3582_v52 = vpack.c.bf16 %v3551_v35, %v3550_v50  ;;  %v2003_v50 = vpack.c.bf16 %v1985_v31, %v1984_v19 }
  0xe0   : > { %5049 = vmatmul.mubr.msk.bf16.gmra.mrb[28].mxu1 %vm448_vm1, %v6169_v16  ;;  %5219 = vmatmul.mubr.msk.bf16.gmra.mrb[8].mxu0 %vm448_vm1, %v3185_v46  ;;  %v1970_v46 = vld [vmem:[%s5728_s13 + $0xb3] sm:$0xff] }
  0xe1   : > { %5052 = vmatprep.mubr.msk.bf16.mxu1 %vm448_vm1, %v6171_v30  ;;  %5222 = vmatprep.mubr.msk.bf16.mxu0 %vm448_vm1, %v3186_v48  ;;  %v1971_v48 = vld [vmem:[%s5728_s13 + $0xbb] sm:$0xff] }
  0xe2   : > { %v1996_v43 = vpack.c.bf16 %v1971_v48, %v1970_v46 }
  0xe8   : > { %5053 = vmatmul.mubr.msk.bf16.gmra.mrb[32].mxu1 %vm448_vm1, %v6185_v45  ;;  %5223 = vmatmul.mubr.msk.bf16.gmra.mrb[12].mxu0 %vm448_vm1, %v3187_v60  ;;  %v3560_v60 = vld [vmem:[%s5728_s13 + $0xb6] sm:$0xff] }
  0xe9   : > { %5058 = vmatprep.mubr.msk.bf16.mxu1 %vm448_vm1, %v6041_v41  ;;  %5226 = vmatprep.mubr.msk.bf16.mxu0 %vm448_vm1, %v3188_v57  ;;  %v3166_v41 = vld [vmem:[%s5728_s13 + $0xd5] sm:$0xff]  ;;  %v3561_v57 = vld [vmem:[%s5728_s13 + $0xbe] sm:$0xff] }
  0xea   : > { %v3191_v11 = vpack.c.bf16 %v3167_v9, %v3166_v41  ;;  %v1998_v41 = vpack.c.bf16 %v1975_v63, %v1974_v61  ;;  %v3588_v9 = vpack.c.bf16 %v3563_v4, %v3562_v3  ;;  %v6350_v63 = vld [vmem:[%s6753_s2] ss:$0 sm:$0xff] }
  0xf0   : > { %5059 = vmatmul.mubr.msk.bf16.vlgmr.msra.gmra.mrb[0].mxu1 %vm448_vm1, %v6043_v42  ;;  %5227 = vmatmul.mubr.msk.bf16.gmra.mrb[16].mxu0 %vm448_vm1, %v3189_v59  ;;  %v3171_v42 = vld [vmem:[%s5728_s13 + $0xfd] sm:$0xff] }
  0xf1   : > { %5062 = vmatprep.mubr.msk.bf16.mxu1 %vm448_vm1, %v6061_v47  ;;  %5230 = vmatprep.mubr.msk.bf16.mxu0 %vm448_vm1, %v3190_v6  ;;  %v3172_v47 = vld [vmem:[%s5728_s13 + $0x105] sm:$0xff]  ;;  %v3587_v6 = vpack.c.bf16 %v3561_v57, %v3560_v60 }
  0xf2   : > { %5285 = vmatpush3.bf16.msra.mxu1 %v5709_v2  ;;  %v3170_v2 = vld [vmem:[%s5728_s13 + $0xf5] sm:$0xff]  ;;  %v3194_v18 = vpack.c.bf16 %v3173_v15, %v3172_v47  ;;  %v3566_v47 = vld [vmem:[%s5728_s13 + $0xe6] sm:$0xff] }
  0xf3   : > { %v3193_v17 = vpack.c.bf16 %v3171_v42, %v3170_v2  ;;  %v1978_v2 = vld [vmem:[%s5728_s13 + $0xf3] sm:$0xff]  ;;  %v1979_v42 = vld [vmem:[%s5728_s13 + $0xfb] sm:$0xff] }
  0xf4   : > { %v3567_v15 = vld [vmem:[%s5728_s13 + $0xee] sm:$0xff] }
  0xf8   : > { %5063 = vmatmul.mubr.msk.bf16.gmra.mrb[4].mxu1 %vm448_vm1, %v6063_v14  ;;  %5231 = vmatmul.mubr.msk.bf16.gmra.mrb[20].mxu0 %vm448_vm1, %v3191_v11  ;;  %v3174_v14 = vld [vmem:[%s5728_s13 + $0x115] sm:$0xff] }
  0xf9   : > { %5066 = vmatprep.mubr.msk.bf16.mxu1 %vm448_vm1, %v6077_v51  ;;  %5234 = vmatprep.mubr.msk.bf16.mxu0 %vm448_vm1, %v3192_v13  ;;  %v3175_v51 = vld [vmem:[%s5728_s13 + $0x11d] sm:$0xff] }
  0xfa   : > { %v3195_v21 = vpack.c.bf16 %v3175_v51, %v3174_v14  ;;  %v3564_v11 = vld [vmem:[%s5728_s13 + $0xd6] sm:$0xff]  ;;  %v3565_v13 = vld [vmem:[%s5728_s13 + $0xde] sm:$0xff]  ;;  %v2000_v14 = vpack.c.bf16 %v1979_v42, %v1978_v2  ;;  %v3590_v51 = vpack.c.bf16 %v3567_v15, %v3566_v47 }
 0x100   : > { %5067 = vmatmul.mubr.msk.bf16.gmra.mrb[8].mxu1 %vm448_vm1, %v6079_v53  ;;  %5235 = vmatmul.mubr.msk.bf16.gmra.mrb[24].mxu0 %vm448_vm1, %v3193_v17  ;;  %v3178_v53 = vld [vmem:[%s5728_s13 + $0x135] sm:$0xff]  ;;  %v1999_v17 = vpack.c.bf16 %v1977_v10, %v1976_v7 }
 0x101   : > { %5070 = vmatprep.mubr.msk.bf16.mxu1 %vm448_vm1, %v6093_v56  ;;  %5238 = vmatprep.mubr.msk.bf16.mxu0 %vm448_vm1, %v3194_v18  ;;  %v3179_v56 = vld [vmem:[%s5728_s13 + $0x13d] sm:$0xff]  ;;  %v3589_v18 = vpack.c.bf16 %v3565_v13, %v3564_v11 }
 0x102   : > { %v3197_v24 = vpack.c.bf16 %v3179_v56, %v3178_v53  ;;  %v1982_v53 = vld [vmem:[%s5728_s13 + $0x113] sm:$0xff]  ;;  %v1983_v56 = vld [vmem:[%s5728_s13 + $0x11b] sm:$0xff] }
 0x108   : > { %5071 = vmatmul.mubr.msk.bf16.gmra.mrb[12].mxu1 %vm448_vm1, %v6095_v58  ;;  %5239 = vmatmul.mubr.msk.bf16.gmra.mrb[28].mxu0 %vm448_vm1, %v3195_v21  ;;  %v3544_v58 = vld [vmem:[%s5728_s13 + $0x36] sm:$0xff] }
 0x109   : > { %5074 = vmatprep.mubr.msk.bf16.mxu1 %vm448_vm1, %v6113_v5  ;;  %5242 = vmatprep.mubr.msk.bf16.mxu0 %vm448_vm1, %v3196_v22  ;;  %v3545_v5 = vld [vmem:[%s5728_s13 + $0x3e] sm:$0xff]  ;;  %v3568_v21 = vld [vmem:[%s5728_s13 + $0xf6] sm:$0xff] }
 0x10a   : > { %v3579_v26 = vpack.c.bf16 %v3545_v5, %v3544_v58  ;;  %v3569_v22 = vld [vmem:[%s5728_s13 + $0xfe] sm:$0xff]  ;;  %v2002_v58 = vpack.c.bf16 %v1983_v56, %v1982_v53  ;;  %v3592_v5 = vpack.c.bf16 %v3571_v38, %v3570_v25 }
 0x110   : > { %5075 = vmatmul.mubr.msk.bf16.gmra.mrb[16].mxu1 %vm448_vm1, %v6115_v8  ;;  %5243 = vmatmul.mubr.msk.bf16.gmra.mrb[32].mxu0 %vm448_vm1, %v3197_v24  ;;  %v3548_v8 = vld [vmem:[%s5728_s13 + $0x56] sm:$0xff]  ;;  %v2001_v24 = vpack.c.bf16 %v1981_v29, %v1980_v23 }
 0x111   : > { %5078 = vmatprep.mubr.msk.bf16.mxu1 %vm448_vm1, %v6131_v27  ;;  %5248 = vmatprep.mubr.msk.bf16.mxu0 %vm448_vm1, %v3578_v28  ;;  %v3549_v27 = vld [vmem:[%s5728_s13 + $0x5e] sm:$0xff]  ;;  %v3591_v28 = vpack.c.bf16 %v3569_v22, %v3568_v21 }
 0x112   : > { %v3581_v36 = vpack.c.bf16 %v3549_v27, %v3548_v8  ;;  %v3574_v8 = vld [vmem:[%s5728_s13 + $0x126] sm:$0xff]  ;;  %v3575_v27 = vld [vmem:[%s5728_s13 + $0x12e] sm:$0xff] }
 0x118   : > { %5079 = vmatmul.mubr.msk.bf16.gmra.mrb[20].mxu1 %vm448_vm1, %v6133_v20  ;;  %5249 = vmatmul.mubr.msk.bf16.vlgmr.msra.gmra.mrb[0].mxu0 %vm448_vm1, %v3579_v26  ;;  %v3552_v20 = vld [vmem:[%s5728_s13 + $0x76] sm:$0xff] }
 0x119   : > { %5082 = vmatprep.mubr.msk.bf16.mxu1 %vm448_vm1, %v6151_v33  ;;  %5252 = vmatprep.mubr.msk.bf16.mxu0 %vm448_vm1, %v3580_v40  ;;  %v3553_v33 = vld [vmem:[%s5728_s13 + $0x7e] sm:$0xff]  ;;  %v3572_v26 = vld [vmem:[%s5728_s13 + $0x116] sm:$0xff] }
 0x11a   : > { %v3583_v39 = vpack.c.bf16 %v3553_v33, %v3552_v20  ;;  %v3573_v40 = vld [vmem:[%s5728_s13 + $0x11e] sm:$0xff] }
 0x11b   : > { %v3593_v35 = vpack.c.bf16 %v3573_v40, %v3572_v26  ;;  %v3577_v20 = vld [vmem:[%s5728_s13 + $0x13e] sm:$0xff] }
 0x120   : > { %5083 = vmatmul.mubr.msk.bf16.gmra.mrb[24].mxu1 %vm448_vm1, %v6153_v34  ;;  %5253 = vmatmul.mubr.msk.bf16.gmra.mrb[4].mxu0 %vm448_vm1, %v3581_v36  ;;  %v1586_v34 = vld [vmem:[%s5728_s13 + $0x122] sm:$0xff]  ;;  %v3594_v36 = vpack.c.bf16 %v3575_v27, %v3574_v8 }
 0x121   : > { %5086 = vmatprep.mubr.msk.bf16.mxu1 %vm448_vm1, %v6169_v16  ;;  %5256 = vmatprep.mubr.msk.bf16.mxu0 %vm448_vm1, %v3582_v52  ;;  %v3557_v16 = vld [vmem:[%s5728_s13 + $0x9e] sm:$0xff]  ;;  %v1605_v49 = vpack.c.bf16 %v1587_v1, %v1586_v34  ;;  %v3576_v52 = vld [vmem:[%s5728_s13 + $0x136] sm:$0xff] }
 0x122   : > { %v3585_v32 = vpack.c.bf16 %v3557_v16, %v3556_v12  ;;  %v3595_v33 = vpack.c.bf16 %v3577_v20, %v3576_v52 }
 0x128   : > { %5087 = vmatmul.mubr.msk.bf16.gmra.mrb[28].mxu1 %vm448_vm1, %v6171_v30  ;;  %5257 = vmatmul.mubr.msk.bf16.gmra.mrb[8].mxu0 %vm448_vm1, %v3583_v39  ;;  %v3558_v30 = vld [vmem:[%s5728_s13 + $0xa6] sm:$0xff] }
 0x129   : > { %5090 = vmatprep.mubr.msk.bf16.mxu1 %vm448_vm1, %v6185_v45  ;;  %5260 = vmatprep.mubr.msk.bf16.mxu0 %vm448_vm1, %v3584_v44  ;;  %v3586_v54 = vpack.c.bf16 %v3559_v0, %v3558_v30  ;;  %v1973_v45 = vld [vmem:[%s5728_s13 + $0xcb] sm:$0xff] }
 0x12a   : > { %v1997_v59 = vpack.c.bf16 %v1973_v45, %v1972_v55 }
 0x130   : > { %5091 = vmatmul.mubr.msk.bf16.gmra.mrb[32].mxu1 %vm448_vm1, %v1605_v49  ;;  %5261 = vmatmul.mubr.msk.bf16.gmra.mrb[12].mxu0 %vm448_vm1, %v3585_v32 }
 0x131   : > { %5116 = vmatprep.mubr.msk.bf16.mxu1 %vm448_vm1, %v1996_v43  ;;  %5264 = vmatprep.mubr.msk.bf16.mxu0 %vm448_vm1, %v3586_v54 }
 0x138   : > { %5117 = vmatmul.mubr.msk.bf16.vlgmr.msra.gmra.mrb[20].mxu1 %vm448_vm1, %v1997_v59  ;;  %5265 = vmatmul.mubr.msk.bf16.gmra.mrb[16].mxu0 %vm448_vm1, %v3587_v6 }
 0x139   : > { %5120 = vmatprep.mubr.msk.bf16.mxu1 %vm448_vm1, %v1998_v41  ;;  %5268 = vmatprep.mubr.msk.bf16.mxu0 %vm448_vm1, %v3588_v9 }
 0x140   : > { %5121 = vmatmul.mubr.msk.bf16.gmra.mrb[24].mxu1 %vm448_vm1, %v1999_v17  ;;  %5269 = vmatmul.mubr.msk.bf16.gmra.mrb[20].mxu0 %vm448_vm1, %v3589_v18 }
 0x141   : > { %5124 = vmatprep.mubr.msk.bf16.mxu1 %vm448_vm1, %v2000_v14  ;;  %5272 = vmatprep.mubr.msk.bf16.mxu0 %vm448_vm1, %v3590_v51 }
 0x148   : > { %5125 = vmatmul.mubr.msk.bf16.gmra.mrb[28].mxu1 %vm448_vm1, %v2001_v24  ;;  %5273 = vmatmul.mubr.msk.bf16.gmra.mrb[24].mxu0 %vm448_vm1, %v3591_v28 }
 0x149   : > { %5128 = vmatprep.mubr.msk.bf16.mxu1 %vm448_vm1, %v2002_v58  ;;  %5276 = vmatprep.mubr.msk.bf16.mxu0 %vm448_vm1, %v3592_v5 }
 0x150   : > { %5129 = vmatmul.mubr.msk.bf16.gmra.mrb[32].mxu1 %vm448_vm1, %v2003_v50  ;;  %5277 = vmatmul.mubr.msk.bf16.gmra.mrb[28].mxu0 %vm448_vm1, %v3593_v35 }
 0x151   : > { %5280 = vmatprep.mubr.msk.bf16.mxu0 %vm448_vm1, %v3594_v36 }
 0x158   : > { %5281 = vmatmul.mubr.msk.bf16.gmra.mrb[32].mxu0 %vm448_vm1, %v3595_v33 }
 0x1c3   : > { %v5060_v37 = vpop.f32.mrb[0].mxu1 }
 0x1c4   : > { %v1735_v62 = vpop.f32.mrb[1].mxu1 }
 0x1c5   : > { %v5061_v39 = vpop.f32.mrb[2].mxu1 }
 0x1c6   : > { %v1738_v44 = vpop.f32.mrb[3].mxu1 }
 0x1cb   : > { %v5064_v34 = vpop.f32.mrb[4].mxu1 }
 0x1cc   : > { %v1751_v1 = vpop.f32.mrb[5].mxu1 }
 0x1cd   : > { %v5065_v12 = vpop.f32.mrb[6].mxu1 }
 0x1ce   : > { %v1754_v16 = vpop.f32.mrb[7].mxu1 }
 0x1d3   : > { %v5068_v46 = vpop.f32.mrb[8].mxu1 }
 0x1d4   : > { %v1767_v48 = vpop.f32.mrb[9].mxu1 }
 0x1d5   : > { %v5069_v30 = vpop.f32.mrb[10].mxu1 }
 0x1d6   : > { %v1770_v0 = vpop.f32.mrb[11].mxu1 }
 0x1db   : > { %v5072_v49 = vpop.f32.mrb[12].mxu1 }
 0x1dc   : > { %v1783_v32 = vpop.f32.mrb[13].mxu1 }
 0x1dd   : > { %v6334_v43 = vpop.f32.mrb[14].mxu1 }
 0x1de   : > { %v6336_v54 = vpop.f32.mrb[15].mxu1 }
 0x1e3   : > { %v6338_v55 = vpop.f32.mrb[16].mxu1 }
 0x1e4   : > { %v6340_v45 = vpop.f32.mrb[17].mxu1 }
 0x1e5   : > { %v6342_v60 = vpop.f32.mrb[18].mxu1 }
 0x1e6   : > { %v6344_v57 = vpop.f32.mrb[19].mxu1 }
 0x1eb   : > { %v5250_v61 = vpop.f32.mrb[0].mxu0 }
 0x1ec   : > { %v5286_v3 = vadd.f32 %v5250_v61, %v5060_v37  ;;  %v3725_v4 = vpop.f32.mrb[1].mxu0 }
 0x1ed   : > { %v5287_v59 = vadd.f32 %v3725_v4, %v1735_v62  ;;  %v5251_v6 = vpop.f32.mrb[2].mxu0 }
 0x1ee   : > { %v6358_v41 = vadd.f32 %v5286_v3, %v6350_v63  ;;  %v5288_v9 = vadd.f32 %v5251_v6, %v5061_v39  ;;  %v3728_v7 = vpop.f32.mrb[3].mxu0 }
 0x1ef   : > { %v6361_v10 = vadd.f32 %v5287_v59, %v6350_v63  ;;  %v5289_v11 = vadd.f32 %v3728_v7, %v1738_v44 }
 0x1f0   : > { %4021 = vst [vmem:[%s6355_s10 + $0x10] sm:$0xff] %v6358_v41  ;;  %v6366_v13 = vadd.f32 %v5288_v9, %v6350_v63 }
 0x1f1   : > { %4019 = vst [vmem:[%s6355_s10] sm:$0xff] %v6361_v10  ;;  %v6371_v2 = vadd.f32 %v5289_v11, %v6350_v63 }
 0x1f2   : > { %4022 = vst [vmem:[%s6355_s10 + $0x18] sm:$0xff] %v6366_v13 }
 0x1f3   : > { %4020 = vst [vmem:[%s6355_s10 + $0x8] sm:$0xff] %v6371_v2  ;;  %v5254_v42 = vpop.f32.mrb[4].mxu0 }
 0x1f4   : > { %v5290_v47 = vadd.f32 %v5254_v42, %v5064_v34  ;;  %v3741_v15 = vpop.f32.mrb[5].mxu0 }
 0x1f5   : > { %v5291_v17 = vadd.f32 %v3741_v15, %v1751_v1  ;;  %v5255_v18 = vpop.f32.mrb[6].mxu0 }
 0x1f6   : > { %v6378_v14 = vadd.f32 %v5290_v47, %v6350_v63  ;;  %v5292_v51 = vadd.f32 %v5255_v18, %v5065_v12  ;;  %v3744_v23 = vpop.f32.mrb[7].mxu0 }
 0x1f7   : > { %v6381_v29 = vadd.f32 %v5291_v17, %v6350_v63  ;;  %v5293_v21 = vadd.f32 %v3744_v23, %v1754_v16 }
 0x1f8   : > { %4025 = vst [vmem:[%s6355_s10 + $0x30] sm:$0xff] %v6378_v14  ;;  %v6386_v22 = vadd.f32 %v5292_v51, %v6350_v63 }
 0x1f9   : > { %4023 = vst [vmem:[%s6355_s10 + $0x20] sm:$0xff] %v6381_v29  ;;  %v6391_v53 = vadd.f32 %v5293_v21, %v6350_v63 }
 0x1fa   : > { %4026 = vst [vmem:[%s6355_s10 + $0x38] sm:$0xff] %v6386_v22 }
 0x1fb   : > { %4024 = vst [vmem:[%s6355_s10 + $0x28] sm:$0xff] %v6391_v53  ;;  %v5258_v56 = vpop.f32.mrb[8].mxu0 }
 0x1fc   : > { %v5294_v25 = vadd.f32 %v5258_v56, %v5068_v46  ;;  %v3757_v38 = vpop.f32.mrb[9].mxu0 }
 0x1fd   : > { %v5295_v24 = vadd.f32 %v3757_v38, %v1767_v48  ;;  %v5259_v28 = vpop.f32.mrb[10].mxu0 }
 0x1fe   : > { %v6398_v58 = vadd.f32 %v5294_v25, %v6350_v63  ;;  %v5296_v5 = vadd.f32 %v5259_v28, %v5069_v30  ;;  %v3760_v19 = vpop.f32.mrb[11].mxu0 }
 0x1ff   : > { %v6401_v31 = vadd.f32 %v5295_v24, %v6350_v63  ;;  %v5297_v26 = vadd.f32 %v3760_v19, %v1770_v0 }
 0x200   : > { %4029 = vst [vmem:[%s6355_s10 + $0x50] sm:$0xff] %v6398_v58  ;;  %v6406_v40 = vadd.f32 %v5296_v5, %v6350_v63 }
 0x201   : > { %4027 = vst [vmem:[%s6355_s10 + $0x40] sm:$0xff] %v6401_v31  ;;  %v6411_v8 = vadd.f32 %v5297_v26, %v6350_v63 }
 0x202   : > { %4030 = vst [vmem:[%s6355_s10 + $0x58] sm:$0xff] %v6406_v40 }
 0x203   : > { %4028 = vst [vmem:[%s6355_s10 + $0x48] sm:$0xff] %v6411_v8  ;;  %v5262_v27 = vpop.f32.mrb[12].mxu0 }
 0x204   : > { %v5298_v50 = vadd.f32 %v5262_v27, %v5072_v49  ;;  %v3773_v35 = vpop.f32.mrb[13].mxu0 }
 0x205   : > { %v5299_v36 = vadd.f32 %v3773_v35, %v1783_v32  ;;  %v5263_v52 = vpop.f32.mrb[14].mxu0 }
 0x206   : > { %v6418_v20 = vadd.f32 %v5298_v50, %v6350_v63  ;;  %v5300_v33 = vadd.f32 %v5263_v52, %v6334_v43  ;;  %v3776_v37 = vpop.f32.mrb[15].mxu0 }
 0x207   : > { %v6422_v62 = vadd.f32 %v5299_v36, %v6350_v63  ;;  %v5301_v39 = vadd.f32 %v3776_v37, %v6336_v54 }
 0x208   : > { %4033 = vst [vmem:[%s6355_s10 + $0x70] sm:$0xff] %v6418_v20  ;;  %v6428_v44 = vadd.f32 %v5300_v33, %v6350_v63 }
 0x209   : > { %4031 = vst [vmem:[%s6355_s10 + $0x60] sm:$0xff] %v6422_v62  ;;  %v6433_v34 = vadd.f32 %v5301_v39, %v6350_v63 }
 0x20a   : > { %4034 = vst [vmem:[%s6355_s10 + $0x78] sm:$0xff] %v6428_v44 }
 0x20b   : > { %v5118_v1 = vpop.f32.mrb[20].mxu1  ;;  %4032 = vst [vmem:[%s6355_s10 + $0x68] sm:$0xff] %v6433_v34  ;;  %v5266_v12 = vpop.f32.mrb[16].mxu0 }
 0x20c   : > { %v2213_v16 = vpop.f32.mrb[21].mxu1  ;;  %v5302_v46 = vadd.f32 %v5266_v12, %v6338_v55  ;;  %v3789_v48 = vpop.f32.mrb[17].mxu0 }
 0x20d   : > { %v5119_v30 = vpop.f32.mrb[22].mxu1  ;;  %v5303_v0 = vadd.f32 %v3789_v48, %v6340_v45  ;;  %v5267_v49 = vpop.f32.mrb[18].mxu0 }
 0x20e   : > { %v2216_v32 = vpop.f32.mrb[23].mxu1  ;;  %v6442_v43 = vadd.f32 %v5302_v46, %v6350_v63  ;;  %v5304_v54 = vadd.f32 %v5267_v49, %v6342_v60  ;;  %v3792_v61 = vpop.f32.mrb[19].mxu0 }
 0x20f   : > { %v6446_v3 = vadd.f32 %v5303_v0, %v6350_v63  ;;  %v5305_v4 = vadd.f32 %v3792_v61, %v6344_v57 }
 0x210   : > { %4037 = vst [vmem:[%s6355_s10 + $0x90] sm:$0xff] %v6442_v43  ;;  %v6452_v55 = vadd.f32 %v5304_v54, %v6350_v63 }
 0x211   : > { %4035 = vst [vmem:[%s6355_s10 + $0x80] sm:$0xff] %v6446_v3  ;;  %v6457_v45 = vadd.f32 %v5305_v4, %v6350_v63 }
 0x212   : > { %4038 = vst [vmem:[%s6355_s10 + $0x98] sm:$0xff] %v6452_v55 }
 0x213   : > { %v5122_v60 = vpop.f32.mrb[24].mxu1  ;;  %4036 = vst [vmem:[%s6355_s10 + $0x88] sm:$0xff] %v6457_v45  ;;  %v5270_v59 = vpop.f32.mrb[20].mxu0 }
 0x214   : > { %v2229_v6 = vpop.f32.mrb[25].mxu1  ;;  %v5306_v57 = vadd.f32 %v5270_v59, %v5118_v1  ;;  %v3805_v9 = vpop.f32.mrb[21].mxu0 }
 0x215   : > { %v5123_v7 = vpop.f32.mrb[26].mxu1  ;;  %v5307_v11 = vadd.f32 %v3805_v9, %v2213_v16  ;;  %v5271_v42 = vpop.f32.mrb[22].mxu0 }
 0x216   : > { %v2232_v47 = vpop.f32.mrb[27].mxu1  ;;  %v6464_v15 = vadd.f32 %v5306_v57, %v6350_v63  ;;  %v5308_v17 = vadd.f32 %v5271_v42, %v5119_v30  ;;  %v3808_v18 = vpop.f32.mrb[23].mxu0 }
 0x217   : > { %v6467_v51 = vadd.f32 %v5307_v11, %v6350_v63  ;;  %v5309_v23 = vadd.f32 %v3808_v18, %v2216_v32 }
 0x218   : > { %4041 = vst [vmem:[%s6355_s10 + $0xb0] sm:$0xff] %v6464_v15  ;;  %v6472_v21 = vadd.f32 %v5308_v17, %v6350_v63 }
 0x219   : > { %4039 = vst [vmem:[%s6355_s10 + $0xa0] sm:$0xff] %v6467_v51  ;;  %v6477_v56 = vadd.f32 %v5309_v23, %v6350_v63 }
 0x21a   : > { %4042 = vst [vmem:[%s6355_s10 + $0xb8] sm:$0xff] %v6472_v21 }
 0x21b   : > { %v5126_v25 = vpop.f32.mrb[28].mxu1  ;;  %4040 = vst [vmem:[%s6355_s10 + $0xa8] sm:$0xff] %v6477_v56  ;;  %v5274_v38 = vpop.f32.mrb[24].mxu0 }
 0x21c   : > { %v2245_v24 = vpop.f32.mrb[29].mxu1  ;;  %v5310_v28 = vadd.f32 %v5274_v38, %v5122_v60  ;;  %v3821_v5 = vpop.f32.mrb[25].mxu0 }
 0x21d   : > { %v5127_v19 = vpop.f32.mrb[30].mxu1  ;;  %v5311_v26 = vadd.f32 %v3821_v5, %v2229_v6  ;;  %v5275_v27 = vpop.f32.mrb[26].mxu0 }
 0x21e   : > { %v2248_v50 = vpop.f32.mrb[31].mxu1  ;;  %v6484_v35 = vadd.f32 %v5310_v28, %v6350_v63  ;;  %v5312_v36 = vadd.f32 %v5275_v27, %v5123_v7  ;;  %v3824_v52 = vpop.f32.mrb[27].mxu0 }
 0x21f   : > { %v6487_v33 = vadd.f32 %v5311_v26, %v6350_v63  ;;  %v5313_v37 = vadd.f32 %v3824_v52, %v2232_v47 }
 0x220   : > { %4045 = vst [vmem:[%s6355_s10 + $0xd0] sm:$0xff] %v6484_v35  ;;  %v6492_v39 = vadd.f32 %v5312_v36, %v6350_v63 }
 0x221   : > { %4043 = vst [vmem:[%s6355_s10 + $0xc0] sm:$0xff] %v6487_v33  ;;  %v6497_v1 = vadd.f32 %v5313_v37, %v6350_v63 }
 0x222   : > { %4046 = vst [vmem:[%s6355_s10 + $0xd8] sm:$0xff] %v6492_v39 }
 0x223   : > { %v5130_v12 = vpop.f32.mrb[32].mxu1  ;;  %4044 = vst [vmem:[%s6355_s10 + $0xc8] sm:$0xff] %v6497_v1  ;;  %v5278_v16 = vpop.f32.mrb[28].mxu0 }
 0x224   : > { %v2261_v46 = vpop.f32.mrb[33].mxu1  ;;  %v5314_v48 = vadd.f32 %v5278_v16, %v5126_v25  ;;  %v3837_v30 = vpop.f32.mrb[29].mxu0 }
 0x225   : > { %v5131_v0 = vpop.f32.mrb[34].mxu1  ;;  %v5315_v49 = vadd.f32 %v3837_v30, %v2245_v24  ;;  %v5279_v32 = vpop.f32.mrb[30].mxu0 }
 0x226   : > { %v2264_v54 = vpop.f32.mrb[35].mxu1  ;;  %v6504_v61 = vadd.f32 %v5314_v48, %v6350_v63  ;;  %v5316_v4 = vadd.f32 %v5279_v32, %v5127_v19  ;;  %v3840_v60 = vpop.f32.mrb[31].mxu0  ;;  %v5638_v19 = vmov (!%p4766_p5), 0.0  }
 0x227   : > { %v6507_v59 = vadd.f32 %v5315_v49, %v6350_v63  ;;  %v5317_v6 = vadd.f32 %v3840_v60, %v2248_v50  ;;  %4059 = vst [vmem:[%s6756_s5] sm:$0x1] (!%p4766_p5), %v5638_v19  ;;  %4060 = vst [vmem:[%s6757_s6] sm:$0x1] (!%p4766_p5), %v5638_v19 }
 0x228   : > { %4049 = vst [vmem:[%s6355_s10 + $0xf0] sm:$0xff] %v6504_v61  ;;  %v6512_v57 = vadd.f32 %v5316_v4, %v6350_v63 }
 0x229   : > { %4047 = vst [vmem:[%s6355_s10 + $0xe0] sm:$0xff] %v6507_v59  ;;  %v6517_v9 = vadd.f32 %v5317_v6, %v6350_v63 }
 0x22a   : > { %4050 = vst [vmem:[%s6355_s10 + $0xf8] sm:$0xff] %v6512_v57 }
 0x22b   : > { %4048 = vst [vmem:[%s6355_s10 + $0xe8] sm:$0xff] %v6517_v9  ;;  %v5282_v7 = vpop.f32.mrb[32].mxu0 }
 0x22c   : > { %v5318_v11 = vadd.f32 %v5282_v7, %v5130_v12  ;;  %v3853_v42 = vpop.f32.mrb[33].mxu0 }
 0x22d   : > { %v5319_v47 = vadd.f32 %v3853_v42, %v2261_v46  ;;  %v5283_v17 = vpop.f32.mrb[34].mxu0  ;;  %4058 = sbr.rel (%p4766_p5) target bundleno = 564 (0x234), region = 40 }
 0x22e   : > { %v6524_v18 = vadd.f32 %v5318_v11, %v6350_v63  ;;  %v5320_v23 = vadd.f32 %v5283_v17, %v5131_v0  ;;  %v3856_v25 = vpop.f32.mrb[35].mxu0 }
 0x22f   : > { %v6527_v38 = vadd.f32 %v5319_v47, %v6350_v63  ;;  %v5321_v24 = vadd.f32 %v3856_v25, %v2264_v54 }
 0x230   : > { %4053 = vst [vmem:[%s6355_s10 + $0x110] sm:$0xff] %v6524_v18  ;;  %v6532_v28 = vadd.f32 %v5320_v23, %v6350_v63 }
 0x231   : > { %4051 = vst [vmem:[%s6355_s10 + $0x100] sm:$0xff] %v6527_v38  ;;  %v6537_v5 = vadd.f32 %v5321_v24, %v6350_v63 }
 0x232   : > { %4054 = vst [vmem:[%s6355_s10 + $0x118] sm:$0xff] %v6532_v28 }
 0x233   : > { %4052 = vst [vmem:[%s6355_s10 + $0x108] sm:$0xff] %v6537_v5 }
 0x234 PF: > { %v4063_v63 = vld [vmem:[%s6754_s3 + $0x10] sm:$0xff]  ;;  %v4061_v26 = vld [vmem:[%s6754_s3] sm:$0xff]  ;;  %v5639_v27 = vmov 0   ;;  %v4064_v50 = vld [vmem:[%s6754_s3 + $0x18] sm:$0xff] }
 0x235   : > { %5613 = vset.pattern.permute.xlu1 %v5639_v27  ;;  %5612 = vset.pattern.permute.xlu0 %v5639_v27  ;;  %v4062_v36 = vld [vmem:[%s6754_s3 + $0x8] sm:$0xff]  ;;  %v4065_v37 = vld [vmem:[%s6754_s3 + $0x20] sm:$0xff]  ;;  %v4068_v12 = vld [vmem:[%s6754_s3 + $0x38] sm:$0xff] }
 0x236   : > { %4109 = vperm.xlu1 %5613, %v4063_v63   ;;  %4099 = vperm.xlu0 %5612, %v4061_v26   ;;  %v4066_v52 = vld [vmem:[%s6754_s3 + $0x28] sm:$0xff]  ;;  %v4067_v16 = vld [vmem:[%s6754_s3 + $0x30] sm:$0xff]  ;;  %v4069_v48 = vld [vmem:[%s6754_s3 + $0x40] sm:$0xff] }
 0x237   : > { %v4070_v46 = vld [vmem:[%s6754_s3 + $0x48] sm:$0xff]  ;;  %v4072_v30 = vld [vmem:[%s6754_s3 + $0x58] sm:$0xff]  ;;  %v4071_v0 = vld [vmem:[%s6754_s3 + $0x50] sm:$0xff] }
 0x238   : > { %v4074_v49 = vld [vmem:[%s6754_s3 + $0x68] sm:$0xff]  ;;  %v4073_v32 = vld [vmem:[%s6754_s3 + $0x60] sm:$0xff]  ;;  %v4076_v54 = vld [vmem:[%s6754_s3 + $0x78] sm:$0xff] }
 0x239   : > { %v4075_v4 = vld [vmem:[%s6754_s3 + $0x70] sm:$0xff]  ;;  %v4078_v60 = vld [vmem:[%s6754_s3 + $0x88] sm:$0xff]  ;;  %v4077_v6 = vld [vmem:[%s6754_s3 + $0x80] sm:$0xff] }
 0x23a   : > { %4114 = vperm.xlu1 %5613, %v4064_v50   ;;  %4104 = vperm.xlu0 %5612, %v4062_v36   ;;  %v4080_v7 = vld [vmem:[%s6754_s3 + $0x98] sm:$0xff]  ;;  %v4079_v11 = vld [vmem:[%s6754_s3 + $0x90] sm:$0xff]  ;;  %v4082_v42 = vld [vmem:[%s6754_s3 + $0xa8] sm:$0xff] }
 0x23b   : > { %v4081_v47 = vld [vmem:[%s6754_s3 + $0xa0] sm:$0xff]  ;;  %v4084_v17 = vld [vmem:[%s6754_s3 + $0xb8] sm:$0xff]  ;;  %v4083_v23 = vld [vmem:[%s6754_s3 + $0xb0] sm:$0xff] }
 0x23c   : > { %v4086_v25 = vld [vmem:[%s6754_s3 + $0xc8] sm:$0xff]  ;;  %v4085_v24 = vld [vmem:[%s6754_s3 + $0xc0] sm:$0xff]  ;;  %v4088_v19 = vld [vmem:[%s6754_s3 + $0xd8] sm:$0xff] }
 0x23d   : > { %v4087_v63 = vld [vmem:[%s6754_s3 + $0xd0] sm:$0xff]  ;;  %v4090_v26 = vld [vmem:[%s6754_s3 + $0xe8] sm:$0xff]  ;;  %v4089_v27 = vld [vmem:[%s6754_s3 + $0xe0] sm:$0xff] }
 0x23e   : > { %4124 = vperm.xlu1 %5613, %v4066_v52   ;;  %4119 = vperm.xlu0 %5612, %v4065_v37   ;;  %v4092_v50 = vld [vmem:[%s6754_s3 + $0xf8] sm:$0xff]  ;;  %v4091_v36 = vld [vmem:[%s6754_s3 + $0xf0] sm:$0xff]  ;;  %v4094_v52 = vld [vmem:[%s6754_s3 + $0x108] sm:$0xff] }
 0x23f   : > { %v4093_v37 = vld [vmem:[%s6754_s3 + $0x100] sm:$0xff] }
 0x242   : > { %4134 = vperm.xlu1 %5613, %v4068_v12   ;;  %4129 = vperm.xlu0 %5612, %v4067_v16   ;;  %v4096_v12 = vld [vmem:[%s6754_s3 + $0x118] sm:$0xff]  ;;  %v4095_v16 = vld [vmem:[%s6754_s3 + $0x110] sm:$0xff] }
 0x246   : > { %4144 = vperm.xlu1 %5613, %v4070_v46   ;;  %4139 = vperm.xlu0 %5612, %v4069_v48  }
 0x24a   : > { %4154 = vperm.xlu1 %5613, %v4072_v30   ;;  %4149 = vperm.xlu0 %5612, %v4071_v0  }
 0x24e   : > { %4164 = vperm.xlu1 %5613, %v4074_v49   ;;  %4159 = vperm.xlu0 %5612, %v4073_v32  }
 0x252   : > { %4174 = vperm.xlu1 %5613, %v4076_v54   ;;  %4169 = vperm.xlu0 %5612, %v4075_v4  }
 0x256   : > { %4184 = vperm.xlu1 %5613, %v4078_v60   ;;  %4179 = vperm.xlu0 %5612, %v4077_v6  }
 0x25a   : > { %4194 = vperm.xlu1 %5613, %v4080_v7   ;;  %4189 = vperm.xlu0 %5612, %v4079_v11  }
 0x25e   : > { %4204 = vperm.xlu1 %5613, %v4082_v42   ;;  %4199 = vperm.xlu0 %5612, %v4081_v47  }
 0x262   : > { %4214 = vperm.xlu1 %5613, %v4084_v17   ;;  %4209 = vperm.xlu0 %5612, %v4083_v23  }
 0x266   : > { %4224 = vperm.xlu1 %5613, %v4086_v25   ;;  %4219 = vperm.xlu0 %5612, %v4085_v24  }
 0x26a   : > { %4234 = vperm.xlu1 %5613, %v4088_v19   ;;  %4229 = vperm.xlu0 %5612, %v4087_v63  }
 0x26e   : > { %4244 = vperm.xlu1 %5613, %v4090_v26   ;;  %4239 = vperm.xlu0 %5612, %v4089_v27  }
 0x272   : > { %4254 = vperm.xlu1 %5613, %v4092_v50   ;;  %4249 = vperm.xlu0 %5612, %v4091_v36  }
 0x276   : > { %4264 = vperm.xlu1 %5613, %v4094_v52   ;;  %4259 = vperm.xlu0 %5612, %v4093_v37  }
 0x27a   : > { %4274 = vperm.xlu1 %5613, %v4096_v12   ;;  %4269 = vperm.xlu0 %5612, %v4095_v16  }
 0x2b5   : > { %v4110_v46 = vpop.permute.xlu1 %4109  ;;  %v4100_v48 = vpop.permute.xlu0 %4099 }
 0x2b6   : > { %v4277_v30 = vmul.f32 %v4100_v48, %v6361_v10  ;;  %v4279_v32 = vmul.f32 %v4110_v46, %v6358_v41 }
 0x2b8   : > { %v4358_v4 = vmul.f32 %v4277_v30, %v6361_v10  ;;  %v4360_v47 = vmul.f32 %v4279_v32, %v6358_v41 }
 0x2b9   : > { %v4115_v0 = vpop.permute.xlu1 %4114  ;;  %v4105_v49 = vpop.permute.xlu0 %4104 }
 0x2ba   : > { %v4278_v54 = vmul.f32 %v4105_v49, %v6371_v2  ;;  %v4280_v60 = vmul.f32 %v4115_v0, %v6366_v13 }
 0x2bc   : > { %v4314_v6 = vadd.f32 %v4278_v54, %v4277_v30  ;;  %v4359_v7 = vmul.f32 %v4278_v54, %v6371_v2  ;;  %v4361_v24 = vmul.f32 %v4280_v60, %v6366_v13 }
 0x2bd   : > { %v4125_v11 = vpop.permute.xlu1 %4124  ;;  %v4120_v42 = vpop.permute.xlu0 %4119 }
 0x2be   : > { %v4315_v17 = vadd.f32 %v4314_v6, %v4279_v32  ;;  %v4394_v23 = vadd.f32 %v4359_v7, %v4358_v4  ;;  %v4281_v25 = vmul.f32 %v4120_v42, %v6381_v29  ;;  %v4282_v63 = vmul.f32 %v4125_v11, %v6391_v53 }
 0x2c0   : > { %v4395_v19 = vadd.f32 %v4394_v23, %v4360_v47  ;;  %v4316_v26 = vadd.f32 %v4315_v17, %v4280_v60  ;;  %v4362_v2 = vmul.f32 %v4281_v25, %v6381_v29  ;;  %v4363_v41 = vmul.f32 %v4282_v63, %v6391_v53 }
 0x2c1   : > { %v4135_v10 = vpop.permute.xlu1 %4134  ;;  %v4130_v27 = vpop.permute.xlu0 %4129 }
 0x2c2   : > { %v4396_v50 = vadd.f32 %v4395_v19, %v4361_v24  ;;  %v4317_v36 = vadd.f32 %v4316_v26, %v4281_v25  ;;  %v4283_v52 = vmul.f32 %v4130_v27, %v6378_v14  ;;  %v4284_v12 = vmul.f32 %v4135_v10, %v6386_v22 }
 0x2c4   : > { %v4397_v37 = vadd.f32 %v4396_v50, %v4362_v2  ;;  %v4318_v16 = vadd.f32 %v4317_v36, %v4282_v63  ;;  %v4364_v0 = vmul.f32 %v4283_v52, %v6378_v14  ;;  %v4365_v32 = vmul.f32 %v4284_v12, %v6386_v22 }
 0x2c5   : > { %v4145_v46 = vpop.permute.xlu1 %4144  ;;  %v4140_v13 = vpop.permute.xlu0 %4139 }
 0x2c6   : > { %v4398_v48 = vadd.f32 %v4397_v37, %v4363_v41  ;;  %v4319_v30 = vadd.f32 %v4318_v16, %v4283_v52  ;;  %v4285_v49 = vmul.f32 %v4140_v13, %v6401_v31  ;;  %v4286_v29 = vmul.f32 %v4145_v46, %v6411_v8 }
 0x2c8   : > { %v4399_v54 = vadd.f32 %v4398_v48, %v4364_v0  ;;  %v4320_v4 = vadd.f32 %v4319_v30, %v4284_v12  ;;  %v4366_v11 = vmul.f32 %v4285_v49, %v6401_v31  ;;  %v4367_v47 = vmul.f32 %v4286_v29, %v6411_v8 }
 0x2c9   : > { %v4155_v60 = vpop.permute.xlu1 %4154  ;;  %v4150_v53 = vpop.permute.xlu0 %4149 }
 0x2ca   : > { %v4400_v6 = vadd.f32 %v4399_v54, %v4365_v32  ;;  %v4321_v7 = vadd.f32 %v4320_v4, %v4285_v49  ;;  %v4287_v42 = vmul.f32 %v4150_v53, %v6398_v58  ;;  %v4288_v14 = vmul.f32 %v4155_v60, %v6406_v40 }
 0x2cc   : > { %v4401_v17 = vadd.f32 %v4400_v6, %v4366_v11  ;;  %v4322_v23 = vadd.f32 %v4321_v7, %v4286_v29  ;;  %v4368_v63 = vmul.f32 %v4287_v42, %v6398_v58  ;;  %v4369_v10 = vmul.f32 %v4288_v14, %v6406_v40 }
 0x2cd   : > { %v4165_v25 = vpop.permute.xlu1 %4164  ;;  %v4160_v22 = vpop.permute.xlu0 %4159 }
 0x2ce   : > { %v4402_v24 = vadd.f32 %v4401_v17, %v4367_v47  ;;  %v4323_v19 = vadd.f32 %v4322_v23, %v4287_v42  ;;  %v4289_v26 = vmul.f32 %v4160_v22, %v6422_v62  ;;  %v4290_v31 = vmul.f32 %v4165_v25, %v6433_v34 }
 0x2d0   : > { %v4403_v27 = vadd.f32 %v4402_v24, %v4368_v63  ;;  %v4324_v50 = vadd.f32 %v4323_v19, %v4288_v14  ;;  %v4370_v41 = vmul.f32 %v4289_v26, %v6422_v62  ;;  %v4371_v12 = vmul.f32 %v4290_v31, %v6433_v34 }
 0x2d1   : > { %v4175_v36 = vpop.permute.xlu1 %4174  ;;  %v4170_v8 = vpop.permute.xlu0 %4169 }
 0x2d2   : > { %v4404_v2 = vadd.f32 %v4403_v27, %v4369_v10  ;;  %v4325_v52 = vadd.f32 %v4324_v50, %v4289_v26  ;;  %v4291_v37 = vmul.f32 %v4170_v8, %v6418_v20  ;;  %v4292_v58 = vmul.f32 %v4175_v36, %v6428_v44 }
 0x2d4   : > { %v4405_v16 = vadd.f32 %v4404_v2, %v4370_v41  ;;  %v4326_v46 = vadd.f32 %v4325_v52, %v4290_v31  ;;  %v4372_v0 = vmul.f32 %v4291_v37, %v6418_v20  ;;  %v4373_v32 = vmul.f32 %v4292_v58, %v6428_v44 }
 0x2d5   : > { %v4185_v13 = vpop.permute.xlu1 %4184  ;;  %v4180_v40 = vpop.permute.xlu0 %4179 }
 0x2d6   : > { %v4406_v48 = vadd.f32 %v4405_v16, %v4371_v12  ;;  %v4327_v30 = vadd.f32 %v4326_v46, %v4291_v37  ;;  %v4293_v49 = vmul.f32 %v4180_v40, %v6446_v3  ;;  %v4294_v62 = vmul.f32 %v4185_v13, %v6457_v45 }
 0x2d8   : > { %v4407_v54 = vadd.f32 %v4406_v48, %v4372_v0  ;;  %v4328_v29 = vadd.f32 %v4327_v30, %v4292_v58  ;;  %v4374_v6 = vmul.f32 %v4293_v49, %v6446_v3  ;;  %v4375_v11 = vmul.f32 %v4294_v62, %v6457_v45 }
 0x2d9   : > { %v4195_v4 = vpop.permute.xlu1 %4194  ;;  %v4190_v34 = vpop.permute.xlu0 %4189 }
 0x2da   : > { %v4408_v60 = vadd.f32 %v4407_v54, %v4373_v32  ;;  %v4329_v53 = vadd.f32 %v4328_v29, %v4293_v49  ;;  %v4295_v7 = vmul.f32 %v4190_v34, %v6442_v43  ;;  %v4296_v20 = vmul.f32 %v4195_v4, %v6452_v55 }
 0x2dc   : > { %v4409_v42 = vadd.f32 %v4408_v60, %v4374_v6  ;;  %v4330_v47 = vadd.f32 %v4329_v53, %v4294_v62  ;;  %v4376_v25 = vmul.f32 %v4295_v7, %v6442_v43  ;;  %v4377_v24 = vmul.f32 %v4296_v20, %v6452_v55 }
 0x2dd   : > { %v4205_v17 = vpop.permute.xlu1 %4204  ;;  %v4200_v44 = vpop.permute.xlu0 %4199 }
 0x2de   : > { %v4410_v14 = vadd.f32 %v4409_v42, %v4375_v11  ;;  %v4331_v23 = vadd.f32 %v4330_v47, %v4295_v7  ;;  %v4297_v22 = vmul.f32 %v4200_v44, %v6467_v51  ;;  %v4298_v3 = vmul.f32 %v4205_v17, %v6477_v56 }
 0x2e0   : > { %v4411_v19 = vadd.f32 %v4410_v14, %v4376_v25  ;;  %v4332_v63 = vadd.f32 %v4331_v23, %v4296_v20  ;;  %v4378_v31 = vmul.f32 %v4297_v22, %v6467_v51  ;;  %v4379_v36 = vmul.f32 %v4298_v3, %v6477_v56 }
 0x2e1   : > { %v4215_v26 = vpop.permute.xlu1 %4214  ;;  %v4210_v45 = vpop.permute.xlu0 %4209 }
 0x2e2   : > { %v4412_v10 = vadd.f32 %v4411_v19, %v4377_v24  ;;  %v4333_v27 = vadd.f32 %v4332_v63, %v4297_v22  ;;  %v4299_v50 = vmul.f32 %v4210_v45, %v6464_v15  ;;  %v4300_v43 = vmul.f32 %v4215_v26, %v6472_v21 }
 0x2e4   : > { %v4413_v8 = vadd.f32 %v4412_v10, %v4378_v31  ;;  %v4334_v2 = vadd.f32 %v4333_v27, %v4298_v3  ;;  %v4380_v12 = vmul.f32 %v4299_v50, %v6464_v15  ;;  %v4381_v58 = vmul.f32 %v4300_v43, %v6472_v21 }
 0x2e5   : > { %v4225_v52 = vpop.permute.xlu1 %4224  ;;  %v4220_v55 = vpop.permute.xlu0 %4219 }
 0x2e6   : > { %v4414_v41 = vadd.f32 %v4413_v8, %v4379_v36  ;;  %v4335_v37 = vadd.f32 %v4334_v2, %v4299_v50  ;;  %v4301_v16 = vmul.f32 %v4220_v55, %v6487_v33  ;;  %v4302_v51 = vmul.f32 %v4225_v52, %v6497_v1 }
 0x2e8   : > { %v4415_v46 = vadd.f32 %v4414_v41, %v4380_v12  ;;  %v4336_v13 = vadd.f32 %v4335_v37, %v4300_v43  ;;  %v4382_v0 = vmul.f32 %v4301_v16, %v6487_v33  ;;  %v4383_v32 = vmul.f32 %v4302_v51, %v6497_v1 }
 0x2e9   : > { %v4235_v40 = vpop.permute.xlu1 %4234  ;;  %v4230_v56 = vpop.permute.xlu0 %4229 }
 0x2ea   : > { %v4416_v48 = vadd.f32 %v4415_v46, %v4381_v58  ;;  %v4337_v30 = vadd.f32 %v4336_v13, %v4301_v16  ;;  %v4303_v49 = vmul.f32 %v4230_v56, %v6484_v35  ;;  %v4304_v15 = vmul.f32 %v4235_v40, %v6492_v39 }
 0x2ec   : > { %v4417_v54 = vadd.f32 %v4416_v48, %v4382_v0  ;;  %v4338_v62 = vadd.f32 %v4337_v30, %v4302_v51  ;;  %v4384_v60 = vmul.f32 %v4303_v49, %v6484_v35  ;;  %v4385_v6 = vmul.f32 %v4304_v15, %v6492_v39  ;;  %v4313_v0 = vld [vmem:[%s6756_s5] sm:$0x1] }
 0x2ed   : > { %v4245_v29 = vpop.permute.xlu1 %4244  ;;  %v4240_v21 = vpop.permute.xlu0 %4239 }
 0x2ee   : > { %v4418_v4 = vadd.f32 %v4417_v54, %v4383_v32  ;;  %v4339_v34 = vadd.f32 %v4338_v62, %v4303_v49  ;;  %v4305_v53 = vmul.f32 %v4240_v21, %v6507_v59  ;;  %v4306_v33 = vmul.f32 %v4245_v29, %v6517_v9 }
 0x2f0   : > { %v4419_v7 = vadd.f32 %v4418_v4, %v4384_v60  ;;  %v4340_v11 = vadd.f32 %v4339_v34, %v4304_v15  ;;  %v4386_v17 = vmul.f32 %v4305_v53, %v6507_v59  ;;  %v4387_v14 = vmul.f32 %v4306_v33, %v6517_v9 }
 0x2f1   : > { %v4255_v42 = vpop.permute.xlu1 %4254  ;;  %v4250_v1 = vpop.permute.xlu0 %4249 }
 0x2f2   : > { %v4420_v20 = vadd.f32 %v4419_v7, %v4385_v6  ;;  %v4341_v47 = vadd.f32 %v4340_v11, %v4305_v53  ;;  %v4307_v44 = vmul.f32 %v4250_v1, %v6504_v61  ;;  %v4308_v35 = vmul.f32 %v4255_v42, %v6512_v57 }
 0x2f4   : > { %v4421_v23 = vadd.f32 %v4420_v20, %v4386_v17  ;;  %v4342_v25 = vadd.f32 %v4341_v47, %v4306_v33  ;;  %v4388_v3 = vmul.f32 %v4307_v44, %v6504_v61  ;;  %v4389_v26 = vmul.f32 %v4308_v35, %v6512_v57 }
 0x2f5   : > { %v4265_v22 = vpop.permute.xlu1 %4264  ;;  %v4260_v39 = vpop.permute.xlu0 %4259 }
 0x2f6   : > { %v4422_v24 = vadd.f32 %v4421_v23, %v4387_v14  ;;  %v4343_v19 = vadd.f32 %v4342_v25, %v4307_v44  ;;  %v4309_v63 = vmul.f32 %v4260_v39, %v6527_v38  ;;  %v4310_v59 = vmul.f32 %v4265_v22, %v6537_v5 }
 0x2f8   : > { %v4423_v45 = vadd.f32 %v4422_v24, %v4388_v3  ;;  %v4344_v10 = vadd.f32 %v4343_v19, %v4308_v35  ;;  %v4390_v36 = vmul.f32 %v4309_v63, %v6527_v38  ;;  %v4391_v43 = vmul.f32 %v4310_v59, %v6537_v5 }
 0x2f9   : > { %v4275_v27 = vpop.permute.xlu1 %4274  ;;  %v4270_v9 = vpop.permute.xlu0 %4269 }
 0x2fa   : > { %v4424_v31 = vadd.f32 %v4423_v45, %v4389_v26  ;;  %v4345_v50 = vadd.f32 %v4344_v10, %v4309_v63  ;;  %v4311_v8 = vmul.f32 %v4270_v9, %v6524_v18  ;;  %v4312_v61 = vmul.f32 %v4275_v27, %v6532_v28 }
 0x2fc   : > { %v4425_v2 = vadd.f32 %v4424_v31, %v4390_v36  ;;  %v4346_v52 = vadd.f32 %v4345_v50, %v4310_v59  ;;  %v4392_v41 = vmul.f32 %v4311_v8, %v6524_v18  ;;  %v4393_v37 = vmul.f32 %v4312_v61, %v6532_v28  ;;  %v4357_v28 = vld [vmem:[%s6757_s6] sm:$0x1] }
 0x2fe   : > { %v4426_v55 = vadd.f32 %v4425_v2, %v4391_v43  ;;  %v4347_v57 = vadd.f32 %v4346_v52, %v4311_v8 }
 0x300   : > { %v4348_v12 = vadd.f32 %v4347_v57, %v4312_v61  ;;  %v4427_v16 = vadd.f32 %v4426_v55, %v4392_v41 }
 0x302   : > { %v4349_v58 = vrot.slane %v4348_v12, 4  ;;  %v4428_v46 = vadd.f32 %v4427_v16, %v4393_v37 }
 0x304   : > { %v4350_v51 = vadd.f32 %v4349_v58, %v4348_v12  ;;  %v4429_v38 = vrot.slane %v4428_v46, 4 }
 0x306   : > { %v4351_v13 = vrot.slane %v4350_v51, 2  ;;  %v4430_v40 = vadd.f32 %v4429_v38, %v4428_v46 }
 0x308   : > { %v4352_v56 = vadd.f32 %v4351_v13, %v4350_v51  ;;  %v4431_v5 = vrot.slane %v4430_v40, 2 }
 0x30a   : > { %v4353_v48 = vrot.slane %v4352_v56, 1  ;;  %v4432_v30 = vadd.f32 %v4431_v5, %v4430_v40 }
 0x30c   : > { %v4354_v49 = vadd.f32 %v4353_v48, %v4352_v56  ;;  %v4433_v18 = vrot.slane %v4432_v30, 1 }
 0x30e   : > { %v4355_v32 = vadd.f32 %v4354_v49, %v4313_v0  ;;  %v4434_v54 = vadd.f32 %v4433_v18, %v4432_v30 }
 0x310   : > { %4356 = vst [vmem:[%s6756_s5] sm:$0x1] %v4355_v32  ;;  %v4435_v15 = vadd.f32 %v4434_v54, %v4357_v28 }
 0x312   : > { %4436 = vst [vmem:[%s6757_s6] sm:$0x1] %v4435_v15 }
 0x313 PF: > { %s17_s23 = sadd.s32 1, %s5636_s23   ;;  %s6758_s21 = smov %s5632_s22 }
 0x314   : > { %p14_p6 = scmp.ge.s32.totalorder %s17_s23, 4   ;;  %s6759_s22 = smov %s6761_s24 }
 0x316   :  { %16 = sbr.rel (!%p14_p6) target bundleno = 2 (0x2), region = 108 }

// kernel: res_block_forward.8
= control target key start
LH: loop header
LB: loop body
LE: loop exit
PB: predicated region body
PF: predicated region fallthrough
CT: control target
= control target key end

     0   :  { %s1663_s21 = smov 0   ;;  %s1665_s22 = smov 0   ;;  %s2025_s0 = inlined_call_operand.vmem [shape: bf16[768,4], index: 0, kind: input, shape index: {}]   ;;  %s2026_s1 = inlined_call_operand.vmem [shape: bf16[4,128], index: 1, kind: input, shape index: {}]   ;;  %s2027_s2 = inlined_call_operand.vmem [shape: f32[1,128], index: 2, kind: input, shape index: {}]   ;;  %s2028_s3 = inlined_call_operand.vmem [shape: f32[768,1], index: 3, kind: input, shape index: {}]   ;;  %s2029_s4 = inlined_call_operand.vmem [shape: f32[768,128], index: 4, kind: output, shape index: {0}]   ;;  %s2030_s5 = inlined_call_operand.vmem [shape: f32[1,128], index: 5, kind: output, shape index: {1}]   ;;  %s2031_s6 = inlined_call_operand.vmem [shape: f32[1,128], index: 6, kind: output, shape index: {2}]  }
   0x1   :  { %s1667_s23 = smov 0  }
   0x2 LB: > { %s32_s24 = sadd.s32 1, %s1620_s22  ;;  %p1456_p0 = scmp.ge.s32.totalorder %s1624_s23, 1  ;;  %s1624_s23 = sphi %s1667_s23, %s17_s23   ;;  %s1620_s22 = sphi %s1665_s22, %s2033_s22   ;;  %s1616_s21 = sphi %s1663_s21, %s2032_s21  }
   0x3   : > { %p34_p1 = scmp.ge.s32.totalorder %s32_s24, 3  ;;  %p277_p2 = scmp.lt.s32.totalorder %s1624_s23, 4 }
   0x5   : > { %s2035_s24 = smov (%p34_p1, %s32_s24), 0  ;;  %p278_p3 = pnand %p1456_p0, %p277_p2 }
   0x6   : > { %v475_v0 = vld [vmem:[%s2026_s1] sm:$0x3] (!%p278_p3)  ;;  %vm605_vm0 = vcmask (!%p278_p3), 1041408   ;;  %s1457_s27 = sshll.u32 (!%p278_p3), %s1616_s21, 5  ;;  %vm556_vm1 = vcmask (!%p278_p3), 31744   ;;  %p834_p5 = scmp.eq.s32.totalorder (!%p278_p3), %s1616_s21, 0 }
   0x7   : > { %281 = sbr.rel (%p278_p3) target bundleno = 475 (0x1db), region = 36  ;;  %1555 = vmatprep.subr.msk.bf16.mxu0 (!%p278_p3), %vm605_vm0, %v475_v0  ;;  %1556 = vmatprep.subr.msk.bf16.mxu1 (!%p278_p3), %vm605_vm0, %v475_v0  ;;  %v607_v1 = vsel (!%p278_p3), %vm605_vm0, %v475_v0, 0  ;;  %p335_p4 = scmp.lt.s32.totalorder (!%p278_p3), %s1457_s27, 95 }
   0x8   : > { %1520 = vmatpush3.bf16.msra.mxu0 (!%p278_p3), %v607_v1  ;;  %1554 = vmatpush3.bf16.msra.mxu1 (!%p278_p3), %v607_v1 }
   0xe   : > { %s2037_s27 = smov (!%p335_p4, %s1457_s27), 95  ;;  %v1626_v50 = vmov (%p834_p5), 0.0  }
   0xf   : > { %s1458_s28 = sshll.u32 %s2037_s27, 2  ;;  %s1460_s29 = sshll.u32 %s2037_s27, 3  ;;  %839 = vst [vmem:[%s2030_s5] sm:$0x1] (%p834_p5), %v1626_v50  ;;  %840 = vst [vmem:[%s2031_s6] sm:$0x1] (%p834_p5), %v1626_v50 }
  0x10   : > { %s1690_s8 = scalar_lea.vmem %s2025_s0, %s1458_s28  ;;  %s1695_s11 = scalar_lea.vmem %s2028_s3, %s1460_s29 }
  0x11   : > { %s1700_s14 = scalar_lea.vmem %s2029_s4, %s1460_s29  ;;  %v1584_v2 = vld [vmem:[%s1690_s8] sm:$0xff]   ;;  %v1586_v4 = vld [vmem:[%s1690_s8 + $0x8] sm:$0xff]   ;;  %v1588_v6 = vld [vmem:[%s1690_s8 + $0x10] sm:$0xff]  }
  0x12   : > { %v1585_v3 = vld [vmem:[%s1690_s8 + $0x40] sm:$0xff]   ;;  %1521 = vmatprep.mubr.msk.bf16.mxu0 %vm556_vm1, %v1584_v2  ;;  %v1587_v5 = vld [vmem:[%s1690_s8 + $0x48] sm:$0xff]   ;;  %v1589_v7 = vld [vmem:[%s1690_s8 + $0x50] sm:$0xff]  }
  0x13   : > { %1537 = vmatprep.mubr.msk.bf16.mxu1 %vm556_vm1, %v1585_v3  ;;  %1522 = vmatmul.mubr.msk.bf16.vlgmr.msra.gmra.mrb[0].mxu0 %vm556_vm1, %v1586_v4  ;;  %v1590_v8 = vld [vmem:[%s1690_s8 + $0x18] sm:$0xff]   ;;  %v1592_v10 = vld [vmem:[%s1690_s8 + $0x20] sm:$0xff]   ;;  %v1594_v12 = vld [vmem:[%s1690_s8 + $0x28] sm:$0xff]  }
  0x14   : > { %1538 = vmatmul.mubr.msk.bf16.vlgmr.msra.gmra.mrb[0].mxu1 %vm556_vm1, %v1587_v5  ;;  %1525 = vmatprep.mubr.msk.bf16.mxu0 %vm556_vm1, %v1588_v6  ;;  %v1591_v9 = vld [vmem:[%s1690_s8 + $0x58] sm:$0xff]   ;;  %v1593_v11 = vld [vmem:[%s1690_s8 + $0x60] sm:$0xff]   ;;  %v1595_v13 = vld [vmem:[%s1690_s8 + $0x68] sm:$0xff]  }
  0x15   : > { %1541 = vmatprep.mubr.msk.bf16.mxu1 %vm556_vm1, %v1589_v7  ;;  %v1596_v14 = vld [vmem:[%s1690_s8 + $0x30] sm:$0xff]   ;;  %v1598_v16 = vld [vmem:[%s1690_s8 + $0x38] sm:$0xff]  }
  0x16   : > { %v1597_v15 = vld [vmem:[%s1690_s8 + $0x70] sm:$0xff]   ;;  %v1599_v17 = vld [vmem:[%s1690_s8 + $0x78] sm:$0xff]  }
  0x1b   : > { %1526 = vmatmul.mubr.msk.bf16.gmra.mrb[4].mxu0 %vm556_vm1, %v1590_v8 }
  0x1c   : > { %1542 = vmatmul.mubr.msk.bf16.gmra.mrb[4].mxu1 %vm556_vm1, %v1591_v9  ;;  %1529 = vmatprep.mubr.msk.bf16.mxu0 %vm556_vm1, %v1592_v10 }
  0x1d   : > { %1545 = vmatprep.mubr.msk.bf16.mxu1 %vm556_vm1, %v1593_v11 }
  0x23   : > { %1530 = vmatmul.mubr.msk.bf16.gmra.mrb[8].mxu0 %vm556_vm1, %v1594_v12 }
  0x24   : > { %1546 = vmatmul.mubr.msk.bf16.gmra.mrb[8].mxu1 %vm556_vm1, %v1595_v13  ;;  %1533 = vmatprep.mubr.msk.bf16.mxu0 %vm556_vm1, %v1596_v14 }
  0x25   : > { %1549 = vmatprep.mubr.msk.bf16.mxu1 %vm556_vm1, %v1597_v15 }
  0x2b   : > { %1534 = vmatmul.mubr.msk.bf16.gmra.mrb[12].mxu0 %vm556_vm1, %v1598_v16 }
  0x2c   : > { %1550 = vmatmul.mubr.msk.bf16.gmra.mrb[12].mxu1 %vm556_vm1, %v1599_v17 }
  0xe6   : > { %v1523_v18 = vpop.f32.mrb[0].mxu0 }
  0xe7   : > { %v1539_v19 = vpop.f32.mrb[0].mxu1  ;;  %v643_v20 = vpop.f32.mrb[1].mxu0  ;;  %804 = vst [vmem:[#allocation2 + $0x10] sm:$0xff] %v1523_v18 }
  0xe8   : > { %v707_v21 = vpop.f32.mrb[1].mxu1  ;;  %v1524_v22 = vpop.f32.mrb[2].mxu0  ;;  %820 = vst [vmem:[#allocation2 + $0x90] sm:$0xff] %v1539_v19  ;;  %802 = vst [vmem:[#allocation2] sm:$0xff] %v643_v20 }
  0xe9   : > { %v1540_v23 = vpop.f32.mrb[2].mxu1  ;;  %v646_v24 = vpop.f32.mrb[3].mxu0  ;;  %818 = vst [vmem:[#allocation2 + $0x80] sm:$0xff] %v707_v21  ;;  %805 = vst [vmem:[#allocation2 + $0x18] sm:$0xff] %v1524_v22 }
  0xea   : > { %v710_v25 = vpop.f32.mrb[3].mxu1  ;;  %821 = vst [vmem:[#allocation2 + $0x98] sm:$0xff] %v1540_v23  ;;  %803 = vst [vmem:[#allocation2 + $0x8] sm:$0xff] %v646_v24 }
  0xeb   : > { %819 = vst [vmem:[#allocation2 + $0x88] sm:$0xff] %v710_v25 }
  0xee   : > { %v1527_v26 = vpop.f32.mrb[4].mxu0 }
  0xef   : > { %v1543_v27 = vpop.f32.mrb[4].mxu1  ;;  %v659_v28 = vpop.f32.mrb[5].mxu0  ;;  %808 = vst [vmem:[#allocation2 + $0x30] sm:$0xff] %v1527_v26 }
  0xf0   : > { %v723_v29 = vpop.f32.mrb[5].mxu1  ;;  %v1528_v30 = vpop.f32.mrb[6].mxu0  ;;  %824 = vst [vmem:[#allocation2 + $0xb0] sm:$0xff] %v1543_v27  ;;  %806 = vst [vmem:[#allocation2 + $0x20] sm:$0xff] %v659_v28 }
  0xf1   : > { %v1544_v31 = vpop.f32.mrb[6].mxu1  ;;  %v662_v32 = vpop.f32.mrb[7].mxu0  ;;  %822 = vst [vmem:[#allocation2 + $0xa0] sm:$0xff] %v723_v29  ;;  %809 = vst [vmem:[#allocation2 + $0x38] sm:$0xff] %v1528_v30 }
  0xf2   : > { %v726_v33 = vpop.f32.mrb[7].mxu1  ;;  %825 = vst [vmem:[#allocation2 + $0xb8] sm:$0xff] %v1544_v31  ;;  %807 = vst [vmem:[#allocation2 + $0x28] sm:$0xff] %v662_v32 }
  0xf3   : > { %823 = vst [vmem:[#allocation2 + $0xa8] sm:$0xff] %v726_v33 }
  0xf6   : > { %v1531_v34 = vpop.f32.mrb[8].mxu0 }
  0xf7   : > { %v1547_v35 = vpop.f32.mrb[8].mxu1  ;;  %v675_v36 = vpop.f32.mrb[9].mxu0  ;;  %812 = vst [vmem:[#allocation2 + $0x50] sm:$0xff] %v1531_v34 }
  0xf8   : > { %v739_v37 = vpop.f32.mrb[9].mxu1  ;;  %v1532_v38 = vpop.f32.mrb[10].mxu0  ;;  %828 = vst [vmem:[#allocation2 + $0xd0] sm:$0xff] %v1547_v35  ;;  %810 = vst [vmem:[#allocation2 + $0x40] sm:$0xff] %v675_v36 }
  0xf9   : > { %v1548_v39 = vpop.f32.mrb[10].mxu1  ;;  %v678_v40 = vpop.f32.mrb[11].mxu0  ;;  %826 = vst [vmem:[#allocation2 + $0xc0] sm:$0xff] %v739_v37  ;;  %813 = vst [vmem:[#allocation2 + $0x58] sm:$0xff] %v1532_v38 }
  0xfa   : > { %v742_v41 = vpop.f32.mrb[11].mxu1  ;;  %829 = vst [vmem:[#allocation2 + $0xd8] sm:$0xff] %v1548_v39  ;;  %811 = vst [vmem:[#allocation2 + $0x48] sm:$0xff] %v678_v40 }
  0xfb   : > { %827 = vst [vmem:[#allocation2 + $0xc8] sm:$0xff] %v742_v41 }
  0xfd   : > { %838 = sbr.rel (!%p834_p5) target bundleno = 260 (0x104), region = 44 }
  0xfe   : > { %v1535_v42 = vpop.f32.mrb[12].mxu0 }
  0xff   : > { %v1551_v43 = vpop.f32.mrb[12].mxu1  ;;  %v691_v44 = vpop.f32.mrb[13].mxu0  ;;  %816 = vst [vmem:[#allocation2 + $0x70] sm:$0xff] %v1535_v42 }
 0x100   : > { %v755_v45 = vpop.f32.mrb[13].mxu1  ;;  %v1536_v46 = vpop.f32.mrb[14].mxu0  ;;  %832 = vst [vmem:[#allocation2 + $0xf0] sm:$0xff] %v1551_v43  ;;  %814 = vst [vmem:[#allocation2 + $0x60] sm:$0xff] %v691_v44 }
 0x101   : > { %v1552_v47 = vpop.f32.mrb[14].mxu1  ;;  %v694_v48 = vpop.f32.mrb[15].mxu0  ;;  %830 = vst [vmem:[#allocation2 + $0xe0] sm:$0xff] %v755_v45  ;;  %817 = vst [vmem:[#allocation2 + $0x78] sm:$0xff] %v1536_v46 }
 0x102   : > { %v758_v49 = vpop.f32.mrb[15].mxu1  ;;  %833 = vst [vmem:[#allocation2 + $0xf8] sm:$0xff] %v1552_v47  ;;  %815 = vst [vmem:[#allocation2 + $0x68] sm:$0xff] %v694_v48 }
 0x103   : > { %831 = vst [vmem:[#allocation2 + $0xe8] sm:$0xff] %v758_v49 }
 0x104 PF: > { %v949_v51 = vld [vmem:[%s1695_s11 + $0x10] sm:$0xff]  ;;  %v947_v52 = vld [vmem:[%s1695_s11] sm:$0xff]  ;;  %v1627_v53 = vmov 0   ;;  %v950_v54 = vld [vmem:[%s1695_s11 + $0x18] sm:$0xff] }
 0x105   : > { %1601 = vset.pattern.permute.xlu1 %v1627_v53  ;;  %1600 = vset.pattern.permute.xlu0 %v1627_v53  ;;  %v948_v55 = vld [vmem:[%s1695_s11 + $0x8] sm:$0xff]  ;;  %v951_v57 = vld [vmem:[%s1695_s11 + $0x20] sm:$0xff]  ;;  %v954_v58 = vld [vmem:[%s1695_s11 + $0x38] sm:$0xff] }
 0x106   : > { %991 = vperm.xlu1 %1601, %v949_v51   ;;  %981 = vperm.xlu0 %1600, %v947_v52   ;;  %v952_v56 = vld [vmem:[%s1695_s11 + $0x28] sm:$0xff]  ;;  %v953_v59 = vld [vmem:[%s1695_s11 + $0x30] sm:$0xff]  ;;  %v1754_v61 = vld [vmem:[%s2027_s2] ss:$0 sm:$0xff] }
 0x107   : > { %v846_v60 = vld [vmem:[#allocation2 + $0x10] sm:$0xff]  ;;  %v844_v62 = vld [vmem:[#allocation2] sm:$0xff]  ;;  %v847_v63 = vld [vmem:[#allocation2 + $0x18] sm:$0xff] }
 0x108   : > { %v1757_v0 = vadd.f32 %v1754_v61, %v846_v60  ;;  %v1760_v1 = vadd.f32 %v1754_v61, %v844_v62  ;;  %v1763_v2 = vadd.f32 %v1754_v61, %v847_v63  ;;  %v845_v3 = vld [vmem:[#allocation2 + $0x8] sm:$0xff]  ;;  %v848_v5 = vld [vmem:[#allocation2 + $0x20] sm:$0xff]  ;;  %v851_v9 = vld [vmem:[#allocation2 + $0x38] sm:$0xff] }
 0x109   : > { %v849_v4 = vld [vmem:[#allocation2 + $0x28] sm:$0xff]  ;;  %v1766_v6 = vadd.f32 %v1754_v61, %v845_v3  ;;  %v1772_v8 = vadd.f32 %v1754_v61, %v848_v5  ;;  %v850_v10 = vld [vmem:[#allocation2 + $0x30] sm:$0xff]  ;;  %v1782_v12 = vadd.f32 %v1754_v61, %v851_v9  ;;  %v955_v14 = vld [vmem:[%s1695_s11 + $0x40] sm:$0xff] }
 0x10a   : > { %996 = vperm.xlu1 %1601, %v950_v54   ;;  %986 = vperm.xlu0 %1600, %v948_v55   ;;  %v1769_v7 = vadd.f32 %v1754_v61, %v849_v4  ;;  %v956_v11 = vld [vmem:[%s1695_s11 + $0x48] sm:$0xff]  ;;  %917 = vst [vmem:[%s1700_s14 + $0x10] sm:$0xff] %v1757_v0  ;;  %915 = vst [vmem:[%s1700_s14] sm:$0xff] %v1760_v1  ;;  %v1785_v13 = vadd.f32 %v1754_v61, %v850_v10  ;;  %v852_v16 = vld [vmem:[#allocation2 + $0x40] sm:$0xff] }
 0x10b   : > { %918 = vst [vmem:[%s1700_s14 + $0x18] sm:$0xff] %v1763_v2  ;;  %916 = vst [vmem:[%s1700_s14 + $0x8] sm:$0xff] %v1766_v6  ;;  %v853_v15 = vld [vmem:[#allocation2 + $0x48] sm:$0xff]  ;;  %v1802_v18 = vadd.f32 %v1754_v61, %v852_v16  ;;  %v958_v19 = vld [vmem:[%s1695_s11 + $0x58] sm:$0xff] }
 0x10c   : > { %920 = vst [vmem:[%s1700_s14 + $0x28] sm:$0xff] %v1769_v7  ;;  %919 = vst [vmem:[%s1700_s14 + $0x20] sm:$0xff] %v1772_v8  ;;  %v1799_v17 = vadd.f32 %v1754_v61, %v853_v15  ;;  %v957_v20 = vld [vmem:[%s1695_s11 + $0x50] sm:$0xff]  ;;  %v855_v21 = vld [vmem:[#allocation2 + $0x58] sm:$0xff] }
 0x10d   : > { %922 = vst [vmem:[%s1700_s14 + $0x38] sm:$0xff] %v1782_v12  ;;  %921 = vst [vmem:[%s1700_s14 + $0x30] sm:$0xff] %v1785_v13  ;;  %v854_v22 = vld [vmem:[#allocation2 + $0x50] sm:$0xff]  ;;  %v1811_v23 = vadd.f32 %v1754_v61, %v855_v21  ;;  %v960_v25 = vld [vmem:[%s1695_s11 + $0x68] sm:$0xff] }
 0x10e   : > { %1006 = vperm.xlu1 %1601, %v952_v56   ;;  %1001 = vperm.xlu0 %1600, %v951_v57   ;;  %924 = vst [vmem:[%s1700_s14 + $0x48] sm:$0xff] %v1799_v17  ;;  %923 = vst [vmem:[%s1700_s14 + $0x40] sm:$0xff] %v1802_v18  ;;  %v1814_v24 = vadd.f32 %v1754_v61, %v854_v22  ;;  %v959_v26 = vld [vmem:[%s1695_s11 + $0x60] sm:$0xff]  ;;  %v857_v27 = vld [vmem:[#allocation2 + $0x68] sm:$0xff] }
 0x10f   : > { %926 = vst [vmem:[%s1700_s14 + $0x58] sm:$0xff] %v1811_v23  ;;  %v856_v28 = vld [vmem:[#allocation2 + $0x60] sm:$0xff]  ;;  %v1823_v29 = vadd.f32 %v1754_v61, %v857_v27  ;;  %v962_v31 = vld [vmem:[%s1695_s11 + $0x78] sm:$0xff]  ;;  %v961_v32 = vld [vmem:[%s1695_s11 + $0x70] sm:$0xff] }
 0x110   : > { %925 = vst [vmem:[%s1700_s14 + $0x50] sm:$0xff] %v1814_v24  ;;  %v1826_v30 = vadd.f32 %v1754_v61, %v856_v28  ;;  %v859_v33 = vld [vmem:[#allocation2 + $0x78] sm:$0xff]  ;;  %v858_v34 = vld [vmem:[#allocation2 + $0x70] sm:$0xff]  ;;  %v964_v37 = vld [vmem:[%s1695_s11 + $0x88] sm:$0xff] }
 0x111   : > { %928 = vst [vmem:[%s1700_s14 + $0x68] sm:$0xff] %v1823_v29  ;;  %v1835_v35 = vadd.f32 %v1754_v61, %v859_v33  ;;  %v1838_v36 = vadd.f32 %v1754_v61, %v858_v34  ;;  %v963_v38 = vld [vmem:[%s1695_s11 + $0x80] sm:$0xff]  ;;  %v861_v39 = vld [vmem:[#allocation2 + $0x88] sm:$0xff]  ;;  %v966_v43 = vld [vmem:[%s1695_s11 + $0x98] sm:$0xff] }
 0x112   : > { %1016 = vperm.xlu1 %1601, %v954_v58   ;;  %1011 = vperm.xlu0 %1600, %v953_v59   ;;  %927 = vst [vmem:[%s1700_s14 + $0x60] sm:$0xff] %v1826_v30  ;;  %v860_v40 = vld [vmem:[#allocation2 + $0x80] sm:$0xff]  ;;  %v1847_v41 = vadd.f32 %v1754_v61, %v861_v39  ;;  %v965_v44 = vld [vmem:[%s1695_s11 + $0x90] sm:$0xff]  ;;  %v863_v45 = vld [vmem:[#allocation2 + $0x98] sm:$0xff] }
 0x113   : > { %930 = vst [vmem:[%s1700_s14 + $0x78] sm:$0xff] %v1835_v35  ;;  %929 = vst [vmem:[%s1700_s14 + $0x70] sm:$0xff] %v1838_v36  ;;  %v1850_v42 = vadd.f32 %v1754_v61, %v860_v40  ;;  %v862_v46 = vld [vmem:[#allocation2 + $0x90] sm:$0xff]  ;;  %v1859_v47 = vadd.f32 %v1754_v61, %v863_v45  ;;  %v968_v49 = vld [vmem:[%s1695_s11 + $0xa8] sm:$0xff] }
 0x114   : > { %932 = vst [vmem:[%s1700_s14 + $0x88] sm:$0xff] %v1847_v41  ;;  %v1862_v48 = vadd.f32 %v1754_v61, %v862_v46  ;;  %v967_v50 = vld [vmem:[%s1695_s11 + $0xa0] sm:$0xff]  ;;  %v865_v51 = vld [vmem:[#allocation2 + $0xa8] sm:$0xff]  ;;  %v970_v55 = vld [vmem:[%s1695_s11 + $0xb8] sm:$0xff] }
 0x115   : > { %931 = vst [vmem:[%s1700_s14 + $0x80] sm:$0xff] %v1850_v42  ;;  %934 = vst [vmem:[%s1700_s14 + $0x98] sm:$0xff] %v1859_v47  ;;  %v864_v52 = vld [vmem:[#allocation2 + $0xa0] sm:$0xff]  ;;  %v1871_v53 = vadd.f32 %v1754_v61, %v865_v51  ;;  %v969_v56 = vld [vmem:[%s1695_s11 + $0xb0] sm:$0xff] }
 0x116   : > { %1026 = vperm.xlu1 %1601, %v956_v11   ;;  %1021 = vperm.xlu0 %1600, %v955_v14   ;;  %933 = vst [vmem:[%s1700_s14 + $0x90] sm:$0xff] %v1862_v48  ;;  %v1874_v54 = vadd.f32 %v1754_v61, %v864_v52  ;;  %v867_v57 = vld [vmem:[#allocation2 + $0xb8] sm:$0xff]  ;;  %v866_v58 = vld [vmem:[#allocation2 + $0xb0] sm:$0xff]  ;;  %v972_v62 = vld [vmem:[%s1695_s11 + $0xc8] sm:$0xff] }
 0x117   : > { %936 = vst [vmem:[%s1700_s14 + $0xa8] sm:$0xff] %v1871_v53  ;;  %v1883_v59 = vadd.f32 %v1754_v61, %v867_v57  ;;  %v1886_v60 = vadd.f32 %v1754_v61, %v866_v58  ;;  %v971_v63 = vld [vmem:[%s1695_s11 + $0xc0] sm:$0xff]  ;;  %v869_v3 = vld [vmem:[#allocation2 + $0xc8] sm:$0xff]  ;;  %v974_v10 = vld [vmem:[%s1695_s11 + $0xd8] sm:$0xff] }
 0x118   : > { %935 = vst [vmem:[%s1700_s14 + $0xa0] sm:$0xff] %v1874_v54  ;;  %v868_v4 = vld [vmem:[#allocation2 + $0xc0] sm:$0xff]  ;;  %v1895_v5 = vadd.f32 %v1754_v61, %v869_v3  ;;  %v973_v11 = vld [vmem:[%s1695_s11 + $0xd0] sm:$0xff]  ;;  %v871_v14 = vld [vmem:[#allocation2 + $0xd8] sm:$0xff] }
 0x119   : > { %938 = vst [vmem:[%s1700_s14 + $0xb8] sm:$0xff] %v1883_v59  ;;  %937 = vst [vmem:[%s1700_s14 + $0xb0] sm:$0xff] %v1886_v60  ;;  %v1898_v9 = vadd.f32 %v1754_v61, %v868_v4  ;;  %v870_v15 = vld [vmem:[#allocation2 + $0xd0] sm:$0xff]  ;;  %v1907_v16 = vadd.f32 %v1754_v61, %v871_v14  ;;  %v975_v21 = vld [vmem:[%s1695_s11 + $0xe0] sm:$0xff] }
 0x11a   : > { %1036 = vperm.xlu1 %1601, %v958_v19   ;;  %1031 = vperm.xlu0 %1600, %v957_v20   ;;  %940 = vst [vmem:[%s1700_s14 + $0xc8] sm:$0xff] %v1895_v5  ;;  %v1910_v19 = vadd.f32 %v1754_v61, %v870_v15  ;;  %v976_v20 = vld [vmem:[%s1695_s11 + $0xe8] sm:$0xff]  ;;  %v978_v28 = vld [vmem:[%s1695_s11 + $0xf8] sm:$0xff]  ;;  %v874_v33 = vld [vmem:[#allocation2 + $0xf0] sm:$0xff] }
 0x11b   : > { %939 = vst [vmem:[%s1700_s14 + $0xc0] sm:$0xff] %v1898_v9  ;;  %942 = vst [vmem:[%s1700_s14 + $0xd8] sm:$0xff] %v1907_v16  ;;  %v873_v22 = vld [vmem:[#allocation2 + $0xe8] sm:$0xff] }
 0x11c   : > { %941 = vst [vmem:[%s1700_s14 + $0xd0] sm:$0xff] %v1910_v19 }
 0x11e   : > { %1046 = vperm.xlu1 %1601, %v960_v25   ;;  %1041 = vperm.xlu0 %1600, %v959_v26   ;;  %v872_v25 = vld [vmem:[#allocation2 + $0xe0] sm:$0xff]  ;;  %v1919_v26 = vadd.f32 %v1754_v61, %v873_v22 }
 0x11f   : > { %v1922_v27 = vadd.f32 %v1754_v61, %v872_v25 }
 0x120   : > { %944 = vst [vmem:[%s1700_s14 + $0xe8] sm:$0xff] %v1919_v26 }
 0x121   : > { %943 = vst [vmem:[%s1700_s14 + $0xe0] sm:$0xff] %v1922_v27 }
 0x122   : > { %1056 = vperm.xlu1 %1601, %v962_v31   ;;  %1051 = vperm.xlu0 %1600, %v961_v32   ;;  %v977_v31 = vld [vmem:[%s1695_s11 + $0xf0] sm:$0xff]  ;;  %v875_v32 = vld [vmem:[#allocation2 + $0xf8] sm:$0xff] }
 0x123   : > { %v1931_v34 = vadd.f32 %v1754_v61, %v875_v32 }
 0x125   : > { %946 = vst [vmem:[%s1700_s14 + $0xf8] sm:$0xff] %v1931_v34 }
 0x126   : > { %1066 = vperm.xlu1 %1601, %v964_v37   ;;  %1061 = vperm.xlu0 %1600, %v963_v38   ;;  %v1934_v37 = vadd.f32 %v1754_v61, %v874_v33 }
 0x128   : > { %945 = vst [vmem:[%s1700_s14 + $0xf0] sm:$0xff] %v1934_v37 }
 0x12a   : > { %1076 = vperm.xlu1 %1601, %v966_v43   ;;  %1071 = vperm.xlu0 %1600, %v965_v44  }
 0x12e   : > { %1086 = vperm.xlu1 %1601, %v968_v49   ;;  %1081 = vperm.xlu0 %1600, %v967_v50  }
 0x132   : > { %1096 = vperm.xlu1 %1601, %v970_v55   ;;  %1091 = vperm.xlu0 %1600, %v969_v56  }
 0x136   : > { %1106 = vperm.xlu1 %1601, %v972_v62   ;;  %1101 = vperm.xlu0 %1600, %v971_v63  }
 0x13a   : > { %1116 = vperm.xlu1 %1601, %v974_v10   ;;  %1111 = vperm.xlu0 %1600, %v973_v11  }
 0x13e   : > { %1126 = vperm.xlu1 %1601, %v976_v20   ;;  %1121 = vperm.xlu0 %1600, %v975_v21  }
 0x142   : > { %1136 = vperm.xlu1 %1601, %v978_v28   ;;  %1131 = vperm.xlu0 %1600, %v977_v31  }
 0x185   : > { %v992_v38 = vpop.permute.xlu1 %991  ;;  %v982_v39 = vpop.permute.xlu0 %981 }
 0x186   : > { %v1139_v40 = vmul.f32 %v982_v39, %v1760_v1  ;;  %v1141_v45 = vmul.f32 %v992_v38, %v1757_v0 }
 0x188   : > { %v1212_v49 = vmul.f32 %v1139_v40, %v1760_v1  ;;  %v1214_v56 = vmul.f32 %v1141_v45, %v1757_v0 }
 0x189   : > { %v997_v43 = vpop.permute.xlu1 %996  ;;  %v987_v44 = vpop.permute.xlu0 %986 }
 0x18a   : > { %v1140_v46 = vmul.f32 %v987_v44, %v1766_v6  ;;  %v1142_v61 = vmul.f32 %v997_v43, %v1763_v2 }
 0x18c   : > { %v1172_v50 = vadd.f32 %v1140_v46, %v1139_v40  ;;  %v1213_v51 = vmul.f32 %v1140_v46, %v1766_v6  ;;  %v1215_v63 = vmul.f32 %v1142_v61, %v1763_v2 }
 0x18d   : > { %v1007_v52 = vpop.permute.xlu1 %1006  ;;  %v1002_v55 = vpop.permute.xlu0 %1001 }
 0x18e   : > { %v1173_v57 = vadd.f32 %v1172_v50, %v1141_v45  ;;  %v1244_v58 = vadd.f32 %v1213_v51, %v1212_v49  ;;  %v1143_v62 = vmul.f32 %v1002_v55, %v1772_v8  ;;  %v1144_v4 = vmul.f32 %v1007_v52, %v1769_v7 }
 0x190   : > { %v1245_v3 = vadd.f32 %v1244_v58, %v1214_v56  ;;  %v1174_v10 = vadd.f32 %v1173_v57, %v1142_v61  ;;  %v1216_v15 = vmul.f32 %v1143_v62, %v1772_v8  ;;  %v1217_v0 = vmul.f32 %v1144_v4, %v1769_v7 }
 0x191   : > { %v1017_v1 = vpop.permute.xlu1 %1016  ;;  %v1012_v11 = vpop.permute.xlu0 %1011 }
 0x192   : > { %v1175_v14 = vadd.f32 %v1174_v10, %v1143_v62  ;;  %v1246_v6 = vadd.f32 %v1245_v3, %v1215_v63  ;;  %v1145_v20 = vmul.f32 %v1012_v11, %v1785_v13  ;;  %v1146_v22 = vmul.f32 %v1017_v1, %v1782_v12 }
 0x194   : > { %v1247_v21 = vadd.f32 %v1246_v6, %v1216_v15  ;;  %v1176_v25 = vadd.f32 %v1175_v14, %v1144_v4  ;;  %v1218_v32 = vmul.f32 %v1145_v20, %v1785_v13  ;;  %v1219_v39 = vmul.f32 %v1146_v22, %v1782_v12 }
 0x195   : > { %v1027_v28 = vpop.permute.xlu1 %1026  ;;  %v1022_v2 = vpop.permute.xlu0 %1021 }
 0x196   : > { %v1177_v31 = vadd.f32 %v1176_v25, %v1145_v20  ;;  %v1248_v33 = vadd.f32 %v1247_v21, %v1217_v0  ;;  %v1147_v38 = vmul.f32 %v1022_v2, %v1802_v18  ;;  %v1148_v40 = vmul.f32 %v1027_v28, %v1799_v17 }
 0x198   : > { %v1249_v8 = vadd.f32 %v1248_v33, %v1218_v32  ;;  %v1178_v43 = vadd.f32 %v1177_v31, %v1146_v22  ;;  %v1220_v46 = vmul.f32 %v1147_v38, %v1802_v18  ;;  %v1221_v50 = vmul.f32 %v1148_v40, %v1799_v17 }
 0x199   : > { %v1037_v44 = vpop.permute.xlu1 %1036  ;;  %v1032_v7 = vpop.permute.xlu0 %1031 }
 0x19a   : > { %v1179_v45 = vadd.f32 %v1178_v43, %v1147_v38  ;;  %v1250_v49 = vadd.f32 %v1249_v8, %v1219_v39  ;;  %v1149_v61 = vmul.f32 %v1032_v7, %v1814_v24  ;;  %v1150_v51 = vmul.f32 %v1037_v44, %v1811_v23 }
 0x19c   : > { %v1251_v13 = vadd.f32 %v1250_v49, %v1220_v46  ;;  %v1180_v52 = vadd.f32 %v1179_v45, %v1148_v40  ;;  %v1222_v57 = vmul.f32 %v1149_v61, %v1814_v24  ;;  %v1223_v63 = vmul.f32 %v1150_v51, %v1811_v23 }
 0x19d   : > { %v1047_v55 = vpop.permute.xlu1 %1046  ;;  %v1042_v12 = vpop.permute.xlu0 %1041 }
 0x19e   : > { %v1181_v56 = vadd.f32 %v1180_v52, %v1149_v61  ;;  %v1252_v58 = vadd.f32 %v1251_v13, %v1221_v50  ;;  %v1151_v62 = vmul.f32 %v1042_v12, %v1826_v30  ;;  %v1152_v3 = vmul.f32 %v1047_v55, %v1823_v29 }
 0x1a0   : > { %v1253_v18 = vadd.f32 %v1252_v58, %v1222_v57  ;;  %v1182_v4 = vadd.f32 %v1181_v56, %v1150_v51  ;;  %v1224_v11 = vmul.f32 %v1151_v62, %v1826_v30  ;;  %v1225_v6 = vmul.f32 %v1152_v3, %v1823_v29 }
 0x1a1   : > { %v1057_v10 = vpop.permute.xlu1 %1056  ;;  %v1052_v17 = vpop.permute.xlu0 %1051 }
 0x1a2   : > { %v1183_v1 = vadd.f32 %v1182_v4, %v1151_v62  ;;  %v1254_v14 = vadd.f32 %v1253_v18, %v1223_v63  ;;  %v1153_v15 = vmul.f32 %v1052_v17, %v1838_v36  ;;  %v1154_v20 = vmul.f32 %v1057_v10, %v1835_v35 }
 0x1a4   : > { %v1255_v24 = vadd.f32 %v1254_v14, %v1224_v11  ;;  %v1184_v0 = vadd.f32 %v1183_v1, %v1152_v3  ;;  %v1226_v25 = vmul.f32 %v1153_v15, %v1838_v36  ;;  %v1227_v31 = vmul.f32 %v1154_v20, %v1835_v35 }
 0x1a5   : > { %v1067_v21 = vpop.permute.xlu1 %1066  ;;  %v1062_v23 = vpop.permute.xlu0 %1061 }
 0x1a6   : > { %v1185_v22 = vadd.f32 %v1184_v0, %v1153_v15  ;;  %v1256_v28 = vadd.f32 %v1255_v24, %v1225_v6  ;;  %v1155_v2 = vmul.f32 %v1062_v23, %v1850_v42  ;;  %v1156_v32 = vmul.f32 %v1067_v21, %v1847_v41 }
 0x1a8   : > { %v1257_v30 = vadd.f32 %v1256_v28, %v1226_v25  ;;  %v1186_v33 = vadd.f32 %v1185_v22, %v1154_v20  ;;  %v1228_v8 = vmul.f32 %v1155_v2, %v1850_v42  ;;  %v1229_v44 = vmul.f32 %v1156_v32, %v1847_v41 }
 0x1a9   : > { %v1077_v38 = vpop.permute.xlu1 %1076  ;;  %v1072_v29 = vpop.permute.xlu0 %1071 }
 0x1aa   : > { %v1187_v39 = vadd.f32 %v1186_v33, %v1155_v2  ;;  %v1258_v40 = vadd.f32 %v1257_v30, %v1227_v31  ;;  %v1157_v43 = vmul.f32 %v1072_v29, %v1862_v48  ;;  %v1158_v7 = vmul.f32 %v1077_v38, %v1859_v47 }
 0x1ac   : > { %v1259_v36 = vadd.f32 %v1258_v40, %v1228_v8  ;;  %v1188_v45 = vadd.f32 %v1187_v39, %v1156_v32  ;;  %v1230_v61 = vmul.f32 %v1157_v43, %v1862_v48  ;;  %v1231_v51 = vmul.f32 %v1158_v7, %v1859_v47 }
 0x1ad   : > { %v1087_v46 = vpop.permute.xlu1 %1086  ;;  %v1082_v35 = vpop.permute.xlu0 %1081 }
 0x1ae   : > { %v1189_v49 = vadd.f32 %v1188_v45, %v1157_v43  ;;  %v1260_v50 = vadd.f32 %v1259_v36, %v1229_v44  ;;  %v1159_v13 = vmul.f32 %v1082_v35, %v1874_v54  ;;  %v1160_v52 = vmul.f32 %v1087_v46, %v1871_v53 }
 0x1b0   : > { %v1261_v42 = vadd.f32 %v1260_v50, %v1230_v61  ;;  %v1190_v55 = vadd.f32 %v1189_v49, %v1158_v7  ;;  %v1232_v57 = vmul.f32 %v1159_v13, %v1874_v54  ;;  %v1233_v63 = vmul.f32 %v1160_v52, %v1871_v53 }
 0x1b1   : > { %v1097_v12 = vpop.permute.xlu1 %1096  ;;  %v1092_v41 = vpop.permute.xlu0 %1091 }
 0x1b2   : > { %v1191_v56 = vadd.f32 %v1190_v55, %v1159_v13  ;;  %v1262_v58 = vadd.f32 %v1261_v42, %v1231_v51  ;;  %v1161_v62 = vmul.f32 %v1092_v41, %v1886_v60  ;;  %v1162_v18 = vmul.f32 %v1097_v12, %v1883_v59 }
 0x1b4   : > { %v1263_v48 = vadd.f32 %v1262_v58, %v1232_v57  ;;  %v1192_v3 = vadd.f32 %v1191_v56, %v1160_v52  ;;  %v1234_v17 = vmul.f32 %v1161_v62, %v1886_v60  ;;  %v1235_v14 = vmul.f32 %v1162_v18, %v1883_v59  ;;  %v1171_v58 = vld [vmem:[%s2030_s5] sm:$0x1] }
 0x1b5   : > { %v1107_v4 = vpop.permute.xlu1 %1106  ;;  %v1102_v47 = vpop.permute.xlu0 %1101 }
 0x1b6   : > { %v1193_v10 = vadd.f32 %v1192_v3, %v1161_v62  ;;  %v1264_v1 = vadd.f32 %v1263_v48, %v1233_v63  ;;  %v1163_v11 = vmul.f32 %v1102_v47, %v1898_v9  ;;  %v1164_v15 = vmul.f32 %v1107_v4, %v1895_v5 }
 0x1b8   : > { %v1265_v54 = vadd.f32 %v1264_v1, %v1234_v17  ;;  %v1194_v6 = vadd.f32 %v1193_v10, %v1162_v18  ;;  %v1236_v0 = vmul.f32 %v1163_v11, %v1898_v9  ;;  %v1237_v22 = vmul.f32 %v1164_v15, %v1895_v5 }
 0x1b9   : > { %v1117_v24 = vpop.permute.xlu1 %1116  ;;  %v1112_v53 = vpop.permute.xlu0 %1111 }
 0x1ba   : > { %v1195_v20 = vadd.f32 %v1194_v6, %v1163_v11  ;;  %v1266_v21 = vadd.f32 %v1265_v54, %v1235_v14  ;;  %v1165_v23 = vmul.f32 %v1112_v53, %v1910_v19  ;;  %v1166_v25 = vmul.f32 %v1117_v24, %v1907_v16 }
 0x1bc   : > { %v1267_v60 = vadd.f32 %v1266_v21, %v1236_v0  ;;  %v1196_v28 = vadd.f32 %v1195_v20, %v1164_v15  ;;  %v1238_v30 = vmul.f32 %v1165_v23, %v1910_v19  ;;  %v1239_v38 = vmul.f32 %v1166_v25, %v1907_v16 }
 0x1bd   : > { %v1127_v2 = vpop.permute.xlu1 %1126  ;;  %v1122_v59 = vpop.permute.xlu0 %1121 }
 0x1be   : > { %v1197_v31 = vadd.f32 %v1196_v28, %v1165_v23  ;;  %v1268_v32 = vadd.f32 %v1267_v60, %v1237_v22  ;;  %v1167_v33 = vmul.f32 %v1122_v59, %v1922_v27  ;;  %v1168_v29 = vmul.f32 %v1127_v2, %v1919_v26 }
 0x1c0   : > { %v1269_v9 = vadd.f32 %v1268_v32, %v1238_v30  ;;  %v1198_v39 = vadd.f32 %v1197_v31, %v1166_v25  ;;  %v1240_v43 = vmul.f32 %v1167_v33, %v1922_v27  ;;  %v1241_v7 = vmul.f32 %v1168_v29, %v1919_v26 }
 0x1c1   : > { %v1137_v8 = vpop.permute.xlu1 %1136  ;;  %v1132_v5 = vpop.permute.xlu0 %1131 }
 0x1c2   : > { %v1199_v40 = vadd.f32 %v1198_v39, %v1167_v33  ;;  %v1270_v44 = vadd.f32 %v1269_v9, %v1239_v38  ;;  %v1169_v36 = vmul.f32 %v1132_v5, %v1934_v37  ;;  %v1170_v45 = vmul.f32 %v1137_v8, %v1931_v34 }
 0x1c4   : > { %v1271_v19 = vadd.f32 %v1270_v44, %v1240_v43  ;;  %v1200_v46 = vadd.f32 %v1199_v40, %v1168_v29  ;;  %v1242_v16 = vmul.f32 %v1169_v36, %v1934_v37  ;;  %v1243_v61 = vmul.f32 %v1170_v45, %v1931_v34  ;;  %v1211_v34 = vld [vmem:[%s2031_s6] sm:$0x1] }
 0x1c6   : > { %v1201_v35 = vadd.f32 %v1200_v46, %v1169_v36  ;;  %v1272_v49 = vadd.f32 %v1271_v19, %v1241_v7 }
 0x1c8   : > { %v1202_v50 = vadd.f32 %v1201_v35, %v1170_v45  ;;  %v1273_v13 = vadd.f32 %v1272_v49, %v1242_v16 }
 0x1ca   : > { %v1203_v51 = vrot.slane %v1202_v50, 4  ;;  %v1274_v42 = vadd.f32 %v1273_v13, %v1243_v61 }
 0x1cc   : > { %v1204_v27 = vadd.f32 %v1203_v51, %v1202_v50  ;;  %v1275_v52 = vrot.slane %v1274_v42, 4 }
 0x1ce   : > { %v1205_v55 = vrot.slane %v1204_v27, 2  ;;  %v1276_v12 = vadd.f32 %v1275_v52, %v1274_v42 }
 0x1d0   : > { %v1206_v41 = vadd.f32 %v1205_v55, %v1204_v27  ;;  %v1277_v26 = vrot.slane %v1276_v12, 2 }
 0x1d2   : > { %v1207_v56 = vrot.slane %v1206_v41, 1  ;;  %v1278_v57 = vadd.f32 %v1277_v26, %v1276_v12 }
 0x1d4   : > { %v1208_v37 = vadd.f32 %v1207_v56, %v1206_v41  ;;  %v1279_v62 = vrot.slane %v1278_v57, 1 }
 0x1d6   : > { %v1209_v63 = vadd.f32 %v1208_v37, %v1171_v58  ;;  %v1280_v48 = vadd.f32 %v1279_v62, %v1278_v57 }
 0x1d8   : > { %1210 = vst [vmem:[%s2030_s5] sm:$0x1] %v1209_v63  ;;  %v1281_v18 = vadd.f32 %v1280_v48, %v1211_v34 }
 0x1da   : > { %1282 = vst [vmem:[%s2031_s6] sm:$0x1] %v1281_v18 }
 0x1db PF: > { %s17_s23 = sadd.s32 1, %s1624_s23   ;;  %s2032_s21 = smov %s1620_s22 }
 0x1dc   : > { %p14_p6 = scmp.ge.s32.totalorder %s17_s23, 5   ;;  %s2033_s22 = smov %s2035_s24 }
 0x1de   :  { %16 = sbr.rel (!%p14_p6) target bundleno = 2 (0x2), region = 111 }

// kernel: res_block_forward.9
= control target key start
LH: loop header
LB: loop body
LE: loop exit
PB: predicated region body
PF: predicated region fallthrough
CT: control target
= control target key end

     0   :  { %s729_s21 = smov 0   ;;  %s1004_s0 = inlined_call_operand.vmem [shape: f32[768,128], index: 0, kind: input, shape index: {}]   ;;  %s1005_s1 = inlined_call_operand.vmem [shape: f32[768,128], index: 1, kind: input, shape index: {}]   ;;  %s1006_s2 = inlined_call_operand.vmem [shape: f32[1,128], index: 2, kind: input, shape index: {}]   ;;  %s1007_s3 = inlined_call_operand.vmem [shape: f32[1,128], index: 3, kind: input, shape index: {}]   ;;  %s1008_s4 = inlined_call_operand.vmem [shape: f32[1,128], index: 4, kind: input, shape index: {}]   ;;  %s1009_s5 = inlined_call_operand.vmem [shape: f32[1,128], index: 5, kind: input, shape index: {}]   ;;  %s1010_s6 = inlined_call_operand.vmem [shape: f32[768,128], index: 6, kind: output, shape index: {}]  }
   0x1 LB: > { %s661_s22 = sadd.s32 4294967295, %s692_s21   ;;  %p665_p0 = scmp.ge.s32.totalorder %s692_s21, 1  ;;  %s692_s21 = sphi %s729_s21, %s16_s21  }
   0x2   : > { %p224_p1 = scmp.lt.s32.totalorder %s692_s21, 4 }
   0x4   : > { %p225_p2 = pnand %p665_p0, %p224_p1 }
   0x5   : > { %s666_s23 = sshll.u32 (!%p225_p2), %s661_s22, 5  ;;  %v742_v0 = vld [vmem:[%s1006_s2] ss:$0 sm:$0xff] (!%p225_p2) }
   0x6   : > { %228 = sbr.rel (%p225_p2) target bundleno = 72 (0x48), region = 44  ;;  %p260_p3 = scmp.lt.s32.totalorder (!%p225_p2), %s666_s23, 95  ;;  %v747_v1 = vld [vmem:[%s1008_s4] ss:$0 sm:$0xff] (!%p225_p2) }
   0x7   : > { %v764_v2 = vld [vmem:[%s1007_s3] ss:$0 sm:$0xff] (!%p225_p2) }
   0x8   : > { %v791_v25 = vld [vmem:[%s1009_s5] ss:$0 sm:$0xff] (!%p225_p2) }
   0xd   : > { %s1012_s23 = smov (!%p260_p3, %s666_s23), 95 }
   0xe   : > { %s737_s24 = sshll.u32 %s1012_s23, 3 }
   0xf   : > { %s753_s7 = scalar_lea.vmem %s1004_s0, %s737_s24  ;;  %s759_s10 = scalar_lea.vmem %s1005_s1, %s737_s24 }
  0x10   : > { %v277_v3 = vld [vmem:[%s753_s7] sm:$0xff]  ;;  %v278_v5 = vld [vmem:[%s753_s7 + $0x8] sm:$0xff]  ;;  %v279_v10 = vld [vmem:[%s753_s7 + $0x10] sm:$0xff]  ;;  %s812_s17 = scalar_lea.vmem %s1010_s6, %s737_s24 }
  0x11   : > { %v387_v4 = vld [vmem:[%s759_s10] sm:$0xff]  ;;  %v316_v6 = vmul.f32 %v742_v0, %v277_v3  ;;  %v317_v8 = vmul.f32 %v742_v0, %v278_v5  ;;  %v388_v9 = vld [vmem:[%s759_s10 + $0x8] sm:$0xff]  ;;  %v389_v11 = vld [vmem:[%s759_s10 + $0x10] sm:$0xff]  ;;  %v318_v13 = vmul.f32 %v742_v0, %v279_v10 }
  0x12   : > { %v426_v7 = vmul.f32 %v747_v1, %v387_v4  ;;  %v427_v12 = vmul.f32 %v747_v1, %v388_v9  ;;  %v428_v14 = vmul.f32 %v747_v1, %v389_v11  ;;  %v280_v15 = vld [vmem:[%s753_s7 + $0x18] sm:$0xff]  ;;  %v281_v17 = vld [vmem:[%s753_s7 + $0x20] sm:$0xff]  ;;  %v282_v23 = vld [vmem:[%s753_s7 + $0x28] sm:$0xff] }
  0x13   : > { %v390_v16 = vld [vmem:[%s759_s10 + $0x18] sm:$0xff]  ;;  %v355_v18 = vadd.f32 %v764_v2, %v316_v6  ;;  %v356_v19 = vadd.f32 %v764_v2, %v317_v8  ;;  %v319_v20 = vmul.f32 %v742_v0, %v280_v15  ;;  %v391_v22 = vld [vmem:[%s759_s10 + $0x20] sm:$0xff]  ;;  %v392_v24 = vld [vmem:[%s759_s10 + $0x28] sm:$0xff]  ;;  %v357_v26 = vadd.f32 %v764_v2, %v318_v13 }
  0x14   : > { %v429_v21 = vmul.f32 %v747_v1, %v390_v16  ;;  %v320_v27 = vmul.f32 %v742_v0, %v281_v17  ;;  %v430_v28 = vmul.f32 %v747_v1, %v391_v22  ;;  %v321_v29 = vmul.f32 %v742_v0, %v282_v23  ;;  %v283_v30 = vld [vmem:[%s753_s7 + $0x30] sm:$0xff]  ;;  %v284_v40 = vld [vmem:[%s753_s7 + $0x38] sm:$0xff]  ;;  %v285_v50 = vld [vmem:[%s753_s7 + $0x40] sm:$0xff] }
  0x15   : > { %v393_v31 = vld [vmem:[%s759_s10 + $0x30] sm:$0xff]  ;;  %v458_v32 = vadd.f32 %v426_v7, %v355_v18  ;;  %v459_v33 = vadd.f32 %v427_v12, %v356_v19  ;;  %v358_v34 = vadd.f32 %v764_v2, %v319_v20  ;;  %v431_v35 = vmul.f32 %v747_v1, %v392_v24  ;;  %v394_v49 = vld [vmem:[%s759_s10 + $0x38] sm:$0xff]  ;;  %v395_v55 = vld [vmem:[%s759_s10 + $0x40] sm:$0xff] }
  0x16   : > { %v460_v36 = vadd.f32 %v428_v14, %v357_v26  ;;  %v359_v37 = vadd.f32 %v764_v2, %v320_v27  ;;  %v360_v38 = vadd.f32 %v764_v2, %v321_v29  ;;  %v322_v39 = vmul.f32 %v742_v0, %v283_v30  ;;  %v286_v60 = vld [vmem:[%s753_s7 + $0x48] sm:$0xff]  ;;  %v287_v5 = vld [vmem:[%s753_s7 + $0x50] sm:$0xff]  ;;  %v288_v7 = vld [vmem:[%s753_s7 + $0x58] sm:$0xff] }
  0x17   : > { %v497_v41 = vadd.f32 %v791_v25, %v458_v32  ;;  %v498_v42 = vadd.f32 %v791_v25, %v459_v33  ;;  %v461_v43 = vadd.f32 %v429_v21, %v358_v34  ;;  %v432_v44 = vmul.f32 %v747_v1, %v393_v31  ;;  %v396_v61 = vld [vmem:[%s759_s10 + $0x48] sm:$0xff]  ;;  %v397_v6 = vld [vmem:[%s759_s10 + $0x50] sm:$0xff]  ;;  %v398_v12 = vld [vmem:[%s759_s10 + $0x58] sm:$0xff] }
  0x18   : > { %v499_v45 = vadd.f32 %v791_v25, %v460_v36  ;;  %v462_v46 = vadd.f32 %v430_v28, %v359_v37  ;;  %v463_v47 = vadd.f32 %v431_v35, %v360_v38  ;;  %v361_v48 = vadd.f32 %v764_v2, %v322_v39  ;;  %v289_v17 = vld [vmem:[%s753_s7 + $0x60] sm:$0xff]  ;;  %v290_v23 = vld [vmem:[%s753_s7 + $0x68] sm:$0xff]  ;;  %v291_v34 = vld [vmem:[%s753_s7 + $0x70] sm:$0xff] }
  0x19   : > { %v529_v51 = vmax.f32 %v497_v41, 0.0  ;;  %v530_v52 = vmax.f32 %v498_v42, 0.0  ;;  %v500_v53 = vadd.f32 %v791_v25, %v461_v43  ;;  %v323_v54 = vmul.f32 %v742_v0, %v284_v40  ;;  %v399_v18 = vld [vmem:[%s759_s10 + $0x60] sm:$0xff]  ;;  %v400_v29 = vld [vmem:[%s759_s10 + $0x68] sm:$0xff]  ;;  %v401_v39 = vld [vmem:[%s759_s10 + $0x70] sm:$0xff] }
  0x1a   : > { %v531_v56 = vmax.f32 %v499_v45, 0.0  ;;  %v501_v57 = vadd.f32 %v791_v25, %v462_v46  ;;  %v502_v58 = vadd.f32 %v791_v25, %v463_v47  ;;  %v464_v59 = vadd.f32 %v432_v44, %v361_v48  ;;  %v292_v44 = vld [vmem:[%s753_s7 + $0x78] sm:$0xff] }
  0x1b   : > { %561 = vst [vmem:[%s812_s17] sm:$0xff] %v529_v51  ;;  %562 = vst [vmem:[%s812_s17 + $0x8] sm:$0xff] %v530_v52  ;;  %v532_v62 = vmax.f32 %v500_v53, 0.0  ;;  %v362_v63 = vadd.f32 %v764_v2, %v323_v54  ;;  %v433_v3 = vmul.f32 %v747_v1, %v394_v49  ;;  %v324_v4 = vmul.f32 %v742_v0, %v285_v50  ;;  %v402_v49 = vld [vmem:[%s759_s10 + $0x78] sm:$0xff]  ;;  %v293_v54 = vld [vmem:[%s753_s7 + $0x80] sm:$0xff] }
  0x1c   : > { %563 = vst [vmem:[%s812_s17 + $0x10] sm:$0xff] %v531_v56  ;;  %v533_v8 = vmax.f32 %v501_v57, 0.0  ;;  %v534_v9 = vmax.f32 %v502_v58, 0.0  ;;  %v503_v10 = vadd.f32 %v791_v25, %v464_v59  ;;  %v434_v11 = vmul.f32 %v747_v1, %v395_v55  ;;  %v403_v59 = vld [vmem:[%s759_s10 + $0x80] sm:$0xff] }
  0x1d   : > { %564 = vst [vmem:[%s812_s17 + $0x18] sm:$0xff] %v532_v62  ;;  %v465_v13 = vadd.f32 %v433_v3, %v362_v63  ;;  %v363_v14 = vadd.f32 %v764_v2, %v324_v4  ;;  %v325_v15 = vmul.f32 %v742_v0, %v286_v60  ;;  %v435_v16 = vmul.f32 %v747_v1, %v396_v61  ;;  %v294_v60 = vld [vmem:[%s753_s7 + $0x88] sm:$0xff] }
  0x1e   : > { %565 = vst [vmem:[%s812_s17 + $0x20] sm:$0xff] %v533_v8  ;;  %566 = vst [vmem:[%s812_s17 + $0x28] sm:$0xff] %v534_v9  ;;  %v535_v19 = vmax.f32 %v503_v10, 0.0  ;;  %v326_v20 = vmul.f32 %v742_v0, %v287_v5  ;;  %v436_v21 = vmul.f32 %v747_v1, %v397_v6  ;;  %v327_v22 = vmul.f32 %v742_v0, %v288_v7  ;;  %v404_v61 = vld [vmem:[%s759_s10 + $0x88] sm:$0xff]  ;;  %v295_v9 = vld [vmem:[%s753_s7 + $0x90] sm:$0xff] }
  0x1f   : > { %v504_v24 = vadd.f32 %v791_v25, %v465_v13  ;;  %v466_v26 = vadd.f32 %v434_v11, %v363_v14  ;;  %v364_v27 = vadd.f32 %v764_v2, %v325_v15  ;;  %v437_v28 = vmul.f32 %v747_v1, %v398_v12  ;;  %v405_v10 = vld [vmem:[%s759_s10 + $0x90] sm:$0xff]  ;;  %v296_v11 = vld [vmem:[%s753_s7 + $0x98] sm:$0xff] }
  0x20   : > { %567 = vst [vmem:[%s812_s17 + $0x30] sm:$0xff] %v535_v19  ;;  %v365_v30 = vadd.f32 %v764_v2, %v326_v20  ;;  %v366_v31 = vadd.f32 %v764_v2, %v327_v22  ;;  %v328_v32 = vmul.f32 %v742_v0, %v289_v17  ;;  %v438_v33 = vmul.f32 %v747_v1, %v399_v18 }
  0x21   : > { %v536_v35 = vmax.f32 %v504_v24, 0.0  ;;  %v505_v36 = vadd.f32 %v791_v25, %v466_v26  ;;  %v467_v37 = vadd.f32 %v435_v16, %v364_v27  ;;  %v329_v38 = vmul.f32 %v742_v0, %v290_v23  ;;  %v406_v16 = vld [vmem:[%s759_s10 + $0x98] sm:$0xff]  ;;  %v407_v27 = vld [vmem:[%s759_s10 + $0xa0] sm:$0xff] }
  0x22   : > { %v468_v40 = vadd.f32 %v436_v21, %v365_v30  ;;  %v469_v41 = vadd.f32 %v437_v28, %v366_v31  ;;  %v367_v42 = vadd.f32 %v764_v2, %v328_v32  ;;  %v439_v43 = vmul.f32 %v747_v1, %v400_v29  ;;  %v297_v21 = vld [vmem:[%s753_s7 + $0xa0] sm:$0xff]  ;;  %v298_v28 = vld [vmem:[%s753_s7 + $0xa8] sm:$0xff] }
  0x23   : > { %568 = vst [vmem:[%s812_s17 + $0x38] sm:$0xff] %v536_v35  ;;  %v537_v45 = vmax.f32 %v505_v36, 0.0  ;;  %v506_v46 = vadd.f32 %v791_v25, %v467_v37  ;;  %v368_v47 = vadd.f32 %v764_v2, %v329_v38  ;;  %v330_v48 = vmul.f32 %v742_v0, %v291_v34  ;;  %v408_v37 = vld [vmem:[%s759_s10 + $0xa8] sm:$0xff]  ;;  %v299_v38 = vld [vmem:[%s753_s7 + $0xb0] sm:$0xff] }
  0x24   : > { %v507_v50 = vadd.f32 %v791_v25, %v468_v40  ;;  %v508_v51 = vadd.f32 %v791_v25, %v469_v41  ;;  %v470_v52 = vadd.f32 %v438_v33, %v367_v42  ;;  %v440_v53 = vmul.f32 %v747_v1, %v401_v39 }
  0x25   : > { %569 = vst [vmem:[%s812_s17 + $0x40] sm:$0xff] %v537_v45  ;;  %v538_v55 = vmax.f32 %v506_v46, 0.0  ;;  %v471_v56 = vadd.f32 %v439_v43, %v368_v47  ;;  %v369_v57 = vadd.f32 %v764_v2, %v330_v48  ;;  %v331_v58 = vmul.f32 %v742_v0, %v292_v44  ;;  %v409_v47 = vld [vmem:[%s759_s10 + $0xb0] sm:$0xff]  ;;  %v300_v48 = vld [vmem:[%s753_s7 + $0xb8] sm:$0xff] }
  0x26   : > { %v539_v62 = vmax.f32 %v507_v50, 0.0  ;;  %v540_v63 = vmax.f32 %v508_v51, 0.0  ;;  %v509_v3 = vadd.f32 %v791_v25, %v470_v52  ;;  %v441_v4 = vmul.f32 %v747_v1, %v402_v49 }
  0x27   : > { %570 = vst [vmem:[%s812_s17 + $0x48] sm:$0xff] %v538_v55  ;;  %v510_v5 = vadd.f32 %v791_v25, %v471_v56  ;;  %v472_v6 = vadd.f32 %v440_v53, %v369_v57  ;;  %v370_v7 = vadd.f32 %v764_v2, %v331_v58  ;;  %v332_v8 = vmul.f32 %v742_v0, %v293_v54  ;;  %v410_v53 = vld [vmem:[%s759_s10 + $0xb8] sm:$0xff]  ;;  %v301_v58 = vld [vmem:[%s753_s7 + $0xc0] sm:$0xff] }
  0x28   : > { %571 = vst [vmem:[%s812_s17 + $0x50] sm:$0xff] %v539_v62  ;;  %572 = vst [vmem:[%s812_s17 + $0x58] sm:$0xff] %v540_v63  ;;  %v541_v12 = vmax.f32 %v509_v3, 0.0  ;;  %v442_v13 = vmul.f32 %v747_v1, %v403_v59  ;;  %v333_v14 = vmul.f32 %v742_v0, %v294_v60  ;;  %v443_v15 = vmul.f32 %v747_v1, %v404_v61  ;;  %v411_v63 = vld [vmem:[%s759_s10 + $0xc0] sm:$0xff]  ;;  %v302_v3 = vld [vmem:[%s753_s7 + $0xc8] sm:$0xff] }
  0x29   : > { %v542_v17 = vmax.f32 %v510_v5, 0.0  ;;  %v511_v18 = vadd.f32 %v791_v25, %v472_v6  ;;  %v473_v19 = vadd.f32 %v441_v4, %v370_v7  ;;  %v371_v20 = vadd.f32 %v764_v2, %v332_v8  ;;  %v412_v4 = vld [vmem:[%s759_s10 + $0xc8] sm:$0xff] }
  0x2a   : > { %573 = vst [vmem:[%s812_s17 + $0x60] sm:$0xff] %v541_v12  ;;  %v372_v22 = vadd.f32 %v764_v2, %v333_v14  ;;  %v334_v23 = vmul.f32 %v742_v0, %v295_v9  ;;  %v444_v24 = vmul.f32 %v747_v1, %v405_v10  ;;  %v335_v26 = vmul.f32 %v742_v0, %v296_v11  ;;  %v413_v14 = vld [vmem:[%s759_s10 + $0xd0] sm:$0xff] }
  0x2b   : > { %574 = vst [vmem:[%s812_s17 + $0x68] sm:$0xff] %v542_v17  ;;  %v543_v29 = vmax.f32 %v511_v18, 0.0  ;;  %v512_v30 = vadd.f32 %v791_v25, %v473_v19  ;;  %v474_v31 = vadd.f32 %v442_v13, %v371_v20  ;;  %v445_v32 = vmul.f32 %v747_v1, %v406_v16  ;;  %v303_v13 = vld [vmem:[%s753_s7 + $0xd0] sm:$0xff]  ;;  %v414_v20 = vld [vmem:[%s759_s10 + $0xd8] sm:$0xff] }
  0x2c   : > { %v475_v33 = vadd.f32 %v443_v15, %v372_v22  ;;  %v373_v34 = vadd.f32 %v764_v2, %v334_v23  ;;  %v374_v35 = vadd.f32 %v764_v2, %v335_v26  ;;  %v336_v36 = vmul.f32 %v742_v0, %v297_v21  ;;  %v304_v15 = vld [vmem:[%s753_s7 + $0xd8] sm:$0xff]  ;;  %v305_v26 = vld [vmem:[%s753_s7 + $0xe0] sm:$0xff] }
  0x2d   : > { %575 = vst [vmem:[%s812_s17 + $0x70] sm:$0xff] %v543_v29  ;;  %v544_v39 = vmax.f32 %v512_v30, 0.0  ;;  %v513_v40 = vadd.f32 %v791_v25, %v474_v31  ;;  %v446_v41 = vmul.f32 %v747_v1, %v407_v27  ;;  %v337_v42 = vmul.f32 %v742_v0, %v298_v28  ;;  %v415_v31 = vld [vmem:[%s759_s10 + $0xe0] sm:$0xff] }
  0x2e   : > { %v514_v43 = vadd.f32 %v791_v25, %v475_v33  ;;  %v476_v44 = vadd.f32 %v444_v24, %v373_v34  ;;  %v477_v45 = vadd.f32 %v445_v32, %v374_v35  ;;  %v375_v46 = vadd.f32 %v764_v2, %v336_v36  ;;  %v306_v32 = vld [vmem:[%s753_s7 + $0xe8] sm:$0xff] }
  0x2f   : > { %576 = vst [vmem:[%s812_s17 + $0x78] sm:$0xff] %v544_v39  ;;  %v545_v49 = vmax.f32 %v513_v40, 0.0  ;;  %v376_v50 = vadd.f32 %v764_v2, %v337_v42  ;;  %v447_v51 = vmul.f32 %v747_v1, %v408_v37  ;;  %v338_v52 = vmul.f32 %v742_v0, %v299_v38  ;;  %v307_v42 = vld [vmem:[%s753_s7 + $0xf0] sm:$0xff] }
  0x30   : > { %v546_v54 = vmax.f32 %v514_v43, 0.0  ;;  %v515_v55 = vadd.f32 %v791_v25, %v476_v44  ;;  %v516_v56 = vadd.f32 %v791_v25, %v477_v45  ;;  %v478_v57 = vadd.f32 %v446_v41, %v375_v46  ;;  %v416_v41 = vld [vmem:[%s759_s10 + $0xe8] sm:$0xff] }
  0x31   : > { %577 = vst [vmem:[%s812_s17 + $0x80] sm:$0xff] %v545_v49  ;;  %v479_v59 = vadd.f32 %v447_v51, %v376_v50  ;;  %v377_v60 = vadd.f32 %v764_v2, %v338_v52  ;;  %v448_v61 = vmul.f32 %v747_v1, %v409_v47  ;;  %v339_v62 = vmul.f32 %v742_v0, %v300_v48  ;;  %v417_v51 = vld [vmem:[%s759_s10 + $0xf0] sm:$0xff]  ;;  %v308_v52 = vld [vmem:[%s753_s7 + $0xf8] sm:$0xff] }
  0x32   : > { %578 = vst [vmem:[%s812_s17 + $0x88] sm:$0xff] %v546_v54  ;;  %v547_v5 = vmax.f32 %v515_v55, 0.0  ;;  %v548_v6 = vmax.f32 %v516_v56, 0.0  ;;  %v517_v7 = vadd.f32 %v791_v25, %v478_v57  ;;  %v449_v8 = vmul.f32 %v747_v1, %v410_v53  ;;  %v418_v57 = vld [vmem:[%s759_s10 + $0xf8] sm:$0xff] }
  0x33   : > { %v518_v9 = vadd.f32 %v791_v25, %v479_v59  ;;  %v480_v10 = vadd.f32 %v448_v61, %v377_v60  ;;  %v378_v11 = vadd.f32 %v764_v2, %v339_v62  ;;  %v340_v12 = vmul.f32 %v742_v0, %v301_v58 }
  0x34   : > { %579 = vst [vmem:[%s812_s17 + $0x90] sm:$0xff] %v547_v5  ;;  %580 = vst [vmem:[%s812_s17 + $0x98] sm:$0xff] %v548_v6  ;;  %v549_v16 = vmax.f32 %v517_v7, 0.0  ;;  %v450_v17 = vmul.f32 %v747_v1, %v411_v63  ;;  %v341_v18 = vmul.f32 %v742_v0, %v302_v3  ;;  %v451_v19 = vmul.f32 %v747_v1, %v412_v4 }
  0x35   : > { %v550_v21 = vmax.f32 %v518_v9, 0.0  ;;  %v519_v22 = vadd.f32 %v791_v25, %v480_v10  ;;  %v481_v23 = vadd.f32 %v449_v8, %v378_v11  ;;  %v379_v24 = vadd.f32 %v764_v2, %v340_v12 }
  0x36   : > { %581 = vst [vmem:[%s812_s17 + $0xa0] sm:$0xff] %v549_v16  ;;  %v380_v27 = vadd.f32 %v764_v2, %v341_v18  ;;  %v342_v28 = vmul.f32 %v742_v0, %v303_v13  ;;  %v452_v29 = vmul.f32 %v747_v1, %v413_v14  ;;  %v343_v30 = vmul.f32 %v742_v0, %v304_v15 }
  0x37   : > { %582 = vst [vmem:[%s812_s17 + $0xa8] sm:$0xff] %v550_v21  ;;  %v551_v33 = vmax.f32 %v519_v22, 0.0  ;;  %v520_v34 = vadd.f32 %v791_v25, %v481_v23  ;;  %v482_v35 = vadd.f32 %v450_v17, %v379_v24  ;;  %v453_v36 = vmul.f32 %v747_v1, %v414_v20 }
  0x38   : > { %v483_v37 = vadd.f32 %v451_v19, %v380_v27  ;;  %v381_v38 = vadd.f32 %v764_v2, %v342_v28  ;;  %v382_v39 = vadd.f32 %v764_v2, %v343_v30  ;;  %v344_v40 = vmul.f32 %v742_v0, %v305_v26 }
  0x39   : > { %583 = vst [vmem:[%s812_s17 + $0xb0] sm:$0xff] %v551_v33  ;;  %v552_v43 = vmax.f32 %v520_v34, 0.0  ;;  %v521_v44 = vadd.f32 %v791_v25, %v482_v35  ;;  %v454_v45 = vmul.f32 %v747_v1, %v415_v31  ;;  %v345_v46 = vmul.f32 %v742_v0, %v306_v32 }
  0x3a   : > { %v522_v47 = vadd.f32 %v791_v25, %v483_v37  ;;  %v484_v48 = vadd.f32 %v452_v29, %v381_v38  ;;  %v485_v49 = vadd.f32 %v453_v36, %v382_v39  ;;  %v383_v50 = vadd.f32 %v764_v2, %v344_v40 }
  0x3b   : > { %584 = vst [vmem:[%s812_s17 + $0xb8] sm:$0xff] %v552_v43  ;;  %v553_v53 = vmax.f32 %v521_v44, 0.0  ;;  %v384_v54 = vadd.f32 %v764_v2, %v345_v46  ;;  %v455_v55 = vmul.f32 %v747_v1, %v416_v41  ;;  %v346_v56 = vmul.f32 %v742_v0, %v307_v42 }
  0x3c   : > { %v554_v58 = vmax.f32 %v522_v47, 0.0  ;;  %v523_v59 = vadd.f32 %v791_v25, %v484_v48  ;;  %v524_v60 = vadd.f32 %v791_v25, %v485_v49  ;;  %v486_v61 = vadd.f32 %v454_v45, %v383_v50 }
  0x3d   : > { %585 = vst [vmem:[%s812_s17 + $0xc0] sm:$0xff] %v553_v53  ;;  %v487_v62 = vadd.f32 %v455_v55, %v384_v54  ;;  %v385_v63 = vadd.f32 %v764_v2, %v346_v56  ;;  %v456_v3 = vmul.f32 %v747_v1, %v417_v51  ;;  %v347_v4 = vmul.f32 %v742_v0, %v308_v52 }
  0x3e   : > { %586 = vst [vmem:[%s812_s17 + $0xc8] sm:$0xff] %v554_v58  ;;  %v555_v5 = vmax.f32 %v523_v59, 0.0  ;;  %v556_v6 = vmax.f32 %v524_v60, 0.0  ;;  %v525_v7 = vadd.f32 %v791_v25, %v486_v61  ;;  %v457_v8 = vmul.f32 %v747_v1, %v418_v57 }
  0x3f   : > { %v526_v9 = vadd.f32 %v791_v25, %v487_v62  ;;  %v488_v10 = vadd.f32 %v456_v3, %v385_v63  ;;  %v386_v11 = vadd.f32 %v764_v2, %v347_v4 }
  0x40   : > { %587 = vst [vmem:[%s812_s17 + $0xd0] sm:$0xff] %v555_v5  ;;  %588 = vst [vmem:[%s812_s17 + $0xd8] sm:$0xff] %v556_v6  ;;  %v557_v12 = vmax.f32 %v525_v7, 0.0 }
  0x41   : > { %v558_v13 = vmax.f32 %v526_v9, 0.0  ;;  %v527_v0 = vadd.f32 %v791_v25, %v488_v10  ;;  %v489_v14 = vadd.f32 %v457_v8, %v386_v11 }
  0x42   : > { %589 = vst [vmem:[%s812_s17 + $0xe0] sm:$0xff] %v557_v12 }
  0x43   : > { %590 = vst [vmem:[%s812_s17 + $0xe8] sm:$0xff] %v558_v13  ;;  %v559_v15 = vmax.f32 %v527_v0, 0.0  ;;  %v528_v16 = vadd.f32 %v791_v25, %v489_v14 }
  0x45   : > { %591 = vst [vmem:[%s812_s17 + $0xf0] sm:$0xff] %v559_v15  ;;  %v560_v1 = vmax.f32 %v528_v16, 0.0 }
  0x47   : > { %592 = vst [vmem:[%s812_s17 + $0xf8] sm:$0xff] %v560_v1 }
  0x48 PF: > { %s16_s21 = sadd.s32 1, %s692_s21  }
  0x49   : > { %p13_p4 = scmp.ge.s32.totalorder %s16_s21, 5  }
  0x4b   :  { %15 = sbr.rel (!%p13_p4) target bundleno = 1 (0x1), region = 77 }

// kernel: res_block_forward.7
= control target key start
LH: loop header
LB: loop body
LE: loop exit
PB: predicated region body
PF: predicated region fallthrough
CT: control target
= control target key end

     0   :  { %s6030_s21 = smov 0   ;;  %s6032_s22 = smov 0   ;;  %s7111_s0 = inlined_call_operand.vmem [shape: f32[2,336,128], index: 0, kind: input, shape index: {}]   ;;  %s7112_s1 = inlined_call_operand.vmem [shape: bf16[9,128,128], index: 1, kind: input, shape index: {}]   ;;  %s7113_s2 = inlined_call_operand.vmem [shape: f32[1,128], index: 2, kind: input, shape index: {}]   ;;  %s7114_s3 = inlined_call_operand.vmem [shape: f32[288,1], index: 3, kind: input, shape index: {}]   ;;  %s7115_s4 = inlined_call_operand.vmem [shape: f32[2,288,128], index: 4, kind: output, shape index: {0}]   ;;  %s7116_s5 = inlined_call_operand.vmem [shape: f32[1,128], index: 5, kind: output, shape index: {1}]   ;;  %s7117_s6 = inlined_call_operand.vmem [shape: f32[1,128], index: 6, kind: output, shape index: {2}]  }
   0x1   :  { %s6034_s23 = smov 0  }
   0x2 LB: > { %s26_s24 = sadd.s32 1, %s5987_s22  ;;  %p4644_p0 = scmp.ge.s32.totalorder %s5991_s23, 1  ;;  %s5991_s23 = sphi %s6034_s23, %s17_s23   ;;  %s5987_s22 = sphi %s6032_s22, %s7119_s22   ;;  %s5983_s21 = sphi %s6030_s21, %s7118_s21  }
   0x3   : > { %p27_p1 = scmp.ge.s32.totalorder %s26_s24, 2  ;;  %p248_p2 = scmp.lt.s32.totalorder %s5991_s23, 3 }
   0x5   : > { %s7121_s24 = smov (%p27_p1, %s26_s24), 0  ;;  %p249_p3 = pnand %p4644_p0, %p248_p2 }
   0x6   : > { %v5887_v0 = vld [vmem:[%s7112_s1] sm:$0xff] (!%p249_p3)   ;;  %p294_p4 = scmp.lt.s32.totalorder (!%p249_p3), %s5983_s21, 1  ;;  %v5889_v2 = vld [vmem:[%s7112_s1 + $0x8] sm:$0xff] (!%p249_p3)   ;;  %v5891_v4 = vld [vmem:[%s7112_s1 + $0x10] sm:$0xff] (!%p249_p3)   ;;  %p4848_p5 = scmp.ne.s32.totalorder (!%p249_p3), %s5983_s21, 0 }
   0x7   : > { %252 = sbr.rel (%p249_p3) target bundleno = 802 (0x322), region = 36  ;;  %v5888_v1 = vld [vmem:[%s7112_s1 + $0x100] sm:$0xff] (!%p249_p3)   ;;  %5087 = vmatprep.subr.bf16.mxu1 (!%p249_p3), %v5887_v0  ;;  %v5890_v3 = vld [vmem:[%s7112_s1 + $0x108] sm:$0xff] (!%p249_p3)   ;;  %v5892_v5 = vld [vmem:[%s7112_s1 + $0x110] sm:$0xff] (!%p249_p3)  }
   0x8   : > { %5295 = vmatprep.subr.bf16.mxu0 (!%p249_p3), %v5888_v1  ;;  %5088 = vmatpush3.bf16.msra.mxu1 (!%p249_p3), %v5887_v0  ;;  %v5893_v6 = vld [vmem:[%s7112_s1 + $0x18] sm:$0xff] (!%p249_p3)   ;;  %v5895_v8 = vld [vmem:[%s7112_s1 + $0x20] sm:$0xff] (!%p249_p3)   ;;  %v5897_v10 = vld [vmem:[%s7112_s1 + $0x28] sm:$0xff] (!%p249_p3)  }
   0x9   : > { %5296 = vmatpush3.bf16.msra.mxu0 (!%p249_p3), %v5888_v1  ;;  %5089 = vmatprep.subr.bf16.mxu1 (!%p249_p3), %v5889_v2  ;;  %v5894_v7 = vld [vmem:[%s7112_s1 + $0x118] sm:$0xff] (!%p249_p3)   ;;  %v5896_v9 = vld [vmem:[%s7112_s1 + $0x120] sm:$0xff] (!%p249_p3)   ;;  %v5898_v14 = vld [vmem:[%s7112_s1 + $0x128] sm:$0xff] (!%p249_p3)  }
   0xa   : > { %5297 = vmatprep.subr.bf16.mxu0 (!%p249_p3), %v5890_v3  ;;  %v5899_v18 = vld [vmem:[%s7112_s1 + $0x30] sm:$0xff] (!%p249_p3)   ;;  %v5901_v20 = vld [vmem:[%s7112_s1 + $0x38] sm:$0xff] (!%p249_p3)   ;;  %v5903_v24 = vld [vmem:[%s7112_s1 + $0x40] sm:$0xff] (!%p249_p3)  }
   0xb   : > { %v5900_v19 = vld [vmem:[%s7112_s1 + $0x130] sm:$0xff] (!%p249_p3)   ;;  %v5902_v21 = vld [vmem:[%s7112_s1 + $0x138] sm:$0xff] (!%p249_p3)   ;;  %v5904_v27 = vld [vmem:[%s7112_s1 + $0x140] sm:$0xff] (!%p249_p3)  }
   0xc   : > { %5090 = vmatpush3.bf16.msra.mxu1 (!%p249_p3), %v5889_v2  ;;  %v5905_v35 = vld [vmem:[%s7112_s1 + $0x148] sm:$0xff] (!%p249_p3)   ;;  %v5906_v43 = vld [vmem:[%s7112_s1 + $0x150] sm:$0xff] (!%p249_p3)   ;;  %v5908_v52 = vld [vmem:[%s7112_s1 + $0x158] sm:$0xff] (!%p249_p3)  }
   0xd   : > { %5298 = vmatpush3.bf16.msra.mxu0 (!%p249_p3), %v5890_v3  ;;  %5091 = vmatprep.subr.bf16.mxu1 (!%p249_p3), %v5891_v4  ;;  %v5907_v41 = vld [vmem:[%s7112_s1 + $0x48] sm:$0xff] (!%p249_p3)   ;;  %v5910_v46 = vld [vmem:[%s7112_s1 + $0x50] sm:$0xff] (!%p249_p3)   ;;  %v5913_v55 = vld [vmem:[%s7112_s1 + $0x58] sm:$0xff] (!%p249_p3)  }
   0xe   : > { %s6070_s13 = scalar_select %p294_p4, %s5983_s21, 1  ;;  %5299 = vmatprep.subr.bf16.mxu0 %v5892_v5  ;;  %v5909_v58 = vld [vmem:[%s7112_s1 + $0x160] sm:$0xff]  }
   0xf   : > { %v5915_v0 = vld [vmem:[%s7112_s1 + $0x60] sm:$0xff]  }
  0x10   : > { %s5859_s18 = smul.u32 336, %s6070_s13  ;;  %5092 = vmatpush3.bf16.msra.mxu1 %v5891_v4  ;;  %v5911_v4 = vld [vmem:[%s7112_s1 + $0x168] sm:$0xff]  }
  0x11   : > { %5300 = vmatpush3.bf16.msra.mxu0 %v5892_v5  ;;  %5093 = vmatprep.subr.bf16.mxu1 %v5893_v6 }
  0x12   : > { %5301 = vmatprep.subr.bf16.mxu0 %v5894_v7  ;;  %s6088_s29 = scalar_lea.vmem %s7111_s0, %s5859_s18 }
  0x13   : > { %v357_v11 = vld [vmem:[%s6088_s29] sm:$0xff]  ;;  %v358_v12 = vld [vmem:[%s6088_s29 + $0x8] sm:$0xff]  ;;  %v1972_v13 = vld [vmem:[%s6088_s29 + $0x13] sm:$0xff] }
  0x14   : > { %5094 = vmatpush3.bf16.msra.mxu1 %v5893_v6  ;;  %v393_v15 = vpack.c.bf16 %v358_v12, %v357_v11  ;;  %v1973_v16 = vld [vmem:[%s6088_s29 + $0x1b] sm:$0xff]  ;;  %v359_v22 = vld [vmem:[%s6088_s29 + $0x10] sm:$0xff]  ;;  %v1974_v25 = vld [vmem:[%s6088_s29 + $0x23] sm:$0xff] }
  0x15   : > { %5302 = vmatpush3.bf16.msra.mxu0 %v5894_v7  ;;  %5095 = vmatprep.subr.bf16.mxu1 %v5895_v8  ;;  %v2008_v17 = vpack.c.bf16 %v1973_v16, %v1972_v13  ;;  %v360_v23 = vld [vmem:[%s6088_s29 + $0x18] sm:$0xff]  ;;  %v1975_v26 = vld [vmem:[%s6088_s29 + $0x2b] sm:$0xff]  ;;  %v361_v28 = vld [vmem:[%s6088_s29 + $0x20] sm:$0xff] }
  0x16   : > { %5303 = vmatprep.subr.bf16.mxu0 %v5896_v9  ;;  %5103 = vmatprep.mubr.bf16.mxu1 %v393_v15  ;;  %v362_v29 = vld [vmem:[%s6088_s29 + $0x28] sm:$0xff]  ;;  %v1976_v30 = vld [vmem:[%s6088_s29 + $0x33] sm:$0xff]  ;;  %v394_v31 = vpack.c.bf16 %v360_v23, %v359_v22  ;;  %v1977_v32 = vld [vmem:[%s6088_s29 + $0x3b] sm:$0xff]  ;;  %v2009_v33 = vpack.c.bf16 %v1975_v26, %v1974_v25 }
  0x17   : > { %5311 = vmatprep.mubr.bf16.mxu0 %v2008_v17  ;;  %v395_v34 = vpack.c.bf16 %v362_v29, %v361_v28  ;;  %v2010_v36 = vpack.c.bf16 %v1977_v32, %v1976_v30  ;;  %v363_v37 = vld [vmem:[%s6088_s29 + $0x30] sm:$0xff]  ;;  %v364_v38 = vld [vmem:[%s6088_s29 + $0x38] sm:$0xff]  ;;  %v1978_v39 = vld [vmem:[%s6088_s29 + $0x43] sm:$0xff] }
  0x18   : > { %5096 = vmatpush3.bf16.msra.mxu1 %v5895_v8  ;;  %v1979_v40 = vld [vmem:[%s6088_s29 + $0x4b] sm:$0xff]  ;;  %v365_v42 = vld [vmem:[%s6088_s29 + $0x40] sm:$0xff]  ;;  %v1980_v45 = vld [vmem:[%s6088_s29 + $0x53] sm:$0xff]  ;;  %v396_v48 = vpack.c.bf16 %v364_v38, %v363_v37 }
  0x19   : > { %5304 = vmatpush3.bf16.msra.mxu0 %v5896_v9  ;;  %5097 = vmatprep.subr.bf16.mxu1 %v5897_v10  ;;  %v366_v44 = vld [vmem:[%s6088_s29 + $0x48] sm:$0xff]  ;;  %v1981_v47 = vld [vmem:[%s6088_s29 + $0x5b] sm:$0xff]  ;;  %v2011_v49 = vpack.c.bf16 %v1979_v40, %v1978_v39  ;;  %v367_v53 = vld [vmem:[%s6088_s29 + $0x50] sm:$0xff] }
  0x1a   : > { %5305 = vmatprep.subr.bf16.mxu0 %v5898_v14  ;;  %v397_v50 = vpack.c.bf16 %v366_v44, %v365_v42  ;;  %v2012_v51 = vpack.c.bf16 %v1981_v47, %v1980_v45  ;;  %v368_v54 = vld [vmem:[%s6088_s29 + $0x58] sm:$0xff]  ;;  %v1982_v56 = vld [vmem:[%s6088_s29 + $0x63] sm:$0xff]  ;;  %v1983_v57 = vld [vmem:[%s6088_s29 + $0x6b] sm:$0xff] }
  0x1b   : > { %v369_v59 = vld [vmem:[%s6088_s29 + $0x60] sm:$0xff]  ;;  %v370_v60 = vld [vmem:[%s6088_s29 + $0x68] sm:$0xff]  ;;  %v1984_v61 = vld [vmem:[%s6088_s29 + $0x73] sm:$0xff]  ;;  %v398_v63 = vpack.c.bf16 %v368_v54, %v367_v53  ;;  %v2013_v1 = vpack.c.bf16 %v1983_v57, %v1982_v56 }
  0x1c   : > { %5098 = vmatpush3.bf16.msra.mxu1 %v5897_v10  ;;  %v1985_v62 = vld [vmem:[%s6088_s29 + $0x7b] sm:$0xff]  ;;  %v399_v2 = vpack.c.bf16 %v370_v60, %v369_v59  ;;  %v371_v5 = vld [vmem:[%s6088_s29 + $0x70] sm:$0xff]  ;;  %v5917_v6 = vld [vmem:[%s7112_s1 + $0x68] sm:$0xff]  }
  0x1d   : > { %5306 = vmatpush3.bf16.msra.mxu0 %v5898_v14  ;;  %5099 = vmatprep.subr.bf16.mxu1 %v5899_v18  ;;  %v2014_v3 = vpack.c.bf16 %v1985_v62, %v1984_v61  ;;  %v372_v7 = vld [vmem:[%s6088_s29 + $0x78] sm:$0xff]  ;;  %v1986_v8 = vld [vmem:[%s6088_s29 + $0x83] sm:$0xff]  ;;  %v1987_v9 = vld [vmem:[%s6088_s29 + $0x8b] sm:$0xff] }
  0x1e   : > { %5307 = vmatprep.subr.bf16.mxu0 %v5900_v19  ;;  %v373_v10 = vld [vmem:[%s6088_s29 + $0x80] sm:$0xff]  ;;  %v374_v11 = vld [vmem:[%s6088_s29 + $0x88] sm:$0xff]  ;;  %v5912_v12 = vld [vmem:[%s7112_s1 + $0x170] sm:$0xff]   ;;  %v400_v15 = vpack.c.bf16 %v372_v7, %v371_v5  ;;  %v2015_v17 = vpack.c.bf16 %v1987_v9, %v1986_v8 }
  0x1f   : > { %v2376_v13 = vld [vmem:[%s6088_s29 + $0x14] sm:$0xff]  ;;  %v2377_v14 = vld [vmem:[%s6088_s29 + $0x1c] sm:$0xff]  ;;  %v2379_v25 = vld [vmem:[%s6088_s29 + $0x2c] sm:$0xff] }
  0x20   : > { %5100 = vmatpush3.bf16.msra.mxu1 %v5899_v18  ;;  %v5919_v16 = vld [vmem:[%s7112_s1 + $0x70] sm:$0xff]   ;;  %v401_v18 = vpack.c.bf16 %v374_v11, %v373_v10  ;;  %v376_v22 = vld [vmem:[%s6088_s29 + $0x98] sm:$0xff]  ;;  %v377_v26 = vld [vmem:[%s6088_s29 + $0xa0] sm:$0xff] }
  0x21   : > { %5308 = vmatpush3.bf16.msra.mxu0 %v5900_v19  ;;  %5101 = vmatprep.subr.bf16.mxu1 %v5901_v20  ;;  %v2412_v19 = vpack.c.bf16 %v2377_v14, %v2376_v13  ;;  %v5921_v23 = vld [vmem:[%s7112_s1 + $0x78] sm:$0xff]   ;;  %v5916_v30 = vld [vmem:[%s7112_s1 + $0x180] sm:$0xff]   ;;  %v5918_v37 = vld [vmem:[%s7112_s1 + $0x188] sm:$0xff]  }
  0x22   : > { %5309 = vmatprep.subr.bf16.mxu0 %v5902_v21  ;;  %v2380_v28 = vld [vmem:[%s6088_s29 + $0x34] sm:$0xff]  ;;  %v2381_v29 = vld [vmem:[%s6088_s29 + $0x3c] sm:$0xff]  ;;  %v2382_v39 = vld [vmem:[%s6088_s29 + $0x44] sm:$0xff] }
  0x23   : > { %v6206_v32 = vld [vmem:[%s7112_s1 + $0x80] sm:$0xff]   ;;  %v380_v38 = vld [vmem:[%s6088_s29 + $0xb8] sm:$0xff]  ;;  %v2383_v40 = vld [vmem:[%s6088_s29 + $0x4c] sm:$0xff] }
  0x24   : > { %5102 = vmatpush3.bf16.msra.mxu1 %v5901_v20  ;;  %v5914_v20 = vld [vmem:[%s7112_s1 + $0x178] sm:$0xff]   ;;  %v382_v42 = vld [vmem:[%s6088_s29 + $0xc8] sm:$0xff]  ;;  %v5920_v45 = vld [vmem:[%s7112_s1 + $0x190] sm:$0xff]   ;;  %v6229_v47 = vpack.c.bf16 %v2383_v40, %v2382_v39 }
  0x25   : > { %5310 = vmatpush3.bf16.msra.mxu0 %v5902_v21  ;;  %5139 = vmatprep.subr.bf16.mxu1 %v5903_v24  ;;  %v375_v21 = vld [vmem:[%s6088_s29 + $0x90] sm:$0xff]  ;;  %v2385_v44 = vld [vmem:[%s6088_s29 + $0x5c] sm:$0xff]  ;;  %v2386_v53 = vld [vmem:[%s6088_s29 + $0x64] sm:$0xff] }
  0x26   : > { %5347 = vmatprep.subr.bf16.mxu0 %v5904_v27  ;;  %v2387_v54 = vld [vmem:[%s6088_s29 + $0x6c] sm:$0xff]  ;;  %v2388_v57 = vld [vmem:[%s6088_s29 + $0x74] sm:$0xff]  ;;  %v5924_v59 = vld [vmem:[%s7112_s1 + $0x1a0] sm:$0xff]  }
  0x27   : > { %5104 = vmatmul.mubr.bf16.vlgmr.msra.gmra.mrb[0].mxu1 %v394_v31  ;;  %v402_v31 = vpack.c.bf16 %v376_v22, %v375_v21  ;;  %v386_v56 = vld [vmem:[%s6088_s29 + $0xe8] sm:$0xff]  ;;  %v6249_v61 = vpack.c.bf16 %v2387_v54, %v2386_v53  ;;  %v389_v5 = vld [vmem:[%s6088_s29 + $0x100] sm:$0xff]  ;;  %v2392_v7 = vld [vmem:[%s6088_s29 + $0x94] sm:$0xff] }
  0x28   : > { %5312 = vmatmul.mubr.bf16.vlgmr.msra.gmra.mrb[0].mxu0 %v2009_v33  ;;  %5140 = vmatpush3.bf16.msra.mxu1 %v5903_v24  ;;  %v2378_v24 = vld [vmem:[%s6088_s29 + $0x24] sm:$0xff]  ;;  %v2393_v8 = vld [vmem:[%s6088_s29 + $0x9c] sm:$0xff]  ;;  %v5928_v9 = vld [vmem:[%s7112_s1 + $0x1b0] sm:$0xff]  }
  0x29   : > { %5348 = vmatpush3.bf16.msra.mxu0 %v5904_v27  ;;  %5107 = vmatprep.mubr.bf16.mxu1 %v395_v34  ;;  %v378_v27 = vld [vmem:[%s6088_s29 + $0xa8] sm:$0xff]  ;;  %v6208_v33 = vpack.c.bf16 %v2379_v25, %v2378_v24  ;;  %v6271_v13 = vpack.c.bf16 %v2393_v8, %v2392_v7  ;;  %v391_v14 = vld [vmem:[%s6088_s29 + $0x110] sm:$0xff]  ;;  %v2397_v22 = vld [vmem:[%s6088_s29 + $0xbc] sm:$0xff] }
  0x2a   : > { %5349 = vmatprep.subr.bf16.mxu0 %v5905_v35  ;;  %5315 = vmatprep.mubr.bf16.mxu0 %v2010_v36  ;;  %v403_v34 = vpack.c.bf16 %v378_v27, %v377_v26  ;;  %v379_v36 = vld [vmem:[%s6088_s29 + $0xb0] sm:$0xff]  ;;  %v2405_v54 = vld [vmem:[%s6088_s29 + $0xfc] sm:$0xff] }
  0x2b   : > { %5141 = vmatprep.subr.bf16.mxu1 %v5907_v41  ;;  %v2396_v21 = vld [vmem:[%s6088_s29 + $0xb4] sm:$0xff] }
  0x2c   : > { %5142 = vmatpush3.bf16.msra.mxu1 %v5907_v41  ;;  %v381_v41 = vld [vmem:[%s6088_s29 + $0xc0] sm:$0xff]  ;;  %v6293_v27 = vpack.c.bf16 %v2397_v22, %v2396_v21  ;;  %v2404_v53 = vld [vmem:[%s6088_s29 + $0xf4] sm:$0xff] }
  0x2d   : > { %5350 = vmatpush3.bf16.msra.mxu0 %v5905_v35  ;;  %5143 = vmatprep.subr.bf16.mxu1 %v5910_v46  ;;  %v6210_v35 = vpack.c.bf16 %v2381_v29, %v2380_v28  ;;  %v762_v28 = vld [vmem:[%s6088_s29 + $0x11] sm:$0xff]  ;;  %v763_v29 = vld [vmem:[%s6088_s29 + $0x19] sm:$0xff] }
  0x2e   : > { %5351 = vmatprep.subr.bf16.mxu0 %v5906_v43  ;;  %v797_v39 = vpack.c.bf16 %v763_v29, %v762_v28  ;;  %v779_v28 = vld [vmem:[%s6088_s29 + $0x99] sm:$0xff]  ;;  %v780_v29 = vld [vmem:[%s6088_s29 + $0xa1] sm:$0xff] }
  0x2f   : > { %5108 = vmatmul.mubr.bf16.gmra.mrb[4].mxu1 %v396_v48  ;;  %v405_v48 = vpack.c.bf16 %v382_v42, %v381_v41 }
  0x30   : > { %5316 = vmatmul.mubr.bf16.gmra.mrb[4].mxu0 %v2011_v49  ;;  %5111 = vmatprep.mubr.bf16.mxu1 %v397_v50  ;;  %v5922_v50 = vld [vmem:[%s7112_s1 + $0x198] sm:$0xff]  }
  0x31   : > { %5352 = vmatpush3.bf16.msra.mxu0 %v5906_v43  ;;  %5319 = vmatprep.mubr.bf16.mxu0 %v2012_v51  ;;  %v2384_v43 = vld [vmem:[%s6088_s29 + $0x54] sm:$0xff] }
  0x32   : > { %5353 = vmatprep.subr.bf16.mxu0 %v5908_v52  ;;  %5144 = vmatpush3.bf16.msra.mxu1 %v5910_v46  ;;  %v404_v46 = vpack.c.bf16 %v380_v38, %v379_v36  ;;  %v6231_v49 = vpack.c.bf16 %v2385_v44, %v2384_v43  ;;  %v383_v51 = vld [vmem:[%s6088_s29 + $0xd0] sm:$0xff]  ;;  %v2401_v38 = vld [vmem:[%s6088_s29 + $0xdc] sm:$0xff]  ;;  %v5925_v43 = vld [vmem:[%s7112_s1 + $0x88] sm:$0xff]  }
  0x33   : > { %5145 = vmatprep.subr.bf16.mxu1 %v5913_v55  ;;  %v765_v36 = vld [vmem:[%s6088_s29 + $0x29] sm:$0xff]  ;;  %v766_v44 = vld [vmem:[%s6088_s29 + $0x31] sm:$0xff] }
  0x35   : > { %5354 = vmatpush3.bf16.msra.mxu0 %v5908_v52  ;;  %v384_v52 = vld [vmem:[%s6088_s29 + $0xd8] sm:$0xff] }
  0x36   : > { %5355 = vmatprep.subr.bf16.mxu0 %v5909_v58  ;;  %5146 = vmatpush3.bf16.msra.mxu1 %v5913_v55  ;;  %v385_v55 = vld [vmem:[%s6088_s29 + $0xe0] sm:$0xff]  ;;  %v406_v60 = vpack.c.bf16 %v384_v52, %v383_v51  ;;  %v769_v51 = vld [vmem:[%s6088_s29 + $0x49] sm:$0xff] }
  0x37   : > { %5112 = vmatmul.mubr.bf16.gmra.mrb[8].mxu1 %v398_v63  ;;  %5147 = vmatprep.subr.bf16.mxu1 %v5915_v0  ;;  %v407_v62 = vpack.c.bf16 %v386_v56, %v385_v55  ;;  %v5927_v52 = vld [vmem:[%s7112_s1 + $0x90] sm:$0xff]  }
  0x38   : > { %5320 = vmatmul.mubr.bf16.gmra.mrb[8].mxu0 %v2013_v1  ;;  %5115 = vmatprep.mubr.bf16.mxu1 %v399_v2  ;;  %v388_v1 = vld [vmem:[%s6088_s29 + $0xf8] sm:$0xff]  ;;  %v5926_v2 = vld [vmem:[%s7112_s1 + $0x1a8] sm:$0xff]  }
  0x39   : > { %5356 = vmatpush3.bf16.msra.mxu0 %v5909_v58  ;;  %5323 = vmatprep.mubr.bf16.mxu0 %v2014_v3  ;;  %v2389_v58 = vld [vmem:[%s6088_s29 + $0x7c] sm:$0xff]  ;;  %v2390_v3 = vld [vmem:[%s6088_s29 + $0x84] sm:$0xff] }
  0x3a   : > { %5357 = vmatprep.subr.bf16.mxu0 %v5911_v4  ;;  %5148 = vmatpush3.bf16.msra.mxu1 %v5915_v0  ;;  %v6251_v63 = vpack.c.bf16 %v2389_v58, %v2388_v57  ;;  %v387_v0 = vld [vmem:[%s6088_s29 + $0xf0] sm:$0xff]  ;;  %v6329_v57 = vpack.c.bf16 %v2405_v54, %v2404_v53  ;;  %v5929_v58 = vld [vmem:[%s7112_s1 + $0x98] sm:$0xff]   ;;  %v792_v54 = vld [vmem:[%s6088_s29 + $0x101] sm:$0xff] }
  0x3b   : > { %5149 = vmatprep.subr.bf16.mxu1 %v5917_v6  ;;  %v408_v10 = vpack.c.bf16 %v388_v1, %v387_v0  ;;  %v2407_v0 = vld [vmem:[%s6088_s29 + $0x10c] sm:$0xff]  ;;  %v772_v1 = vld [vmem:[%s6088_s29 + $0x61] sm:$0xff]  ;;  %v791_v53 = vld [vmem:[%s6088_s29 + $0xf9] sm:$0xff] }
  0x3d   : > { %5358 = vmatpush3.bf16.msra.mxu0 %v5911_v4  ;;  %v2391_v4 = vld [vmem:[%s6088_s29 + $0x8c] sm:$0xff] }
  0x3e   : > { %5359 = vmatprep.subr.bf16.mxu0 %v5912_v12  ;;  %5150 = vmatpush3.bf16.msra.mxu1 %v5917_v6  ;;  %v390_v6 = vld [vmem:[%s6088_s29 + $0x108] sm:$0xff]  ;;  %v6269_v11 = vpack.c.bf16 %v2391_v4, %v2390_v3  ;;  %v2408_v3 = vld [vmem:[%s6088_s29 + $0x114] sm:$0xff]  ;;  %v2409_v4 = vld [vmem:[%s6088_s29 + $0x11c] sm:$0xff] }
  0x3f   : > { %5116 = vmatmul.mubr.bf16.gmra.mrb[12].mxu1 %v400_v15  ;;  %5151 = vmatprep.subr.bf16.mxu1 %v5919_v16  ;;  %v5930_v15 = vld [vmem:[%s7112_s1 + $0x1b8] sm:$0xff]  }
  0x40   : > { %5324 = vmatmul.mubr.bf16.gmra.mrb[12].mxu0 %v2015_v17  ;;  %5119 = vmatprep.mubr.bf16.mxu1 %v401_v18  ;;  %v2394_v17 = vld [vmem:[%s6088_s29 + $0xa4] sm:$0xff]  ;;  %v2395_v18 = vld [vmem:[%s6088_s29 + $0xac] sm:$0xff] }
  0x41   : > { %5360 = vmatpush3.bf16.msra.mxu0 %v5912_v12  ;;  %5363 = vmatprep.mubr.bf16.mxu0 %v2412_v19  ;;  %v409_v12 = vpack.c.bf16 %v390_v6, %v389_v5  ;;  %v760_v19 = vld [vmem:[%s6088_s29 + $0x1] sm:$0xff]  ;;  %v6291_v25 = vpack.c.bf16 %v2395_v18, %v2394_v17  ;;  %v777_v18 = vld [vmem:[%s6088_s29 + $0x89] sm:$0xff] }
  0x42   : > { %5361 = vmatprep.subr.bf16.mxu0 %v5914_v20  ;;  %5152 = vmatpush3.bf16.msra.mxu1 %v5919_v16  ;;  %v392_v16 = vld [vmem:[%s6088_s29 + $0x118] sm:$0xff]  ;;  %v5931_v5 = vld [vmem:[%s7112_s1 + $0xa0] sm:$0xff]  }
  0x43   : > { %5153 = vmatprep.subr.bf16.mxu1 %v5921_v23  ;;  %v410_v24 = vpack.c.bf16 %v392_v16, %v391_v14  ;;  %v775_v14 = vld [vmem:[%s6088_s29 + $0x79] sm:$0xff]  ;;  %v2411_v16 = vld [vmem:[%s6088_s29 + $0x12c] sm:$0xff]  ;;  %v776_v17 = vld [vmem:[%s6088_s29 + $0x81] sm:$0xff] }
  0x44   : > { %v804_v22 = vpack.c.bf16 %v777_v18, %v776_v17  ;;  %v5945_v17 = vld [vmem:[%s7112_s1 + $0xd8] sm:$0xff]  }
  0x45   : > { %5362 = vmatpush3.bf16.msra.mxu0 %v5914_v20  ;;  %v761_v20 = vld [vmem:[%s6088_s29 + $0x9] sm:$0xff]  ;;  %v1175_v18 = vld [vmem:[%s6088_s29 + $0x5a] sm:$0xff] }
  0x46   : > { %5399 = vmatprep.subr.bf16.mxu0 %v5916_v30  ;;  %5154 = vmatpush3.bf16.msra.mxu1 %v5921_v23  ;;  %v6289_v23 = vld [vmem:[%s7112_s1 + $0x1c0] sm:$0xff]   ;;  %v796_v26 = vpack.c.bf16 %v761_v20, %v760_v19  ;;  %v5935_v19 = vld [vmem:[%s7112_s1 + $0xb0] sm:$0xff]  }
  0x47   : > { %5120 = vmatmul.mubr.bf16.gmra.mrb[16].mxu1 %v402_v31  ;;  %5191 = vmatprep.subr.bf16.mxu1 %v6206_v32  ;;  %v2399_v31 = vld [vmem:[%s6088_s29 + $0xcc] sm:$0xff] }
  0x48   : > { %5364 = vmatmul.mubr.bf16.vlgmr.msra.gmra.mrb[0].mxu0 %v6208_v33  ;;  %5123 = vmatprep.mubr.bf16.mxu1 %v403_v34  ;;  %v764_v34 = vld [vmem:[%s6088_s29 + $0x21] sm:$0xff] }
  0x49   : > { %5367 = vmatprep.mubr.bf16.mxu0 %v6210_v35  ;;  %5400 = vmatpush3.bf16.msra.mxu0 %v5916_v30  ;;  %v2398_v30 = vld [vmem:[%s6088_s29 + $0xc4] sm:$0xff]  ;;  %v798_v41 = vpack.c.bf16 %v765_v36, %v764_v34 }
  0x4a   : > { %5401 = vmatprep.subr.bf16.mxu0 %v5918_v37  ;;  %v6306_v40 = vpack.c.bf16 %v2399_v31, %v2398_v30  ;;  %v781_v30 = vld [vmem:[%s6088_s29 + $0xa9] sm:$0xff]  ;;  %v6379_v31 = vld [vmem:[%s7112_s1 + $0xc0] sm:$0xff]  }
  0x4b   : > { %v806_v36 = vpack.c.bf16 %v781_v30, %v780_v29  ;;  %v2814_v29 = vld [vmem:[%s6088_s29 + $0x134] sm:$0xff]  ;;  %v2815_v30 = vld [vmem:[%s6088_s29 + $0x13c] sm:$0xff] }
  0x4d   : > { %5402 = vmatpush3.bf16.msra.mxu0 %v5918_v37  ;;  %v2400_v37 = vld [vmem:[%s6088_s29 + $0xd4] sm:$0xff] }
  0x4e   : > { %5403 = vmatprep.subr.bf16.mxu0 %v5920_v45  ;;  %v6308_v42 = vpack.c.bf16 %v2401_v38, %v2400_v37  ;;  %v5934_v37 = vld [vmem:[%s7112_s1 + $0x1c8] sm:$0xff]   ;;  %v783_v38 = vld [vmem:[%s6088_s29 + $0xb9] sm:$0xff] }
  0x4f   : > { %5124 = vmatmul.mubr.bf16.gmra.mrb[20].mxu1 %v404_v46  ;;  %v2402_v46 = vld [vmem:[%s6088_s29 + $0xe4] sm:$0xff] }
  0x50   : > { %5368 = vmatmul.mubr.bf16.gmra.mrb[4].mxu0 %v6229_v47  ;;  %5127 = vmatprep.mubr.bf16.mxu1 %v405_v48  ;;  %v2403_v48 = vld [vmem:[%s6088_s29 + $0xec] sm:$0xff] }
  0x51   : > { %5371 = vmatprep.mubr.bf16.mxu0 %v6231_v49  ;;  %5404 = vmatpush3.bf16.msra.mxu0 %v5920_v45  ;;  %v767_v45 = vld [vmem:[%s6088_s29 + $0x39] sm:$0xff]  ;;  %v6327_v55 = vpack.c.bf16 %v2403_v48, %v2402_v46  ;;  %v788_v46 = vld [vmem:[%s6088_s29 + $0xe1] sm:$0xff]  ;;  %v789_v48 = vld [vmem:[%s6088_s29 + $0xe9] sm:$0xff] }
  0x52   : > { %5405 = vmatprep.subr.bf16.mxu0 %v5922_v50 }
  0x55   : > { %5406 = vmatpush3.bf16.msra.mxu0 %v5922_v50  ;;  %v768_v50 = vld [vmem:[%s6088_s29 + $0x41] sm:$0xff] }
  0x56   : > { %5407 = vmatprep.subr.bf16.mxu0 %v5924_v59  ;;  %v800_v56 = vpack.c.bf16 %v769_v51, %v768_v50  ;;  %v5940_v50 = vld [vmem:[%s7112_s1 + $0x1e0] sm:$0xff]  }
  0x57   : > { %5128 = vmatmul.mubr.bf16.gmra.mrb[24].mxu1 %v406_v60  ;;  %v771_v60 = vld [vmem:[%s6088_s29 + $0x59] sm:$0xff] }
  0x58   : > { %5372 = vmatmul.mubr.bf16.gmra.mrb[8].mxu0 %v6249_v61  ;;  %5131 = vmatprep.mubr.bf16.mxu1 %v407_v62  ;;  %v2406_v62 = vld [vmem:[%s6088_s29 + $0x104] sm:$0xff] }
  0x59   : > { %5375 = vmatprep.mubr.bf16.mxu0 %v6251_v63  ;;  %5408 = vmatpush3.bf16.msra.mxu0 %v5924_v59  ;;  %v770_v59 = vld [vmem:[%s6088_s29 + $0x51] sm:$0xff]  ;;  %v6347_v7 = vpack.c.bf16 %v2407_v0, %v2406_v62  ;;  %v1164_v62 = vld [vmem:[%s6088_s29 + $0x2] sm:$0xff] }
  0x5a   : > { %5409 = vmatprep.subr.bf16.mxu0 %v5926_v2  ;;  %v801_v6 = vpack.c.bf16 %v771_v60, %v770_v59  ;;  %v795_v60 = vld [vmem:[%s6088_s29 + $0x119] sm:$0xff]  ;;  %v1165_v0 = vld [vmem:[%s6088_s29 + $0xa] sm:$0xff] }
  0x5d   : > { %5410 = vmatpush3.bf16.msra.mxu0 %v5926_v2  ;;  %v773_v2 = vld [vmem:[%s6088_s29 + $0x69] sm:$0xff] }
  0x5e   : > { %5411 = vmatprep.subr.bf16.mxu0 %v5928_v9  ;;  %v802_v8 = vpack.c.bf16 %v773_v2, %v772_v1  ;;  %v6431_v1 = vld [vmem:[%s7112_s1 + $0x200] sm:$0xff]  }
  0x5f   : > { %5132 = vmatmul.mubr.bf16.gmra.mrb[28].mxu1 %v408_v10  ;;  %v5933_v10 = vld [vmem:[%s7112_s1 + $0xa8] sm:$0xff]  }
  0x60   : > { %5376 = vmatmul.mubr.bf16.gmra.mrb[12].mxu0 %v6269_v11  ;;  %5135 = vmatprep.mubr.bf16.mxu1 %v409_v12  ;;  %v774_v12 = vld [vmem:[%s6088_s29 + $0x71] sm:$0xff] }
  0x61   : > { %5379 = vmatprep.mubr.bf16.mxu0 %v6271_v13  ;;  %5412 = vmatpush3.bf16.msra.mxu0 %v5928_v9  ;;  %v6349_v9 = vpack.c.bf16 %v2409_v4, %v2408_v3  ;;  %v803_v20 = vpack.c.bf16 %v775_v14, %v774_v12  ;;  %v1167_v3 = vld [vmem:[%s6088_s29 + $0x1a] sm:$0xff]  ;;  %v1168_v4 = vld [vmem:[%s6088_s29 + $0x22] sm:$0xff]  ;;  %v1173_v14 = vld [vmem:[%s6088_s29 + $0x4a] sm:$0xff] }
  0x62   : > { %5413 = vmatprep.subr.bf16.mxu0 %v5930_v15  ;;  %v1171_v12 = vld [vmem:[%s6088_s29 + $0x3a] sm:$0xff] }
  0x65   : > { %5414 = vmatpush3.bf16.msra.mxu0 %v5930_v15  ;;  %v2410_v15 = vld [vmem:[%s6088_s29 + $0x124] sm:$0xff] }
  0x66   : > { %5451 = vmatprep.subr.bf16.mxu0 %v6289_v23  ;;  %v6365_v21 = vpack.c.bf16 %v2411_v16, %v2410_v15  ;;  %v5943_v15 = vld [vmem:[%s7112_s1 + $0xd0] sm:$0xff]  }
  0x67   : > { %5136 = vmatmul.mubr.bf16.gmra.mrb[32].mxu1 %v410_v24  ;;  %v5937_v24 = vld [vmem:[%s7112_s1 + $0xb8] sm:$0xff]  }
  0x68   : > { %5380 = vmatmul.mubr.bf16.gmra.mrb[16].mxu0 %v6291_v25  ;;  %5155 = vmatprep.mubr.bf16.mxu1 %v796_v26  ;;  %v778_v26 = vld [vmem:[%s6088_s29 + $0x91] sm:$0xff] }
  0x69   : > { %5383 = vmatprep.mubr.bf16.mxu0 %v6293_v27  ;;  %v805_v34 = vpack.c.bf16 %v779_v28, %v778_v26  ;;  %v1178_v26 = vld [vmem:[%s6088_s29 + $0x72] sm:$0xff]  ;;  %v1179_v28 = vld [vmem:[%s6088_s29 + $0x7a] sm:$0xff] }
  0x6f   : > { %5156 = vmatmul.mubr.bf16.vlgmr.msra.gmra.mrb[0].mxu1 %v797_v39  ;;  %v784_v39 = vld [vmem:[%s6088_s29 + $0xc1] sm:$0xff] }
  0x70   : > { %5384 = vmatmul.mubr.bf16.gmra.mrb[20].mxu0 %v6306_v40  ;;  %5192 = vmatpush3.bf16.msra.mxu1 %v6206_v32  ;;  %v799_v32 = vpack.c.bf16 %v767_v45, %v766_v44  ;;  %v5938_v45 = vld [vmem:[%s7112_s1 + $0x1d8] sm:$0xff]  }
  0x71   : > { %5159 = vmatprep.mubr.bf16.mxu1 %v798_v41  ;;  %5387 = vmatprep.mubr.bf16.mxu0 %v6308_v42  ;;  %v785_v41 = vld [vmem:[%s6088_s29 + $0xc9] sm:$0xff] }
  0x72   : > { %5193 = vmatprep.subr.bf16.mxu1 %v5925_v43 }
  0x74   : > { %5194 = vmatpush3.bf16.msra.mxu1 %v5925_v43  ;;  %v5936_v43 = vld [vmem:[%s7112_s1 + $0x1d0] sm:$0xff]  }
  0x75   : > { %5195 = vmatprep.subr.bf16.mxu1 %v5927_v52 }
  0x77   : > { %5160 = vmatmul.mubr.bf16.gmra.mrb[4].mxu1 %v799_v32  ;;  %v793_v32 = vld [vmem:[%s6088_s29 + $0x109] sm:$0xff] }
  0x78   : > { %5388 = vmatmul.mubr.bf16.gmra.mrb[24].mxu0 %v6327_v55  ;;  %5163 = vmatprep.mubr.bf16.mxu1 %v800_v56  ;;  %v5944_v56 = vld [vmem:[%s7112_s1 + $0x1f0] sm:$0xff]   ;;  %v812_v59 = vpack.c.bf16 %v793_v32, %v792_v54  ;;  %v1187_v32 = vld [vmem:[%s6088_s29 + $0xba] sm:$0xff] }
  0x79   : > { %5391 = vmatprep.mubr.bf16.mxu0 %v6329_v57  ;;  %5196 = vmatpush3.bf16.msra.mxu1 %v5927_v52  ;;  %v810_v52 = vpack.c.bf16 %v789_v48, %v788_v46  ;;  %v3188_v46 = vld [vmem:[%s6088_s29 + $0x45] sm:$0xff]  ;;  %v3189_v48 = vld [vmem:[%s6088_s29 + $0x4d] sm:$0xff] }
  0x7a   : > { %5197 = vmatprep.subr.bf16.mxu1 %v5929_v58  ;;  %v1186_v54 = vld [vmem:[%s6088_s29 + $0xb2] sm:$0xff] }
  0x7d   : > { %5198 = vmatpush3.bf16.msra.mxu1 %v5929_v58 }
  0x7e   : > { %5199 = vmatprep.subr.bf16.mxu1 %v5931_v5 }
  0x7f   : > { %5164 = vmatmul.mubr.bf16.gmra.mrb[8].mxu1 %v801_v6 }
  0x80   : > { %5392 = vmatmul.mubr.bf16.gmra.mrb[28].mxu0 %v6347_v7  ;;  %5167 = vmatprep.mubr.bf16.mxu1 %v802_v8 }
  0x81   : > { %5395 = vmatprep.mubr.bf16.mxu0 %v6349_v9  ;;  %5200 = vmatpush3.bf16.msra.mxu1 %v5931_v5  ;;  %v1169_v5 = vld [vmem:[%s6088_s29 + $0x2a] sm:$0xff] }
  0x82   : > { %5201 = vmatprep.subr.bf16.mxu1 %v5933_v10  ;;  %v6442_v8 = vpack.c.bf16 %v1169_v5, %v1168_v4  ;;  %v1191_v4 = vld [vmem:[%s6088_s29 + $0xda] sm:$0xff] }
  0x83   : > { %v3194_v5 = vld [vmem:[%s6088_s29 + $0x75] sm:$0xff] }
  0x85   : > { %5202 = vmatpush3.bf16.msra.mxu1 %v5933_v10  ;;  %v5941_v10 = vld [vmem:[%s7112_s1 + $0xc8] sm:$0xff]  }
  0x86   : > { %5203 = vmatprep.subr.bf16.mxu1 %v5935_v19 }
  0x87   : > { %5168 = vmatmul.mubr.bf16.gmra.mrb[12].mxu1 %v803_v20  ;;  %v1177_v20 = vld [vmem:[%s6088_s29 + $0x6a] sm:$0xff] }
  0x88   : > { %5396 = vmatmul.mubr.bf16.gmra.mrb[32].mxu0 %v6365_v21  ;;  %5171 = vmatprep.mubr.bf16.mxu1 %v804_v22 }
  0x89   : > { %5415 = vmatprep.mubr.bf16.mxu0 %v6208_v33  ;;  %5204 = vmatpush3.bf16.msra.mxu1 %v5935_v19  ;;  %v782_v33 = vld [vmem:[%s6088_s29 + $0xb1] sm:$0xff]  ;;  %v1176_v19 = vld [vmem:[%s6088_s29 + $0x62] sm:$0xff] }
  0x8a   : > { %5205 = vmatprep.subr.bf16.mxu1 %v5937_v24  ;;  %v807_v44 = vpack.c.bf16 %v783_v38, %v782_v33  ;;  %v6499_v33 = vpack.c.bf16 %v1179_v28, %v1178_v26  ;;  %v3198_v26 = vld [vmem:[%s6088_s29 + $0x95] sm:$0xff]  ;;  %v3199_v28 = vld [vmem:[%s6088_s29 + $0x9d] sm:$0xff] }
  0x8d   : > { %5206 = vmatpush3.bf16.msra.mxu1 %v5937_v24  ;;  %v6479_v24 = vpack.c.bf16 %v1177_v20, %v1176_v19  ;;  %v5956_v20 = vld [vmem:[%s7112_s1 + $0x228] sm:$0xff]  }
  0x8e   : > { %5243 = vmatprep.subr.bf16.mxu1 %v6379_v31 }
  0x8f   : > { %5172 = vmatmul.mubr.bf16.gmra.mrb[16].mxu1 %v805_v34  ;;  %v1181_v34 = vld [vmem:[%s6088_s29 + $0x8a] sm:$0xff] }
  0x90   : > { %5416 = vmatmul.mubr.bf16.vlgmr.msra.gmra.mrb[0].mxu0 %v6210_v35  ;;  %5175 = vmatprep.mubr.bf16.mxu1 %v806_v36  ;;  %v808_v35 = vpack.c.bf16 %v785_v41, %v784_v39  ;;  %v3184_v36 = vld [vmem:[%s6088_s29 + $0x25] sm:$0xff]  ;;  %v5953_v41 = vld [vmem:[%s7112_s1 + $0xf8] sm:$0xff]  }
  0x91   : > { %5419 = vmatprep.mubr.bf16.mxu0 %v6229_v47  ;;  %5452 = vmatpush3.bf16.msra.mxu0 %v6289_v23  ;;  %v786_v47 = vld [vmem:[%s6088_s29 + $0xd1] sm:$0xff]  ;;  %v787_v23 = vld [vmem:[%s6088_s29 + $0xd9] sm:$0xff] }
  0x92   : > { %5453 = vmatprep.subr.bf16.mxu0 %v5934_v37  ;;  %v809_v51 = vpack.c.bf16 %v787_v23, %v786_v47  ;;  %v1184_v47 = vld [vmem:[%s6088_s29 + $0xa2] sm:$0xff]  ;;  %v1185_v23 = vld [vmem:[%s6088_s29 + $0xaa] sm:$0xff] }
  0x95   : > { %5454 = vmatpush3.bf16.msra.mxu0 %v5934_v37  ;;  %v3185_v37 = vld [vmem:[%s6088_s29 + $0x2d] sm:$0xff] }
  0x96   : > { %5455 = vmatprep.subr.bf16.mxu0 %v5936_v43  ;;  %v3220_v39 = vpack.c.bf16 %v3185_v37, %v3184_v36  ;;  %v5957_v36 = vld [vmem:[%s7112_s1 + $0x230] sm:$0xff]  }
  0x97   : > { %5176 = vmatmul.mubr.bf16.gmra.mrb[20].mxu1 %v807_v44  ;;  %v1183_v44 = vld [vmem:[%s6088_s29 + $0x9a] sm:$0xff] }
  0x98   : > { %5420 = vmatmul.mubr.bf16.gmra.mrb[4].mxu0 %v6231_v49  ;;  %5179 = vmatprep.mubr.bf16.mxu1 %v808_v35  ;;  %v5942_v49 = vld [vmem:[%s7112_s1 + $0x1e8] sm:$0xff]   ;;  %v3186_v35 = vld [vmem:[%s6088_s29 + $0x35] sm:$0xff] }
  0x99   : > { %5423 = vmatprep.mubr.bf16.mxu0 %v6249_v61  ;;  %5456 = vmatpush3.bf16.msra.mxu0 %v5936_v43  ;;  %v790_v61 = vld [vmem:[%s6088_s29 + $0xf1] sm:$0xff] }
  0x9a   : > { %5457 = vmatprep.subr.bf16.mxu0 %v5938_v45  ;;  %v811_v58 = vpack.c.bf16 %v791_v53, %v790_v61  ;;  %v1182_v43 = vld [vmem:[%s6088_s29 + $0x92] sm:$0xff]  ;;  %v5950_v61 = vld [vmem:[%s7112_s1 + $0x208] sm:$0xff]   ;;  %v6526_v53 = vld [vmem:[%s7112_s1 + $0x100] sm:$0xff]  }
  0x9d   : > { %5458 = vmatpush3.bf16.msra.mxu0 %v5938_v45  ;;  %v3187_v45 = vld [vmem:[%s6088_s29 + $0x3d] sm:$0xff] }
  0x9e   : > { %5459 = vmatprep.subr.bf16.mxu0 %v5940_v50 }
  0x9f   : > { %5180 = vmatmul.mubr.bf16.gmra.mrb[24].mxu1 %v809_v51  ;;  %v3221_v51 = vpack.c.bf16 %v3187_v45, %v3186_v35  ;;  %v3202_v35 = vld [vmem:[%s6088_s29 + $0xb5] sm:$0xff]  ;;  %v3203_v45 = vld [vmem:[%s6088_s29 + $0xbd] sm:$0xff] }
  0xa0   : > { %5424 = vmatmul.mubr.bf16.gmra.mrb[8].mxu0 %v6251_v63  ;;  %5183 = vmatprep.mubr.bf16.mxu1 %v810_v52  ;;  %v5946_v63 = vld [vmem:[%s7112_s1 + $0x1f8] sm:$0xff]   ;;  %v6518_v52 = vpack.c.bf16 %v1185_v23, %v1184_v47  ;;  %v3204_v47 = vld [vmem:[%s6088_s29 + $0xc5] sm:$0xff]  ;;  %v3205_v23 = vld [vmem:[%s6088_s29 + $0xcd] sm:$0xff] }
  0xa1   : > { %5427 = vmatprep.mubr.bf16.mxu0 %v6269_v11  ;;  %5460 = vmatpush3.bf16.msra.mxu0 %v5940_v50  ;;  %v794_v11 = vld [vmem:[%s6088_s29 + $0x111] sm:$0xff]  ;;  %v6516_v50 = vpack.c.bf16 %v1183_v44, %v1182_v43  ;;  %v1199_v44 = vld [vmem:[%s6088_s29 + $0x11a] sm:$0xff] }
  0xa2   : > { %5461 = vmatprep.subr.bf16.mxu0 %v5942_v49  ;;  %v813_v2 = vpack.c.bf16 %v795_v60, %v794_v11  ;;  %v3192_v11 = vld [vmem:[%s6088_s29 + $0x65] sm:$0xff]  ;;  %v3193_v60 = vld [vmem:[%s6088_s29 + $0x6d] sm:$0xff] }
  0xa3   : > { %v1198_v43 = vld [vmem:[%s6088_s29 + $0x112] sm:$0xff] }
  0xa5   : > { %5462 = vmatpush3.bf16.msra.mxu0 %v5942_v49  ;;  %v3222_v49 = vpack.c.bf16 %v3189_v48, %v3188_v46  ;;  %v6598_v46 = vpack.c.bf16 %v1199_v44, %v1198_v43  ;;  %v3229_v48 = vpack.c.bf16 %v3203_v45, %v3202_v35  ;;  %v3605_v43 = vld [vmem:[%s6088_s29 + $0xae] sm:$0xff] }
  0xa6   : > { %5463 = vmatprep.subr.bf16.mxu0 %v5944_v56  ;;  %v1603_v45 = vld [vmem:[%s6088_s29 + $0x12a] sm:$0xff] }
  0xa7   : > { %5184 = vmatmul.mubr.bf16.gmra.mrb[28].mxu1 %v811_v58  ;;  %v3191_v58 = vld [vmem:[%s6088_s29 + $0x5d] sm:$0xff] }
  0xa8   : > { %5428 = vmatmul.mubr.bf16.gmra.mrb[12].mxu0 %v6271_v13  ;;  %5187 = vmatprep.mubr.bf16.mxu1 %v812_v59  ;;  %v1200_v13 = vpack.c.bf16 %v1165_v0, %v1164_v62  ;;  %v1188_v59 = vld [vmem:[%s6088_s29 + $0xc2] sm:$0xff]  ;;  %v5952_v62 = vld [vmem:[%s7112_s1 + $0x210] sm:$0xff]   ;;  %v6543_v0 = vpack.c.bf16 %v1187_v32, %v1186_v54 }
  0xa9   : > { %5431 = vmatprep.mubr.bf16.mxu0 %v6291_v25  ;;  %5464 = vmatpush3.bf16.msra.mxu0 %v5944_v56  ;;  %v1166_v25 = vld [vmem:[%s6088_s29 + $0x12] sm:$0xff]  ;;  %v3208_v54 = vld [vmem:[%s6088_s29 + $0xe5] sm:$0xff] }
  0xaa   : > { %5465 = vmatprep.subr.bf16.mxu0 %v5946_v63  ;;  %v6440_v6 = vpack.c.bf16 %v1167_v3, %v1166_v25  ;;  %v3190_v56 = vld [vmem:[%s6088_s29 + $0x55] sm:$0xff]  ;;  %v3209_v32 = vld [vmem:[%s6088_s29 + $0xed] sm:$0xff] }
  0xab   : > { %v5954_v25 = vld [vmem:[%s7112_s1 + $0x218] sm:$0xff]  }
  0xac   : > { %v1190_v3 = vld [vmem:[%s6088_s29 + $0xd2] sm:$0xff] }
  0xad   : > { %5466 = vmatpush3.bf16.msra.mxu0 %v5946_v63  ;;  %v1189_v63 = vld [vmem:[%s6088_s29 + $0xca] sm:$0xff] }
  0xae   : > { %5503 = vmatprep.subr.bf16.mxu0 %v6431_v1 }
  0xaf   : > { %5188 = vmatmul.mubr.bf16.gmra.mrb[32].mxu1 %v813_v2  ;;  %v3223_v2 = vpack.c.bf16 %v3191_v58, %v3190_v56  ;;  %v3232_v58 = vpack.c.bf16 %v3209_v32, %v3208_v54  ;;  %v1990_v32 = vld [vmem:[%s6088_s29 + $0xa3] sm:$0xff] }
  0xb0   : > { %5432 = vmatmul.mubr.bf16.gmra.mrb[16].mxu0 %v6293_v27  ;;  %5207 = vmatprep.mubr.bf16.mxu1 %v1200_v13  ;;  %v1170_v27 = vld [vmem:[%s6088_s29 + $0x32] sm:$0xff]  ;;  %v6545_v13 = vpack.c.bf16 %v1189_v63, %v1188_v59  ;;  %v5960_v63 = vld [vmem:[%s7112_s1 + $0x108] sm:$0xff]  }
  0xb1   : > { %5435 = vmatprep.mubr.bf16.mxu0 %v6306_v40  ;;  %v1172_v40 = vld [vmem:[%s6088_s29 + $0x42] sm:$0xff]  ;;  %v3210_v59 = vld [vmem:[%s6088_s29 + $0xf5] sm:$0xff] }
  0xb2   : > { %v6461_v16 = vpack.c.bf16 %v1173_v14, %v1172_v40  ;;  %v3196_v40 = vld [vmem:[%s6088_s29 + $0x85] sm:$0xff]  ;;  %v3197_v14 = vld [vmem:[%s6088_s29 + $0x8d] sm:$0xff] }
  0xb3   : > { %v3226_v19 = vpack.c.bf16 %v3197_v14, %v3196_v40  ;;  %v5964_v40 = vld [vmem:[%s7112_s1 + $0x128] sm:$0xff]  }
  0xb7   : > { %5208 = vmatmul.mubr.bf16.vlgmr.msra.gmra.mrb[0].mxu1 %v6440_v6 }
  0xb8   : > { %5436 = vmatmul.mubr.bf16.gmra.mrb[20].mxu0 %v6308_v42  ;;  %5244 = vmatpush3.bf16.msra.mxu1 %v6379_v31  ;;  %v6459_v42 = vpack.c.bf16 %v1171_v12, %v1170_v27  ;;  %v1180_v31 = vld [vmem:[%s6088_s29 + $0x82] sm:$0xff]  ;;  %v1193_v12 = vld [vmem:[%s6088_s29 + $0xea] sm:$0xff] }
  0xb9   : > { %5211 = vmatprep.mubr.bf16.mxu1 %v6442_v8  ;;  %5439 = vmatprep.mubr.bf16.mxu0 %v6327_v55  ;;  %v1174_v55 = vld [vmem:[%s6088_s29 + $0x52] sm:$0xff]  ;;  %v6501_v38 = vpack.c.bf16 %v1181_v34, %v1180_v31  ;;  %v1192_v27 = vld [vmem:[%s6088_s29 + $0xe2] sm:$0xff] }
  0xba   : > { %5245 = vmatprep.subr.bf16.mxu1 %v5941_v10  ;;  %v6477_v22 = vpack.c.bf16 %v1175_v18, %v1174_v55  ;;  %v6565_v18 = vpack.c.bf16 %v1193_v12, %v1192_v27  ;;  %v3200_v31 = vld [vmem:[%s6088_s29 + $0xa5] sm:$0xff]  ;;  %v3201_v34 = vld [vmem:[%s6088_s29 + $0xad] sm:$0xff] }
  0xbb   : > { %v3588_v27 = vld [vmem:[%s6088_s29 + $0x26] sm:$0xff]  ;;  %v3589_v12 = vld [vmem:[%s6088_s29 + $0x2e] sm:$0xff] }
  0xbc   : > { %5246 = vmatpush3.bf16.msra.mxu1 %v5941_v10  ;;  %v3195_v10 = vld [vmem:[%s6088_s29 + $0x7d] sm:$0xff] }
  0xbd   : > { %5247 = vmatprep.subr.bf16.mxu1 %v5943_v15  ;;  %v3225_v55 = vpack.c.bf16 %v3195_v10, %v3194_v5  ;;  %v3218_v5 = vld [vmem:[%s6088_s29 + $0x135] sm:$0xff]  ;;  %v3219_v10 = vld [vmem:[%s6088_s29 + $0x13d] sm:$0xff] }
  0xbe   : > { %v3237_v14 = vpack.c.bf16 %v3219_v10, %v3218_v5  ;;  %v3617_v5 = vld [vmem:[%s6088_s29 + $0x10e] sm:$0xff] }
  0xbf   : > { %5212 = vmatmul.mubr.bf16.gmra.mrb[4].mxu1 %v6459_v42 }
  0xc0   : > { %5440 = vmatmul.mubr.bf16.gmra.mrb[24].mxu0 %v6329_v57  ;;  %5215 = vmatprep.mubr.bf16.mxu1 %v6461_v16  ;;  %v5947_v57 = vld [vmem:[%s7112_s1 + $0xe0] sm:$0xff]  }
  0xc1   : > { %5443 = vmatprep.mubr.bf16.mxu0 %v6347_v7  ;;  %5248 = vmatpush3.bf16.msra.mxu1 %v5943_v15  ;;  %v5949_v7 = vld [vmem:[%s7112_s1 + $0xe8] sm:$0xff]   ;;  %v5955_v15 = vld [vmem:[%s7112_s1 + $0x220] sm:$0xff]  }
  0xc2   : > { %5249 = vmatprep.subr.bf16.mxu1 %v5945_v17 }
  0xc5   : > { %5250 = vmatpush3.bf16.msra.mxu1 %v5945_v17  ;;  %v6563_v17 = vpack.c.bf16 %v1191_v4, %v1190_v3  ;;  %v5962_v3 = vld [vmem:[%s7112_s1 + $0x118] sm:$0xff]  }
  0xc6   : > { %5251 = vmatprep.subr.bf16.mxu1 %v5947_v57 }
  0xc7   : > { %5216 = vmatmul.mubr.bf16.gmra.mrb[8].mxu1 %v6477_v22 }
  0xc8   : > { %5444 = vmatmul.mubr.bf16.gmra.mrb[28].mxu0 %v6349_v9  ;;  %5219 = vmatprep.mubr.bf16.mxu1 %v6479_v24  ;;  %v5951_v9 = vld [vmem:[%s7112_s1 + $0xf0] sm:$0xff]  }
  0xc9   : > { %5447 = vmatprep.mubr.bf16.mxu0 %v6365_v21  ;;  %5252 = vmatpush3.bf16.msra.mxu1 %v5947_v57  ;;  %v2833_v21 = vpack.c.bf16 %v2815_v30, %v2814_v29  ;;  %v1194_v57 = vld [vmem:[%s6088_s29 + $0xf2] sm:$0xff]  ;;  %v1196_v29 = vld [vmem:[%s6088_s29 + $0x102] sm:$0xff]  ;;  %v1197_v30 = vld [vmem:[%s6088_s29 + $0x10a] sm:$0xff] }
  0xca   : > { %5253 = vmatprep.subr.bf16.mxu1 %v5949_v7 }
  0xcd   : > { %5254 = vmatpush3.bf16.msra.mxu1 %v5949_v7  ;;  %v1195_v7 = vld [vmem:[%s6088_s29 + $0xfa] sm:$0xff] }
  0xce   : > { %5255 = vmatprep.subr.bf16.mxu1 %v5951_v9  ;;  %v6583_v37 = vpack.c.bf16 %v1195_v7, %v1194_v57  ;;  %v5966_v57 = vld [vmem:[%s7112_s1 + $0x138] sm:$0xff]  }
  0xcf   : > { %5220 = vmatmul.mubr.bf16.gmra.mrb[12].mxu1 %v6499_v33 }
  0xd0   : > { %5448 = vmatmul.mubr.bf16.gmra.mrb[32].mxu0 %v2833_v21  ;;  %5223 = vmatprep.mubr.bf16.mxu1 %v6501_v38  ;;  %v6585_v21 = vpack.c.bf16 %v1197_v30, %v1196_v29  ;;  %v3597_v29 = vld [vmem:[%s6088_s29 + $0x6e] sm:$0xff] }
  0xd1   : > { %5467 = vmatprep.mubr.bf16.mxu0 %v3220_v39  ;;  %5256 = vmatpush3.bf16.msra.mxu1 %v5951_v9  ;;  %v3227_v9 = vpack.c.bf16 %v3199_v28, %v3198_v26  ;;  %v3228_v39 = vpack.c.bf16 %v3201_v34, %v3200_v31  ;;  %v3595_v26 = vld [vmem:[%s6088_s29 + $0x5e] sm:$0xff]  ;;  %v3596_v28 = vld [vmem:[%s6088_s29 + $0x66] sm:$0xff] }
  0xd2   : > { %5257 = vmatprep.subr.bf16.mxu1 %v5953_v41  ;;  %v3628_v31 = vpack.c.bf16 %v3597_v29, %v3596_v28  ;;  %v3599_v34 = vld [vmem:[%s6088_s29 + $0x7e] sm:$0xff]  ;;  %v2003_v29 = vld [vmem:[%s6088_s29 + $0x10b] sm:$0xff] }
  0xd3   : > { %v2002_v28 = vld [vmem:[%s6088_s29 + $0x103] sm:$0xff] }
  0xd5   : > { %5258 = vmatpush3.bf16.msra.mxu1 %v5953_v41  ;;  %v5958_v41 = vld [vmem:[%s7112_s1 + $0x238] sm:$0xff]  }
  0xd6   : > { %5555 = vmatprep.subr.bf16.mxu1 %v6526_v53 }
  0xd7   : > { %5224 = vmatmul.mubr.bf16.gmra.mrb[16].mxu1 %v6516_v50 }
  0xd8   : > { %5468 = vmatmul.mubr.bf16.vlgmr.msra.gmra.mrb[0].mxu0 %v3221_v51  ;;  %5227 = vmatprep.mubr.bf16.mxu1 %v6518_v52  ;;  %v3230_v51 = vpack.c.bf16 %v3205_v23, %v3204_v47  ;;  %v3607_v47 = vld [vmem:[%s6088_s29 + $0xbe] sm:$0xff]  ;;  %v1988_v23 = vld [vmem:[%s6088_s29 + $0x93] sm:$0xff] }
  0xd9   : > { %5471 = vmatprep.mubr.bf16.mxu0 %v3222_v49  ;;  %5504 = vmatpush3.bf16.msra.mxu0 %v6431_v1  ;;  %v3224_v1 = vpack.c.bf16 %v3193_v60, %v3192_v11  ;;  %v3206_v49 = vld [vmem:[%s6088_s29 + $0xd5] sm:$0xff]  ;;  %v3212_v11 = vld [vmem:[%s6088_s29 + $0x105] sm:$0xff]  ;;  %v3213_v60 = vld [vmem:[%s6088_s29 + $0x10d] sm:$0xff] }
  0xda   : > { %5505 = vmatprep.subr.bf16.mxu0 %v5950_v61 }
  0xdd   : > { %5506 = vmatpush3.bf16.msra.mxu0 %v5950_v61  ;;  %v3207_v61 = vld [vmem:[%s6088_s29 + $0xdd] sm:$0xff] }
  0xde   : > { %5507 = vmatprep.subr.bf16.mxu0 %v5952_v62  ;;  %v3231_v56 = vpack.c.bf16 %v3207_v61, %v3206_v49  ;;  %v3609_v49 = vld [vmem:[%s6088_s29 + $0xce] sm:$0xff] }
  0xdf   : > { %5228 = vmatmul.mubr.bf16.gmra.mrb[20].mxu1 %v6543_v0 }
  0xe0   : > { %5472 = vmatmul.mubr.bf16.gmra.mrb[4].mxu0 %v3223_v2  ;;  %5231 = vmatprep.mubr.bf16.mxu1 %v6545_v13  ;;  %v3215_v2 = vld [vmem:[%s6088_s29 + $0x11d] sm:$0xff] }
  0xe1   : > { %5475 = vmatprep.mubr.bf16.mxu0 %v3224_v1  ;;  %5508 = vmatpush3.bf16.msra.mxu0 %v5952_v62  ;;  %v3234_v62 = vpack.c.bf16 %v3213_v60, %v3212_v11  ;;  %v3216_v1 = vld [vmem:[%s6088_s29 + $0x125] sm:$0xff]  ;;  %v3613_v60 = vld [vmem:[%s6088_s29 + $0xee] sm:$0xff] }
  0xe2   : > { %5509 = vmatprep.subr.bf16.mxu0 %v5954_v25  ;;  %v3612_v11 = vld [vmem:[%s6088_s29 + $0xe6] sm:$0xff] }
  0xe5   : > { %5510 = vmatpush3.bf16.msra.mxu0 %v5954_v25  ;;  %v3217_v25 = vld [vmem:[%s6088_s29 + $0x12d] sm:$0xff] }
  0xe6   : > { %5511 = vmatprep.subr.bf16.mxu0 %v5955_v15 }
  0xe7   : > { %5232 = vmatmul.mubr.bf16.gmra.mrb[24].mxu1 %v6563_v17 }
  0xe8   : > { %5476 = vmatmul.mubr.bf16.gmra.mrb[8].mxu0 %v3225_v55  ;;  %5235 = vmatprep.mubr.bf16.mxu1 %v6565_v18  ;;  %v3591_v55 = vld [vmem:[%s6088_s29 + $0x3e] sm:$0xff] }
  0xe9   : > { %5479 = vmatprep.mubr.bf16.mxu0 %v3226_v19  ;;  %5512 = vmatpush3.bf16.msra.mxu0 %v5955_v15  ;;  %v3590_v15 = vld [vmem:[%s6088_s29 + $0x36] sm:$0xff]  ;;  %v3592_v19 = vld [vmem:[%s6088_s29 + $0x46] sm:$0xff] }
  0xea   : > { %5513 = vmatprep.subr.bf16.mxu0 %v5956_v20  ;;  %v3625_v7 = vpack.c.bf16 %v3591_v55, %v3590_v15  ;;  %v3619_v15 = vld [vmem:[%s6088_s29 + $0x11e] sm:$0xff]  ;;  %v2000_v55 = vld [vmem:[%s6088_s29 + $0xf3] sm:$0xff] }
  0xed   : > { %5514 = vmatpush3.bf16.msra.mxu0 %v5956_v20  ;;  %v3593_v20 = vld [vmem:[%s6088_s29 + $0x4e] sm:$0xff] }
  0xee   : > { %5515 = vmatprep.subr.bf16.mxu0 %v5957_v36 }
  0xef   : > { %5236 = vmatmul.mubr.bf16.gmra.mrb[28].mxu1 %v6583_v37 }
  0xf0   : > { %5480 = vmatmul.mubr.bf16.gmra.mrb[12].mxu0 %v3227_v9  ;;  %5239 = vmatprep.mubr.bf16.mxu1 %v6585_v21 }
  0xf1   : > { %5483 = vmatprep.mubr.bf16.mxu0 %v3228_v39  ;;  %5516 = vmatpush3.bf16.msra.mxu0 %v5957_v36  ;;  %v3601_v36 = vld [vmem:[%s6088_s29 + $0x8e] sm:$0xff] }
  0xf2   : > { %5517 = vmatprep.subr.bf16.mxu0 %v5958_v41 }
  0xf5   : > { %5518 = vmatpush3.bf16.msra.mxu0 %v5958_v41  ;;  %v3604_v41 = vld [vmem:[%s6088_s29 + $0xa6] sm:$0xff] }
  0xf6   : > { %v3632_v35 = vpack.c.bf16 %v3605_v43, %v3604_v41 }
  0xf7   : > { %5240 = vmatmul.mubr.bf16.gmra.mrb[32].mxu1 %v6598_v46 }
  0xf8   : > { %5484 = vmatmul.mubr.bf16.gmra.mrb[16].mxu0 %v3229_v48  ;;  %5259 = vmatprep.mubr.bf16.mxu1 %v6440_v6  ;;  %v3211_v6 = vld [vmem:[%s6088_s29 + $0xfd] sm:$0xff] }
  0xf9   : > { %5487 = vmatprep.mubr.bf16.mxu0 %v3230_v51  ;;  %v1989_v48 = vld [vmem:[%s6088_s29 + $0x9b] sm:$0xff]  ;;  %v3608_v51 = vld [vmem:[%s6088_s29 + $0xc6] sm:$0xff] }
  0xfa   : > { %v3634_v54 = vpack.c.bf16 %v3609_v49, %v3608_v51 }
  0xff   : > { %5260 = vmatmul.mubr.bf16.vlgmr.msra.gmra.mrb[0].mxu1 %v6442_v8  ;;  %v3233_v8 = vpack.c.bf16 %v3211_v6, %v3210_v59  ;;  %v3611_v59 = vld [vmem:[%s6088_s29 + $0xde] sm:$0xff]  ;;  %v1992_v6 = vld [vmem:[%s6088_s29 + $0xb3] sm:$0xff] }
 0x100   : > { %5488 = vmatmul.mubr.bf16.gmra.mrb[20].mxu0 %v3231_v56  ;;  %5563 = vmatpush3.bf16.msra.mxu1 %v6526_v53  ;;  %v3214_v53 = vld [vmem:[%s6088_s29 + $0x115] sm:$0xff]  ;;  %v1991_v56 = vld [vmem:[%s6088_s29 + $0xab] sm:$0xff] }
 0x101   : > { %5263 = vmatprep.mubr.bf16.mxu1 %v6459_v42  ;;  %5491 = vmatprep.mubr.bf16.mxu0 %v3232_v58  ;;  %v5961_v42 = vld [vmem:[%s7112_s1 + $0x110] sm:$0xff]   ;;  %v3235_v4 = vpack.c.bf16 %v3215_v2, %v3214_v53  ;;  %v3636_v53 = vpack.c.bf16 %v3613_v60, %v3612_v11  ;;  %v1994_v2 = vld [vmem:[%s6088_s29 + $0xc3] sm:$0xff] }
 0x102   : > { %5556 = vmatprep.subr.bf16.mxu1 %v5960_v63  ;;  %v3610_v58 = vld [vmem:[%s6088_s29 + $0xd6] sm:$0xff] }
 0x104   : > { %5564 = vmatpush3.bf16.msra.mxu1 %v5960_v63  ;;  %v1993_v63 = vld [vmem:[%s6088_s29 + $0xbb] sm:$0xff] }
 0x105   : > { %5557 = vmatprep.subr.bf16.mxu1 %v5961_v42 }
 0x107   : > { %5264 = vmatmul.mubr.bf16.gmra.mrb[4].mxu1 %v6461_v16  ;;  %v3236_v16 = vpack.c.bf16 %v3217_v25, %v3216_v1  ;;  %v1995_v1 = vld [vmem:[%s6088_s29 + $0xcb] sm:$0xff]  ;;  %v3614_v25 = vld [vmem:[%s6088_s29 + $0xf6] sm:$0xff] }
 0x108   : > { %5492 = vmatmul.mubr.bf16.gmra.mrb[24].mxu0 %v3233_v8  ;;  %5267 = vmatprep.mubr.bf16.mxu1 %v6477_v22  ;;  %v5963_v22 = vld [vmem:[%s7112_s1 + $0x120] sm:$0xff]   ;;  %v2017_v8 = vpack.c.bf16 %v1991_v56, %v1990_v32  ;;  %v2019_v10 = vpack.c.bf16 %v1995_v1, %v1994_v2 }
 0x109   : > { %5495 = vmatprep.mubr.bf16.mxu0 %v3234_v62  ;;  %5565 = vmatpush3.bf16.msra.mxu1 %v5961_v42  ;;  %v3635_v62 = vpack.c.bf16 %v3611_v59, %v3610_v58  ;;  %v2018_v42 = vpack.c.bf16 %v1993_v63, %v1992_v6  ;;  %v6716_v56 = vld [vmem:[%s7113_s2] ss:$0 sm:$0xff] }
 0x10a   : > { %5558 = vmatprep.subr.bf16.mxu1 %v5962_v3 }
 0x10d   : > { %5566 = vmatpush3.bf16.msra.mxu1 %v5962_v3  ;;  %v3615_v3 = vld [vmem:[%s6088_s29 + $0xfe] sm:$0xff] }
 0x10e   : > { %5559 = vmatprep.subr.bf16.mxu1 %v5963_v22 }
 0x10f   : > { %5268 = vmatmul.mubr.bf16.gmra.mrb[8].mxu1 %v6479_v24  ;;  %v3624_v24 = vpack.c.bf16 %v3589_v12, %v3588_v27  ;;  %v3637_v27 = vpack.c.bf16 %v3615_v3, %v3614_v25 }
 0x110   : > { %5496 = vmatmul.mubr.bf16.gmra.mrb[28].mxu0 %v3235_v4  ;;  %5271 = vmatprep.mubr.bf16.mxu1 %v6499_v33  ;;  %v5965_v33 = vld [vmem:[%s7112_s1 + $0x130] sm:$0xff]  }
 0x111   : > { %5499 = vmatprep.mubr.bf16.mxu0 %v3236_v16  ;;  %5567 = vmatpush3.bf16.msra.mxu1 %v5963_v22  ;;  %v1996_v4 = vld [vmem:[%s6088_s29 + $0xd3] sm:$0xff]  ;;  %v1997_v16 = vld [vmem:[%s6088_s29 + $0xdb] sm:$0xff]  ;;  %v3616_v22 = vld [vmem:[%s6088_s29 + $0x106] sm:$0xff] }
 0x112   : > { %5560 = vmatprep.subr.bf16.mxu1 %v5964_v40  ;;  %v2020_v12 = vpack.c.bf16 %v1997_v16, %v1996_v4 }
 0x115   : > { %5568 = vmatpush3.bf16.msra.mxu1 %v5964_v40  ;;  %v3638_v40 = vpack.c.bf16 %v3617_v5, %v3616_v22 }
 0x116   : > { %5561 = vmatprep.subr.bf16.mxu1 %v5965_v33 }
 0x117   : > { %5272 = vmatmul.mubr.bf16.gmra.mrb[12].mxu1 %v6501_v38  ;;  %v3626_v38 = vpack.c.bf16 %v3593_v20, %v3592_v19  ;;  %v2001_v19 = vld [vmem:[%s6088_s29 + $0xfb] sm:$0xff]  ;;  %v3620_v20 = vld [vmem:[%s6088_s29 + $0x126] sm:$0xff] }
 0x118   : > { %5500 = vmatmul.mubr.bf16.gmra.mrb[32].mxu0 %v3237_v14  ;;  %5275 = vmatprep.mubr.bf16.mxu1 %v6516_v50  ;;  %v3594_v50 = vld [vmem:[%s6088_s29 + $0x56] sm:$0xff]  ;;  %v1998_v14 = vld [vmem:[%s6088_s29 + $0xe3] sm:$0xff] }
 0x119   : > { %5519 = vmatprep.mubr.bf16.mxu0 %v3624_v24  ;;  %5569 = vmatpush3.bf16.msra.mxu1 %v5965_v33  ;;  %v3627_v30 = vpack.c.bf16 %v3595_v26, %v3594_v50  ;;  %v1999_v24 = vld [vmem:[%s6088_s29 + $0xeb] sm:$0xff]  ;;  %v3618_v33 = vld [vmem:[%s6088_s29 + $0x116] sm:$0xff]  ;;  %v2022_v50 = vpack.c.bf16 %v2001_v19, %v2000_v55 }
 0x11a   : > { %5562 = vmatprep.subr.bf16.mxu1 %v5966_v57 }
 0x11d   : > { %5570 = vmatpush3.bf16.msra.mxu1 %v5966_v57  ;;  %v3621_v57 = vld [vmem:[%s6088_s29 + $0x12e] sm:$0xff] }
 0x11e   : > { %v3640_v26 = vpack.c.bf16 %v3621_v57, %v3620_v20 }
 0x11f   : > { %5276 = vmatmul.mubr.bf16.gmra.mrb[16].mxu1 %v6518_v52  ;;  %v3598_v52 = vld [vmem:[%s6088_s29 + $0x76] sm:$0xff] }
 0x120   : > { %5520 = vmatmul.mubr.bf16.vlgmr.msra.gmra.mrb[0].mxu0 %v3625_v7  ;;  %5279 = vmatprep.mubr.bf16.mxu1 %v6543_v0  ;;  %v3600_v0 = vld [vmem:[%s6088_s29 + $0x86] sm:$0xff]  ;;  %v3629_v9 = vpack.c.bf16 %v3599_v34, %v3598_v52  ;;  %v2021_v7 = vpack.c.bf16 %v1999_v24, %v1998_v14  ;;  %v2004_v52 = vld [vmem:[%s6088_s29 + $0x113] sm:$0xff]  ;;  %v2005_v34 = vld [vmem:[%s6088_s29 + $0x11b] sm:$0xff] }
 0x121   : > { %5523 = vmatprep.mubr.bf16.mxu0 %v3626_v38  ;;  %v3630_v39 = vpack.c.bf16 %v3601_v36, %v3600_v0  ;;  %v3639_v38 = vpack.c.bf16 %v3619_v15, %v3618_v33  ;;  %v2023_v0 = vpack.c.bf16 %v2003_v29, %v2002_v28 }
 0x127   : > { %5280 = vmatmul.mubr.bf16.gmra.mrb[20].mxu1 %v6545_v13  ;;  %v3602_v13 = vld [vmem:[%s6088_s29 + $0x96] sm:$0xff] }
 0x128   : > { %5524 = vmatmul.mubr.bf16.gmra.mrb[4].mxu0 %v3627_v30  ;;  %5283 = vmatprep.mubr.bf16.mxu1 %v6563_v17  ;;  %v3603_v17 = vld [vmem:[%s6088_s29 + $0x9e] sm:$0xff]  ;;  %v3622_v30 = vld [vmem:[%s6088_s29 + $0x136] sm:$0xff] }
 0x129   : > { %5527 = vmatprep.mubr.bf16.mxu0 %v3628_v31  ;;  %v3631_v44 = vpack.c.bf16 %v3603_v17, %v3602_v13  ;;  %v3623_v31 = vld [vmem:[%s6088_s29 + $0x13e] sm:$0xff]  ;;  %v2007_v13 = vld [vmem:[%s6088_s29 + $0x12b] sm:$0xff] }
 0x12a   : > { %v3641_v36 = vpack.c.bf16 %v3623_v31, %v3622_v30 }
 0x12f   : > { %5284 = vmatmul.mubr.bf16.gmra.mrb[24].mxu1 %v6565_v18  ;;  %v1602_v18 = vld [vmem:[%s6088_s29 + $0x122] sm:$0xff] }
 0x130   : > { %5528 = vmatmul.mubr.bf16.gmra.mrb[8].mxu0 %v3629_v9  ;;  %5287 = vmatprep.mubr.bf16.mxu1 %v6583_v37  ;;  %v3606_v37 = vld [vmem:[%s6088_s29 + $0xb6] sm:$0xff]  ;;  %v2024_v9 = vpack.c.bf16 %v2005_v34, %v2004_v52 }
 0x131   : > { %5531 = vmatprep.mubr.bf16.mxu0 %v3630_v39  ;;  %v3633_v61 = vpack.c.bf16 %v3607_v47, %v3606_v37  ;;  %v2006_v39 = vld [vmem:[%s6088_s29 + $0x123] sm:$0xff]  ;;  %s5860_s29 = smul.u32 288, %s6070_s13 }
 0x132   : > { %v2025_v17 = vpack.c.bf16 %v2007_v13, %v2006_v39 }
 0x133   : > { %s6721_s30 = scalar_lea.vmem %s7115_s4, %s5860_s29 }
 0x137   : > { %5288 = vmatmul.mubr.bf16.gmra.mrb[28].mxu1 %v6585_v21  ;;  %v1621_v21 = vpack.c.bf16 %v1603_v45, %v1602_v18 }
 0x138   : > { %5532 = vmatmul.mubr.bf16.gmra.mrb[12].mxu0 %v3631_v44  ;;  %5291 = vmatprep.mubr.bf16.mxu1 %v6598_v46  ;;  %v2016_v46 = vpack.c.bf16 %v1989_v48, %v1988_v23 }
 0x139   : > { %5535 = vmatprep.mubr.bf16.mxu0 %v3632_v35 }
 0x13f   : > { %5292 = vmatmul.mubr.bf16.gmra.mrb[32].mxu1 %v1621_v21 }
 0x140   : > { %5536 = vmatmul.mubr.bf16.gmra.mrb[16].mxu0 %v3633_v61  ;;  %5327 = vmatprep.mubr.bf16.mxu1 %v2016_v46 }
 0x141   : > { %5539 = vmatprep.mubr.bf16.mxu0 %v3634_v54 }
 0x147   : > { %5328 = vmatmul.mubr.bf16.vlgmr.msra.gmra.mrb[16].mxu1 %v2017_v8 }
 0x148   : > { %5540 = vmatmul.mubr.bf16.gmra.mrb[20].mxu0 %v3635_v62  ;;  %5331 = vmatprep.mubr.bf16.mxu1 %v2018_v42 }
 0x149   : > { %5543 = vmatprep.mubr.bf16.mxu0 %v3636_v53 }
 0x14f   : > { %5332 = vmatmul.mubr.bf16.gmra.mrb[20].mxu1 %v2019_v10 }
 0x150   : > { %5544 = vmatmul.mubr.bf16.gmra.mrb[24].mxu0 %v3637_v27  ;;  %5335 = vmatprep.mubr.bf16.mxu1 %v2020_v12 }
 0x151   : > { %5547 = vmatprep.mubr.bf16.mxu0 %v3638_v40 }
 0x157   : > { %5336 = vmatmul.mubr.bf16.gmra.mrb[24].mxu1 %v2021_v7 }
 0x158   : > { %5548 = vmatmul.mubr.bf16.gmra.mrb[28].mxu0 %v3639_v38  ;;  %5339 = vmatprep.mubr.bf16.mxu1 %v2022_v50 }
 0x159   : > { %5551 = vmatprep.mubr.bf16.mxu0 %v3640_v26 }
 0x15f   : > { %5340 = vmatmul.mubr.bf16.gmra.mrb[28].mxu1 %v2023_v0 }
 0x160   : > { %5552 = vmatmul.mubr.bf16.gmra.mrb[32].mxu0 %v3641_v36  ;;  %5343 = vmatprep.mubr.bf16.mxu1 %v2024_v9 }
 0x167   : > { %5344 = vmatmul.mubr.bf16.gmra.mrb[32].mxu1 %v2025_v17 }
 0x1d2   : > { %v5261_v41 = vpop.f32.mrb[0].mxu1 }
 0x1d3   : > { %v1757_v43 = vpop.f32.mrb[1].mxu1 }
 0x1d4   : > { %v5262_v44 = vpop.f32.mrb[2].mxu1 }
 0x1d5   : > { %v1760_v35 = vpop.f32.mrb[3].mxu1 }
 0x1da   : > { %v5265_v18 = vpop.f32.mrb[4].mxu1 }
 0x1db   : > { %v1773_v45 = vpop.f32.mrb[5].mxu1 }
 0x1dc   : > { %v5266_v37 = vpop.f32.mrb[6].mxu1 }
 0x1dd   : > { %v1776_v47 = vpop.f32.mrb[7].mxu1 }
 0x1e2   : > { %v5269_v23 = vpop.f32.mrb[8].mxu1 }
 0x1e3   : > { %v1789_v48 = vpop.f32.mrb[9].mxu1 }
 0x1e4   : > { %v5270_v51 = vpop.f32.mrb[10].mxu1 }
 0x1e5   : > { %v1792_v49 = vpop.f32.mrb[11].mxu1 }
 0x1ea   : > { %v5273_v21 = vpop.f32.mrb[12].mxu1 }
 0x1eb   : > { %v1805_v61 = vpop.f32.mrb[13].mxu1 }
 0x1ec   : > { %v5274_v46 = vpop.f32.mrb[14].mxu1 }
 0x1ed   : > { %v1808_v54 = vpop.f32.mrb[15].mxu1 }
 0x1f3   : > { %v5521_v32 = vpop.f32.mrb[0].mxu0 }
 0x1f4   : > { %v5571_v58 = vadd.f32 %v5521_v32, %v5261_v41  ;;  %v3777_v59 = vpop.f32.mrb[1].mxu0 }
 0x1f5   : > { %v5572_v6 = vadd.f32 %v3777_v59, %v1757_v43  ;;  %v5522_v63 = vpop.f32.mrb[2].mxu0 }
 0x1f6   : > { %v6724_v11 = vadd.f32 %v5571_v58, %v6716_v56  ;;  %v5573_v60 = vadd.f32 %v5522_v63, %v5262_v44  ;;  %v3780_v8 = vpop.f32.mrb[3].mxu0 }
 0x1f7   : > { %v6727_v62 = vadd.f32 %v5572_v6, %v6716_v56  ;;  %v5574_v42 = vadd.f32 %v3780_v8, %v1760_v35 }
 0x1f8   : > { %4073 = vst [vmem:[%s6721_s30 + $0x10] sm:$0xff] %v6724_v11  ;;  %v6732_v53 = vadd.f32 %v5573_v60, %v6716_v56 }
 0x1f9   : > { %4071 = vst [vmem:[%s6721_s30] sm:$0xff] %v6727_v62  ;;  %v6737_v2 = vadd.f32 %v5574_v42, %v6716_v56 }
 0x1fa   : > { %4074 = vst [vmem:[%s6721_s30 + $0x18] sm:$0xff] %v6732_v53 }
 0x1fb   : > { %4072 = vst [vmem:[%s6721_s30 + $0x8] sm:$0xff] %v6737_v2  ;;  %v5525_v1 = vpop.f32.mrb[4].mxu0 }
 0x1fc   : > { %v5575_v25 = vadd.f32 %v5525_v1, %v5265_v18  ;;  %v3793_v3 = vpop.f32.mrb[5].mxu0 }
 0x1fd   : > { %v5576_v4 = vadd.f32 %v3793_v3, %v1773_v45  ;;  %v5526_v16 = vpop.f32.mrb[6].mxu0 }
 0x1fe   : > { %v6744_v22 = vadd.f32 %v5575_v25, %v6716_v56  ;;  %v5577_v5 = vadd.f32 %v5526_v16, %v5266_v37  ;;  %v3796_v10 = vpop.f32.mrb[7].mxu0 }
 0x1ff   : > { %v6747_v27 = vadd.f32 %v5576_v4, %v6716_v56  ;;  %v5578_v12 = vadd.f32 %v3796_v10, %v1776_v47 }
 0x200   : > { %4077 = vst [vmem:[%s6721_s30 + $0x30] sm:$0xff] %v6744_v22  ;;  %v6752_v40 = vadd.f32 %v5577_v5, %v6716_v56 }
 0x201   : > { %4075 = vst [vmem:[%s6721_s30 + $0x20] sm:$0xff] %v6747_v27  ;;  %v6757_v14 = vadd.f32 %v5578_v12, %v6716_v56 }
 0x202   : > { %4078 = vst [vmem:[%s6721_s30 + $0x38] sm:$0xff] %v6752_v40 }
 0x203   : > { %4076 = vst [vmem:[%s6721_s30 + $0x28] sm:$0xff] %v6757_v14  ;;  %v5529_v24 = vpop.f32.mrb[8].mxu0 }
 0x204   : > { %v5579_v33 = vadd.f32 %v5529_v24, %v5269_v23  ;;  %v3809_v15 = vpop.f32.mrb[9].mxu0 }
 0x205   : > { %v5580_v55 = vadd.f32 %v3809_v15, %v1789_v48  ;;  %v5530_v19 = vpop.f32.mrb[10].mxu0 }
 0x206   : > { %v6764_v20 = vadd.f32 %v5579_v33, %v6716_v56  ;;  %v5581_v57 = vadd.f32 %v5530_v19, %v5270_v51  ;;  %v3812_v7 = vpop.f32.mrb[11].mxu0 }
 0x207   : > { %v6767_v38 = vadd.f32 %v5580_v55, %v6716_v56  ;;  %v5582_v50 = vadd.f32 %v3812_v7, %v1792_v49 }
 0x208   : > { %4081 = vst [vmem:[%s6721_s30 + $0x50] sm:$0xff] %v6764_v20  ;;  %v6772_v26 = vadd.f32 %v5581_v57, %v6716_v56 }
 0x209   : > { %4079 = vst [vmem:[%s6721_s30 + $0x40] sm:$0xff] %v6767_v38  ;;  %v6777_v28 = vadd.f32 %v5582_v50, %v6716_v56 }
 0x20a   : > { %4082 = vst [vmem:[%s6721_s30 + $0x58] sm:$0xff] %v6772_v26 }
 0x20b   : > { %4080 = vst [vmem:[%s6721_s30 + $0x48] sm:$0xff] %v6777_v28  ;;  %v5533_v29 = vpop.f32.mrb[12].mxu0 }
 0x20c   : > { %v5583_v30 = vadd.f32 %v5533_v29, %v5273_v21  ;;  %v3825_v31 = vpop.f32.mrb[13].mxu0 }
 0x20d   : > { %v5584_v52 = vadd.f32 %v3825_v31, %v1805_v61  ;;  %v5534_v34 = vpop.f32.mrb[14].mxu0 }
 0x20e   : > { %v6784_v0 = vadd.f32 %v5583_v30, %v6716_v56  ;;  %v5585_v36 = vadd.f32 %v5534_v34, %v5274_v46  ;;  %v3828_v9 = vpop.f32.mrb[15].mxu0 }
 0x20f   : > { %v6787_v39 = vadd.f32 %v5584_v52, %v6716_v56  ;;  %v5586_v13 = vadd.f32 %v3828_v9, %v1808_v54 }
 0x210   : > { %4085 = vst [vmem:[%s6721_s30 + $0x70] sm:$0xff] %v6784_v0  ;;  %v6792_v17 = vadd.f32 %v5585_v36, %v6716_v56 }
 0x211   : > { %4083 = vst [vmem:[%s6721_s30 + $0x60] sm:$0xff] %v6787_v39  ;;  %v6797_v41 = vadd.f32 %v5586_v13, %v6716_v56 }
 0x212   : > { %4086 = vst [vmem:[%s6721_s30 + $0x78] sm:$0xff] %v6792_v17 }
 0x213   : > { %4084 = vst [vmem:[%s6721_s30 + $0x68] sm:$0xff] %v6797_v41  ;;  %v5537_v43 = vpop.f32.mrb[16].mxu0 }
 0x214   : > { %v3841_v44 = vpop.f32.mrb[17].mxu0 }
 0x215   : > { %v5538_v35 = vpop.f32.mrb[18].mxu0 }
 0x216   : > { %v3844_v18 = vpop.f32.mrb[19].mxu0 }
 0x21a   : > { %v5329_v45 = vpop.f32.mrb[16].mxu1 }
 0x21b   : > { %v5587_v37 = vadd.f32 %v5537_v43, %v5329_v45  ;;  %v5541_v47 = vpop.f32.mrb[20].mxu0  ;;  %v2225_v23 = vpop.f32.mrb[17].mxu1 }
 0x21c   : > { %v5588_v48 = vadd.f32 %v3841_v44, %v2225_v23  ;;  %v3857_v51 = vpop.f32.mrb[21].mxu0  ;;  %v5330_v49 = vpop.f32.mrb[18].mxu1 }
 0x21d   : > { %v6804_v21 = vadd.f32 %v5587_v37, %v6716_v56  ;;  %v5589_v61 = vadd.f32 %v5538_v35, %v5330_v49  ;;  %v5542_v46 = vpop.f32.mrb[22].mxu0  ;;  %v2228_v54 = vpop.f32.mrb[19].mxu1 }
 0x21e   : > { %v6807_v32 = vadd.f32 %v5588_v48, %v6716_v56  ;;  %v5590_v58 = vadd.f32 %v3844_v18, %v2228_v54  ;;  %v3860_v59 = vpop.f32.mrb[23].mxu0 }
 0x21f   : > { %4089 = vst [vmem:[%s6721_s30 + $0x90] sm:$0xff] %v6804_v21  ;;  %v6812_v6 = vadd.f32 %v5589_v61, %v6716_v56 }
 0x220   : > { %4087 = vst [vmem:[%s6721_s30 + $0x80] sm:$0xff] %v6807_v32  ;;  %v6817_v63 = vadd.f32 %v5590_v58, %v6716_v56 }
 0x221   : > { %4090 = vst [vmem:[%s6721_s30 + $0x98] sm:$0xff] %v6812_v6 }
 0x222   : > { %4088 = vst [vmem:[%s6721_s30 + $0x88] sm:$0xff] %v6817_v63  ;;  %v5333_v60 = vpop.f32.mrb[20].mxu1 }
 0x223   : > { %v5591_v8 = vadd.f32 %v5541_v47, %v5333_v60  ;;  %v5545_v42 = vpop.f32.mrb[24].mxu0  ;;  %v2241_v1 = vpop.f32.mrb[21].mxu1 }
 0x224   : > { %v5592_v25 = vadd.f32 %v3857_v51, %v2241_v1  ;;  %v3873_v3 = vpop.f32.mrb[25].mxu0  ;;  %v5334_v4 = vpop.f32.mrb[22].mxu1 }
 0x225   : > { %v6824_v16 = vadd.f32 %v5591_v8, %v6716_v56  ;;  %v5593_v5 = vadd.f32 %v5542_v46, %v5334_v4  ;;  %v5546_v10 = vpop.f32.mrb[26].mxu0  ;;  %v2244_v12 = vpop.f32.mrb[23].mxu1 }
 0x226   : > { %v6827_v24 = vadd.f32 %v5592_v25, %v6716_v56  ;;  %v5594_v33 = vadd.f32 %v3860_v59, %v2244_v12  ;;  %v3876_v15 = vpop.f32.mrb[27].mxu0 }
 0x227   : > { %4093 = vst [vmem:[%s6721_s30 + $0xb0] sm:$0xff] %v6824_v16  ;;  %v6832_v55 = vadd.f32 %v5593_v5, %v6716_v56 }
 0x228   : > { %4091 = vst [vmem:[%s6721_s30 + $0xa0] sm:$0xff] %v6827_v24  ;;  %v6837_v19 = vadd.f32 %v5594_v33, %v6716_v56 }
 0x229   : > { %4094 = vst [vmem:[%s6721_s30 + $0xb8] sm:$0xff] %v6832_v55 }
 0x22a   : > { %4092 = vst [vmem:[%s6721_s30 + $0xa8] sm:$0xff] %v6837_v19  ;;  %v5337_v57 = vpop.f32.mrb[24].mxu1 }
 0x22b   : > { %v5595_v7 = vadd.f32 %v5545_v42, %v5337_v57  ;;  %v5549_v50 = vpop.f32.mrb[28].mxu0  ;;  %v2257_v29 = vpop.f32.mrb[25].mxu1 }
 0x22c   : > { %v5596_v30 = vadd.f32 %v3873_v3, %v2257_v29  ;;  %v3889_v31 = vpop.f32.mrb[29].mxu0  ;;  %v5338_v52 = vpop.f32.mrb[26].mxu1 }
 0x22d   : > { %v6844_v34 = vadd.f32 %v5595_v7, %v6716_v56  ;;  %v5597_v36 = vadd.f32 %v5546_v10, %v5338_v52  ;;  %v5550_v9 = vpop.f32.mrb[30].mxu0  ;;  %v2260_v13 = vpop.f32.mrb[27].mxu1 }
 0x22e   : > { %v6847_v43 = vadd.f32 %v5596_v30, %v6716_v56  ;;  %v5598_v44 = vadd.f32 %v3876_v15, %v2260_v13  ;;  %v3892_v35 = vpop.f32.mrb[31].mxu0 }
 0x22f   : > { %4097 = vst [vmem:[%s6721_s30 + $0xd0] sm:$0xff] %v6844_v34  ;;  %v6852_v18 = vadd.f32 %v5597_v36, %v6716_v56 }
 0x230   : > { %4095 = vst [vmem:[%s6721_s30 + $0xc0] sm:$0xff] %v6847_v43  ;;  %v6857_v45 = vadd.f32 %v5598_v44, %v6716_v56 }
 0x231   : > { %4098 = vst [vmem:[%s6721_s30 + $0xd8] sm:$0xff] %v6852_v18 }
 0x232   : > { %4096 = vst [vmem:[%s6721_s30 + $0xc8] sm:$0xff] %v6857_v45  ;;  %v5341_v37 = vpop.f32.mrb[28].mxu1 }
 0x233   : > { %v5599_v47 = vadd.f32 %v5549_v50, %v5341_v37  ;;  %v5553_v23 = vpop.f32.mrb[32].mxu0  ;;  %v2273_v48 = vpop.f32.mrb[29].mxu1 }
 0x234   : > { %v5600_v51 = vadd.f32 %v3889_v31, %v2273_v48  ;;  %v3905_v49 = vpop.f32.mrb[33].mxu0  ;;  %v5342_v61 = vpop.f32.mrb[30].mxu1  ;;  %v5993_v31 = vmov (!%p4848_p5), 0.0  }
 0x235   : > { %v6864_v46 = vadd.f32 %v5599_v47, %v6716_v56  ;;  %v5601_v54 = vadd.f32 %v5550_v9, %v5342_v61  ;;  %v5554_v58 = vpop.f32.mrb[34].mxu0  ;;  %v2276_v59 = vpop.f32.mrb[31].mxu1  ;;  %4111 = vst [vmem:[%s7116_s5] sm:$0x1] (!%p4848_p5), %v5993_v31  ;;  %4112 = vst [vmem:[%s7117_s6] sm:$0x1] (!%p4848_p5), %v5993_v31 }
 0x236   : > { %v6867_v60 = vadd.f32 %v5600_v51, %v6716_v56  ;;  %v5602_v8 = vadd.f32 %v3892_v35, %v2276_v59  ;;  %v3908_v42 = vpop.f32.mrb[35].mxu0 }
 0x237   : > { %4101 = vst [vmem:[%s6721_s30 + $0xf0] sm:$0xff] %v6864_v46  ;;  %v6872_v1 = vadd.f32 %v5601_v54, %v6716_v56 }
 0x238   : > { %4099 = vst [vmem:[%s6721_s30 + $0xe0] sm:$0xff] %v6867_v60  ;;  %v6877_v25 = vadd.f32 %v5602_v8, %v6716_v56 }
 0x239   : > { %4102 = vst [vmem:[%s6721_s30 + $0xf8] sm:$0xff] %v6872_v1 }
 0x23a   : > { %4100 = vst [vmem:[%s6721_s30 + $0xe8] sm:$0xff] %v6877_v25  ;;  %v5345_v3 = vpop.f32.mrb[32].mxu1 }
 0x23b   : > { %v5603_v4 = vadd.f32 %v5553_v23, %v5345_v3  ;;  %v2289_v5 = vpop.f32.mrb[33].mxu1 }
 0x23c   : > { %v5604_v10 = vadd.f32 %v3905_v49, %v2289_v5  ;;  %v5346_v12 = vpop.f32.mrb[34].mxu1  ;;  %4110 = sbr.rel (%p4848_p5) target bundleno = 579 (0x243), region = 40 }
 0x23d   : > { %v6884_v33 = vadd.f32 %v5603_v4, %v6716_v56  ;;  %v5605_v15 = vadd.f32 %v5554_v58, %v5346_v12  ;;  %v2292_v57 = vpop.f32.mrb[35].mxu1 }
 0x23e   : > { %v6887_v7 = vadd.f32 %v5604_v10, %v6716_v56  ;;  %v5606_v50 = vadd.f32 %v3908_v42, %v2292_v57 }
 0x23f   : > { %4105 = vst [vmem:[%s6721_s30 + $0x110] sm:$0xff] %v6884_v33  ;;  %v6892_v29 = vadd.f32 %v5605_v15, %v6716_v56 }
 0x240   : > { %4103 = vst [vmem:[%s6721_s30 + $0x100] sm:$0xff] %v6887_v7  ;;  %v6897_v30 = vadd.f32 %v5606_v50, %v6716_v56 }
 0x241   : > { %4106 = vst [vmem:[%s6721_s30 + $0x118] sm:$0xff] %v6892_v29 }
 0x242   : > { %4104 = vst [vmem:[%s6721_s30 + $0x108] sm:$0xff] %v6897_v30 }
 0x243 PF: > { %v4115_v56 = vld [vmem:[%s7114_s3 + $0x10] sm:$0xff]  ;;  %v4113_v52 = vld [vmem:[%s7114_s3] sm:$0xff]  ;;  %v5994_v36 = vmov 0   ;;  %v4116_v9 = vld [vmem:[%s7114_s3 + $0x18] sm:$0xff] }
 0x244   : > { %5968 = vset.pattern.permute.xlu1 %v5994_v36  ;;  %5967 = vset.pattern.permute.xlu0 %v5994_v36  ;;  %v4114_v13 = vld [vmem:[%s7114_s3 + $0x8] sm:$0xff]  ;;  %v4117_v35 = vld [vmem:[%s7114_s3 + $0x20] sm:$0xff]  ;;  %v4120_v37 = vld [vmem:[%s7114_s3 + $0x38] sm:$0xff] }
 0x245   : > { %4161 = vperm.xlu1 %5968, %v4115_v56   ;;  %4151 = vperm.xlu0 %5967, %v4113_v52   ;;  %v4118_v44 = vld [vmem:[%s7114_s3 + $0x28] sm:$0xff]  ;;  %v4119_v47 = vld [vmem:[%s7114_s3 + $0x30] sm:$0xff]  ;;  %v4121_v48 = vld [vmem:[%s7114_s3 + $0x40] sm:$0xff] }
 0x246   : > { %v4122_v23 = vld [vmem:[%s7114_s3 + $0x48] sm:$0xff]  ;;  %v4124_v51 = vld [vmem:[%s7114_s3 + $0x58] sm:$0xff]  ;;  %v4123_v49 = vld [vmem:[%s7114_s3 + $0x50] sm:$0xff] }
 0x247   : > { %v4126_v61 = vld [vmem:[%s7114_s3 + $0x68] sm:$0xff]  ;;  %v4125_v54 = vld [vmem:[%s7114_s3 + $0x60] sm:$0xff]  ;;  %v4128_v58 = vld [vmem:[%s7114_s3 + $0x78] sm:$0xff] }
 0x248   : > { %v4127_v59 = vld [vmem:[%s7114_s3 + $0x70] sm:$0xff]  ;;  %v4130_v8 = vld [vmem:[%s7114_s3 + $0x88] sm:$0xff]  ;;  %v4129_v42 = vld [vmem:[%s7114_s3 + $0x80] sm:$0xff] }
 0x249   : > { %4166 = vperm.xlu1 %5968, %v4116_v9   ;;  %4156 = vperm.xlu0 %5967, %v4114_v13   ;;  %v4132_v3 = vld [vmem:[%s7114_s3 + $0x98] sm:$0xff]  ;;  %v4131_v4 = vld [vmem:[%s7114_s3 + $0x90] sm:$0xff]  ;;  %v4134_v5 = vld [vmem:[%s7114_s3 + $0xa8] sm:$0xff] }
 0x24a   : > { %v4133_v10 = vld [vmem:[%s7114_s3 + $0xa0] sm:$0xff]  ;;  %v4136_v12 = vld [vmem:[%s7114_s3 + $0xb8] sm:$0xff]  ;;  %v4135_v15 = vld [vmem:[%s7114_s3 + $0xb0] sm:$0xff] }
 0x24b   : > { %v4138_v57 = vld [vmem:[%s7114_s3 + $0xc8] sm:$0xff]  ;;  %v4137_v50 = vld [vmem:[%s7114_s3 + $0xc0] sm:$0xff]  ;;  %v4140_v31 = vld [vmem:[%s7114_s3 + $0xd8] sm:$0xff] }
 0x24c   : > { %v4139_v56 = vld [vmem:[%s7114_s3 + $0xd0] sm:$0xff]  ;;  %v4142_v52 = vld [vmem:[%s7114_s3 + $0xe8] sm:$0xff]  ;;  %v4141_v36 = vld [vmem:[%s7114_s3 + $0xe0] sm:$0xff] }
 0x24d   : > { %4176 = vperm.xlu1 %5968, %v4118_v44   ;;  %4171 = vperm.xlu0 %5967, %v4117_v35   ;;  %v4144_v9 = vld [vmem:[%s7114_s3 + $0xf8] sm:$0xff]  ;;  %v4143_v13 = vld [vmem:[%s7114_s3 + $0xf0] sm:$0xff]  ;;  %v4146_v44 = vld [vmem:[%s7114_s3 + $0x108] sm:$0xff] }
 0x24e   : > { %v4145_v35 = vld [vmem:[%s7114_s3 + $0x100] sm:$0xff] }
 0x251   : > { %4186 = vperm.xlu1 %5968, %v4120_v37   ;;  %4181 = vperm.xlu0 %5967, %v4119_v47   ;;  %v4148_v37 = vld [vmem:[%s7114_s3 + $0x118] sm:$0xff]  ;;  %v4147_v47 = vld [vmem:[%s7114_s3 + $0x110] sm:$0xff] }
 0x255   : > { %4196 = vperm.xlu1 %5968, %v4122_v23   ;;  %4191 = vperm.xlu0 %5967, %v4121_v48  }
 0x259   : > { %4206 = vperm.xlu1 %5968, %v4124_v51   ;;  %4201 = vperm.xlu0 %5967, %v4123_v49  }
 0x25d   : > { %4216 = vperm.xlu1 %5968, %v4126_v61   ;;  %4211 = vperm.xlu0 %5967, %v4125_v54  }
 0x261   : > { %4226 = vperm.xlu1 %5968, %v4128_v58   ;;  %4221 = vperm.xlu0 %5967, %v4127_v59  }
 0x265   : > { %4236 = vperm.xlu1 %5968, %v4130_v8   ;;  %4231 = vperm.xlu0 %5967, %v4129_v42  }
 0x269   : > { %4246 = vperm.xlu1 %5968, %v4132_v3   ;;  %4241 = vperm.xlu0 %5967, %v4131_v4  }
 0x26d   : > { %4256 = vperm.xlu1 %5968, %v4134_v5   ;;  %4251 = vperm.xlu0 %5967, %v4133_v10  }
 0x271   : > { %4266 = vperm.xlu1 %5968, %v4136_v12   ;;  %4261 = vperm.xlu0 %5967, %v4135_v15  }
 0x275   : > { %4276 = vperm.xlu1 %5968, %v4138_v57   ;;  %4271 = vperm.xlu0 %5967, %v4137_v50  }
 0x279   : > { %4286 = vperm.xlu1 %5968, %v4140_v31   ;;  %4281 = vperm.xlu0 %5967, %v4139_v56  }
 0x27d   : > { %4296 = vperm.xlu1 %5968, %v4142_v52   ;;  %4291 = vperm.xlu0 %5967, %v4141_v36  }
 0x281   : > { %4306 = vperm.xlu1 %5968, %v4144_v9   ;;  %4301 = vperm.xlu0 %5967, %v4143_v13  }
 0x285   : > { %4316 = vperm.xlu1 %5968, %v4146_v44   ;;  %4311 = vperm.xlu0 %5967, %v4145_v35  }
 0x289   : > { %4326 = vperm.xlu1 %5968, %v4148_v37   ;;  %4321 = vperm.xlu0 %5967, %v4147_v47  }
 0x2c4   : > { %v4162_v23 = vpop.permute.xlu1 %4161  ;;  %v4152_v48 = vpop.permute.xlu0 %4151 }
 0x2c5   : > { %v4329_v51 = vmul.f32 %v4152_v48, %v6727_v62  ;;  %v4331_v54 = vmul.f32 %v4162_v23, %v6724_v11 }
 0x2c7   : > { %v4410_v59 = vmul.f32 %v4329_v51, %v6727_v62  ;;  %v4412_v10 = vmul.f32 %v4331_v54, %v6724_v11 }
 0x2c8   : > { %v4167_v49 = vpop.permute.xlu1 %4166  ;;  %v4157_v61 = vpop.permute.xlu0 %4156 }
 0x2c9   : > { %v4330_v58 = vmul.f32 %v4157_v61, %v6737_v2  ;;  %v4332_v8 = vmul.f32 %v4167_v49, %v6732_v53 }
 0x2cb   : > { %v4366_v42 = vadd.f32 %v4330_v58, %v4329_v51  ;;  %v4411_v3 = vmul.f32 %v4330_v58, %v6737_v2  ;;  %v4413_v50 = vmul.f32 %v4332_v8, %v6732_v53 }
 0x2cc   : > { %v4177_v4 = vpop.permute.xlu1 %4176  ;;  %v4172_v5 = vpop.permute.xlu0 %4171 }
 0x2cd   : > { %v4367_v12 = vadd.f32 %v4366_v42, %v4331_v54  ;;  %v4446_v15 = vadd.f32 %v4411_v3, %v4410_v59  ;;  %v4333_v57 = vmul.f32 %v4172_v5, %v6747_v27  ;;  %v4334_v56 = vmul.f32 %v4177_v4, %v6757_v14 }
 0x2cf   : > { %v4447_v31 = vadd.f32 %v4446_v15, %v4412_v10  ;;  %v4368_v52 = vadd.f32 %v4367_v12, %v4332_v8  ;;  %v4414_v2 = vmul.f32 %v4333_v57, %v6747_v27  ;;  %v4415_v11 = vmul.f32 %v4334_v56, %v6757_v14 }
 0x2d0   : > { %v4187_v62 = vpop.permute.xlu1 %4186  ;;  %v4182_v36 = vpop.permute.xlu0 %4181 }
 0x2d1   : > { %v4448_v9 = vadd.f32 %v4447_v31, %v4413_v50  ;;  %v4369_v13 = vadd.f32 %v4368_v52, %v4333_v57  ;;  %v4335_v44 = vmul.f32 %v4182_v36, %v6744_v22  ;;  %v4336_v37 = vmul.f32 %v4187_v62, %v6752_v40 }
 0x2d3   : > { %v4449_v35 = vadd.f32 %v4448_v9, %v4414_v2  ;;  %v4370_v47 = vadd.f32 %v4369_v13, %v4334_v56  ;;  %v4416_v49 = vmul.f32 %v4335_v44, %v6744_v22  ;;  %v4417_v54 = vmul.f32 %v4336_v37, %v6752_v40 }
 0x2d4   : > { %v4197_v23 = vpop.permute.xlu1 %4196  ;;  %v4192_v53 = vpop.permute.xlu0 %4191 }
 0x2d5   : > { %v4450_v48 = vadd.f32 %v4449_v35, %v4415_v11  ;;  %v4371_v51 = vadd.f32 %v4370_v47, %v4335_v44  ;;  %v4337_v61 = vmul.f32 %v4192_v53, %v6767_v38  ;;  %v4338_v27 = vmul.f32 %v4197_v23, %v6777_v28 }
 0x2d7   : > { %v4451_v58 = vadd.f32 %v4450_v48, %v4416_v49  ;;  %v4372_v59 = vadd.f32 %v4371_v51, %v4336_v37  ;;  %v4418_v4 = vmul.f32 %v4337_v61, %v6767_v38  ;;  %v4419_v10 = vmul.f32 %v4338_v27, %v6777_v28 }
 0x2d8   : > { %v4207_v8 = vpop.permute.xlu1 %4206  ;;  %v4202_v14 = vpop.permute.xlu0 %4201 }
 0x2d9   : > { %v4452_v42 = vadd.f32 %v4451_v58, %v4417_v54  ;;  %v4373_v3 = vadd.f32 %v4372_v59, %v4337_v61  ;;  %v4339_v5 = vmul.f32 %v4202_v14, %v6764_v20  ;;  %v4340_v22 = vmul.f32 %v4207_v8, %v6772_v26 }
 0x2db   : > { %v4453_v12 = vadd.f32 %v4452_v42, %v4418_v4  ;;  %v4374_v15 = vadd.f32 %v4373_v3, %v4338_v27  ;;  %v4420_v56 = vmul.f32 %v4339_v5, %v6764_v20  ;;  %v4421_v62 = vmul.f32 %v4340_v22, %v6772_v26 }
 0x2dc   : > { %v4217_v57 = vpop.permute.xlu1 %4216  ;;  %v4212_v40 = vpop.permute.xlu0 %4211 }
 0x2dd   : > { %v4454_v50 = vadd.f32 %v4453_v12, %v4419_v10  ;;  %v4375_v31 = vadd.f32 %v4374_v15, %v4339_v5  ;;  %v4341_v52 = vmul.f32 %v4212_v40, %v6787_v39  ;;  %v4342_v38 = vmul.f32 %v4217_v57, %v6797_v41 }
 0x2df   : > { %v4455_v36 = vadd.f32 %v4454_v50, %v4420_v56  ;;  %v4376_v9 = vadd.f32 %v4375_v31, %v4340_v22  ;;  %v4422_v11 = vmul.f32 %v4341_v52, %v6787_v39  ;;  %v4423_v37 = vmul.f32 %v4342_v38, %v6797_v41 }
 0x2e0   : > { %v4227_v13 = vpop.permute.xlu1 %4226  ;;  %v4222_v28 = vpop.permute.xlu0 %4221 }
 0x2e1   : > { %v4456_v2 = vadd.f32 %v4455_v36, %v4421_v62  ;;  %v4377_v44 = vadd.f32 %v4376_v9, %v4341_v52  ;;  %v4343_v35 = vmul.f32 %v4222_v28, %v6784_v0  ;;  %v4344_v20 = vmul.f32 %v4227_v13, %v6792_v17 }
 0x2e3   : > { %v4457_v47 = vadd.f32 %v4456_v2, %v4422_v11  ;;  %v4378_v23 = vadd.f32 %v4377_v44, %v4342_v38  ;;  %v4424_v49 = vmul.f32 %v4343_v35, %v6784_v0  ;;  %v4425_v54 = vmul.f32 %v4344_v20, %v6792_v17 }
 0x2e4   : > { %v4237_v53 = vpop.permute.xlu1 %4236  ;;  %v4232_v26 = vpop.permute.xlu0 %4231 }
 0x2e5   : > { %v4458_v48 = vadd.f32 %v4457_v47, %v4423_v37  ;;  %v4379_v51 = vadd.f32 %v4378_v23, %v4343_v35  ;;  %v4345_v61 = vmul.f32 %v4232_v26, %v6807_v32  ;;  %v4346_v39 = vmul.f32 %v4237_v53, %v6817_v63 }
 0x2e7   : > { %v4459_v58 = vadd.f32 %v4458_v48, %v4424_v49  ;;  %v4380_v27 = vadd.f32 %v4379_v51, %v4344_v20  ;;  %v4426_v42 = vmul.f32 %v4345_v61, %v6807_v32  ;;  %v4427_v4 = vmul.f32 %v4346_v39, %v6817_v63 }
 0x2e8   : > { %v4247_v59 = vpop.permute.xlu1 %4246  ;;  %v4242_v41 = vpop.permute.xlu0 %4241 }
 0x2e9   : > { %v4460_v8 = vadd.f32 %v4459_v58, %v4425_v54  ;;  %v4381_v14 = vadd.f32 %v4380_v27, %v4345_v61  ;;  %v4347_v3 = vmul.f32 %v4242_v41, %v6804_v21  ;;  %v4348_v0 = vmul.f32 %v4247_v59, %v6812_v6 }
 0x2eb   : > { %v4461_v5 = vadd.f32 %v4460_v8, %v4426_v42  ;;  %v4382_v10 = vadd.f32 %v4381_v14, %v4346_v39  ;;  %v4428_v57 = vmul.f32 %v4347_v3, %v6804_v21  ;;  %v4429_v50 = vmul.f32 %v4348_v0, %v6812_v6 }
 0x2ec   : > { %v4257_v12 = vpop.permute.xlu1 %4256  ;;  %v4252_v17 = vpop.permute.xlu0 %4251 }
 0x2ed   : > { %v4462_v22 = vadd.f32 %v4461_v5, %v4427_v4  ;;  %v4383_v15 = vadd.f32 %v4382_v10, %v4347_v3  ;;  %v4349_v40 = vmul.f32 %v4252_v17, %v6827_v24  ;;  %v4350_v32 = vmul.f32 %v4257_v12, %v6837_v19 }
 0x2ef   : > { %v4463_v31 = vadd.f32 %v4462_v22, %v4428_v57  ;;  %v4384_v56 = vadd.f32 %v4383_v15, %v4348_v0  ;;  %v4430_v38 = vmul.f32 %v4349_v40, %v6827_v24  ;;  %v4431_v13 = vmul.f32 %v4350_v32, %v6837_v19 }
 0x2f0   : > { %v4267_v52 = vpop.permute.xlu1 %4266  ;;  %v4262_v63 = vpop.permute.xlu0 %4261 }
 0x2f1   : > { %v4464_v62 = vadd.f32 %v4463_v31, %v4429_v50  ;;  %v4385_v36 = vadd.f32 %v4384_v56, %v4349_v40  ;;  %v4351_v9 = vmul.f32 %v4262_v63, %v6824_v16  ;;  %v4352_v21 = vmul.f32 %v4267_v52, %v6832_v55 }
 0x2f3   : > { %v4465_v28 = vadd.f32 %v4464_v62, %v4430_v38  ;;  %v4386_v2 = vadd.f32 %v4385_v36, %v4350_v32  ;;  %v4432_v37 = vmul.f32 %v4351_v9, %v6824_v16  ;;  %v4433_v20 = vmul.f32 %v4352_v21, %v6832_v55 }
 0x2f4   : > { %v4277_v44 = vpop.permute.xlu1 %4276  ;;  %v4272_v6 = vpop.permute.xlu0 %4271 }
 0x2f5   : > { %v4466_v11 = vadd.f32 %v4465_v28, %v4431_v13  ;;  %v4387_v35 = vadd.f32 %v4386_v2, %v4351_v9  ;;  %v4353_v47 = vmul.f32 %v4272_v6, %v6847_v43  ;;  %v4354_v24 = vmul.f32 %v4277_v44, %v6857_v45 }
 0x2f7   : > { %v4467_v23 = vadd.f32 %v4466_v11, %v4432_v37  ;;  %v4388_v53 = vadd.f32 %v4387_v35, %v4352_v21  ;;  %v4434_v49 = vmul.f32 %v4353_v47, %v6847_v43  ;;  %v4435_v54 = vmul.f32 %v4354_v24, %v6857_v45 }
 0x2f8   : > { %v4287_v26 = vpop.permute.xlu1 %4286  ;;  %v4282_v19 = vpop.permute.xlu0 %4281 }
 0x2f9   : > { %v4468_v48 = vadd.f32 %v4467_v23, %v4433_v20  ;;  %v4389_v51 = vadd.f32 %v4388_v53, %v4353_v47  ;;  %v4355_v61 = vmul.f32 %v4282_v19, %v6844_v34  ;;  %v4356_v16 = vmul.f32 %v4287_v26, %v6852_v18 }
 0x2fb   : > { %v4469_v58 = vadd.f32 %v4468_v48, %v4434_v49  ;;  %v4390_v39 = vadd.f32 %v4389_v51, %v4354_v24  ;;  %v4436_v8 = vmul.f32 %v4355_v61, %v6844_v34  ;;  %v4437_v42 = vmul.f32 %v4356_v16, %v6852_v18  ;;  %v4365_v49 = vld [vmem:[%s7116_s5] sm:$0x1] }
 0x2fc   : > { %v4297_v27 = vpop.permute.xlu1 %4296  ;;  %v4292_v55 = vpop.permute.xlu0 %4291 }
 0x2fd   : > { %v4470_v59 = vadd.f32 %v4469_v58, %v4435_v54  ;;  %v4391_v41 = vadd.f32 %v4390_v39, %v4355_v61  ;;  %v4357_v14 = vmul.f32 %v4292_v55, %v6867_v60  ;;  %v4358_v43 = vmul.f32 %v4297_v27, %v6877_v25 }
 0x2ff   : > { %v4471_v3 = vadd.f32 %v4470_v59, %v4436_v8  ;;  %v4392_v4 = vadd.f32 %v4391_v41, %v4356_v16  ;;  %v4438_v12 = vmul.f32 %v4357_v14, %v6867_v60  ;;  %v4439_v22 = vmul.f32 %v4358_v43, %v6877_v25 }
 0x300   : > { %v4307_v5 = vpop.permute.xlu1 %4306  ;;  %v4302_v45 = vpop.permute.xlu0 %4301 }
 0x301   : > { %v4472_v0 = vadd.f32 %v4471_v3, %v4437_v42  ;;  %v4393_v10 = vadd.f32 %v4392_v4, %v4357_v14  ;;  %v4359_v17 = vmul.f32 %v4302_v45, %v6864_v46  ;;  %v4360_v34 = vmul.f32 %v4307_v5, %v6872_v1 }
 0x303   : > { %v4473_v15 = vadd.f32 %v4472_v0, %v4438_v12  ;;  %v4394_v57 = vadd.f32 %v4393_v10, %v4358_v43  ;;  %v4440_v32 = vmul.f32 %v4359_v17, %v6864_v46  ;;  %v4441_v52 = vmul.f32 %v4360_v34, %v6872_v1 }
 0x304   : > { %v4317_v40 = vpop.permute.xlu1 %4316  ;;  %v4312_v18 = vpop.permute.xlu0 %4311 }
 0x305   : > { %v4474_v50 = vadd.f32 %v4473_v15, %v4439_v22  ;;  %v4395_v31 = vadd.f32 %v4394_v57, %v4359_v17  ;;  %v4361_v56 = vmul.f32 %v4312_v18, %v6887_v7  ;;  %v4362_v60 = vmul.f32 %v4317_v40, %v6897_v30 }
 0x307   : > { %v4475_v63 = vadd.f32 %v4474_v50, %v4440_v32  ;;  %v4396_v62 = vadd.f32 %v4395_v31, %v4360_v34  ;;  %v4442_v13 = vmul.f32 %v4361_v56, %v6887_v7  ;;  %v4443_v21 = vmul.f32 %v4362_v60, %v6897_v30 }
 0x308   : > { %v4327_v36 = vpop.permute.xlu1 %4326  ;;  %v4322_v25 = vpop.permute.xlu0 %4321 }
 0x309   : > { %v4476_v38 = vadd.f32 %v4475_v63, %v4441_v52  ;;  %v4397_v9 = vadd.f32 %v4396_v62, %v4361_v56  ;;  %v4363_v28 = vmul.f32 %v4322_v25, %v6884_v33  ;;  %v4364_v46 = vmul.f32 %v4327_v36, %v6892_v29 }
 0x30b   : > { %v4477_v2 = vadd.f32 %v4476_v38, %v4442_v13  ;;  %v4398_v44 = vadd.f32 %v4397_v9, %v4362_v60  ;;  %v4444_v11 = vmul.f32 %v4363_v28, %v6884_v33  ;;  %v4445_v35 = vmul.f32 %v4364_v46, %v6892_v29  ;;  %v4409_v29 = vld [vmem:[%s7117_s6] sm:$0x1] }
 0x30d   : > { %v4478_v6 = vadd.f32 %v4477_v2, %v4443_v21  ;;  %v4399_v1 = vadd.f32 %v4398_v44, %v4363_v28 }
 0x30f   : > { %v4400_v37 = vadd.f32 %v4399_v1, %v4364_v46  ;;  %v4479_v47 = vadd.f32 %v4478_v6, %v4444_v11 }
 0x311   : > { %v4401_v20 = vrot.slane %v4400_v37, 4  ;;  %v4480_v23 = vadd.f32 %v4479_v47, %v4445_v35 }
 0x313   : > { %v4402_v24 = vadd.f32 %v4401_v20, %v4400_v37  ;;  %v4481_v7 = vrot.slane %v4480_v23, 4 }
 0x315   : > { %v4403_v53 = vrot.slane %v4402_v24, 2  ;;  %v4482_v26 = vadd.f32 %v4481_v7, %v4480_v23 }
 0x317   : > { %v4404_v19 = vadd.f32 %v4403_v53, %v4402_v24  ;;  %v4483_v30 = vrot.slane %v4482_v26, 2 }
 0x319   : > { %v4405_v48 = vrot.slane %v4404_v19, 1  ;;  %v4484_v51 = vadd.f32 %v4483_v30, %v4482_v26 }
 0x31b   : > { %v4406_v61 = vadd.f32 %v4405_v48, %v4404_v19  ;;  %v4485_v33 = vrot.slane %v4484_v51, 1 }
 0x31d   : > { %v4407_v54 = vadd.f32 %v4406_v61, %v4365_v49  ;;  %v4486_v58 = vadd.f32 %v4485_v33, %v4484_v51 }
 0x31f   : > { %4408 = vst [vmem:[%s7116_s5] sm:$0x1] %v4407_v54  ;;  %v4487_v16 = vadd.f32 %v4486_v58, %v4409_v29 }
 0x321   : > { %4488 = vst [vmem:[%s7117_s6] sm:$0x1] %v4487_v16 }
 0x322 PF: > { %s17_s23 = sadd.s32 1, %s5991_s23   ;;  %s7118_s21 = smov %s5987_s22 }
 0x323   : > { %p14_p6 = scmp.ge.s32.totalorder %s17_s23, 4   ;;  %s7119_s22 = smov %s7121_s24 }
 0x325   :  { %16 = sbr.rel (!%p14_p6) target bundleno = 2 (0x2), region = 108 }

</bundles_post_ra>
